<compile_context>
chip_gen: v6e
topology: v6e:2x2x1
jax: 0.10.0
libtpu: 0.0.40
codegen_flags: <defaults>
</compile_context>

<pallas_src>
from functools import partial

import jax
import jax.numpy as jnp
from jax.experimental import pallas as pl
from jax.experimental.pallas import tpu as pltpu

DEFAULT_COLOR = (0.8, 0.1, 0.8)          # self.default_color in the PyTorch module
_TWO_PI = 6.283185307179586


# ---------------------------------------------------------------------------
# Fused render kernel: one-hot bf16 MXU gather + composite + clamp.
# ---------------------------------------------------------------------------
def _render_kernel(bg_ref, tex_ref, iy_ref, ix_ref, mask_ref, img_ref, fg_ref,
                   *, h, clamp):
    w = tex_ref.shape[1]
    pblk = iy_ref.shape[1]

    iy = iy_ref[...]                                             # (1, P_blk) int32
    ix = ix_ref[...]                                             # (1, P_blk) int32
    mask = mask_ref[...]                                         # (1, P_blk) f32

    # bf16 one-hot column selector (W, P_blk): the UV gather becomes ONE MXU
    # matmul covering all 3 channels (channel-stacked (3H, W) LHS).
    onehot_x = (jax.lax.broadcasted_iota(jnp.int32, (w, pblk), 0) == ix)
    onehot_x = onehot_x.astype(jnp.float32).astype(jnp.bfloat16)  # (W, P_blk)

    tex_bf = tex_ref[...].astype(jnp.bfloat16)                    # (3H, W)
    cols = jnp.dot(tex_bf, onehot_x,
                   preferred_element_type=jnp.float32)            # (3H, P_blk) f32

    # y-selection: masked sublane reduce per 128-row channel slice, assembled
    # into one lane-dense (3, P_blk) value (single full-ref store below).
    eq_y = (jax.lax.broadcasted_iota(jnp.int32, (h, pblk), 0) == iy)   # (H, P_blk)
    feat = jnp.concatenate(
        [jnp.sum(jnp.where(eq_y, cols[c * h:(c + 1) * h, :], 0.0),
                 axis=0, keepdims=True)
         for c in range(3)],
        axis=0)                                                   # (3, P_blk)

    fg = feat * mask                                              # zero outside silhouette
    img = bg_ref[...] * (1.0 - mask) + fg                         # (3,1)x(1,P) broadcast
    if clamp:                                                     # static Python bool
        img = jnp.clip(img, 0.0, 1.0)
        fg = jnp.clip(fg, 0.0, 1.0)
    img_ref[...] = img
    fg_ref[...] = fg


def _raster_composite(texture, iy, ix, mask, bg_col, *, clamp):
    c, h, w = texture.shape
    p = iy.shape[1]
    pblk = 2048 if (p > 2048 and p % 2048 == 0) else p
    nblk = p // pblk
    tex_stack = texture.reshape(c * h, w)                         # view, no copy

    blk_px = lambda i: (0, i)
    const0 = lambda i: (0, 0)
    return pl.pallas_call(
        partial(_render_kernel, h=h, clamp=clamp),
        grid=(nblk,),
        in_specs=[
            pl.BlockSpec((3, 1), const0),            # background color (3,1)
            pl.BlockSpec((c * h, w), const0),        # channel-stacked texture
            pl.BlockSpec((1, pblk), blk_px),         # iy
            pl.BlockSpec((1, pblk), blk_px),         # ix
            pl.BlockSpec((1, pblk), blk_px),         # mask
        ],
        out_specs=(pl.BlockSpec((3, pblk), blk_px),
                   pl.BlockSpec((3, pblk), blk_px)),
        out_shape=(jax.ShapeDtypeStruct((3, p), jnp.float32),
                   jax.ShapeDtypeStruct((3, p), jnp.float32)),
        compiler_params=pltpu.CompilerParams(
            dimension_semantics=("parallel",)),
    )(bg_col, tex_stack, iy, ix, mask)


# ---------------------------------------------------------------------------
# Synthetic rasterizer stand-in + jitted render pipeline (XLA glue).
# ---------------------------------------------------------------------------
def _synthetic_uv(theta, phi, radius, r, h, w):
    # TODO(synk): kaolin rasterization (render_single_view_texture) has no Pallas
    # equivalent; deterministic synthetic screen->UV coordinates stand in for it.
    ys = (jnp.arange(r, dtype=jnp.float32) + 0.5) / r
    xs = (jnp.arange(r, dtype=jnp.float32) + 0.5) / r
    gy, gx = jnp.meshgrid(ys, xs, indexing="ij")
    u = (gx + 0.13 * jnp.sin(theta + _TWO_PI * gy)) % 1.0
    v = (gy + 0.13 * jnp.cos(phi + _TWO_PI * gx)) % 1.0
    ix = jnp.clip((u * w).astype(jnp.int32), 0, w - 1)
    iy = jnp.clip((v * h).astype(jnp.int32), 0, h - 1)
    mask2d = (((gx - 0.5) ** 2 + (gy - 0.5) ** 2)
              < (0.45 / radius) ** 2).astype(jnp.float32)
    return iy, ix, mask2d


@partial(jax.jit, static_argnames=("use_median", "clamp", "augment", "grid_r"))
def _render_impl(texture, basis, vertices, coeffs, theta, phi, radius,
                 background, mesh_scale, dy, *, use_median, clamp, augment,
                 grid_r):
    c, h, w = texture.shape

    if use_median:
        # change_default_to_median: masked per-channel mean + fill.  One XLA
        # fusion inside this jit; the filled texture must hit HBM anyway
        # because it is returned as `texture_map`.
        default = jnp.array(DEFAULT_COLOR, jnp.float32).reshape(3, 1, 1)
        diff = jnp.sum(jnp.abs(texture - default), axis=0)             # (H, W)
        keep = (diff >= 0.1).astype(jnp.float32)
        cnt = jnp.maximum(jnp.sum(keep), 1.0)                          # empty-guard
        median = jnp.sum(texture * keep[None], axis=(1, 2)) / cnt      # (3,)
        texture = jnp.where((diff < 0.1)[None], median[:, None, None], texture)

    if augment:
        # spectral_augmentations + normalize_vertices: (20,V)/(3,V) math is
        # <1us of VPU work, so it lives in XLA instead of its own pallas_call.
        recon = coeffs @ basis                                          # (V,)
        vnorm = jnp.sqrt(jnp.sum(vertices * vertices, axis=0, keepdims=True))
        directions = vertices / jnp.maximum(vnorm, 1e-12)
        deformed = vertices + 0.25 * recon[None, :] * directions
        centered = deformed - jnp.mean(deformed, axis=1, keepdims=True)
        norms = jnp.sqrt(jnp.sum(centered * centered, axis=0))
        verts = centered * (mesh_scale / jnp.maximum(jnp.max(norms), 1e-12))
        verts = verts.at[1].add(dy)
    else:
        verts = vertices

    r = grid_r
    iy, ix, mask2d = _synthetic_uv(theta, phi, radius, r, h, w)
    p = r * r

    img_flat, fg_flat = _raster_composite(
        texture, iy.reshape(1, p), ix.reshape(1, p), mask2d.reshape(1, p),
        background.reshape(3, 1).astype(jnp.float32), clamp=clamp)

    image = img_flat.reshape(1, 3, r, r)
    foreground = fg_flat.reshape(1, 3, r, r)
    mask = mask2d.reshape(1, 1, r, r)
    pred_back = (jnp.ones((1, 3, r, r), jnp.float32)
                 * background.reshape(1, 3, 1, 1))
    return image, foreground, mask, pred_back, texture, verts


# ---------------------------------------------------------------------------
# Model wrapper (parameter setup + glue)
# ---------------------------------------------------------------------------
class TexturedMeshModelPallas:
    def __init__(self, texture_resolution=128, render_grid_size=64,
                 num_vertices=256, n_eigen_values=20, env_faces=64,
                 mesh_scale=1.0, dy=0.25):
        key = jax.random.PRNGKey(0)
        k1, k2, k3, k4, k5 = jax.random.split(key, 5)
        self.texture_resolution = texture_resolution
        self.render_grid_size = render_grid_size
        self.mesh_scale = mesh_scale
        self.dy = dy
        self.n_eigen_values = n_eigen_values
        self.num_features = 3

        # init_paint(): modulated background sphere colors (1, F, 3, num_features)
        bases = jax.random.uniform(k1, (1, 3), jnp.float32)
        self.background_sphere_colors = (
            bases[:, None, None, :] * 0.8
            + 0.2 * jax.random.normal(
                k2, (1, env_faces, 3, self.num_features), jnp.float32))

        # texture_img (1, 3, H, W); deterministic stand-in for Image.open(initial_texture)
        self.texture_img = jax.random.uniform(
            k3, (1, 3, texture_resolution, texture_resolution), jnp.float32)
        self.meta_texture_img = jnp.zeros_like(self.texture_img)

        # mesh vertices, stored (3, V)
        self.vertices = jax.random.normal(k4, (3, num_vertices), jnp.float32)

        # TODO(synk): cotan-Laplacian + scipy.sparse eigsh (eigen_problem) has no
        # Pallas/TPU equivalent; a deterministic synthetic spectral basis is used.
        raw_basis = jax.random.normal(
            k5, (n_eigen_values, num_vertices), jnp.float32)
        rng = (jnp.max(raw_basis, axis=-1, keepdims=True)
               - jnp.min(raw_basis, axis=-1, keepdims=True))
        self.basis_functions = raw_basis / jnp.where(rng == 0.0, 1.0, rng)

        # TODO(synk): choose_multi_modal + torch.rand sign flips use host RNG;
        # a deterministic coefficient vector stands in for them.
        coeffs = jnp.zeros((n_eigen_values,), jnp.float32)
        self._coeffs = coeffs.at[3].set(1.0).at[n_eigen_values // 2 + 3].set(-1.0)

    def render(self, theta, phi, radius, background, use_meta_texture=False,
               use_median=False, augmentations=True):
        texture = (self.meta_texture_img if use_meta_texture
                   else self.texture_img)[0]                     # (3, H, W)
        image, foreground, mask, pred_back, texture_out, verts = _render_impl(
            texture, self.basis_functions, self.vertices, self._coeffs,
            theta, phi, radius, background, self.mesh_scale, self.dy,
            use_median=use_median, clamp=not use_meta_texture,
            augment=augmentations, grid_r=self.render_grid_size)
        return {
            "image": image,
            "mask": mask,
            "background": pred_back,
            "foreground": foreground,
            "texture_map": texture_out[None],
            "augmented_vertices": verts,
        }


if __name__ == "__main__":
    model = TexturedMeshModelPallas(texture_resolution=128, render_grid_size=64,
                                    num_vertices=256, n_eigen_values=20,
                                    env_faces=64, mesh_scale=1.0, dy=0.25)
    background = jnp.array([0.2, 0.3, 0.4], dtype=jnp.float32)
    out = model.render(theta=0.3, phi=1.1, radius=1.5, background=background,
                       use_meta_texture=False, use_median=True, augmentations=True)
    jax.block_until_ready(out["image"])
    jax.block_until_ready(out["foreground"])
    jax.block_until_ready(out["augmented_vertices"])

    assert out["image"].shape == (1, 3, 64, 64)
    assert out["foreground"].shape == (1, 3, 64, 64)
    assert out["mask"].shape == (1, 1, 64, 64)
    assert out["texture_map"].shape == (1, 3, 128, 128)
    assert out["augmented_vertices"].shape == (3, 256)
    assert bool(jnp.isfinite(out["image"]).all())
    assert bool(jnp.isfinite(out["foreground"]).all())
    assert bool(jnp.isfinite(out["augmented_vertices"]).all())

    # Reference check: XLA gather vs the Pallas one-hot-matmul gather
    # (mean-error threshold tolerates bf16 texel rounding and rare 1-ulp
    # index flips at texel boundaries).
    tex = out["texture_map"][0]
    iy, ix, mask2d = _synthetic_uv(0.3, 1.1, 1.5, 64, 128, 128)
    feat_ref = tex[:, iy, ix] * mask2d[None]
    img_ref = jnp.clip(
        background.reshape(3, 1, 1) * (1.0 - mask2d[None]) + feat_ref, 0.0, 1.0)
    mean_err = float(jnp.mean(jnp.abs(img_ref - out["image"][0])))
    assert mean_err < 5e-3, mean_err

    # Second variant: meta-texture path (no clamp, no median, no augmentation).
    out2 = model.render(theta=0.9, phi=0.2, radius=1.2, background=background,
                        use_meta_texture=True, use_median=False,
                        augmentations=False)
    jax.block_until_ready(out2["image"])
    assert out2["image"].shape == (1, 3, 64, 64)
    assert bool(jnp.isfinite(out2["image"]).all())

    print("KERNEL_OK")
</pallas_src>

<mosaic_0001>
module attributes {stable_mosaic.version = 11 : i64} {
  func.func @_render_kernel(%arg0: i32, %arg1: memref<3x1xf32, #tpu.memory_space<vmem>>, %arg2: memref<384x128xf32, #tpu.memory_space<vmem>>, %arg3: memref<1x2048xi32, #tpu.memory_space<vmem>>, %arg4: memref<1x2048xi32, #tpu.memory_space<vmem>>, %arg5: memref<1x2048xf32, #tpu.memory_space<vmem>>, %arg6: memref<3x2048xf32, #tpu.memory_space<vmem>>, %arg7: memref<3x2048xf32, #tpu.memory_space<vmem>>) attributes {dimension_semantics = [#tpu.dimension_semantics<parallel>], iteration_bounds = array<i64: 2>, scalar_prefetch = 0 : i64, scratch_operands = 0 : i64, tpu.core_type = #tpu.core_type<tc>, window_params = [{pipeline_mode = #tpu.pipeline_mode<synchronous>, transform_indices = @transform_0, window_bounds = array<i64: 3, 1>}, {pipeline_mode = #tpu.pipeline_mode<synchronous>, transform_indices = @transform_1, window_bounds = array<i64: 384, 128>}, {transform_indices = @transform_2, window_bounds = array<i64: 1, 2048>}, {transform_indices = @transform_3, window_bounds = array<i64: 1, 2048>}, {transform_indices = @transform_4, window_bounds = array<i64: 1, 2048>}, {transform_indices = @transform_5, window_bounds = array<i64: 3, 2048>}, {transform_indices = @transform_6, window_bounds = array<i64: 3, 2048>}]} {
    %c0 = arith.constant 0 : index
    %c0_0 = arith.constant 0 : index
    %0 = vector.load %arg3[%c0, %c0_0] : memref<1x2048xi32, #tpu.memory_space<vmem>>, vector<1x2048xi32>
    %c0_1 = arith.constant 0 : index
    %c0_2 = arith.constant 0 : index
    %1 = vector.load %arg4[%c0_1, %c0_2] : memref<1x2048xi32, #tpu.memory_space<vmem>>, vector<1x2048xi32>
    %c0_3 = arith.constant 0 : index
    %c0_4 = arith.constant 0 : index
    %2 = vector.load %arg5[%c0_3, %c0_4] : memref<1x2048xf32, #tpu.memory_space<vmem>>, vector<1x2048xf32>
    %3 = tpu.iota {dimensions = array<i32: 0>} : vector<128x2048xi32>
    %4 = vector.broadcast %1 : vector<1x2048xi32> to vector<128x2048xi32>
    %5 = arith.cmpi eq, %3, %4 : vector<128x2048xi32>
    %6 = arith.extui %5 : vector<128x2048xi1> to vector<128x2048xi32>
    %7 = arith.sitofp %6 : vector<128x2048xi32> to vector<128x2048xf32>
    %8 = arith.truncf %7 : vector<128x2048xf32> to vector<128x2048xbf16>
    %c0_5 = arith.constant 0 : index
    %c0_6 = arith.constant 0 : index
    %9 = vector.load %arg2[%c0_5, %c0_6] : memref<384x128xf32, #tpu.memory_space<vmem>>, vector<384x128xf32>
    %10 = arith.truncf %9 : vector<384x128xf32> to vector<384x128xbf16>
    %cst = arith.constant dense<0.000000e+00> : vector<384x2048xf32>
    %11 = tpu.matmul %10, %8, %cst {dimension_numbers = #tpu.dot_dimension_numbers<[1], [0], [0], [1], [0, 0, 1, 1], [], []>} : vector<384x128xbf16>, vector<128x2048xbf16>, vector<384x2048xf32> -> vector<384x2048xf32>
    %12 = tpu.iota {dimensions = array<i32: 0>} : vector<128x2048xi32>
    %13 = vector.broadcast %0 : vector<1x2048xi32> to vector<128x2048xi32>
    %14 = arith.cmpi eq, %12, %13 : vector<128x2048xi32>
    %15 = vector.extract_strided_slice %11 {offsets = [0, 0], sizes = [128, 2048], strides = [1, 1]} : vector<384x2048xf32> to vector<128x2048xf32>
    %cst_7 = arith.constant 0.000000e+00 : f32
    %16 = vector.broadcast %cst_7 : f32 to vector<128x2048xf32>
    %17 = arith.select %14, %15, %16 : vector<128x2048xi1>, vector<128x2048xf32>
    %cst_8 = arith.constant dense<0.000000e+00> : vector<2048xf32>
    %18 = vector.multi_reduction <add>, %17, %cst_8 [0] : vector<128x2048xf32> to vector<2048xf32>
    %19 = vector.shape_cast %18 : vector<2048xf32> to vector<1x2048xf32>
    %20 = vector.extract_strided_slice %11 {offsets = [128, 0], sizes = [128, 2048], strides = [1, 1]} : vector<384x2048xf32> to vector<128x2048xf32>
    %cst_9 = arith.constant 0.000000e+00 : f32
    %21 = vector.broadcast %cst_9 : f32 to vector<128x2048xf32>
    %22 = arith.select %14, %20, %21 : vector<128x2048xi1>, vector<128x2048xf32>
    %cst_10 = arith.constant dense<0.000000e+00> : vector<2048xf32>
    %23 = vector.multi_reduction <add>, %22, %cst_10 [0] : vector<128x2048xf32> to vector<2048xf32>
    %24 = vector.shape_cast %23 : vector<2048xf32> to vector<1x2048xf32>
    %25 = vector.extract_strided_slice %11 {offsets = [256, 0], sizes = [128, 2048], strides = [1, 1]} : vector<384x2048xf32> to vector<128x2048xf32>
    %cst_11 = arith.constant 0.000000e+00 : f32
    %26 = vector.broadcast %cst_11 : f32 to vector<128x2048xf32>
    %27 = arith.select %14, %25, %26 : vector<128x2048xi1>, vector<128x2048xf32>
    %cst_12 = arith.constant dense<0.000000e+00> : vector<2048xf32>
    %28 = vector.multi_reduction <add>, %27, %cst_12 [0] : vector<128x2048xf32> to vector<2048xf32>
    %29 = vector.shape_cast %28 : vector<2048xf32> to vector<1x2048xf32>
    %30 = tpu.concatenate %19, %24, %29 in 0 : vector<1x2048xf32>, vector<1x2048xf32>, vector<1x2048xf32> -> vector<3x2048xf32>
    %31 = vector.broadcast %2 : vector<1x2048xf32> to vector<3x2048xf32>
    %32 = arith.mulf %30, %31 : vector<3x2048xf32>
    %c0_13 = arith.constant 0 : index
    %c0_14 = arith.constant 0 : index
    %33 = vector.load %arg1[%c0_13, %c0_14] : memref<3x1xf32, #tpu.memory_space<vmem>>, vector<3x1xf32>
    %cst_15 = arith.constant 1.000000e+00 : f32
    %34 = vector.broadcast %cst_15 : f32 to vector<1x2048xf32>
    %35 = arith.subf %34, %2 : vector<1x2048xf32>
    %36 = vector.broadcast %33 : vector<3x1xf32> to vector<3x2048xf32>
    %37 = vector.broadcast %35 : vector<1x2048xf32> to vector<3x2048xf32>
    %38 = arith.mulf %36, %37 : vector<3x2048xf32>
    %39 = arith.addf %38, %32 : vector<3x2048xf32>
    %cst_16 = arith.constant 0.000000e+00 : f32
    %cst_17 = arith.constant 1.000000e+00 : f32
    %40 = vector.broadcast %cst_16 : f32 to vector<3x2048xf32>
    %41 = arith.maximumf %40, %39 : vector<3x2048xf32>
    %42 = vector.broadcast %cst_17 : f32 to vector<3x2048xf32>
    %43 = arith.minimumf %42, %41 : vector<3x2048xf32>
    %cst_18 = arith.constant 0.000000e+00 : f32
    %cst_19 = arith.constant 1.000000e+00 : f32
    %44 = vector.broadcast %cst_18 : f32 to vector<3x2048xf32>
    %45 = arith.maximumf %44, %32 : vector<3x2048xf32>
    %46 = vector.broadcast %cst_19 : f32 to vector<3x2048xf32>
    %47 = arith.minimumf %46, %45 : vector<3x2048xf32>
    %c0_20 = arith.constant 0 : index
    %c0_21 = arith.constant 0 : index
    %48 = vector.load %arg6[%c0_20, %c0_21] : memref<3x2048xf32, #tpu.memory_space<vmem>>, vector<3x2048xf32>
    tpu.vector_store %arg6[%c0_20, %c0_21], %43 {strides = array<i32>} : memref<3x2048xf32, #tpu.memory_space<vmem>>, vector<3x2048xf32>,
    %c0_22 = arith.constant 0 : index
    %c0_23 = arith.constant 0 : index
    %49 = vector.load %arg7[%c0_22, %c0_23] : memref<3x2048xf32, #tpu.memory_space<vmem>>, vector<3x2048xf32>
    tpu.vector_store %arg7[%c0_22, %c0_23], %47 {strides = array<i32>} : memref<3x2048xf32, #tpu.memory_space<vmem>>, vector<3x2048xf32>,
    return
  }
  func.func @transform_0(%arg0: i32) -> (i32, i32) {
    %c0_i32 = arith.constant 0 : i32
    %c0_i32_0 = arith.constant 0 : i32
    %c0_i32_1 = arith.constant 0 : i32
    return %c0_i32, %c0_i32_0 : i32, i32
  }
  func.func @transform_1(%arg0: i32) -> (i32, i32) {
    %c0_i32 = arith.constant 0 : i32
    %c0_i32_0 = arith.constant 0 : i32
    %c0_i32_1 = arith.constant 0 : i32
    return %c0_i32, %c0_i32_0 : i32, i32
  }
  func.func @transform_2(%arg0: i32) -> (i32, i32) {
    %c0_i32 = arith.constant 0 : i32
    %c0_i32_0 = arith.constant 0 : i32
    return %c0_i32, %arg0 : i32, i32
  }
  func.func @transform_3(%arg0: i32) -> (i32, i32) {
    %c0_i32 = arith.constant 0 : i32
    %c0_i32_0 = arith.constant 0 : i32
    return %c0_i32, %arg0 : i32, i32
  }
  func.func @transform_4(%arg0: i32) -> (i32, i32) {
    %c0_i32 = arith.constant 0 : i32
    %c0_i32_0 = arith.constant 0 : i32
    return %c0_i32, %arg0 : i32, i32
  }
  func.func @transform_5(%arg0: i32) -> (i32, i32) {
    %c0_i32 = arith.constant 0 : i32
    %c0_i32_0 = arith.constant 0 : i32
    return %c0_i32, %arg0 : i32, i32
  }
  func.func @transform_6(%arg0: i32) -> (i32, i32) {
    %c0_i32 = arith.constant 0 : i32
    %c0_i32_0 = arith.constant 0 : i32
    return %c0_i32, %arg0 : i32, i32
  }
}

</mosaic_0001>

<bundles_post_ra>
// kernel: mul.45
= control target key start
LH: loop header
LB: loop body
LE: loop exit
PB: predicated region body
PF: predicated region fallthrough
CT: control target
= control target key end

     0   :  { %s117_s0 = inlined_call_operand.vmem [shape: f32[3], index: 0, kind: input, shape index: {}]   ;;  %s118_s1 = inlined_call_operand.hbm [shape: f32[1,3,64,64], index: 1, kind: output, shape index: {}]  }
   0x1   :  { %v5_v0 = vld [vmem:[%s117_s0] ss:$0 sm:$0xff] }
   0x2   :  { %2 = vsyncpa [#allocation1], 0  ;;  %6 = vbcast.lane.b32.xlu0 %v5_v0, 0  ;;  %15 = vbcast.lane.b32.xlu1 %v5_v0, 2  ;;  %s98_s0 = smov [#allocation0]  }
   0x3   :  { %s64_s8 = sshll.u32 %s98_s0, 4  ;;  %s65_s8 = int_to_ptr.vmem [resolvable:$true] %s64_s8 }
   0x4   :  { %s76_s9 = scalar_lea.vmem %s65_s8, 3072  ;;  %p81_p1 = scmp.lt.s32.totalorder %s65_s8, %s65_s8 }
   0x5   :  { %p77_p0 = scmp.ne.s32.totalorder %s65_s8, %s76_s9  ;;  %p82_p2 = scmp.lt.s32.totalorder %s76_s9, %s76_s9 }
   0x6   :  { %10 = vbcast.lane.b32.xlu0 %v5_v0, 1 }
   0x7   :  { %p83_p3 = por %p82_p2, %p81_p1 }
   0x9   :  { %p84_p4 = pnand %p83_p3, %p77_p0 }
  0x74   :  { %v7_v1 = vpop.permute.xlu0 %6  ;;  %v16_v2 = vpop.permute.xlu1 %15 }
  0x75   :  { %8 = vst [vmem:[#allocation0] sm:$0xff] %v7_v1  ;;  %20 = vst [vmem:[#allocation0 + $0x8] sm:$0xff] %v7_v1 }
  0x76   :  { %26 = vst [vmem:[#allocation0 + $0x10] sm:$0xff] %v7_v1  ;;  %32 = vst [vmem:[#allocation0 + $0x18] sm:$0xff] %v7_v1 }
  0x77   :  { %38 = vst [vmem:[#allocation0 + $0x20] sm:$0xff] %v7_v1  ;;  %44 = vst [vmem:[#allocation0 + $0x28] sm:$0xff] %v7_v1 }
  0x78   :  { %50 = vst [vmem:[#allocation0 + $0x30] sm:$0xff] %v7_v1  ;;  %56 = vst [vmem:[#allocation0 + $0x38] sm:$0xff] %v7_v1  ;;  %v11_v3 = vpop.permute.xlu0 %10 }
  0x79   :  { %18 = vst [vmem:[#allocation0 + $0x80] sm:$0xff] %v16_v2  ;;  %24 = vst [vmem:[#allocation0 + $0x88] sm:$0xff] %v16_v2 }
  0x7a   :  { %30 = vst [vmem:[#allocation0 + $0x90] sm:$0xff] %v16_v2  ;;  %36 = vst [vmem:[#allocation0 + $0x98] sm:$0xff] %v16_v2 }
  0x7b   :  { %42 = vst [vmem:[#allocation0 + $0xa0] sm:$0xff] %v16_v2  ;;  %48 = vst [vmem:[#allocation0 + $0xa8] sm:$0xff] %v16_v2 }
  0x7c   :  { %54 = vst [vmem:[#allocation0 + $0xb0] sm:$0xff] %v16_v2  ;;  %60 = vst [vmem:[#allocation0 + $0xb8] sm:$0xff] %v16_v2 }
  0x7d   :  { %13 = vst [vmem:[#allocation0 + $0x40] sm:$0xff] %v11_v3  ;;  %22 = vst [vmem:[#allocation0 + $0x48] sm:$0xff] %v11_v3 }
  0x7e   :  { %28 = vst [vmem:[#allocation0 + $0x50] sm:$0xff] %v11_v3  ;;  %34 = vst [vmem:[#allocation0 + $0x58] sm:$0xff] %v11_v3 }
  0x7f   :  { %40 = vst [vmem:[#allocation0 + $0x60] sm:$0xff] %v11_v3  ;;  %46 = vst [vmem:[#allocation0 + $0x68] sm:$0xff] %v11_v3 }
  0x80   :  { %52 = vst [vmem:[#allocation0 + $0x70] sm:$0xff] %v11_v3  ;;  %58 = vst [vmem:[#allocation0 + $0x78] sm:$0xff] %v11_v3 }
  0x81   :  { %87 = shalt.err (!%p84_p4)
}
  0x82   :  { %s99_s10 = smov 128   ;;  %s100_s11 = smov 8  }
  0x83   :  { %70 = dma.vmem_to_hbm [thread:$0]  %s65_s8, 3072, %s118_s1, [#allocation1], %s99_s10, %s99_s10, %s100_s11  }
  0x84   :  { %96 = dma.done.wait [#allocation1], 3072  }
  0x85   :  { %97 = vsyncadd [#allocation1], 4294964224 }
  0x86   :  { %72 = vsyncpa [#allocation1], 1 }

// kernel: _render_impl.1
= control target key start
LH: loop header
LB: loop body
LE: loop exit
PB: predicated region body
PF: predicated region fallthrough
CT: control target
= control target key end

     0   :  { %s6730_s21 = smov 0   ;;  %s12319_s0 = inlined_call_operand.vmem [shape: f32[3,1], index: 0, kind: input, shape index: {}]   ;;  %s12320_s1 = inlined_call_operand.vmem [shape: f32[384,128], index: 1, kind: input, shape index: {}]   ;;  %s12321_s2 = inlined_call_operand.vmem [shape: s32[1,4096], index: 2, kind: input, shape index: {}]   ;;  %s12322_s3 = inlined_call_operand.vmem [shape: s32[1,4096], index: 3, kind: input, shape index: {}]   ;;  %s12323_s4 = inlined_call_operand.vmem [shape: f32[1,4096], index: 4, kind: input, shape index: {}]   ;;  %s12324_s5 = inlined_call_operand.vmem [shape: f32[3,4096], index: 5, kind: output, shape index: {0}]   ;;  %s12325_s6 = inlined_call_operand.vmem [shape: f32[3,4096], index: 6, kind: output, shape index: {1}]  }
   0x1 LB: > { %s6143_s22 = sadd.s32 4294967295, %s6691_s21   ;;  %p6147_p0 = scmp.ge.s32.totalorder %s6691_s21, 1  ;;  %s6691_s21 = sphi %s6730_s21, %s17_s21  }
   0x2   : > { %p235_p1 = scmp.lt.s32.totalorder %s6691_s21, 3 }
   0x4   : > { %p236_p2 = pnand %p6147_p0, %p235_p1 }
   0x6   : > { %239 = sbr.rel (%p236_p2) target bundleno = 1077 (0x435), region = 40 }
   0xb   : > { %s6148_s23 = sshll.u32 %s6143_s22, 4  ;;  %v311_v0 = vlaneseq  ;;  %v12326_v1 = vmov 0   ;;  %v12330_v16 = vmov 1.0|1.0   ;;  %v1288_v34 = vld [vmem:[%s12320_s1] sm:$0xff]  ;;  %v1289_v35 = vld [vmem:[%s12320_s1 + $0x8] sm:$0xff] }
   0xc   : > { %p278_p3 = scmp.lt.s32.totalorder %s6148_s23, 31  ;;  %1392 = vmatprep.mubr.bf16.mxu0 %v12326_v1  ;;  %1665 = vmatprep.mubr.bf16.mxu1 %v12326_v1  ;;  %v7041_v38 = vpack.c.bf16 %v1289_v35, %v1288_v34  ;;  %v1290_v39 = vld [vmem:[%s12320_s1 + $0x10] sm:$0xff]  ;;  %v1291_v40 = vld [vmem:[%s12320_s1 + $0x18] sm:$0xff]  ;;  %v1292_v42 = vld [vmem:[%s12320_s1 + $0x20] sm:$0xff] }
   0xd   : > { %v6740_v2 = vshrl.u32 %v311_v0, 7  ;;  %6679 = vset.pattern.permute.xlu0 %v12326_v1  ;;  %v7104_v41 = vpack.c.bf16 %v1291_v40, %v1290_v39  ;;  %v1293_v43 = vld [vmem:[%s12320_s1 + $0x28] sm:$0xff]  ;;  %v1294_v45 = vld [vmem:[%s12320_s1 + $0x30] sm:$0xff]  ;;  %v1295_v46 = vld [vmem:[%s12320_s1 + $0x38] sm:$0xff] }
   0xe   : > { %s13474_s23 = smov (!%p278_p3, %s6148_s23), 31  ;;  %12670 = vst [vmem:[#allocation18_spill] sm:$0xff] %v7041_v38  ;;  %v7171_v44 = vpack.c.bf16 %v1293_v43, %v1292_v42  ;;  %v7241_v47 = vpack.c.bf16 %v1295_v46, %v1294_v45  ;;  %v1296_v48 = vld [vmem:[%s12320_s1 + $0x40] sm:$0xff]  ;;  %v1297_v49 = vld [vmem:[%s12320_s1 + $0x48] sm:$0xff]  ;;  %v1298_v51 = vld [vmem:[%s12320_s1 + $0x50] sm:$0xff] }
   0xf   : > { %v6746_v3 = vsub.s32 1, %v6740_v2  ;;  %v6749_v4 = vsub.s32 3, %v6740_v2  ;;  %s6755_s26 = scalar_lea.vmem %s12322_s3, %s13474_s23  ;;  %v6758_v5 = vadd.s32 112, %v6740_v2  ;;  %v6761_v6 = vadd.s32 120, %v6740_v2  ;;  %12671 = vst [vmem:[#allocation19_spill] sm:$0xff] %v7104_v41  ;;  %v1299_v52 = vld [vmem:[%s12320_s1 + $0x58] sm:$0xff]  ;;  %s7548_s19 = scalar_lea.vmem %s12321_s2, %s13474_s23 }
  0x10   : > { %v6764_v7 = vsub.s32 0, %v6740_v2  ;;  %v6767_v8 = vsub.s32 2, %v6740_v2  ;;  %v6770_v9 = vld [vmem:[%s6755_s26] sm:$0xff]  ;;  %v6773_v10 = vadd.s32 96, %v6740_v2  ;;  %v6776_v11 = vadd.s32 104, %v6740_v2  ;;  %12672 = vst [vmem:[#allocation20_spill] sm:$0xff] %v7171_v44  ;;  %s8679_s22 = scalar_lea.vmem %s12323_s4, %s13474_s23 }
  0x11   : > { %12654 = vst [vmem:[#allocation2_spill] sm:$0xff] %v6746_v3  ;;  %12655 = vst [vmem:[#allocation3_spill] sm:$0xff] %v6749_v4  ;;  %v6780_v12 = vrot.slane %v6770_v9, %v6746_v3  ;;  %v6784_v13 = vrot.slane %v6770_v9, %v6749_v4  ;;  %v6816_v17 = vadd.s32 80, %v6740_v2  ;;  %v6819_v18 = vadd.s32 88, %v6740_v2  ;;  %v1300_v54 = vld [vmem:[%s12320_s1 + $0x60] sm:$0xff]  ;;  %v1301_v55 = vld [vmem:[%s12320_s1 + $0x68] sm:$0xff] }
  0x12   : > { %12656 = vst [vmem:[#allocation4_spill] sm:$0xff] %v6758_v5  ;;  %12657 = vst [vmem:[#allocation5_spill] sm:$0xff] %v6761_v6  ;;  %v6788_v14 = vrot.slane %v6770_v9, %v6764_v7  ;;  %v6792_v15 = vrot.slane %v6770_v9, %v6767_v8  ;;  %v6842_v19 = vadd.s32 64, %v6740_v2  ;;  %v6845_v20 = vadd.s32 72, %v6740_v2  ;;  %v1302_v57 = vld [vmem:[%s12320_s1 + $0x70] sm:$0xff]  ;;  %v1303_v58 = vld [vmem:[%s12320_s1 + $0x78] sm:$0xff] }
  0x13   : > { %12658 = vst [vmem:[#allocation6_spill] sm:$0xff] %v6764_v7  ;;  %12659 = vst [vmem:[#allocation7_spill] sm:$0xff] %v6767_v8  ;;  %vm617_vm0 = vcmp.eq.s32.totalorder %v6758_v5, %v6780_v12  ;;  %vm633_vm1 = vcmp.eq.s32.totalorder %v6761_v6, %v6780_v12  ;;  %vm619_vm2 = vcmp.eq.s32.totalorder %v6758_v5, %v6784_v13  ;;  %v6868_v21 = vadd.s32 48, %v6740_v2  ;;  %v1304_v60 = vld [vmem:[%s12320_s1 + $0x80] sm:$0xff]  ;;  %v1305_v61 = vld [vmem:[%s12320_s1 + $0x88] sm:$0xff]  ;;  %s6152_s24 = sshll.u32 %s13474_s23, 2 }
  0x14   : > { %12660 = vst [vmem:[#allocation8_spill] sm:$0xff] %v6773_v10  ;;  %12661 = vst [vmem:[#allocation9_spill] sm:$0xff] %v6776_v11  ;;  %vm635_vm3 = vcmp.eq.s32.totalorder %v6761_v6, %v6784_v13  ;;  %vm616_vm5 = vcmp.eq.s32.totalorder %v6758_v5, %v6788_v14  ;;  %vm632_vm6 = vcmp.eq.s32.totalorder %v6761_v6, %v6788_v14  ;;  %v6871_v22 = vadd.s32 56, %v6740_v2  ;;  %v7343_v63 = vld [vmem:[%s6755_s26 + $0x8] sm:$0xff]  ;;  %v1306_v0 = vld [vmem:[%s12320_s1 + $0x90] sm:$0xff]  ;;  %s9548_s28 = scalar_lea.vmem %s12325_s6, %s6152_s24  ;;  %s9652_s7 = scalar_lea.vmem %s12324_s5, %s6152_s24 }
  0x15   : > { %vm6411_vm4 = vmpackc.low %vm633_vm1, %vm617_vm0  ;;  %vm618_vm7 = vcmp.eq.s32.totalorder %v6758_v5, %v6792_v15  ;;  %vm634_vm8 = vcmp.eq.s32.totalorder %v6761_v6, %v6792_v15  ;;  %vm585_vm10 = vcmp.eq.s32.totalorder %v6773_v10, %v6780_v12  ;;  %vm601_vm11 = vcmp.eq.s32.totalorder %v6776_v11, %v6780_v12  ;;  %12662 = vst [vmem:[#allocation10_spill] sm:$0xff] %v6816_v17  ;;  %v1310_v34 = vld [vmem:[%s12320_s1 + $0xb0] sm:$0xff]  ;;  %v1311_v35 = vld [vmem:[%s12320_s1 + $0xb8] sm:$0xff] }
  0x16   : > { %6412 = vmatprep.subr.msk.bf16.mxu0 %vm6411_vm4, %v12330_v16  ;;  %vm6443_vm9 = vmpackc.low %vm635_vm3, %vm619_vm2  ;;  %12663 = vst [vmem:[#allocation11_spill] sm:$0xff] %v6819_v18  ;;  %vm587_vm13 = vcmp.eq.s32.totalorder %v6773_v10, %v6784_v13  ;;  %vm603_vm14 = vcmp.eq.s32.totalorder %v6776_v11, %v6784_v13  ;;  %vm584_vm0 = vcmp.eq.s32.totalorder %v6773_v10, %v6788_v14  ;;  %v6894_v23 = vadd.s32 32, %v6740_v2  ;;  %v1313_v39 = vld [vmem:[%s12320_s1 + $0xc8] sm:$0xff]  ;;  %v1314_v42 = vld [vmem:[%s12320_s1 + $0xd0] sm:$0xff] }
  0x17   : > { %6444 = vmatprep.subr.msk.bf16.mxu1 %vm6443_vm9, %v12330_v16  ;;  %vm6413_vm12 = vmpackc.low %vm632_vm6, %vm616_vm5  ;;  %vm600_vm1 = vcmp.eq.s32.totalorder %v6776_v11, %v6788_v14  ;;  %vm586_vm3 = vcmp.eq.s32.totalorder %v6773_v10, %v6792_v15  ;;  %vm602_vm4 = vcmp.eq.s32.totalorder %v6776_v11, %v6792_v15  ;;  %vm553_vm6 = vcmp.eq.s32.totalorder %v6816_v17, %v6780_v12  ;;  %v1315_v43 = vld [vmem:[%s12320_s1 + $0xd8] sm:$0xff]  ;;  %v1316_v46 = vld [vmem:[%s12320_s1 + $0xe0] sm:$0xff] }
  0x18   : > { %6414 = vmatpush1.bf16.msk.msra.mxu0 %vm6413_vm12, %v12330_v16  ;;  %vm6445_vm15 = vmpackc.low %vm634_vm8, %vm618_vm7  ;;  %vm569_vm7 = vcmp.eq.s32.totalorder %v6819_v18, %v6780_v12  ;;  %12664 = vst [vmem:[#allocation12_spill] sm:$0xff] %v6842_v19  ;;  %vm555_vm9 = vcmp.eq.s32.totalorder %v6816_v17, %v6784_v13  ;;  %vm552_vm12 = vcmp.eq.s32.totalorder %v6816_v17, %v6788_v14  ;;  %v6897_v24 = vadd.s32 40, %v6740_v2 }
  0x19   : > { %6446 = vmatpush1.bf16.msk.msra.mxu1 %vm6445_vm15, %v12330_v16  ;;  %vm6415_vm2 = vmpackc.low %vm601_vm11, %vm585_vm10  ;;  %12665 = vst [vmem:[#allocation13_spill] sm:$0xff] %v6845_v20  ;;  %vm571_vm10 = vcmp.eq.s32.totalorder %v6819_v18, %v6784_v13  ;;  %vm554_vm15 = vcmp.eq.s32.totalorder %v6816_v17, %v6792_v15  ;;  %v6920_v25 = vadd.s32 16, %v6740_v2  ;;  %v6923_v26 = vadd.s32 24, %v6740_v2 }
  0x1a   : > { %6416 = vmatprep.subr.msk.bf16.mxu0 %vm6415_vm2, %v12330_v16  ;;  %vm6447_vm5 = vmpackc.low %vm603_vm14, %vm587_vm13  ;;  %vm568_vm13 = vcmp.eq.s32.totalorder %v6819_v18, %v6788_v14  ;;  %vm521_vm2 = vcmp.eq.s32.totalorder %v6842_v19, %v6780_v12  ;;  %v6946_v27 = vadd.s32 8, %v6740_v2  ;;  %v6949_v28 = vsub.s32 5, %v6740_v2  ;;  %12673 = vst [vmem:[#allocation21_spill] sm:$0xff] %v7241_v47 }
  0x1b   : > { %6448 = vmatprep.subr.msk.bf16.mxu1 %vm6447_vm5, %v12330_v16  ;;  %vm6417_vm8 = vmpackc.low %vm600_vm1, %vm584_vm0  ;;  %vm570_vm0 = vcmp.eq.s32.totalorder %v6819_v18, %v6792_v15  ;;  %vm523_vm5 = vcmp.eq.s32.totalorder %v6842_v19, %v6784_v13  ;;  %v6957_v29 = vsub.s32 7, %v6740_v2  ;;  %v6965_v30 = vsub.s32 4, %v6740_v2 }
  0x1c   : > { %6418 = vmatpush1.bf16.msk.msra.mxu0 %vm6417_vm8, %v12330_v16  ;;  %vm6449_vm11 = vmpackc.low %vm602_vm4, %vm586_vm3  ;;  %vm537_vm3 = vcmp.eq.s32.totalorder %v6845_v20, %v6780_v12  ;;  %vm520_vm8 = vcmp.eq.s32.totalorder %v6842_v19, %v6788_v14  ;;  %12666 = vst [vmem:[#allocation14_spill] sm:$0xff] %v6949_v28  ;;  %v6976_v31 = vsub.s32 6, %v6740_v2  ;;  %v6985_v32 = vrot.slane %v6770_v9, %v6949_v28 }
  0x1d   : > { %6450 = vmatpush1.bf16.msk.msra.mxu1 %vm6449_vm11, %v12330_v16  ;;  %vm6419_vm14 = vmpackc.low %vm569_vm7, %vm553_vm6  ;;  %vm539_vm6 = vcmp.eq.s32.totalorder %v6845_v20, %v6784_v13  ;;  %vm522_vm11 = vcmp.eq.s32.totalorder %v6842_v19, %v6792_v15  ;;  %12667 = vst [vmem:[#allocation15_spill] sm:$0xff] %v6957_v29  ;;  %v6994_v33 = vrot.slane %v6770_v9, %v6957_v29 }
  0x1e   : > { %6420 = vmatprep.subr.msk.bf16.mxu0 %vm6419_vm14, %v12330_v16  ;;  %vm6451_vm1 = vmpackc.low %vm571_vm10, %vm555_vm9  ;;  %vm536_vm9 = vcmp.eq.s32.totalorder %v6845_v20, %v6788_v14  ;;  %vm489_vm14 = vcmp.eq.s32.totalorder %v6868_v21, %v6780_v12  ;;  %12668 = vst [vmem:[#allocation16_spill] sm:$0xff] %v6965_v30  ;;  %v7009_v36 = vrot.slane %v6770_v9, %v6965_v30 }
  0x1f   : > { %6452 = vmatprep.subr.msk.bf16.mxu1 %vm6451_vm1, %v12330_v16  ;;  %vm6421_vm4 = vmpackc.low %vm568_vm13, %vm552_vm12  ;;  %vm538_vm12 = vcmp.eq.s32.totalorder %v6845_v20, %v6792_v15  ;;  %vm491_vm1 = vcmp.eq.s32.totalorder %v6868_v21, %v6784_v13  ;;  %12669 = vst [vmem:[#allocation17_spill] sm:$0xff] %v6976_v31  ;;  %v7024_v37 = vrot.slane %v6770_v9, %v6976_v31  ;;  %v1307_v9 = vld [vmem:[%s12320_s1 + $0x98] sm:$0xff] }
  0x20   : > { %6422 = vmatpush1.bf16.msk.msra.mxu0 %vm6421_vm4, %v12330_v16  ;;  %vm6453_vm7 = vmpackc.low %vm570_vm0, %vm554_vm15  ;;  %vm505_vm15 = vcmp.eq.s32.totalorder %v6871_v22, %v6780_v12  ;;  %vm488_vm4 = vcmp.eq.s32.totalorder %v6868_v21, %v6788_v14  ;;  %v7272_v50 = vpack.c.bf16 %v1297_v49, %v1296_v48  ;;  %v7284_v53 = vpack.c.bf16 %v1299_v52, %v1298_v51  ;;  %v1317_v48 = vld [vmem:[%s12320_s1 + $0xe8] sm:$0xff]  ;;  %v1318_v51 = vld [vmem:[%s12320_s1 + $0xf0] sm:$0xff] }
  0x21   : > { %6454 = vmatpush1.bf16.msk.msra.mxu1 %vm6453_vm7, %v12330_v16  ;;  %vm6423_vm10 = vmpackc.low %vm537_vm3, %vm521_vm2  ;;  %vm507_vm2 = vcmp.eq.s32.totalorder %v6871_v22, %v6784_v13  ;;  %vm490_vm7 = vcmp.eq.s32.totalorder %v6868_v21, %v6792_v15  ;;  %v7313_v56 = vpack.c.bf16 %v1301_v55, %v1300_v54  ;;  %v7328_v59 = vpack.c.bf16 %v1303_v58, %v1302_v57  ;;  %v1319_v52 = vld [vmem:[%s12320_s1 + $0xf8] sm:$0xff]  ;;  %v1320_v55 = vld [vmem:[%s12320_s1 + $0x100] sm:$0xff] }
  0x22   : > { %6424 = vmatprep.subr.msk.bf16.mxu0 %vm6423_vm10, %v12330_v16  ;;  %vm6455_vm13 = vmpackc.low %vm539_vm6, %vm523_vm5  ;;  %vm504_vm5 = vcmp.eq.s32.totalorder %v6871_v22, %v6788_v14  ;;  %vm457_vm10 = vcmp.eq.s32.totalorder %v6894_v23, %v6780_v12  ;;  %12674 = vst [vmem:[#allocation22_spill] sm:$0xff] %v7272_v50  ;;  %v7340_v62 = vpack.c.bf16 %v1305_v61, %v1304_v60  ;;  %v1321_v57 = vld [vmem:[%s12320_s1 + $0x108] sm:$0xff]  ;;  %v1322_v60 = vld [vmem:[%s12320_s1 + $0x110] sm:$0xff] }
  0x23   : > { %6456 = vmatprep.subr.msk.bf16.mxu1 %vm6455_vm13, %v12330_v16  ;;  %vm6425_vm0 = vmpackc.low %vm536_vm9, %vm520_vm8  ;;  %vm506_vm8 = vcmp.eq.s32.totalorder %v6871_v22, %v6792_v15  ;;  %vm459_vm13 = vcmp.eq.s32.totalorder %v6894_v23, %v6784_v13  ;;  %12675 = vst [vmem:[#allocation23_spill] sm:$0xff] %v7284_v53  ;;  %v7421_v45 = vpack.c.bf16 %v1315_v43, %v1314_v42  ;;  %v1323_v61 = vld [vmem:[%s12320_s1 + $0x118] sm:$0xff]  ;;  %v1328_v42 = vld [vmem:[%s12320_s1 + $0x140] sm:$0xff] }
  0x24   : > { %6426 = vmatpush1.bf16.msk.msra.mxu0 %vm6425_vm0, %v12330_v16  ;;  %vm6457_vm3 = vmpackc.low %vm538_vm12, %vm522_vm11  ;;  %vm473_vm11 = vcmp.eq.s32.totalorder %v6897_v24, %v6780_v12  ;;  %vm456_vm0 = vcmp.eq.s32.totalorder %v6894_v23, %v6788_v14  ;;  %12676 = vst [vmem:[#allocation24_spill] sm:$0xff] %v7313_v56  ;;  %v7433_v49 = vpack.c.bf16 %v1317_v48, %v1316_v46  ;;  %v1329_v43 = vld [vmem:[%s12320_s1 + $0x148] sm:$0xff]  ;;  %v1330_v48 = vld [vmem:[%s12320_s1 + $0x150] sm:$0xff] }
  0x25   : > { %6458 = vmatpush1.bf16.msk.msra.mxu1 %vm6457_vm3, %v12330_v16  ;;  %vm6427_vm6 = vmpackc.low %vm505_vm15, %vm489_vm14  ;;  %vm475_vm14 = vcmp.eq.s32.totalorder %v6897_v24, %v6784_v13  ;;  %vm458_vm3 = vcmp.eq.s32.totalorder %v6894_v23, %v6792_v15  ;;  %12677 = vst [vmem:[#allocation25_spill] sm:$0xff] %v7328_v59  ;;  %v7445_v54 = vpack.c.bf16 %v1319_v52, %v1318_v51  ;;  %v1331_v51 = vld [vmem:[%s12320_s1 + $0x158] sm:$0xff] }
  0x26   : > { %6428 = vmatprep.subr.msk.bf16.mxu0 %vm6427_vm6, %v12330_v16  ;;  %vm6459_vm9 = vmpackc.low %vm507_vm2, %vm491_vm1  ;;  %vm472_vm1 = vcmp.eq.s32.totalorder %v6897_v24, %v6788_v14  ;;  %vm425_vm6 = vcmp.eq.s32.totalorder %v6920_v25, %v6780_v12  ;;  %12678 = vst [vmem:[#allocation26_spill] sm:$0xff] %v7340_v62  ;;  %v7457_v58 = vpack.c.bf16 %v1321_v57, %v1320_v55  ;;  %v1332_v55 = vld [vmem:[%s12320_s1 + $0x160] sm:$0xff]  ;;  %v1333_v57 = vld [vmem:[%s12320_s1 + $0x168] sm:$0xff] }
  0x27   : > { %6460 = vmatprep.subr.msk.bf16.mxu1 %vm6459_vm9, %v12330_v16  ;;  %vm6429_vm12 = vmpackc.low %vm504_vm5, %vm488_vm4  ;;  %vm474_vm4 = vcmp.eq.s32.totalorder %v6897_v24, %v6792_v15  ;;  %vm427_vm9 = vcmp.eq.s32.totalorder %v6920_v25, %v6784_v13  ;;  %12683 = vst [vmem:[#allocation31_spill] sm:$0xff] %v7421_v45  ;;  %v7508_v46 = vpack.c.bf16 %v1329_v43, %v1328_v42 }
  0x28   : > { %6430 = vmatpush1.bf16.msk.msra.mxu0 %vm6429_vm12, %v12330_v16  ;;  %vm6461_vm15 = vmpackc.low %vm506_vm8, %vm490_vm7  ;;  %vm441_vm7 = vcmp.eq.s32.totalorder %v6923_v26, %v6780_v12  ;;  %vm424_vm12 = vcmp.eq.s32.totalorder %v6920_v25, %v6788_v14  ;;  %12684 = vst [vmem:[#allocation32_spill] sm:$0xff] %v7433_v49  ;;  %v7520_v52 = vpack.c.bf16 %v1331_v51, %v1330_v48 }
  0x29   : > { %6462 = vmatpush1.bf16.msk.msra.mxu1 %vm6461_vm15, %v12330_v16  ;;  %vm6431_vm2 = vmpackc.low %vm473_vm11, %vm457_vm10  ;;  %vm443_vm10 = vcmp.eq.s32.totalorder %v6923_v26, %v6784_v13  ;;  %vm426_vm15 = vcmp.eq.s32.totalorder %v6920_v25, %v6792_v15  ;;  %12685 = vst [vmem:[#allocation33_spill] sm:$0xff] %v7445_v54 }
  0x2a   : > { %6432 = vmatprep.subr.msk.bf16.mxu0 %vm6431_vm2, %v12330_v16  ;;  %vm6463_vm5 = vmpackc.low %vm475_vm14, %vm459_vm13  ;;  %vm440_vm13 = vcmp.eq.s32.totalorder %v6923_v26, %v6788_v14  ;;  %vm393_vm2 = vcmp.eq.s32.totalorder %v6740_v2, %v6780_v12  ;;  %12686 = vst [vmem:[#allocation34_spill] sm:$0xff] %v7457_v58 }
  0x2b   : > { %6464 = vmatprep.subr.msk.bf16.mxu1 %vm6463_vm5, %v12330_v16  ;;  %vm6433_vm8 = vmpackc.low %vm472_vm1, %vm456_vm0  ;;  %vm442_vm0 = vcmp.eq.s32.totalorder %v6923_v26, %v6792_v15  ;;  %vm395_vm5 = vcmp.eq.s32.totalorder %v6740_v2, %v6784_v13  ;;  %12690 = vst [vmem:[#allocation38_spill] sm:$0xff] %v7508_v46 }
  0x2c   : > { %6434 = vmatpush1.bf16.msk.msra.mxu0 %vm6433_vm8, %v12330_v16  ;;  %vm6465_vm11 = vmpackc.low %vm474_vm4, %vm458_vm3  ;;  %vm409_vm3 = vcmp.eq.s32.totalorder %v6946_v27, %v6780_v12  ;;  %vm392_vm8 = vcmp.eq.s32.totalorder %v6740_v2, %v6788_v14  ;;  %v7357_v12 = vrot.slane %v7343_v63, %v6746_v3  ;;  %12691 = vst [vmem:[#allocation39_spill] sm:$0xff] %v7520_v52 }
  0x2d   : > { %6466 = vmatpush1.bf16.msk.msra.mxu1 %vm6465_vm11, %v12330_v16  ;;  %vm6435_vm14 = vmpackc.low %vm441_vm7, %vm425_vm6  ;;  %vm411_vm6 = vcmp.eq.s32.totalorder %v6946_v27, %v6784_v13  ;;  %vm394_vm11 = vcmp.eq.s32.totalorder %v6740_v2, %v6792_v15  ;;  %v7361_v13 = vrot.slane %v7343_v63, %v6749_v4 }
  0x2e   : > { %6436 = vmatprep.subr.msk.bf16.mxu0 %vm6435_vm14, %v12330_v16  ;;  %vm6467_vm1 = vmpackc.low %vm443_vm10, %vm427_vm9  ;;  %vm408_vm9 = vcmp.eq.s32.totalorder %v6946_v27, %v6788_v14  ;;  %vm621_vm14 = vcmp.eq.s32.totalorder %v6758_v5, %v6985_v32  ;;  %v7363_v14 = vpack.c.bf16 %v1307_v9, %v1306_v0  ;;  %v7469_v0 = vpack.c.bf16 %v1323_v61, %v1322_v60  ;;  %v1324_v9 = vld [vmem:[%s12320_s1 + $0x120] sm:$0xff]  ;;  %v1334_v61 = vld [vmem:[%s12320_s1 + $0x170] sm:$0xff] }
  0x2f   : > { %6468 = vmatprep.subr.msk.bf16.mxu1 %vm6467_vm1, %v12330_v16  ;;  %vm6437_vm4 = vmpackc.low %vm440_vm13, %vm424_vm12  ;;  %vm410_vm12 = vcmp.eq.s32.totalorder %v6946_v27, %v6792_v15  ;;  %vm623_vm1 = vcmp.eq.s32.totalorder %v6758_v5, %v6994_v33  ;;  %v1308_v15 = vld [vmem:[%s12320_s1 + $0xa0] sm:$0xff]  ;;  %v7532_v60 = vpack.c.bf16 %v1333_v57, %v1332_v55 }
  0x30   : > { %6438 = vmatpush1.bf16.msk.msra.mxu0 %vm6437_vm4, %v12330_v16  ;;  %vm6469_vm7 = vmpackc.low %vm442_vm0, %vm426_vm15  ;;  %vm637_vm15 = vcmp.eq.s32.totalorder %v6761_v6, %v6985_v32  ;;  %vm620_vm4 = vcmp.eq.s32.totalorder %v6758_v5, %v7009_v36  ;;  %12679 = vst [vmem:[#allocation27_spill] sm:$0xff] %v7363_v14 }
  0x31   : > { %6470 = vmatpush1.bf16.msk.msra.mxu1 %vm6469_vm7, %v12330_v16  ;;  %vm6439_vm10 = vmpackc.low %vm409_vm3, %vm393_vm2  ;;  %vm639_vm2 = vcmp.eq.s32.totalorder %v6761_v6, %v6994_v33  ;;  %vm622_vm7 = vcmp.eq.s32.totalorder %v6758_v5, %v7024_v37  ;;  %12687 = vst [vmem:[#allocation35_spill] sm:$0xff] %v7469_v0 }
  0x32   : > { %6440 = vmatprep.subr.msk.bf16.mxu0 %vm6439_vm10, %v12330_v16  ;;  %vm6471_vm13 = vmpackc.low %vm411_vm6, %vm395_vm5  ;;  %vm636_vm5 = vcmp.eq.s32.totalorder %v6761_v6, %v7009_v36  ;;  %vm589_vm10 = vcmp.eq.s32.totalorder %v6773_v10, %v6985_v32  ;;  %12692 = vst [vmem:[#allocation40_spill] sm:$0xff] %v7532_v60 }
  0x33   : > { %6472 = vmatprep.subr.msk.bf16.mxu1 %vm6471_vm13, %v12330_v16  ;;  %vm6441_vm0 = vmpackc.low %vm408_vm9, %vm392_vm8  ;;  %vm638_vm8 = vcmp.eq.s32.totalorder %v6761_v6, %v7024_v37  ;;  %vm591_vm13 = vcmp.eq.s32.totalorder %v6773_v10, %v6994_v33 }
  0x34   : > { %6442 = vmatpush1.bf16.msk.msra.mxu0 %vm6441_vm0, %v12330_v16  ;;  %vm6473_vm3 = vmpackc.low %vm410_vm12, %vm394_vm11  ;;  %vm605_vm11 = vcmp.eq.s32.totalorder %v6776_v11, %v6985_v32  ;;  %vm588_vm0 = vcmp.eq.s32.totalorder %v6773_v10, %v7009_v36 }
  0x35   : > { %6474 = vmatpush1.bf16.msk.msra.mxu1 %vm6473_vm3, %v12330_v16  ;;  %vm6475_vm6 = vmpackc.low %vm637_vm15, %vm621_vm14  ;;  %vm607_vm14 = vcmp.eq.s32.totalorder %v6776_v11, %v6994_v33  ;;  %vm590_vm3 = vcmp.eq.s32.totalorder %v6773_v10, %v7024_v37 }
  0x36   : > { %6476 = vmatprep.subr.msk.bf16.mxu0 %vm6475_vm6, %v12330_v16  ;;  %vm6507_vm9 = vmpackc.low %vm639_vm2, %vm623_vm1  ;;  %vm604_vm1 = vcmp.eq.s32.totalorder %v6776_v11, %v7009_v36  ;;  %vm557_vm6 = vcmp.eq.s32.totalorder %v6816_v17, %v6985_v32 }
  0x37   : > { %1393 = vmatmul.mubr.bf16.vlgmr.msra.gmra.mxu0 %v7041_v38  ;;  %6508 = vmatprep.subr.msk.bf16.mxu1 %vm6507_vm9, %v12330_v16  ;;  %vm6477_vm12 = vmpackc.low %vm636_vm5, %vm620_vm4  ;;  %vm606_vm4 = vcmp.eq.s32.totalorder %v6776_v11, %v7024_v37  ;;  %vm559_vm9 = vcmp.eq.s32.totalorder %v6816_v17, %v6994_v33 }
  0x38   : > { %1666 = vmatmul.mubr.bf16.vlgmr.msra.gmra.mxu1 %v7041_v38  ;;  %6478 = vmatpush1.bf16.msk.msra.mxu0 %vm6477_vm12, %v12330_v16  ;;  %vm6509_vm15 = vmpackc.low %vm638_vm8, %vm622_vm7  ;;  %vm573_vm7 = vcmp.eq.s32.totalorder %v6819_v18, %v6985_v32  ;;  %vm556_vm12 = vcmp.eq.s32.totalorder %v6816_v17, %v7009_v36 }
  0x39   : > { %6510 = vmatpush1.bf16.msk.msra.mxu1 %vm6509_vm15, %v12330_v16  ;;  %1402 = vmatprep.mubr.bf16.mxu0 %v12326_v1  ;;  %vm6479_vm2 = vmpackc.low %vm605_vm11, %vm589_vm10  ;;  %vm575_vm10 = vcmp.eq.s32.totalorder %v6819_v18, %v6994_v33  ;;  %vm558_vm15 = vcmp.eq.s32.totalorder %v6816_v17, %v7024_v37 }
  0x3a   : > { %1675 = vmatprep.mubr.bf16.mxu1 %v12326_v1  ;;  %6480 = vmatprep.subr.msk.bf16.mxu0 %vm6479_vm2, %v12330_v16  ;;  %vm6511_vm5 = vmpackc.low %vm607_vm14, %vm591_vm13  ;;  %vm572_vm13 = vcmp.eq.s32.totalorder %v6819_v18, %v7009_v36  ;;  %vm525_vm2 = vcmp.eq.s32.totalorder %v6842_v19, %v6985_v32 }
  0x3b   : > { %6512 = vmatprep.subr.msk.bf16.mxu1 %vm6511_vm5, %v12330_v16  ;;  %vm6481_vm8 = vmpackc.low %vm604_vm1, %vm588_vm0  ;;  %vm574_vm0 = vcmp.eq.s32.totalorder %v6819_v18, %v7024_v37  ;;  %vm527_vm5 = vcmp.eq.s32.totalorder %v6842_v19, %v6994_v33 }
  0x3c   : > { %6482 = vmatpush1.bf16.msk.msra.mxu0 %vm6481_vm8, %v12330_v16  ;;  %vm6513_vm11 = vmpackc.low %vm606_vm4, %vm590_vm3  ;;  %vm541_vm3 = vcmp.eq.s32.totalorder %v6845_v20, %v6985_v32  ;;  %vm524_vm8 = vcmp.eq.s32.totalorder %v6842_v19, %v7009_v36 }
  0x3d   : > { %6514 = vmatpush1.bf16.msk.msra.mxu1 %vm6513_vm11, %v12330_v16  ;;  %vm6483_vm14 = vmpackc.low %vm573_vm7, %vm557_vm6  ;;  %vm543_vm6 = vcmp.eq.s32.totalorder %v6845_v20, %v6994_v33  ;;  %vm526_vm11 = vcmp.eq.s32.totalorder %v6842_v19, %v7024_v37 }
  0x3e   : > { %6484 = vmatprep.subr.msk.bf16.mxu0 %vm6483_vm14, %v12330_v16  ;;  %vm6515_vm1 = vmpackc.low %vm575_vm10, %vm559_vm9  ;;  %vm540_vm9 = vcmp.eq.s32.totalorder %v6845_v20, %v7009_v36  ;;  %vm493_vm14 = vcmp.eq.s32.totalorder %v6868_v21, %v6985_v32 }
  0x3f   : > { %1403 = vmatmul.mubr.bf16.gmra.mxu0 %v7104_v41  ;;  %6516 = vmatprep.subr.msk.bf16.mxu1 %vm6515_vm1, %v12330_v16  ;;  %vm6485_vm4 = vmpackc.low %vm572_vm13, %vm556_vm12  ;;  %vm542_vm12 = vcmp.eq.s32.totalorder %v6845_v20, %v7024_v37  ;;  %vm495_vm1 = vcmp.eq.s32.totalorder %v6868_v21, %v6994_v33 }
  0x40   : > { %1676 = vmatmul.mubr.bf16.gmra.mxu1 %v7104_v41  ;;  %1412 = vmatprep.mubr.bf16.mxu0 %v12326_v1  ;;  %vm6517_vm7 = vmpackc.low %vm574_vm0, %vm558_vm15  ;;  %vm509_vm15 = vcmp.eq.s32.totalorder %v6871_v22, %v6985_v32 }
  0x41   : > { %1685 = vmatprep.mubr.bf16.mxu1 %v12326_v1  ;;  %6486 = vmatpush1.bf16.msk.msra.mxu0 %vm6485_vm4, %v12330_v16  ;;  %vm6487_vm10 = vmpackc.low %vm541_vm3, %vm525_vm2  ;;  %vm511_vm2 = vcmp.eq.s32.totalorder %v6871_v22, %v6994_v33  ;;  %vm492_vm4 = vcmp.eq.s32.totalorder %v6868_v21, %v7009_v36 }
  0x42   : > { %6518 = vmatpush1.bf16.msk.msra.mxu1 %vm6517_vm7, %v12330_v16  ;;  %6488 = vmatprep.subr.msk.bf16.mxu0 %vm6487_vm10, %v12330_v16  ;;  %vm6519_vm13 = vmpackc.low %vm543_vm6, %vm527_vm5  ;;  %vm508_vm5 = vcmp.eq.s32.totalorder %v6871_v22, %v7009_v36  ;;  %vm494_vm7 = vcmp.eq.s32.totalorder %v6868_v21, %v7024_v37  ;;  %vm461_vm10 = vcmp.eq.s32.totalorder %v6894_v23, %v6985_v32 }
  0x43   : > { %6520 = vmatprep.subr.msk.bf16.mxu1 %vm6519_vm13, %v12330_v16  ;;  %vm6489_vm0 = vmpackc.low %vm540_vm9, %vm524_vm8  ;;  %vm510_vm8 = vcmp.eq.s32.totalorder %v6871_v22, %v7024_v37  ;;  %vm463_vm13 = vcmp.eq.s32.totalorder %v6894_v23, %v6994_v33 }
  0x44   : > { %vm6521_vm3 = vmpackc.low %vm542_vm12, %vm526_vm11  ;;  %vm477_vm11 = vcmp.eq.s32.totalorder %v6897_v24, %v6985_v32 }
  0x45   : > { %6490 = vmatpush1.bf16.msk.msra.mxu0 %vm6489_vm0, %v12330_v16  ;;  %vm6491_vm6 = vmpackc.low %vm509_vm15, %vm493_vm14  ;;  %vm479_vm14 = vcmp.eq.s32.totalorder %v6897_v24, %v6994_v33  ;;  %vm460_vm0 = vcmp.eq.s32.totalorder %v6894_v23, %v7009_v36 }
  0x46   : > { %6522 = vmatpush1.bf16.msk.msra.mxu1 %vm6521_vm3, %v12330_v16  ;;  %6492 = vmatprep.subr.msk.bf16.mxu0 %vm6491_vm6, %v12330_v16  ;;  %vm6523_vm9 = vmpackc.low %vm511_vm2, %vm495_vm1  ;;  %vm476_vm1 = vcmp.eq.s32.totalorder %v6897_v24, %v7009_v36  ;;  %vm462_vm3 = vcmp.eq.s32.totalorder %v6894_v23, %v7024_v37  ;;  %vm429_vm6 = vcmp.eq.s32.totalorder %v6920_v25, %v6985_v32 }
  0x47   : > { %1413 = vmatmul.mubr.bf16.gmra.mxu0 %v7171_v44  ;;  %6524 = vmatprep.subr.msk.bf16.mxu1 %vm6523_vm9, %v12330_v16  ;;  %vm6493_vm12 = vmpackc.low %vm508_vm5, %vm492_vm4  ;;  %vm478_vm4 = vcmp.eq.s32.totalorder %v6897_v24, %v7024_v37  ;;  %vm431_vm9 = vcmp.eq.s32.totalorder %v6920_v25, %v6994_v33 }
  0x48   : > { %1686 = vmatmul.mubr.bf16.gmra.mxu1 %v7171_v44  ;;  %1422 = vmatprep.mubr.bf16.mxu0 %v12326_v1  ;;  %vm6525_vm15 = vmpackc.low %vm510_vm8, %vm494_vm7  ;;  %vm445_vm7 = vcmp.eq.s32.totalorder %v6923_v26, %v6985_v32 }
  0x49   : > { %1695 = vmatprep.mubr.bf16.mxu1 %v12326_v1  ;;  %6494 = vmatpush1.bf16.msk.msra.mxu0 %vm6493_vm12, %v12330_v16  ;;  %vm6495_vm2 = vmpackc.low %vm477_vm11, %vm461_vm10  ;;  %vm447_vm10 = vcmp.eq.s32.totalorder %v6923_v26, %v6994_v33  ;;  %vm428_vm12 = vcmp.eq.s32.totalorder %v6920_v25, %v7009_v36 }
  0x4a   : > { %6526 = vmatpush1.bf16.msk.msra.mxu1 %vm6525_vm15, %v12330_v16  ;;  %6496 = vmatprep.subr.msk.bf16.mxu0 %vm6495_vm2, %v12330_v16  ;;  %vm6527_vm5 = vmpackc.low %vm479_vm14, %vm463_vm13  ;;  %vm444_vm13 = vcmp.eq.s32.totalorder %v6923_v26, %v7009_v36  ;;  %vm430_vm15 = vcmp.eq.s32.totalorder %v6920_v25, %v7024_v37 }
  0x4b   : > { %6528 = vmatprep.subr.msk.bf16.mxu1 %vm6527_vm5, %v12330_v16  ;;  %vm6497_vm8 = vmpackc.low %vm476_vm1, %vm460_vm0  ;;  %vm446_vm0 = vcmp.eq.s32.totalorder %v6923_v26, %v7024_v37  ;;  %vm413_vm5 = vcmp.eq.s32.totalorder %v6946_v27, %v6985_v32 }
  0x4c   : > { %vm6529_vm11 = vmpackc.low %vm478_vm4, %vm462_vm3  ;;  %vm397_vm4 = vcmp.eq.s32.totalorder %v6740_v2, %v6985_v32  ;;  %v1309_v32 = vld [vmem:[%s12320_s1 + $0xa8] sm:$0xff] }
  0x4d   : > { %6498 = vmatpush1.bf16.msk.msra.mxu0 %vm6497_vm8, %v12330_v16  ;;  %vm6499_vm14 = vmpackc.low %vm445_vm7, %vm429_vm6  ;;  %vm399_vm6 = vcmp.eq.s32.totalorder %v6740_v2, %v6994_v33  ;;  %vm415_vm8 = vcmp.eq.s32.totalorder %v6946_v27, %v6994_v33  ;;  %v7385_v33 = vpack.c.bf16 %v1309_v32, %v1308_v15  ;;  %v1325_v15 = vld [vmem:[%s12320_s1 + $0x128] sm:$0xff] }
  0x4e   : > { %6530 = vmatpush1.bf16.msk.msra.mxu1 %vm6529_vm11, %v12330_v16  ;;  %6500 = vmatprep.subr.msk.bf16.mxu0 %vm6499_vm14, %v12330_v16  ;;  %vm6531_vm1 = vmpackc.low %vm447_vm10, %vm431_vm9  ;;  %vm396_vm9 = vcmp.eq.s32.totalorder %v6740_v2, %v7009_v36  ;;  %vm412_vm10 = vcmp.eq.s32.totalorder %v6946_v27, %v7009_v36  ;;  %vm398_vm11 = vcmp.eq.s32.totalorder %v6740_v2, %v7024_v37 }
  0x4f   : > { %1423 = vmatmul.mubr.bf16.gmra.mxu0 %v7241_v47  ;;  %6532 = vmatprep.subr.msk.bf16.mxu1 %vm6531_vm1, %v12330_v16  ;;  %vm6501_vm2 = vmpackc.low %vm444_vm13, %vm428_vm12  ;;  %vm414_vm13 = vcmp.eq.s32.totalorder %v6946_v27, %v7024_v37  ;;  %vm641_vm1 = vcmp.eq.s32.totalorder %v6761_v6, %v7357_v12  ;;  %12680 = vst [vmem:[#allocation28_spill] sm:$0xff] %v7385_v33  ;;  %v1312_v37 = vld [vmem:[%s12320_s1 + $0xc0] sm:$0xff] }
  0x50   : > { %1696 = vmatmul.mubr.bf16.gmra.mxu1 %v7241_v47  ;;  %1432 = vmatprep.mubr.bf16.mxu0 %v12326_v1  ;;  %vm6533_vm3 = vmpackc.low %vm446_vm0, %vm430_vm15  ;;  %vm625_vm0 = vcmp.eq.s32.totalorder %v6758_v5, %v7357_v12  ;;  %v7397_v36 = vpack.c.bf16 %v1311_v35, %v1310_v34  ;;  %v7409_v40 = vpack.c.bf16 %v1313_v39, %v1312_v37  ;;  %v1326_v34 = vld [vmem:[%s12320_s1 + $0x130] sm:$0xff]  ;;  %v1327_v35 = vld [vmem:[%s12320_s1 + $0x138] sm:$0xff] }
  0x51   : > { %1705 = vmatprep.mubr.bf16.mxu1 %v12326_v1  ;;  %6502 = vmatpush1.bf16.msk.msra.mxu0 %vm6501_vm2, %v12330_v16  ;;  %vm6503_vm7 = vmpackc.low %vm413_vm5, %vm397_vm4  ;;  %vm627_vm2 = vcmp.eq.s32.totalorder %v6758_v5, %v7361_v13  ;;  %v7481_v32 = vpack.c.bf16 %v1325_v15, %v1324_v9  ;;  %v5772_v37 = vld [vmem:[%s12319_s0] sm:$0x7]  ;;  %v7496_v39 = vpack.c.bf16 %v1327_v35, %v1326_v34  ;;  %v1335_v9 = vld [vmem:[%s12320_s1 + $0x178] sm:$0xff] }
  0x52   : > { %6534 = vmatpush1.bf16.msk.msra.mxu1 %vm6533_vm3, %v12330_v16  ;;  %6504 = vmatprep.subr.msk.bf16.mxu0 %vm6503_vm7, %v12330_v16  ;;  %vm6535_vm12 = vmpackc.low %vm415_vm8, %vm399_vm6  ;;  %vm643_vm3 = vcmp.eq.s32.totalorder %v6761_v6, %v7361_v13  ;;  %12681 = vst [vmem:[#allocation29_spill] sm:$0xff] %v7397_v36  ;;  %v7550_v15 = vpack.c.bf16 %v1335_v9, %v1334_v61  ;;  %v305_v34 = vld [vmem:[%s7548_s19] sm:$0xff] }
  0x53   : > { %6536 = vmatprep.subr.msk.bf16.mxu1 %vm6535_vm12, %v12330_v16  ;;  %vm6505_vm14 = vmpackc.low %vm412_vm10, %vm396_vm9  ;;  %12682 = vst [vmem:[#allocation30_spill] sm:$0xff] %v7409_v40  ;;  %5777 = vperm.xlu0 %6679, %v5772_v37   ;;  %v7555_v35 = vrot.slane %v7343_v63, %v6764_v7  ;;  %v7559_v37 = vrot.slane %v7343_v63, %v6767_v8 }
  0x54   : > { %vm6537_vm15 = vmpackc.low %vm414_vm13, %vm398_vm11  ;;  %12688 = vst [vmem:[#allocation36_spill] sm:$0xff] %v7481_v32  ;;  %v7563_v42 = vrot.slane %v305_v34, %v6764_v7  ;;  %v7568_v43 = vrot.slane %v305_v34, %v6767_v8  ;;  %v7571_v48 = vrot.slane %v305_v34, %v6746_v3  ;;  %v7579_v63 = vrot.slane %v305_v34, %v6749_v4 }
  0x55   : > { %6506 = vmatpush1.bf16.msk.msra.mxu0 %vm6505_vm14, %v12330_v16  ;;  %vm6539_vm4 = vmpackc.low %vm641_vm1, %vm625_vm0  ;;  %12689 = vst [vmem:[#allocation37_spill] sm:$0xff] %v7496_v39  ;;  %vm624_vm6 = vcmp.eq.s32.totalorder %v6758_v5, %v7555_v35  ;;  %vm640_vm7 = vcmp.eq.s32.totalorder %v6761_v6, %v7555_v35  ;;  %vm626_vm8 = vcmp.eq.s32.totalorder %v6758_v5, %v7559_v37 }
  0x56   : > { %6538 = vmatpush1.bf16.msk.msra.mxu1 %vm6537_vm15, %v12330_v16  ;;  %6540 = vmatprep.subr.msk.bf16.mxu0 %vm6539_vm4, %v12330_v16  ;;  %vm6571_vm5 = vmpackc.low %vm643_vm3, %vm627_vm2  ;;  %12693 = vst [vmem:[#allocation41_spill] sm:$0xff] %v7550_v15  ;;  %vm642_vm9 = vcmp.eq.s32.totalorder %v6761_v6, %v7559_v37  ;;  %vm12342_vm10 = vcmp.eq.s32.totalorder %v6740_v2, %v7563_v42 }
  0x57   : > { %1433 = vmatmul.mubr.bf16.gmra.mxu0 %v7272_v50  ;;  %6572 = vmatprep.subr.msk.bf16.mxu1 %vm6571_vm5, %v12330_v16  ;;  %vm593_vm11 = vcmp.eq.s32.totalorder %v6773_v10, %v7357_v12  ;;  %vm609_vm12 = vcmp.eq.s32.totalorder %v6776_v11, %v7357_v12  ;;  %vm7593_vm14 = vmpackc.low %vm640_vm7, %vm624_vm6  ;;  %vm595_vm0 = vcmp.eq.s32.totalorder %v6773_v10, %v7361_v13 }
  0x58   : > { %1706 = vmatmul.mubr.bf16.gmra.mxu1 %v7272_v50  ;;  %1442 = vmatprep.mubr.bf16.mxu0 %v12326_v1  ;;  %vm611_vm1 = vcmp.eq.s32.totalorder %v6776_v11, %v7361_v13  ;;  %vm7603_vm2 = vmpackc.low %vm642_vm9, %vm626_vm8  ;;  %vm12345_vm4 = vcmp.eq.s32.totalorder %v6946_v27, %v7563_v42  ;;  %vm592_vm5 = vcmp.eq.s32.totalorder %v6773_v10, %v7555_v35 }
  0x59   : > { %1715 = vmatprep.mubr.bf16.mxu1 %v12326_v1  ;;  %vm608_vm6 = vcmp.eq.s32.totalorder %v6776_v11, %v7555_v35  ;;  %vm7619_vm9 = vmpackc.low %vm609_vm12, %vm593_vm11  ;;  %vm594_vm3 = vcmp.eq.s32.totalorder %v6773_v10, %v7559_v37  ;;  %vm610_vm15 = vcmp.eq.s32.totalorder %v6776_v11, %v7559_v37  ;;  %vm561_vm12 = vcmp.eq.s32.totalorder %v6816_v17, %v7357_v12 }
  0x5a   : > { %vm7638_vm11 = vmpackc.low %vm611_vm1, %vm595_vm0  ;;  %vm577_vm8 = vcmp.eq.s32.totalorder %v6819_v18, %v7357_v12  ;;  %vm563_vm1 = vcmp.eq.s32.totalorder %v6816_v17, %v7361_v13  ;;  %vm579_vm13 = vcmp.eq.s32.totalorder %v6819_v18, %v7361_v13 }
  0x5b   : > { %vm7658_vm0 = vmpackc.low %vm608_vm6, %vm592_vm5  ;;  %vm562_vm6 = vcmp.eq.s32.totalorder %v6816_v17, %v7559_v37  ;;  %vm545_vm5 = vcmp.eq.s32.totalorder %v6845_v20, %v7357_v12 }
  0x5c   : > { %vm7682_vm7 = vmpackc.low %vm610_vm15, %vm594_vm3  ;;  %vm560_vm3 = vcmp.eq.s32.totalorder %v6816_v17, %v7555_v35 }
  0x5d   : > { %vm7698_vm15 = vmpackc.low %vm577_vm8, %vm561_vm12  ;;  %vm578_vm12 = vcmp.eq.s32.totalorder %v6819_v18, %v7559_v37 }
  0x5e   : > { %vm7719_vm8 = vmpackc.low %vm579_vm13, %vm563_vm1  ;;  %vm547_vm1 = vcmp.eq.s32.totalorder %v6845_v20, %v7361_v13  ;;  %vm12348_vm13 = vcmp.eq.s32.totalorder %v6894_v23, %v7563_v42 }
  0x5f   : > { %1443 = vmatmul.mubr.bf16.gmra.mxu0 %v7284_v53 }
  0x60   : > { %1716 = vmatmul.mubr.bf16.gmra.mxu1 %v7284_v53  ;;  %1452 = vmatprep.mubr.bf16.mxu0 %v12326_v1 }
  0x61   : > { %1725 = vmatprep.mubr.bf16.mxu1 %v12326_v1 }
  0x67   : > { %1453 = vmatmul.mubr.bf16.gmra.mxu0 %v7313_v56 }
  0x68   : > { %1726 = vmatmul.mubr.bf16.gmra.mxu1 %v7313_v56  ;;  %1462 = vmatprep.mubr.bf16.mxu0 %v12326_v1 }
  0x69   : > { %1735 = vmatprep.mubr.bf16.mxu1 %v12326_v1 }
  0x6f   : > { %1463 = vmatmul.mubr.bf16.gmra.mxu0 %v7328_v59 }
  0x70   : > { %1736 = vmatmul.mubr.bf16.gmra.mxu1 %v7328_v59  ;;  %1472 = vmatprep.mubr.bf16.mxu0 %v12326_v1 }
  0x71   : > { %1745 = vmatprep.mubr.bf16.mxu1 %v12326_v1 }
  0x77   : > { %1473 = vmatmul.mubr.bf16.gmra.mxu0 %v7340_v62 }
  0x78   : > { %1746 = vmatmul.mubr.bf16.gmra.mxu1 %v7340_v62  ;;  %1482 = vmatprep.mubr.bf16.mxu0 %v12326_v1 }
  0x79   : > { %1755 = vmatprep.mubr.bf16.mxu1 %v12326_v1 }
  0x7f   : > { %1483 = vmatmul.mubr.bf16.gmra.mxu0 %v7363_v14 }
  0x80   : > { %1756 = vmatmul.mubr.bf16.gmra.mxu1 %v7363_v14  ;;  %1492 = vmatprep.mubr.bf16.mxu0 %v12326_v1 }
  0x81   : > { %1765 = vmatprep.mubr.bf16.mxu1 %v12326_v1 }
  0x87   : > { %1493 = vmatmul.mubr.bf16.gmra.mxu0 %v7385_v33 }
  0x88   : > { %1766 = vmatmul.mubr.bf16.gmra.mxu1 %v7385_v33  ;;  %1502 = vmatprep.mubr.bf16.mxu0 %v12326_v1 }
  0x89   : > { %1775 = vmatprep.mubr.bf16.mxu1 %v12326_v1 }
  0x8f   : > { %1503 = vmatmul.mubr.bf16.gmra.mxu0 %v7397_v36 }
  0x90   : > { %1776 = vmatmul.mubr.bf16.gmra.mxu1 %v7397_v36  ;;  %1512 = vmatprep.mubr.bf16.mxu0 %v12326_v1 }
  0x91   : > { %1785 = vmatprep.mubr.bf16.mxu1 %v12326_v1 }
  0x97   : > { %1513 = vmatmul.mubr.bf16.gmra.mxu0 %v7409_v40 }
  0x98   : > { %1786 = vmatmul.mubr.bf16.gmra.mxu1 %v7409_v40  ;;  %1522 = vmatprep.mubr.bf16.mxu0 %v12326_v1 }
  0x99   : > { %1795 = vmatprep.mubr.bf16.mxu1 %v12326_v1 }
  0x9f   : > { %1523 = vmatmul.mubr.bf16.gmra.mxu0 %v7421_v45 }
  0xa0   : > { %1796 = vmatmul.mubr.bf16.gmra.mxu1 %v7421_v45  ;;  %1532 = vmatprep.mubr.bf16.mxu0 %v12326_v1 }
  0xa1   : > { %1805 = vmatprep.mubr.bf16.mxu1 %v12326_v1 }
  0xa7   : > { %1533 = vmatmul.mubr.bf16.gmra.mxu0 %v7433_v49 }
  0xa8   : > { %1806 = vmatmul.mubr.bf16.gmra.mxu1 %v7433_v49  ;;  %1542 = vmatprep.mubr.bf16.mxu0 %v12326_v1 }
  0xa9   : > { %1815 = vmatprep.mubr.bf16.mxu1 %v12326_v1 }
  0xaf   : > { %1543 = vmatmul.mubr.bf16.gmra.mxu0 %v7445_v54 }
  0xb0   : > { %1816 = vmatmul.mubr.bf16.gmra.mxu1 %v7445_v54  ;;  %1552 = vmatprep.mubr.bf16.mxu0 %v12326_v1 }
  0xb1   : > { %1825 = vmatprep.mubr.bf16.mxu1 %v12326_v1 }
  0xb7   : > { %1553 = vmatmul.mubr.bf16.gmra.mxu0 %v7457_v58 }
  0xb8   : > { %1826 = vmatmul.mubr.bf16.gmra.mxu1 %v7457_v58  ;;  %1562 = vmatprep.mubr.bf16.mxu0 %v12326_v1 }
  0xb9   : > { %1835 = vmatprep.mubr.bf16.mxu1 %v12326_v1 }
  0xbf   : > { %1563 = vmatmul.mubr.bf16.gmra.mxu0 %v7469_v0 }
  0xc0   : > { %1836 = vmatmul.mubr.bf16.gmra.mxu1 %v7469_v0  ;;  %1572 = vmatprep.mubr.bf16.mxu0 %v12326_v1 }
  0xc1   : > { %1845 = vmatprep.mubr.bf16.mxu1 %v12326_v1 }
  0xc7   : > { %1573 = vmatmul.mubr.bf16.gmra.mxu0 %v7481_v32 }
  0xc8   : > { %1846 = vmatmul.mubr.bf16.gmra.mxu1 %v7481_v32  ;;  %1582 = vmatprep.mubr.bf16.mxu0 %v12326_v1 }
  0xc9   : > { %1855 = vmatprep.mubr.bf16.mxu1 %v12326_v1 }
  0xcf   : > { %1583 = vmatmul.mubr.bf16.gmra.mxu0 %v7496_v39 }
  0xd0   : > { %1856 = vmatmul.mubr.bf16.gmra.mxu1 %v7496_v39  ;;  %1592 = vmatprep.mubr.bf16.mxu0 %v12326_v1 }
  0xd1   : > { %1865 = vmatprep.mubr.bf16.mxu1 %v12326_v1 }
  0xd7   : > { %1593 = vmatmul.mubr.bf16.gmra.mxu0 %v7508_v46 }
  0xd8   : > { %1866 = vmatmul.mubr.bf16.gmra.mxu1 %v7508_v46  ;;  %1602 = vmatprep.mubr.bf16.mxu0 %v12326_v1 }
  0xd9   : > { %1875 = vmatprep.mubr.bf16.mxu1 %v12326_v1 }
  0xdf   : > { %1603 = vmatmul.mubr.bf16.gmra.mxu0 %v7520_v52 }
  0xe0   : > { %1876 = vmatmul.mubr.bf16.gmra.mxu1 %v7520_v52  ;;  %1612 = vmatprep.mubr.bf16.mxu0 %v12326_v1 }
  0xe1   : > { %1885 = vmatprep.mubr.bf16.mxu1 %v12326_v1 }
  0xe7   : > { %1613 = vmatmul.mubr.bf16.gmra.mxu0 %v7532_v60 }
  0xe8   : > { %1886 = vmatmul.mubr.bf16.gmra.mxu1 %v7532_v60  ;;  %1622 = vmatprep.mubr.bf16.mxu0 %v12326_v1 }
  0xe9   : > { %1895 = vmatprep.mubr.bf16.mxu1 %v12326_v1 }
  0xef   : > { %1623 = vmatmul.mubr.bf16.gmra.mxu0 %v7550_v15 }
  0xf0   : > { %1896 = vmatmul.mubr.bf16.gmra.mxu1 %v7550_v15  ;;  %1938 = vmatprep.mubr.bf16.mxu0 %v12326_v1  ;;  %v12707_v15 = vmov 1.0|1.0  }
  0xf1   : > { %2211 = vmatprep.mubr.bf16.mxu1 %v12326_v1 }
  0xf7   : > { %v1394_v61 = vpop.f32.mrf.mxu0  ;;  %1939 = vmatmul.mubr.bf16.vlgmr.msra.gmra.mxu0 %v7041_v38 }
  0xf8   : > { %v1667_v34 = vpop.f32.mrf.mxu1  ;;  %2212 = vmatmul.mubr.bf16.vlgmr.msra.gmra.mxu1 %v7041_v38  ;;  %6542 = vmatpush1.bf16.msk.msra.mxu0 %vm7593_vm14, %v12330_v16  ;;  %v12704_v38 = vmov 0   ;;  %v3864_v9 = vsel %vm12342_vm10, %v1394_v61, 0.0  ;;  %vm528_vm14 = vcmp.eq.s32.totalorder %v6842_v19, %v7555_v35  ;;  %vm12712_vm10 = vcmp.eq.s32.totalorder %v6740_v2, %v7568_v43 }
  0xf9   : > { %6574 = vmatpush1.bf16.msk.msra.mxu1 %vm7603_vm2, %v12330_v16  ;;  %v1396_v51 = vpop.f32.mrf.mxu0  ;;  %1948 = vmatprep.mubr.bf16.mxu0 %v12704_v38  ;;  %vm576_vm2 = vcmp.eq.s32.totalorder %v6819_v18, %v7555_v35  ;;  %v3866_v61 = vsel %vm12712_vm10, %v1667_v34, 0.0 }
  0xfa   : > { %v1669_v16 = vpop.f32.mrf.mxu1  ;;  %2221 = vmatprep.mubr.bf16.mxu1 %v12704_v38  ;;  %6544 = vmatprep.subr.msk.bf16.mxu0 %vm7619_vm9, %v12707_v15  ;;  %vm529_vm9 = vcmp.eq.s32.totalorder %v6842_v19, %v7357_v12  ;;  %vm7766_vm10 = vmpackc.low %vm576_vm2, %vm560_vm3  ;;  %vm530_vm3 = vcmp.eq.s32.totalorder %v6842_v19, %v7559_v37 }
  0xfb   : > { %v1398_v57 = vpop.f32.mrf.mxu0  ;;  %6576 = vmatprep.subr.msk.bf16.mxu1 %vm7638_vm11, %v12707_v15  ;;  %vm531_vm11 = vcmp.eq.s32.totalorder %v6842_v19, %v7361_v13  ;;  %vm7789_vm2 = vmpackc.low %vm578_vm12, %vm562_vm6  ;;  %vm12389_vm6 = vcmp.eq.s32.totalorder %v6894_v23, %v7571_v48 }
  0xfc   : > { %v3880_v46 = vsel %vm12345_vm4, %v1398_v57, 0.0  ;;  %v1671_v4 = vpop.f32.mrf.mxu1  ;;  %6546 = vmatpush1.bf16.msk.msra.mxu0 %vm7658_vm0, %v12707_v15  ;;  %vm12713_vm4 = vcmp.eq.s32.totalorder %v6946_v27, %v7568_v43  ;;  %vm12717_vm0 = vcmp.eq.s32.totalorder %v6946_v27, %v7571_v48  ;;  %vm7810_vm12 = vmpackc.low %vm545_vm5, %vm529_vm9  ;;  %vm497_vm9 = vcmp.eq.s32.totalorder %v6868_v21, %v7357_v12 }
  0xfd   : > { %v4120_v8 = vadd.f32 %v3880_v46, %v3864_v9  ;;  %v3882_v57 = vsel %vm12713_vm4, %v1671_v4, 0.0  ;;  %v1400_v31 = vpop.f32.mrf.mxu0  ;;  %6578 = vmatpush1.bf16.msk.msra.mxu1 %vm7682_vm7, %v12707_v15  ;;  %6548 = vmatprep.subr.msk.bf16.mxu0 %vm7698_vm15, %v12707_v15  ;;  %vm544_vm4 = vcmp.eq.s32.totalorder %v6845_v20, %v7555_v35  ;;  %vm12716_vm7 = vcmp.eq.s32.totalorder %v6740_v2, %v7571_v48  ;;  %vm7829_vm5 = vmpackc.low %vm547_vm1, %vm531_vm11 }
  0xfe   : > { %v3865_v4 = vsel %vm12716_vm7, %v1396_v51, 0.0  ;;  %v4162_v46 = vadd.f32 %v3882_v57, %v3866_v61  ;;  %v3881_v60 = vsel %vm12717_vm0, %v1400_v31, 0.0  ;;  %v1673_v34 = vpop.f32.mrf.mxu1  ;;  %vm3674_vm15 = vcmp.eq.s32.totalorder %v6894_v23, %v7568_v43  ;;  %6580 = vmatprep.subr.msk.bf16.mxu1 %vm7719_vm8, %v12707_v15  ;;  %vm7852_vm1 = vmpackc.low %vm544_vm4, %vm528_vm14 }
  0xff   : > { %vm12720_vm7 = vcmp.eq.s32.totalorder %v6740_v2, %v7579_v63  ;;  %v4141_v55 = vadd.f32 %v3881_v60, %v3865_v4  ;;  %vm12721_vm8 = vcmp.eq.s32.totalorder %v6946_v27, %v7579_v63  ;;  %v1404_v9 = vpop.f32.mrf.mxu0  ;;  %1949 = vmatmul.mubr.bf16.gmra.mxu0 %v7104_v41  ;;  %vm546_vm0 = vcmp.eq.s32.totalorder %v6845_v20, %v7559_v37 }
 0x100   : > { %v3867_v31 = vsel %vm12720_vm7, %v1669_v16, 0.0  ;;  %v3883_v52 = vsel %vm12721_vm8, %v1673_v34, 0.0  ;;  %vm12724_vm7 = vcmp.eq.s32.totalorder %v6920_v25, %v7563_v42  ;;  %v1677_v4 = vpop.f32.mrf.mxu1  ;;  %2222 = vmatmul.mubr.bf16.gmra.mxu1 %v7104_v41  ;;  %1958 = vmatprep.mubr.bf16.mxu0 %v12704_v38  ;;  %vm12727_vm8 = vcmp.eq.s32.totalorder %v6920_v25, %v7568_v43  ;;  %vm7875_vm14 = vmpackc.low %vm546_vm0, %vm530_vm3 }
 0x101   : > { %v4183_v16 = vadd.f32 %v3883_v52, %v3867_v31  ;;  %v3896_v57 = vsel %vm12724_vm7, %v1404_v9, 0.0  ;;  %vm513_vm7 = vcmp.eq.s32.totalorder %v6871_v22, %v7357_v12  ;;  %v3898_v31 = vsel %vm12727_vm8, %v1677_v4, 0.0  ;;  %v1406_v52 = vpop.f32.mrf.mxu0  ;;  %2231 = vmatprep.mubr.bf16.mxu1 %v12704_v38  ;;  %6550 = vmatpush1.bf16.msk.msra.mxu0 %vm7766_vm10, %v12707_v15 }
 0x102   : > { %v4121_v34 = vadd.f32 %v4120_v8, %v3896_v57  ;;  %vm499_vm8 = vcmp.eq.s32.totalorder %v6868_v21, %v7361_v13  ;;  %vm515_vm11 = vcmp.eq.s32.totalorder %v6871_v22, %v7361_v13  ;;  %v4163_v9 = vadd.f32 %v4162_v46, %v3898_v31  ;;  %v1679_v57 = vpop.f32.mrf.mxu1  ;;  %6582 = vmatpush1.bf16.msk.msra.mxu1 %vm7789_vm2, %v12707_v15  ;;  %vm7895_vm3 = vmpackc.low %vm513_vm7, %vm497_vm9 }
 0x103   : > { %vm12730_vm10 = vcmp.eq.s32.totalorder %v6920_v25, %v7571_v48  ;;  %6552 = vmatprep.subr.msk.bf16.mxu0 %vm7810_vm12, %v12707_v15  ;;  %vm496_vm4 = vcmp.eq.s32.totalorder %v6868_v21, %v7555_v35  ;;  %vm512_vm2 = vcmp.eq.s32.totalorder %v6871_v22, %v7555_v35  ;;  %vm12733_vm12 = vcmp.eq.s32.totalorder %v6920_v25, %v7579_v63  ;;  %v1408_v4 = vpop.f32.mrf.mxu0  ;;  %vm7912_vm9 = vmpackc.low %vm515_vm11, %vm499_vm8 }
 0x104   : > { %v3897_v1 = vsel %vm12730_vm10, %v1406_v52, 0.0  ;;  %v3899_v61 = vsel %vm12733_vm12, %v1679_v57, 0.0  ;;  %6584 = vmatprep.subr.msk.bf16.mxu1 %vm7829_vm5, %v12707_v15  ;;  %vm498_vm0 = vcmp.eq.s32.totalorder %v6868_v21, %v7559_v37  ;;  %vm514_vm10 = vcmp.eq.s32.totalorder %v6871_v22, %v7559_v37  ;;  %v1681_v52 = vpop.f32.mrf.mxu1  ;;  %vm7932_vm11 = vmpackc.low %vm512_vm2, %vm496_vm4 }
 0x105   : > { %v4142_v51 = vadd.f32 %v4141_v55, %v3897_v1  ;;  %v4184_v55 = vadd.f32 %v4183_v16, %v3899_v61  ;;  %vm12736_vm5 = vcmp.eq.s32.totalorder %v6923_v26, %v7563_v42  ;;  %vm465_vm7 = vcmp.eq.s32.totalorder %v6894_v23, %v7357_v12  ;;  %v1410_v61 = vpop.f32.mrf.mxu0  ;;  %6554 = vmatpush1.bf16.msk.msra.mxu0 %vm7852_vm1, %v12707_v15  ;;  %vm7955_vm4 = vmpackc.low %vm514_vm10, %vm498_vm0 }
 0x106   : > { %v3912_v60 = vsel %vm12736_vm5, %v1408_v4, 0.0  ;;  %vm481_vm12 = vcmp.eq.s32.totalorder %v6897_v24, %v7357_v12  ;;  %vm12739_vm5 = vcmp.eq.s32.totalorder %v6923_v26, %v7568_v43  ;;  %vm467_vm8 = vcmp.eq.s32.totalorder %v6894_v23, %v7361_v13  ;;  %6586 = vmatpush1.bf16.msk.msra.mxu1 %vm7875_vm14, %v12707_v15  ;;  %6556 = vmatprep.subr.msk.bf16.mxu0 %vm7895_vm3, %v12707_v15 }
 0x107   : > { %v4122_v16 = vadd.f32 %v4121_v34, %v3912_v60  ;;  %v3914_v57 = vsel %vm12739_vm5, %v1681_v52, 0.0  ;;  %vm483_vm5 = vcmp.eq.s32.totalorder %v6897_v24, %v7361_v13  ;;  %vm12742_vm1 = vcmp.eq.s32.totalorder %v6923_v26, %v7571_v48  ;;  %v1683_v60 = vpop.f32.mrf.mxu1  ;;  %v1414_v52 = vpop.f32.mrf.mxu0  ;;  %1959 = vmatmul.mubr.bf16.gmra.mxu0 %v7171_v44  ;;  %6588 = vmatprep.subr.msk.bf16.mxu1 %vm7912_vm9, %v12707_v15  ;;  %vm7976_vm0 = vmpackc.low %vm481_vm12, %vm465_vm7 }
 0x108   : > { %v4164_v34 = vadd.f32 %v4163_v9, %v3914_v57  ;;  %v3913_v8 = vsel %vm12742_vm1, %v1410_v61, 0.0  ;;  %vm464_vm2 = vcmp.eq.s32.totalorder %v6894_v23, %v7555_v35  ;;  %vm480_vm14 = vcmp.eq.s32.totalorder %v6897_v24, %v7555_v35  ;;  %2232 = vmatmul.mubr.bf16.gmra.mxu1 %v7171_v44  ;;  %1968 = vmatprep.mubr.bf16.mxu0 %v12704_v38  ;;  %vm7999_vm12 = vmpackc.low %vm483_vm5, %vm467_vm8 }
 0x109   : > { %v4143_v46 = vadd.f32 %v4142_v51, %v3913_v8  ;;  %vm12745_vm3 = vcmp.eq.s32.totalorder %v6923_v26, %v7579_v63  ;;  %vm466_vm10 = vcmp.eq.s32.totalorder %v6894_v23, %v7559_v37  ;;  %vm482_vm1 = vcmp.eq.s32.totalorder %v6897_v24, %v7559_v37  ;;  %v1687_v61 = vpop.f32.mrf.mxu1  ;;  %2241 = vmatprep.mubr.bf16.mxu1 %v12704_v38  ;;  %vm8020_vm8 = vmpackc.low %vm480_vm14, %vm464_vm2 }
 0x10a   : > { %v3915_v31 = vsel %vm12745_vm3, %v1683_v60, 0.0  ;;  %v3928_v1 = vsel %vm12348_vm13, %v1414_v52, 0.0  ;;  %vm12388_vm9 = vcmp.eq.s32.totalorder %v6897_v24, %v7568_v43  ;;  %vm12387_vm7 = vcmp.eq.s32.totalorder %v6897_v24, %v7571_v48  ;;  %6558 = vmatpush1.bf16.msk.msra.mxu0 %vm7932_vm11, %v12707_v15  ;;  %6590 = vmatpush1.bf16.msk.msra.mxu1 %vm7955_vm4, %v12707_v15  ;;  %vm8039_vm11 = vmpackc.low %vm482_vm1, %vm466_vm10 }
 0x10b   : > { %v4185_v51 = vadd.f32 %v4184_v55, %v3915_v31  ;;  %v4123_v8 = vadd.f32 %v4122_v16, %v3928_v1  ;;  %v3930_v60 = vsel %vm3674_vm15, %v1687_v61, 0.0  ;;  %v1416_v31 = vpop.f32.mrf.mxu0  ;;  %vm12368_vm3 = vcmp.eq.s32.totalorder %v6897_v24, %v7579_v63  ;;  %v1689_v61 = vpop.f32.mrf.mxu1  ;;  %6560 = vmatprep.subr.msk.bf16.mxu0 %vm7976_vm0, %v12707_v15  ;;  %6592 = vmatprep.subr.msk.bf16.mxu1 %vm7999_vm12, %v12707_v15 }
 0x10c   : > { %vm12366_vm13 = vcmp.eq.s32.totalorder %v6868_v21, %v7563_v42  ;;  %v4165_v52 = vadd.f32 %v4164_v34, %v3930_v60  ;;  %v3929_v1 = vsel %vm12389_vm6, %v1416_v31, 0.0  ;;  %vm433_vm5 = vcmp.eq.s32.totalorder %v6920_v25, %v7357_v12 }
 0x10d   : > { %vm449_vm4 = vcmp.eq.s32.totalorder %v6923_v26, %v7357_v12  ;;  %v4144_v34 = vadd.f32 %v4143_v46, %v3929_v1  ;;  %vm12754_vm2 = vcmp.eq.s32.totalorder %v6894_v23, %v7579_v63  ;;  %v1418_v57 = vpop.f32.mrf.mxu0  ;;  %vm435_vm0 = vcmp.eq.s32.totalorder %v6920_v25, %v7361_v13  ;;  %v1691_v1 = vpop.f32.mrf.mxu1 }
 0x10e   : > { %v3931_v9 = vsel %vm12754_vm2, %v1689_v61, 0.0  ;;  %vm8053_vm14 = vmpackc.low %vm449_vm4, %vm433_vm5  ;;  %vm451_vm10 = vcmp.eq.s32.totalorder %v6923_v26, %v7361_v13  ;;  %vm12757_vm1 = vcmp.eq.s32.totalorder %v6897_v24, %v7563_v42  ;;  %vm432_vm12 = vcmp.eq.s32.totalorder %v6920_v25, %v7555_v35  ;;  %6562 = vmatpush1.bf16.msk.msra.mxu0 %vm8020_vm8, %v12707_v15  ;;  %6594 = vmatpush1.bf16.msk.msra.mxu1 %vm8039_vm11, %v12707_v15 }
 0x10f   : > { %v4186_v46 = vadd.f32 %v4185_v51, %v3931_v9  ;;  %v3944_v31 = vsel %vm12757_vm1, %v1418_v57, 0.0  ;;  %vm8064_vm2 = vmpackc.low %vm451_vm10, %vm435_vm0  ;;  %vm448_vm5 = vcmp.eq.s32.totalorder %v6923_v26, %v7555_v35  ;;  %v3946_v51 = vsel %vm12388_vm9, %v1691_v1, 0.0  ;;  %v1420_v9 = vpop.f32.mrf.mxu0  ;;  %6564 = vmatprep.subr.msk.bf16.mxu0 %vm8053_vm14, %v12707_v15  ;;  %1969 = vmatmul.mubr.bf16.gmra.mxu0 %v7241_v47 }
 0x110   : > { %v4124_v55 = vadd.f32 %v4123_v8, %v3944_v31  ;;  %vm434_vm4 = vcmp.eq.s32.totalorder %v6920_v25, %v7559_v37  ;;  %vm450_vm0 = vcmp.eq.s32.totalorder %v6923_v26, %v7559_v37  ;;  %v4166_v57 = vadd.f32 %v4165_v52, %v3946_v51  ;;  %v1693_v31 = vpop.f32.mrf.mxu1  ;;  %vm8093_vm8 = vmpackc.low %vm448_vm5, %vm432_vm12  ;;  %6596 = vmatprep.subr.msk.bf16.mxu1 %vm8064_vm2, %v12707_v15 }
 0x111   : > { %v3945_v8 = vsel %vm12387_vm7, %v1420_v9, 0.0  ;;  %vm12365_vm10 = vcmp.eq.s32.totalorder %v6868_v21, %v7568_v43  ;;  %v3947_v1 = vsel %vm12368_vm3, %v1693_v31, 0.0  ;;  %v1424_v51 = vpop.f32.mrf.mxu0  ;;  %vm12363_vm1 = vcmp.eq.s32.totalorder %v6868_v21, %v7571_v48  ;;  %vm8109_vm11 = vmpackc.low %vm450_vm0, %vm434_vm4  ;;  %2242 = vmatmul.mubr.bf16.gmra.mxu1 %v7241_v47  ;;  %1978 = vmatprep.mubr.bf16.mxu0 %v12704_v38 }
 0x112   : > { %v4145_v52 = vadd.f32 %v4144_v34, %v3945_v8  ;;  %v4187_v34 = vadd.f32 %v4186_v46, %v3947_v1  ;;  %v3960_v60 = vsel %vm12366_vm13, %v1424_v51, 0.0  ;;  %v1697_v9 = vpop.f32.mrf.mxu1  ;;  %vm12362_vm14 = vcmp.eq.s32.totalorder %v6868_v21, %v7579_v63  ;;  %2251 = vmatprep.mubr.bf16.mxu1 %v12704_v38  ;;  %6566 = vmatpush1.bf16.msk.msra.mxu0 %vm8093_vm8, %v12707_v15 }
 0x113   : > { %v4125_v61 = vadd.f32 %v4124_v55, %v3960_v60  ;;  %v3962_v8 = vsel %vm12365_vm10, %v1697_v9, 0.0  ;;  %v1426_v31 = vpop.f32.mrf.mxu0  ;;  %vm12360_vm2 = vcmp.eq.s32.totalorder %v6871_v22, %v7563_v42  ;;  %vm12356_vm12 = vcmp.eq.s32.totalorder %v6871_v22, %v7568_v43  ;;  %6598 = vmatpush1.bf16.msk.msra.mxu1 %vm8109_vm11, %v12707_v15 }
 0x114   : > { %v4167_v46 = vadd.f32 %v4166_v57, %v3962_v8  ;;  %v3961_v1 = vsel %vm12363_vm1, %v1426_v31, 0.0  ;;  %v1699_v55 = vpop.f32.mrf.mxu1  ;;  %vm12349_vm5 = vcmp.eq.s32.totalorder %v6871_v22, %v7571_v48  ;;  %vm12350_vm4 = vcmp.eq.s32.totalorder %v6871_v22, %v7579_v63 }
 0x115   : > { %v4146_v51 = vadd.f32 %v4145_v52, %v3961_v1  ;;  %v3963_v60 = vsel %vm12362_vm14, %v1699_v55, 0.0  ;;  %v1428_v16 = vpop.f32.mrf.mxu0  ;;  %vm12351_vm0 = vcmp.eq.s32.totalorder %v6842_v19, %v7563_v42  ;;  %vm12352_vm8 = vcmp.eq.s32.totalorder %v6842_v19, %v7568_v43 }
 0x116   : > { %v4188_v57 = vadd.f32 %v4187_v34, %v3963_v60  ;;  %v3976_v9 = vsel %vm12360_vm2, %v1428_v16, 0.0  ;;  %v1701_v8 = vpop.f32.mrf.mxu1  ;;  %vm12353_vm11 = vcmp.eq.s32.totalorder %v6842_v19, %v7571_v48  ;;  %vm3785_vm2 = vcmp.eq.s32.totalorder %v6819_v18, %v7571_v48 }
 0x117   : > { %v4126_v4 = vadd.f32 %v4125_v61, %v3976_v9  ;;  %v3978_v52 = vsel %vm12356_vm12, %v1701_v8, 0.0  ;;  %v1430_v31 = vpop.f32.mrf.mxu0  ;;  %1979 = vmatmul.mubr.bf16.gmra.mxu0 %v7272_v50  ;;  %vm12367_vm12 = vcmp.eq.s32.totalorder %v6816_v17, %v7571_v48  ;;  %vm3800_vm14 = vcmp.eq.s32.totalorder %v6773_v10, %v7563_v42 }
 0x118   : > { %v4168_v1 = vadd.f32 %v4167_v46, %v3978_v52  ;;  %v3977_v34 = vsel %vm12349_vm5, %v1430_v31, 0.0  ;;  %v1703_v55 = vpop.f32.mrf.mxu1  ;;  %vm12354_vm5 = vcmp.eq.s32.totalorder %v6842_v19, %v7579_v63  ;;  %1988 = vmatprep.mubr.bf16.mxu0 %v12704_v38  ;;  %vm401_vm1 = vcmp.eq.s32.totalorder %v6740_v2, %v7357_v12 }
 0x119   : > { %v4147_v60 = vadd.f32 %v4146_v51, %v3977_v34  ;;  %v3979_v61 = vsel %vm12350_vm4, %v1703_v55, 0.0  ;;  %v1434_v16 = vpop.f32.mrf.mxu0  ;;  %2252 = vmatmul.mubr.bf16.gmra.mxu1 %v7272_v50  ;;  %vm12355_vm4 = vcmp.eq.s32.totalorder %v6845_v20, %v7563_v42  ;;  %vm403_vm13 = vcmp.eq.s32.totalorder %v6740_v2, %v7361_v13 }
 0x11a   : > { %v4189_v46 = vadd.f32 %v4188_v57, %v3979_v61  ;;  %v3992_v9 = vsel %vm12351_vm0, %v1434_v16, 0.0  ;;  %v1707_v8 = vpop.f32.mrf.mxu1  ;;  %2261 = vmatprep.mubr.bf16.mxu1 %v12704_v38  ;;  %vm12357_vm0 = vcmp.eq.s32.totalorder %v6845_v20, %v7568_v43 }
 0x11b   : > { %v4127_v51 = vadd.f32 %v4126_v4, %v3992_v9  ;;  %v3994_v52 = vsel %vm12352_vm8, %v1707_v8, 0.0  ;;  %v1436_v31 = vpop.f32.mrf.mxu0  ;;  %vm12358_vm8 = vcmp.eq.s32.totalorder %v6845_v20, %v7571_v48 }
 0x11c   : > { %v4169_v57 = vadd.f32 %v4168_v1, %v3994_v52  ;;  %v3993_v34 = vsel %vm12353_vm11, %v1436_v31, 0.0  ;;  %v1709_v55 = vpop.f32.mrf.mxu1  ;;  %vm12359_vm11 = vcmp.eq.s32.totalorder %v6845_v20, %v7579_v63 }
 0x11d   : > { %v4148_v4 = vadd.f32 %v4147_v60, %v3993_v34  ;;  %v3995_v61 = vsel %vm12354_vm5, %v1709_v55, 0.0  ;;  %v1438_v16 = vpop.f32.mrf.mxu0  ;;  %vm12361_vm5 = vcmp.eq.s32.totalorder %v6816_v17, %v7563_v42 }
 0x11e   : > { %v4190_v9 = vadd.f32 %v4189_v46, %v3995_v61  ;;  %v4008_v1 = vsel %vm12355_vm4, %v1438_v16, 0.0  ;;  %v1711_v8 = vpop.f32.mrf.mxu1  ;;  %vm12364_vm4 = vcmp.eq.s32.totalorder %v6816_v17, %v7568_v43 }
 0x11f   : > { %v4128_v52 = vadd.f32 %v4127_v51, %v4008_v1  ;;  %v4010_v60 = vsel %vm12357_vm0, %v1711_v8, 0.0  ;;  %v1440_v31 = vpop.f32.mrf.mxu0  ;;  %1989 = vmatmul.mubr.bf16.gmra.mxu0 %v7284_v53  ;;  %vm12369_vm0 = vcmp.eq.s32.totalorder %v6816_v17, %v7579_v63 }
 0x120   : > { %v4170_v34 = vadd.f32 %v4169_v57, %v4010_v60  ;;  %v4009_v46 = vsel %vm12358_vm8, %v1440_v31, 0.0  ;;  %v1713_v55 = vpop.f32.mrf.mxu1  ;;  %vm12370_vm8 = vcmp.eq.s32.totalorder %v6819_v18, %v7563_v42  ;;  %1998 = vmatprep.mubr.bf16.mxu0 %v12704_v38 }
 0x121   : > { %v4149_v51 = vadd.f32 %v4148_v4, %v4009_v46  ;;  %v4011_v61 = vsel %vm12359_vm11, %v1713_v55, 0.0  ;;  %v1444_v16 = vpop.f32.mrf.mxu0  ;;  %2262 = vmatmul.mubr.bf16.gmra.mxu1 %v7284_v53  ;;  %vm3786_vm11 = vcmp.eq.s32.totalorder %v6819_v18, %v7568_v43 }
 0x122   : > { %v4191_v57 = vadd.f32 %v4190_v9, %v4011_v61  ;;  %v4024_v1 = vsel %vm12361_vm5, %v1444_v16, 0.0  ;;  %v1717_v8 = vpop.f32.mrf.mxu1  ;;  %vm3787_vm5 = vcmp.eq.s32.totalorder %v6819_v18, %v7579_v63  ;;  %2271 = vmatprep.mubr.bf16.mxu1 %v12704_v38 }
 0x123   : > { %v4129_v4 = vadd.f32 %v4128_v52, %v4024_v1  ;;  %v4026_v9 = vsel %vm12364_vm4, %v1717_v8, 0.0  ;;  %v1446_v60 = vpop.f32.mrf.mxu0  ;;  %vm417_vm4 = vcmp.eq.s32.totalorder %v6946_v27, %v7357_v12 }
 0x124   : > { %v4171_v31 = vadd.f32 %v4170_v34, %v4026_v9  ;;  %v4025_v46 = vsel %vm12367_vm12, %v1446_v60, 0.0  ;;  %v1719_v55 = vpop.f32.mrf.mxu1  ;;  %vm6567_vm10 = vmpackc.low %vm417_vm4, %vm401_vm1  ;;  %vm419_vm12 = vcmp.eq.s32.totalorder %v6946_v27, %v7361_v13  ;;  %vm416_vm1 = vcmp.eq.s32.totalorder %v6946_v27, %v7555_v35 }
 0x125   : > { %v4150_v52 = vadd.f32 %v4149_v51, %v4025_v46  ;;  %v4027_v61 = vsel %vm12369_vm0, %v1719_v55, 0.0  ;;  %v1448_v16 = vpop.f32.mrf.mxu0  ;;  %6568 = vmatprep.subr.msk.bf16.mxu0 %vm6567_vm10, %v12707_v15  ;;  %vm6599_vm3 = vmpackc.low %vm419_vm12, %vm403_vm13  ;;  %vm400_vm0 = vcmp.eq.s32.totalorder %v6740_v2, %v7555_v35  ;;  %vm418_vm13 = vcmp.eq.s32.totalorder %v6946_v27, %v7559_v37 }
 0x126   : > { %v4192_v34 = vadd.f32 %v4191_v57, %v4027_v61  ;;  %v4040_v1 = vsel %vm12370_vm8, %v1448_v16, 0.0  ;;  %v1721_v8 = vpop.f32.mrf.mxu1  ;;  %6600 = vmatprep.subr.msk.bf16.mxu1 %vm6599_vm3, %v12707_v15  ;;  %vm6569_vm4 = vmpackc.low %vm416_vm1, %vm400_vm0  ;;  %vm402_vm8 = vcmp.eq.s32.totalorder %v6740_v2, %v7559_v37  ;;  %vm3802_vm10 = vcmp.eq.s32.totalorder %v6773_v10, %v7568_v43 }
 0x127   : > { %v4130_v12 = vadd.f32 %v4129_v4, %v4040_v1  ;;  %v4042_v13 = vsel %vm3786_vm11, %v1721_v8, 0.0  ;;  %v1450_v51 = vpop.f32.mrf.mxu0  ;;  %6570 = vmatpush1.bf16.msk.msra.mxu0 %vm6569_vm4, %v12707_v15  ;;  %vm6601_vm12 = vmpackc.low %vm418_vm13, %vm402_vm8  ;;  %vm3801_vm3 = vcmp.eq.s32.totalorder %v6773_v10, %v7571_v48  ;;  %vm3803_vm0 = vcmp.eq.s32.totalorder %v6773_v10, %v7579_v63 }
 0x128   : > { %v4172_v57 = vadd.f32 %v4171_v31, %v4042_v13  ;;  %v4041_v35 = vsel %vm3785_vm2, %v1450_v51, 0.0  ;;  %v1723_v4 = vpop.f32.mrf.mxu1  ;;  %1999 = vmatmul.mubr.bf16.gmra.mxu0 %v7313_v56  ;;  %6602 = vmatpush1.bf16.msk.msra.mxu1 %vm6601_vm12, %v12707_v15  ;;  %vm12371_vm8 = vcmp.eq.s32.totalorder %v6776_v11, %v7563_v42  ;;  %vm12372_vm1 = vcmp.eq.s32.totalorder %v6776_v11, %v7568_v43 }
 0x129   : > { %v4151_v9 = vadd.f32 %v4150_v52, %v4041_v35  ;;  %v4043_v60 = vsel %vm3787_vm5, %v1723_v4, 0.0  ;;  %v1454_v46 = vpop.f32.mrf.mxu0  ;;  %2272 = vmatmul.mubr.bf16.gmra.mxu1 %v7313_v56  ;;  %2008 = vmatprep.mubr.bf16.mxu0 %v12704_v38  ;;  %vm12373_vm4 = vcmp.eq.s32.totalorder %v6776_v11, %v7571_v48  ;;  %vm12374_vm13 = vcmp.eq.s32.totalorder %v6776_v11, %v7579_v63 }
 0x12a   : > { %v4193_v37 = vadd.f32 %v4192_v34, %v4043_v60  ;;  %v4056_v31 = vsel %vm3800_vm14, %v1454_v46, 0.0  ;;  %v1727_v55 = vpop.f32.mrf.mxu1  ;;  %2281 = vmatprep.mubr.bf16.mxu1 %v12704_v38  ;;  %vm12375_vm12 = vcmp.eq.s32.totalorder %v6758_v5, %v7563_v42 }
 0x12b   : > { %v4131_v52 = vadd.f32 %v4130_v12, %v4056_v31  ;;  %v4058_v61 = vsel %vm3802_vm10, %v1727_v55, 0.0  ;;  %v1456_v16 = vpop.f32.mrf.mxu0 }
 0x12c   : > { %v4173_v34 = vadd.f32 %v4172_v57, %v4058_v61  ;;  %v4057_v1 = vsel %vm3801_vm3, %v1456_v16, 0.0  ;;  %v1729_v8 = vpop.f32.mrf.mxu1 }
 0x12d   : > { %v4152_v12 = vadd.f32 %v4151_v9, %v4057_v1  ;;  %v4059_v13 = vsel %vm3803_vm0, %v1729_v8, 0.0  ;;  %v1458_v51 = vpop.f32.mrf.mxu0 }
 0x12e   : > { %v4194_v35 = vadd.f32 %v4193_v37, %v4059_v13  ;;  %v4072_v57 = vsel %vm12371_vm8, %v1458_v51, 0.0  ;;  %v1731_v4 = vpop.f32.mrf.mxu1  ;;  %vm12376_vm8 = vcmp.eq.s32.totalorder %v6758_v5, %v7568_v43 }
 0x12f   : > { %v4132_v60 = vadd.f32 %v4131_v52, %v4072_v57  ;;  %v4074_v9 = vsel %vm12372_vm1, %v1731_v4, 0.0  ;;  %v1460_v46 = vpop.f32.mrf.mxu0  ;;  %vm12377_vm1 = vcmp.eq.s32.totalorder %v6758_v5, %v7571_v48 }
 0x130   : > { %v4174_v31 = vadd.f32 %v4173_v34, %v4074_v9  ;;  %v4073_v37 = vsel %vm12373_vm4, %v1460_v46, 0.0  ;;  %v1733_v55 = vpop.f32.mrf.mxu1  ;;  %2009 = vmatmul.mubr.bf16.gmra.mxu0 %v7328_v59  ;;  %vm12382_vm4 = vcmp.eq.s32.totalorder %v6758_v5, %v7579_v63 }
 0x131   : > { %v4153_v61 = vadd.f32 %v4152_v12, %v4073_v37  ;;  %v4075_v52 = vsel %vm12374_vm13, %v1733_v55, 0.0  ;;  %v1464_v16 = vpop.f32.mrf.mxu0  ;;  %2282 = vmatmul.mubr.bf16.gmra.mxu1 %v7328_v59  ;;  %2018 = vmatprep.mubr.bf16.mxu0 %v12704_v38  ;;  %vm12381_vm13 = vcmp.eq.s32.totalorder %v6761_v6, %v7563_v42 }
 0x132   : > { %v4195_v34 = vadd.f32 %v4194_v35, %v4075_v52  ;;  %v4088_v1 = vsel %vm12375_vm12, %v1464_v16, 0.0  ;;  %v1737_v8 = vpop.f32.mrf.mxu1  ;;  %2291 = vmatprep.mubr.bf16.mxu1 %v12704_v38  ;;  %vm12380_vm12 = vcmp.eq.s32.totalorder %v6761_v6, %v7568_v43 }
 0x133   : > { %v4133_v12 = vadd.f32 %v4132_v60, %v4088_v1  ;;  %v4090_v13 = vsel %vm12376_vm8, %v1737_v8, 0.0  ;;  %v1466_v51 = vpop.f32.mrf.mxu0  ;;  %vm12378_vm8 = vcmp.eq.s32.totalorder %v6761_v6, %v7571_v48 }
 0x134   : > { %v4175_v35 = vadd.f32 %v4174_v31, %v4090_v13  ;;  %v4089_v57 = vsel %vm12377_vm1, %v1466_v51, 0.0  ;;  %v1739_v4 = vpop.f32.mrf.mxu1  ;;  %vm12379_vm1 = vcmp.eq.s32.totalorder %v6761_v6, %v7579_v63 }
 0x135   : > { %v4154_v60 = vadd.f32 %v4153_v61, %v4089_v57  ;;  %v4091_v9 = vsel %vm12382_vm4, %v1739_v4, 0.0  ;;  %v1468_v46 = vpop.f32.mrf.mxu0  ;;  %vm12768_vm4 = vcmp.eq.s32.totalorder %v6740_v2, %v7571_v48 }
 0x136   : > { %v4196_v37 = vadd.f32 %v4195_v34, %v4091_v9  ;;  %v4104_v31 = vsel %vm12381_vm13, %v1468_v46, 0.0  ;;  %v1741_v55 = vpop.f32.mrf.mxu1  ;;  %vm12767_vm13 = vcmp.eq.s32.totalorder %v6946_v27, %v7568_v43 }
 0x137   : > { %v8343_v52 = vadd.f32 %v4133_v12, %v4104_v31  ;;  %v4106_v61 = vsel %vm12380_vm12, %v1741_v55, 0.0  ;;  %v1470_v16 = vpop.f32.mrf.mxu0  ;;  %vm12766_vm12 = vcmp.eq.s32.totalorder %v6740_v2, %v7568_v43 }
 0x138   : > { %v8348_v1 = vadd.f32 %v4175_v35, %v4106_v61  ;;  %v4105_v34 = vsel %vm12378_vm8, %v1470_v16, 0.0  ;;  %v1743_v8 = vpop.f32.mrf.mxu1  ;;  %2019 = vmatmul.mubr.bf16.gmra.mxu0 %v7340_v62  ;;  %vm12764_vm8 = vcmp.eq.s32.totalorder %v6740_v2, %v7563_v42 }
 0x139   : > { %v8353_v13 = vadd.f32 %v4154_v60, %v4105_v34  ;;  %v4107_v51 = vsel %vm12379_vm1, %v1743_v8, 0.0  ;;  %v1474_v12 = vpop.f32.mrf.mxu0  ;;  %2292 = vmatmul.mubr.bf16.gmra.mxu1 %v7340_v62  ;;  %2028 = vmatprep.mubr.bf16.mxu0 %v12704_v38  ;;  %vm12765_vm1 = vcmp.eq.s32.totalorder %v6946_v27, %v7563_v42 }
 0x13a   : > { %v8359_v57 = vadd.f32 %v4196_v37, %v4107_v51  ;;  %v1747_v4 = vpop.f32.mrf.mxu1  ;;  %2301 = vmatprep.mubr.bf16.mxu1 %v12704_v38  ;;  %v4456_v46 = vsel %vm12764_vm8, %v1474_v12, 0.0  ;;  %vm12769_vm8 = vcmp.eq.s32.totalorder %v6946_v27, %v7571_v48 }
 0x13b   : > { %v1476_v35 = vpop.f32.mrf.mxu0  ;;  %v4458_v55 = vsel %vm12766_vm12, %v1747_v4, 0.0  ;;  %vm12771_vm12 = vcmp.eq.s32.totalorder %v6946_v27, %v7579_v63 }
 0x13c   : > { %v1749_v9 = vpop.f32.mrf.mxu1  ;;  %v4457_v8 = vsel %vm12768_vm4, %v1476_v35, 0.0  ;;  %vm12772_vm4 = vcmp.eq.s32.totalorder %v6920_v25, %v7563_v42 }
 0x13d   : > { %v1478_v60 = vpop.f32.mrf.mxu0 }
 0x13e   : > { %v4472_v31 = vsel %vm12765_vm1, %v1478_v60, 0.0  ;;  %v1751_v37 = vpop.f32.mrf.mxu1  ;;  %vm12770_vm1 = vcmp.eq.s32.totalorder %v6740_v2, %v7579_v63 }
 0x13f   : > { %v4712_v61 = vadd.f32 %v4472_v31, %v4456_v46  ;;  %v4474_v16 = vsel %vm12767_vm13, %v1751_v37, 0.0  ;;  %v1480_v34 = vpop.f32.mrf.mxu0  ;;  %v4459_v4 = vsel %vm12770_vm1, %v1749_v9, 0.0  ;;  %vm12773_vm13 = vcmp.eq.s32.totalorder %v6920_v25, %v7568_v43 }
 0x140   : > { %v4754_v51 = vadd.f32 %v4474_v16, %v4458_v55  ;;  %v4473_v12 = vsel %vm12769_vm8, %v1480_v34, 0.0  ;;  %v1753_v60 = vpop.f32.mrf.mxu1  ;;  %2029 = vmatmul.mubr.bf16.gmra.mxu0 %v7363_v14  ;;  %vm12774_vm8 = vcmp.eq.s32.totalorder %v6920_v25, %v7571_v48  ;;  %vm12775_vm1 = vcmp.eq.s32.totalorder %v6920_v25, %v7579_v63 }
 0x141   : > { %v4733_v46 = vadd.f32 %v4473_v12, %v4457_v8  ;;  %v4475_v31 = vsel %vm12771_vm12, %v1753_v60, 0.0  ;;  %v1484_v37 = vpop.f32.mrf.mxu0  ;;  %2302 = vmatmul.mubr.bf16.gmra.mxu1 %v7363_v14  ;;  %2038 = vmatprep.mubr.bf16.mxu0 %v12704_v38  ;;  %vm12776_vm12 = vcmp.eq.s32.totalorder %v6923_v26, %v7563_v42 }
 0x142   : > { %v4775_v62 = vadd.f32 %v4475_v31, %v4459_v4  ;;  %v4488_v35 = vsel %vm12772_vm4, %v1484_v37, 0.0  ;;  %v1757_v55 = vpop.f32.mrf.mxu1  ;;  %2311 = vmatprep.mubr.bf16.mxu1 %v12704_v38  ;;  %vm12777_vm4 = vcmp.eq.s32.totalorder %v6923_v26, %v7568_v43 }
 0x143   : > { %v4713_v16 = vadd.f32 %v4712_v61, %v4488_v35  ;;  %v4490_v9 = vsel %vm12773_vm13, %v1757_v55, 0.0  ;;  %v1486_v34 = vpop.f32.mrf.mxu0  ;;  %vm12778_vm13 = vcmp.eq.s32.totalorder %v6923_v26, %v7571_v48 }
 0x144   : > { %v4755_v8 = vadd.f32 %v4754_v51, %v4490_v9  ;;  %v4489_v12 = vsel %vm12774_vm8, %v1486_v34, 0.0  ;;  %v1759_v60 = vpop.f32.mrf.mxu1  ;;  %vm12779_vm8 = vcmp.eq.s32.totalorder %v6923_v26, %v7579_v63 }
 0x145   : > { %v4734_v4 = vadd.f32 %v4733_v46, %v4489_v12  ;;  %v4491_v31 = vsel %vm12775_vm1, %v1759_v60, 0.0  ;;  %v1488_v37 = vpop.f32.mrf.mxu0  ;;  %vm12780_vm1 = vcmp.eq.s32.totalorder %v6894_v23, %v7563_v42 }
 0x146   : > { %v4776_v61 = vadd.f32 %v4775_v62, %v4491_v31  ;;  %v4504_v35 = vsel %vm12776_vm12, %v1488_v37, 0.0  ;;  %v1761_v55 = vpop.f32.mrf.mxu1  ;;  %vm12781_vm12 = vcmp.eq.s32.totalorder %v6894_v23, %v7579_v63 }
 0x147   : > { %v4714_v14 = vadd.f32 %v4713_v16, %v4504_v35  ;;  %v4506_v51 = vsel %vm12777_vm4, %v1761_v55, 0.0  ;;  %v1490_v9 = vpop.f32.mrf.mxu0  ;;  %vm12782_vm4 = vcmp.eq.s32.totalorder %v6897_v24, %v7563_v42 }
 0x148   : > { %v4756_v34 = vadd.f32 %v4755_v8, %v4506_v51  ;;  %v4505_v46 = vsel %vm12778_vm13, %v1490_v9, 0.0  ;;  %v1763_v12 = vpop.f32.mrf.mxu1  ;;  %2039 = vmatmul.mubr.bf16.gmra.mxu0 %v7385_v33  ;;  %vm12783_vm13 = vcmp.eq.s32.totalorder %v6897_v24, %v7579_v63 }
 0x149   : > { %v4735_v60 = vadd.f32 %v4734_v4, %v4505_v46  ;;  %v4507_v62 = vsel %vm12779_vm8, %v1763_v12, 0.0  ;;  %v1494_v31 = vpop.f32.mrf.mxu0  ;;  %2312 = vmatmul.mubr.bf16.gmra.mxu1 %v7385_v33  ;;  %2048 = vmatprep.mubr.bf16.mxu0 %v12704_v38  ;;  %vm12786_vm8 = vcmp.eq.s32.totalorder %v6868_v21, %v7563_v42 }
 0x14a   : > { %v4777_v16 = vadd.f32 %v4776_v61, %v4507_v62  ;;  %v4520_v37 = vsel %vm12780_vm1, %v1494_v31, 0.0  ;;  %v1767_v35 = vpop.f32.mrf.mxu1  ;;  %2321 = vmatprep.mubr.bf16.mxu1 %v12704_v38  ;;  %vm12787_vm1 = vcmp.eq.s32.totalorder %v6868_v21, %v7568_v43 }
 0x14b   : > { %v4715_v8 = vadd.f32 %v4714_v14, %v4520_v37  ;;  %v4522_v4 = vsel %vm3674_vm15, %v1767_v35, 0.0  ;;  %v1496_v55 = vpop.f32.mrf.mxu0 }
 0x14c   : > { %v4757_v51 = vadd.f32 %v4756_v34, %v4522_v4  ;;  %v4521_v61 = vsel %vm12389_vm6, %v1496_v55, 0.0  ;;  %v1769_v9 = vpop.f32.mrf.mxu1 }
 0x14d   : > { %v4736_v46 = vadd.f32 %v4735_v60, %v4521_v61  ;;  %v4523_v12 = vsel %vm12781_vm12, %v1769_v9, 0.0  ;;  %v1498_v14 = vpop.f32.mrf.mxu0 }
 0x14e   : > { %v4778_v62 = vadd.f32 %v4777_v16, %v4523_v12  ;;  %v4536_v31 = vsel %vm12782_vm4, %v1498_v14, 0.0  ;;  %v1771_v37 = vpop.f32.mrf.mxu1 }
 0x14f   : > { %v4716_v35 = vadd.f32 %v4715_v8, %v4536_v31  ;;  %v4538_v34 = vsel %vm12388_vm9, %v1771_v37, 0.0  ;;  %v1500_v4 = vpop.f32.mrf.mxu0  ;;  %v8446_v8 = vld [vmem:[%s6755_s26 + $0x8] sm:$0xff]  ;;  %vm12789_vm9 = vcmp.eq.s32.totalorder %v6868_v21, %v7579_v63 }
 0x150   : > { %v4758_v55 = vadd.f32 %v4757_v51, %v4538_v34  ;;  %v4537_v60 = vsel %vm12387_vm7, %v1500_v4, 0.0  ;;  %v1773_v61 = vpop.f32.mrf.mxu1  ;;  %2049 = vmatmul.mubr.bf16.gmra.mxu0 %v7397_v36  ;;  %v8450_v14 = vrot.slane %v8446_v8, %v6949_v28  ;;  %v8454_v51 = vrot.slane %v8446_v8, %v6957_v29 }
 0x151   : > { %v4737_v9 = vadd.f32 %v4736_v46, %v4537_v60  ;;  %v4539_v16 = vsel %vm12783_vm13, %v1773_v61, 0.0  ;;  %v1504_v12 = vpop.f32.mrf.mxu0  ;;  %2322 = vmatmul.mubr.bf16.gmra.mxu1 %v7397_v36  ;;  %2058 = vmatprep.mubr.bf16.mxu0 %v12704_v38  ;;  %vm12788_vm13 = vcmp.eq.s32.totalorder %v6868_v21, %v7571_v48 }
 0x152   : > { %12784 = vst [vmem:[#allocation42_spill] sm:$0xff] %v8450_v14  ;;  %12785 = vst [vmem:[#allocation43_spill] sm:$0xff] %v8454_v51  ;;  %v4779_v31 = vadd.f32 %v4778_v62, %v4539_v16  ;;  %v4552_v46 = vsel %vm12786_vm8, %v1504_v12, 0.0  ;;  %v1777_v37 = vpop.f32.mrf.mxu1  ;;  %2331 = vmatprep.mubr.bf16.mxu1 %v12704_v38  ;;  %vm629_vm12 = vcmp.eq.s32.totalorder %v6758_v5, %v8450_v14 }
 0x153   : > { %v4717_v34 = vadd.f32 %v4716_v35, %v4552_v46  ;;  %v4554_v4 = vsel %vm12787_vm1, %v1777_v37, 0.0  ;;  %v1506_v60 = vpop.f32.mrf.mxu0  ;;  %vm645_vm4 = vcmp.eq.s32.totalorder %v6761_v6, %v8450_v14  ;;  %vm631_vm7 = vcmp.eq.s32.totalorder %v6758_v5, %v8454_v51 }
 0x154   : > { %v4759_v62 = vadd.f32 %v4758_v55, %v4554_v4  ;;  %v4553_v61 = vsel %vm12788_vm13, %v1506_v60, 0.0  ;;  %v1779_v16 = vpop.f32.mrf.mxu1  ;;  %vm6603_vm8 = vmpackc.low %vm645_vm4, %vm629_vm12  ;;  %vm647_vm1 = vcmp.eq.s32.totalorder %v6761_v6, %v8454_v51  ;;  %vm12790_vm13 = vcmp.eq.s32.totalorder %v6871_v22, %v7563_v42 }
 0x155   : > { %v4738_v35 = vadd.f32 %v4737_v9, %v4553_v61  ;;  %v4555_v12 = vsel %vm12789_vm9, %v1779_v16, 0.0  ;;  %v1508_v46 = vpop.f32.mrf.mxu0  ;;  %6604 = vmatprep.subr.msk.bf16.mxu0 %vm6603_vm8, %v12707_v15  ;;  %vm6635_vm6 = vmpackc.low %vm647_vm1, %vm631_vm7  ;;  %vm12791_vm12 = vcmp.eq.s32.totalorder %v6871_v22, %v7568_v43  ;;  %vm12792_vm9 = vcmp.eq.s32.totalorder %v6871_v22, %v7571_v48 }
 0x156   : > { %v4780_v55 = vadd.f32 %v4779_v31, %v4555_v12  ;;  %v4568_v37 = vsel %vm12790_vm13, %v1508_v46, 0.0  ;;  %v1781_v4 = vpop.f32.mrf.mxu1  ;;  %6636 = vmatprep.subr.msk.bf16.mxu1 %vm6635_vm6, %v12707_v15  ;;  %vm12793_vm7 = vcmp.eq.s32.totalorder %v6871_v22, %v7579_v63  ;;  %vm12794_vm6 = vcmp.eq.s32.totalorder %v6842_v19, %v7563_v42 }
 0x157   : > { %v4718_v60 = vadd.f32 %v4717_v34, %v4568_v37  ;;  %v4570_v9 = vsel %vm12791_vm12, %v1781_v4, 0.0  ;;  %v1510_v61 = vpop.f32.mrf.mxu0  ;;  %vm12795_vm4 = vcmp.eq.s32.totalorder %v6842_v19, %v7568_v43  ;;  %vm12796_vm8 = vcmp.eq.s32.totalorder %v6842_v19, %v7571_v48 }
 0x158   : > { %v4760_v36 = vadd.f32 %v4759_v62, %v4570_v9  ;;  %v4569_v16 = vsel %vm12792_vm9, %v1510_v61, 0.0  ;;  %v1783_v33 = vpop.f32.mrf.mxu1  ;;  %2059 = vmatmul.mubr.bf16.gmra.mxu0 %v7409_v40  ;;  %vm12797_vm1 = vcmp.eq.s32.totalorder %v6842_v19, %v7579_v63  ;;  %vm12798_vm13 = vcmp.eq.s32.totalorder %v6845_v20, %v7563_v42 }
 0x159   : > { %v4739_v31 = vadd.f32 %v4738_v35, %v4569_v16  ;;  %v4571_v12 = vsel %vm12793_vm7, %v1783_v33, 0.0  ;;  %v1514_v46 = vpop.f32.mrf.mxu0  ;;  %2332 = vmatmul.mubr.bf16.gmra.mxu1 %v7409_v40  ;;  %2068 = vmatprep.mubr.bf16.mxu0 %v12704_v38  ;;  %vm12799_vm12 = vcmp.eq.s32.totalorder %v6845_v20, %v7568_v43  ;;  %vm12800_vm9 = vcmp.eq.s32.totalorder %v6845_v20, %v7571_v48 }
 0x15a   : > { %v4781_v34 = vadd.f32 %v4780_v55, %v4571_v12  ;;  %v4584_v37 = vsel %vm12794_vm6, %v1514_v46, 0.0  ;;  %v1787_v4 = vpop.f32.mrf.mxu1  ;;  %2341 = vmatprep.mubr.bf16.mxu1 %v12704_v38  ;;  %vm12801_vm7 = vcmp.eq.s32.totalorder %v6845_v20, %v7579_v63  ;;  %vm12802_vm6 = vcmp.eq.s32.totalorder %v6816_v17, %v7563_v42  ;;  %v12828_v20 = vld [vmem:[#allocation7_spill] sm:$0xff] }
 0x15b   : > { %v4719_v62 = vadd.f32 %v4718_v60, %v4584_v37  ;;  %v4586_v35 = vsel %vm12795_vm4, %v1787_v4, 0.0  ;;  %v1516_v9 = vpop.f32.mrf.mxu0  ;;  %vm12803_vm4 = vcmp.eq.s32.totalorder %v6816_v17, %v7568_v43 }
 0x15c   : > { %v4761_v33 = vadd.f32 %v4760_v36, %v4586_v35  ;;  %v4585_v55 = vsel %vm12796_vm8, %v1516_v9, 0.0  ;;  %v1789_v61 = vpop.f32.mrf.mxu1  ;;  %vm12804_vm8 = vcmp.eq.s32.totalorder %v6816_v17, %v7571_v48 }
 0x15d   : > { %v4740_v16 = vadd.f32 %v4739_v31, %v4585_v55  ;;  %v4587_v12 = vsel %vm12797_vm1, %v1789_v61, 0.0  ;;  %v1518_v46 = vpop.f32.mrf.mxu0  ;;  %vm12805_vm1 = vcmp.eq.s32.totalorder %v6816_v17, %v7579_v63 }
 0x15e   : > { %v4782_v60 = vadd.f32 %v4781_v34, %v4587_v12  ;;  %v4600_v37 = vsel %vm12798_vm13, %v1518_v46, 0.0  ;;  %v1791_v4 = vpop.f32.mrf.mxu1  ;;  %vm12806_vm13 = vcmp.eq.s32.totalorder %v6819_v18, %v7563_v42 }
 0x15f   : > { %v4720_v40 = vadd.f32 %v4719_v62, %v4600_v37  ;;  %v4602_v36 = vsel %vm12799_vm12, %v1791_v4, 0.0  ;;  %v1520_v35 = vpop.f32.mrf.mxu0  ;;  %vm12807_vm12 = vcmp.eq.s32.totalorder %v6776_v11, %v7563_v42 }
 0x160   : > { %v4762_v9 = vadd.f32 %v4761_v33, %v4602_v36  ;;  %v4601_v31 = vsel %vm12800_vm9, %v1520_v35, 0.0  ;;  %v1793_v55 = vpop.f32.mrf.mxu1  ;;  %2069 = vmatmul.mubr.bf16.gmra.mxu0 %v7421_v45  ;;  %vm12808_vm9 = vcmp.eq.s32.totalorder %v6776_v11, %v7568_v43 }
 0x161   : > { %v4741_v61 = vadd.f32 %v4740_v16, %v4601_v31  ;;  %v4603_v34 = vsel %vm12801_vm7, %v1793_v55, 0.0  ;;  %v1524_v12 = vpop.f32.mrf.mxu0  ;;  %2342 = vmatmul.mubr.bf16.gmra.mxu1 %v7421_v45  ;;  %2078 = vmatprep.mubr.bf16.mxu0 %v12704_v38  ;;  %vm12809_vm7 = vcmp.eq.s32.totalorder %v6776_v11, %v7571_v48 }
 0x162   : > { %v4783_v62 = vadd.f32 %v4782_v60, %v4603_v34  ;;  %v4616_v46 = vsel %vm12802_vm6, %v1524_v12, 0.0  ;;  %v1797_v37 = vpop.f32.mrf.mxu1  ;;  %2351 = vmatprep.mubr.bf16.mxu1 %v12704_v38  ;;  %vm12810_vm6 = vcmp.eq.s32.totalorder %v6776_v11, %v7579_v63 }
 0x163   : > { %v4721_v33 = vadd.f32 %v4720_v40, %v4616_v46  ;;  %v4618_v16 = vsel %vm12803_vm4, %v1797_v37, 0.0  ;;  %v1526_v4 = vpop.f32.mrf.mxu0  ;;  %vm12811_vm4 = vcmp.eq.s32.totalorder %v6758_v5, %v7563_v42 }
 0x164   : > { %v4763_v36 = vadd.f32 %v4762_v9, %v4618_v16  ;;  %v4617_v60 = vsel %vm12804_vm8, %v1526_v4, 0.0  ;;  %v1799_v35 = vpop.f32.mrf.mxu1  ;;  %vm12812_vm8 = vcmp.eq.s32.totalorder %v6758_v5, %v7568_v43 }
 0x165   : > { %v4742_v31 = vadd.f32 %v4741_v61, %v4617_v60  ;;  %v4619_v55 = vsel %vm12805_vm1, %v1799_v35, 0.0  ;;  %v1528_v34 = vpop.f32.mrf.mxu0  ;;  %vm12813_vm1 = vcmp.eq.s32.totalorder %v6758_v5, %v7571_v48 }
 0x166   : > { %v4784_v40 = vadd.f32 %v4783_v62, %v4619_v55  ;;  %v4632_v12 = vsel %vm12806_vm13, %v1528_v34, 0.0  ;;  %v1801_v46 = vpop.f32.mrf.mxu1  ;;  %vm12814_vm13 = vcmp.eq.s32.totalorder %v6758_v5, %v7579_v63 }
 0x167   : > { %v4722_v37 = vadd.f32 %v4721_v33, %v4632_v12  ;;  %v4634_v9 = vsel %vm3786_vm11, %v1801_v46, 0.0  ;;  %v1530_v16 = vpop.f32.mrf.mxu0 }
 0x168   : > { %v4764_v4 = vadd.f32 %v4763_v36, %v4634_v9  ;;  %v4633_v61 = vsel %vm3785_vm2, %v1530_v16, 0.0  ;;  %v1803_v60 = vpop.f32.mrf.mxu1  ;;  %2079 = vmatmul.mubr.bf16.gmra.mxu0 %v7433_v49 }
 0x169   : > { %v4743_v35 = vadd.f32 %v4742_v31, %v4633_v61  ;;  %v4635_v62 = vsel %vm3787_vm5, %v1803_v60, 0.0  ;;  %v1534_v55 = vpop.f32.mrf.mxu0  ;;  %2352 = vmatmul.mubr.bf16.gmra.mxu1 %v7433_v49  ;;  %2088 = vmatprep.mubr.bf16.mxu0 %v12704_v38 }
 0x16a   : > { %v4785_v33 = vadd.f32 %v4784_v40, %v4635_v62  ;;  %v4648_v34 = vsel %vm3800_vm14, %v1534_v55, 0.0  ;;  %v1807_v12 = vpop.f32.mrf.mxu1  ;;  %2361 = vmatprep.mubr.bf16.mxu1 %v12704_v38 }
 0x16b   : > { %v4723_v36 = vadd.f32 %v4722_v37, %v4648_v34  ;;  %v4650_v31 = vsel %vm3802_vm10, %v1807_v12, 0.0  ;;  %v1536_v46 = vpop.f32.mrf.mxu0  ;;  %v4135_v12 = vrot.slane %v8343_v52, 4 }
 0x16c   : > { %v4765_v9 = vadd.f32 %v4764_v4, %v4650_v31  ;;  %v4649_v40 = vsel %vm3801_vm3, %v1536_v46, 0.0  ;;  %v1809_v16 = vpop.f32.mrf.mxu1 }
 0x16d   : > { %v4744_v61 = vadd.f32 %v4743_v35, %v4649_v40  ;;  %v4651_v60 = vsel %vm3803_vm0, %v1809_v16, 0.0  ;;  %v1538_v62 = vpop.f32.mrf.mxu0  ;;  %v4177_v35 = vrot.slane %v8348_v1, 4 }
 0x16e   : > { %v4786_v37 = vadd.f32 %v4785_v33, %v4651_v60  ;;  %v4664_v55 = vsel %vm12807_vm12, %v1538_v62, 0.0  ;;  %v1811_v34 = vpop.f32.mrf.mxu1  ;;  %v4156_v60 = vrot.slane %v8353_v13, 4  ;;  %vm12815_vm12 = vcmp.eq.s32.totalorder %v6761_v6, %v7563_v42 }
 0x16f   : > { %v4724_v4 = vadd.f32 %v4723_v36, %v4664_v55  ;;  %v4666_v31 = vsel %vm12808_vm9, %v1811_v34, 0.0  ;;  %v1540_v46 = vpop.f32.mrf.mxu0  ;;  %v4198_v34 = vrot.slane %v8359_v57, 4  ;;  %vm12816_vm9 = vcmp.eq.s32.totalorder %v6761_v6, %v7568_v43 }
 0x170   : > { %v4766_v40 = vadd.f32 %v4765_v9, %v4666_v31  ;;  %v4665_v33 = vsel %vm12809_vm7, %v1540_v46, 0.0  ;;  %v1813_v16 = vpop.f32.mrf.mxu1  ;;  %2089 = vmatmul.mubr.bf16.gmra.mxu0 %v7445_v54  ;;  %v4157_v45 = vadd.f32 %v4156_v60, %v8353_v13  ;;  %vm12817_vm7 = vcmp.eq.s32.totalorder %v6761_v6, %v7571_v48 }
 0x171   : > { %v4745_v62 = vadd.f32 %v4744_v61, %v4665_v33  ;;  %v4667_v36 = vsel %vm12810_vm6, %v1813_v16, 0.0  ;;  %v1544_v55 = vpop.f32.mrf.mxu0  ;;  %2362 = vmatmul.mubr.bf16.gmra.mxu1 %v7445_v54  ;;  %2098 = vmatprep.mubr.bf16.mxu0 %v12704_v38  ;;  %v4136_v61 = vadd.f32 %v4135_v12, %v8343_v52  ;;  %vm12818_vm6 = vcmp.eq.s32.totalorder %v6761_v6, %v7579_v63  ;;  %v8730_v6 = vpop.permute.xlu0 %5777 }
 0x172   : > { %v4787_v49 = vadd.f32 %v4786_v37, %v4667_v36  ;;  %v4680_v9 = vsel %vm12811_vm4, %v1544_v55, 0.0  ;;  %v1817_v31 = vpop.f32.mrf.mxu1  ;;  %2371 = vmatprep.mubr.bf16.mxu1 %v12704_v38  ;;  %v4178_v37 = vadd.f32 %v4177_v35, %v8348_v1  ;;  %vm12458_vm4 = vcmask 1040384  }
 0x173   : > { %v4725_v46 = vadd.f32 %v4724_v4, %v4680_v9  ;;  %v4682_v33 = vsel %vm12812_vm8, %v1817_v31, 0.0  ;;  %v1546_v16 = vpop.f32.mrf.mxu0  ;;  %v4199_v4 = vadd.f32 %v4198_v34, %v8359_v57  ;;  %vm12830_vm8 = vcmp.eq.s32.totalorder %v6946_v27, %v7563_v42 }
 0x174   : > { %v4767_v36 = vadd.f32 %v4766_v40, %v4682_v33  ;;  %v4681_v55 = vsel %vm12813_vm1, %v1546_v16, 0.0  ;;  %v1819_v54 = vpop.f32.mrf.mxu1  ;;  %v4137_v40 = vrot.slane %v4136_v61, 2  ;;  %vm12831_vm1 = vcmp.eq.s32.totalorder %v6946_v27, %v7568_v43 }
 0x175   : > { %v4746_v59 = vadd.f32 %v4745_v62, %v4681_v55  ;;  %v4683_v52 = vsel %vm12814_vm13, %v1819_v54, 0.0  ;;  %v1548_v12 = vpop.f32.mrf.mxu0  ;;  %v4179_v62 = vrot.slane %v4178_v37, 2  ;;  %vm12835_vm13 = vcmp.eq.s32.totalorder %v6740_v2, %v7563_v42 }
 0x176   : > { %v4788_v9 = vadd.f32 %v4787_v49, %v4683_v52  ;;  %v4696_v1 = vsel %vm12815_vm12, %v1548_v12, 0.0  ;;  %v1821_v35 = vpop.f32.mrf.mxu1  ;;  %v4158_v49 = vrot.slane %v4157_v45, 2  ;;  %v4200_v52 = vrot.slane %v4199_v4, 2 }
 0x177   : > { %v4726_v31 = vadd.f32 %v4725_v46, %v4696_v1  ;;  %v4698_v13 = vsel %vm12816_vm9, %v1821_v35, 0.0  ;;  %v1550_v60 = vpop.f32.mrf.mxu0  ;;  %v4138_v35 = vadd.f32 %v4137_v40, %v4136_v61  ;;  %vm12836_vm12 = vcmp.eq.s32.totalorder %v6740_v2, %v7568_v43 }
 0x178   : > { %v4768_v33 = vadd.f32 %v4767_v36, %v4698_v13  ;;  %v4697_v54 = vsel %vm12817_vm7, %v1550_v60, 0.0  ;;  %v1823_v57 = vpop.f32.mrf.mxu1  ;;  %2099 = vmatmul.mubr.bf16.gmra.mxu0 %v7457_v58  ;;  %v4159_v50 = vadd.f32 %v4158_v49, %v4157_v45  ;;  %vm12837_vm9 = vcmp.eq.s32.totalorder %v6946_v27, %v7571_v48 }
 0x179   : > { %v4727_v34 = vrot.slane %v4726_v31, 4  ;;  %v4747_v16 = vadd.f32 %v4746_v59, %v4697_v54  ;;  %v4699_v55 = vsel %vm12818_vm6, %v1823_v57, 0.0  ;;  %v8613_v46 = vpop.f32.mrf.mxu0  ;;  %2372 = vmatmul.mubr.bf16.gmra.mxu1 %v7457_v58  ;;  %2108 = vmatprep.mubr.bf16.mxu0 %v12704_v38  ;;  %v4180_v54 = vadd.f32 %v4179_v62, %v4178_v37 }
 0x17a   : > { %v4769_v12 = vrot.slane %v4768_v33, 4  ;;  %v4789_v1 = vadd.f32 %v4788_v9, %v4699_v55  ;;  %v8616_v36 = vpop.f32.mrf.mxu1  ;;  %2381 = vmatprep.mubr.bf16.mxu1 %v12704_v38  ;;  %v4201_v58 = vadd.f32 %v4200_v52, %v4199_v4  ;;  %v4139_v40 = vrot.slane %v4138_v35, 1 }
 0x17b   : > { %v4728_v13 = vadd.f32 %v4727_v34, %v4726_v31  ;;  %v4748_v59 = vrot.slane %v4747_v16, 4  ;;  %v8620_v60 = vpop.f32.mrf.mxu0  ;;  %v4181_v37 = vrot.slane %v4180_v54, 1  ;;  %v4160_v45 = vrot.slane %v4159_v50, 1 }
 0x17c   : > { %v4770_v57 = vadd.f32 %v4769_v12, %v4768_v33  ;;  %v4790_v56 = vrot.slane %v4789_v1, 4  ;;  %v8623_v53 = vpop.f32.mrf.mxu1  ;;  %vm12838_vm7 = vcmp.eq.s32.totalorder %v6920_v25, %v7563_v42  ;;  %vm12839_vm6 = vcmp.eq.s32.totalorder %v6740_v2, %v7571_v48 }
 0x17d   : > { %v4729_v9 = vrot.slane %v4728_v13, 2  ;;  %v4749_v55 = vadd.f32 %v4748_v59, %v4747_v16  ;;  %v8625_v47 = vpop.f32.mrf.mxu0  ;;  %v4161_v10 = vadd.f32 %v4160_v45, %v4159_v50 }
 0x17e   : > { %v4771_v44 = vrot.slane %v4770_v57, 2  ;;  %v4791_v41 = vadd.f32 %v4790_v56, %v4789_v1  ;;  %v8627_v61 = vpop.f32.mrf.mxu1  ;;  %v4202_v56 = vrot.slane %v4201_v58, 1 }
 0x17f   : > { %v4730_v31 = vadd.f32 %v4729_v9, %v4728_v13  ;;  %v4750_v34 = vrot.slane %v4749_v55, 2  ;;  %v8629_v15 = vpop.f32.mrf.mxu0 }
 0x180   : > { %v4772_v62 = vadd.f32 %v4771_v44, %v4770_v57  ;;  %v4792_v33 = vrot.slane %v4791_v41, 2  ;;  %v8631_v12 = vpop.f32.mrf.mxu1  ;;  %2109 = vmatmul.mubr.bf16.gmra.mxu0 %v7469_v0  ;;  %v4140_v44 = vadd.f32 %v4139_v40, %v4138_v35  ;;  %v4203_v35 = vadd.f32 %v4202_v56, %v4201_v58 }
 0x181   : > { %v4731_v49 = vrot.slane %v4730_v31, 1  ;;  %v4751_v16 = vadd.f32 %v4750_v34, %v4749_v55  ;;  %v8633_v59 = vpop.f32.mrf.mxu0  ;;  %2382 = vmatmul.mubr.bf16.gmra.mxu1 %v7469_v0  ;;  %2118 = vmatprep.mubr.bf16.mxu0 %v12704_v38  ;;  %v4182_v55 = vadd.f32 %v4181_v37, %v4180_v54 }
 0x182   : > { %v4773_v4 = vrot.slane %v4772_v62, 1  ;;  %v4793_v52 = vadd.f32 %v4792_v33, %v4791_v41  ;;  %v8636_v1 = vpop.f32.mrf.mxu1  ;;  %2391 = vmatprep.mubr.bf16.mxu1 %v12704_v38 }
 0x183   : > { %v4732_v13 = vadd.f32 %v4731_v49, %v4730_v31  ;;  %v4752_v57 = vrot.slane %v4751_v16, 1  ;;  %v8640_v9 = vpop.f32.mrf.mxu0 }
 0x184   : > { %v4774_v34 = vadd.f32 %v4773_v4, %v4772_v62  ;;  %v4794_v51 = vrot.slane %v4793_v52, 1  ;;  %v8643_v11 = vpop.f32.mrf.mxu1  ;;  %v8688_v4 = vld [vmem:[%s8679_s22] sm:$0xff] }
 0x185   : > { %v8646_v41 = vsel %vm12458_vm4, %v4140_v44, %v4732_v13  ;;  %v4753_v33 = vadd.f32 %v4752_v57, %v4751_v16  ;;  %v8648_v0 = vpop.f32.mrf.mxu0  ;;  %v8698_v57 = vsub.f32 1.0, %v8688_v4 }
 0x186   : > { %12819 = vst [vmem:[#allocation44_spill] sm:$0xff] %v8646_v41  ;;  %v8651_v40 = vsel %vm12458_vm4, %v4182_v55, %v4774_v34  ;;  %v4795_v31 = vadd.f32 %v4794_v51, %v4793_v52  ;;  %v8653_v49 = vpop.f32.mrf.mxu1 }
 0x187   : > { %12820 = vst [vmem:[#allocation45_spill] sm:$0xff] %v8651_v40  ;;  %v8656_v54 = vsel %vm12458_vm4, %v4161_v10, %v4753_v33  ;;  %v8658_v37 = vpop.f32.mrf.mxu0  ;;  %12823 = vst [vmem:[#allocation48_spill] sm:$0xff] %v8698_v57  ;;  %v12825_v40 = vld [vmem:[#allocation17_spill] sm:$0xff] }
 0x188   : > { %12821 = vst [vmem:[#allocation46_spill] sm:$0xff] %v8656_v54  ;;  %v8661_v50 = vsel %vm12458_vm4, %v4203_v35, %v4795_v31  ;;  %v8663_v62 = vpop.f32.mrf.mxu1  ;;  %2119 = vmatmul.mubr.bf16.gmra.mxu0 %v7481_v32  ;;  %v5785_v31 = vrot.slane %v8698_v57, %v6764_v7  ;;  %v6681_v54 = vld [vmem:[%s7548_s19] sm:$0xff]  ;;  %v8754_v19 = vrot.slane %v8446_v8, %v12825_v40 }
 0x189   : > { %12822 = vst [vmem:[#allocation47_spill] sm:$0xff] %v8661_v50  ;;  %v8665_v45 = vpop.f32.mrf.mxu0  ;;  %2392 = vmatmul.mubr.bf16.gmra.mxu1 %v7481_v32  ;;  %2128 = vmatprep.mubr.bf16.mxu0 %v12704_v38  ;;  %v5789_v32 = vrot.slane %v8698_v57, %v6746_v3  ;;  %v8722_v41 = vrot.slane %v6681_v54, %v12825_v40 }
 0x18a   : > { %v8668_v58 = vpop.f32.mrf.mxu1  ;;  %2401 = vmatprep.mubr.bf16.mxu1 %v12704_v38  ;;  %v8725_v14 = vrot.slane %v6681_v54, %v6949_v28  ;;  %v8728_v18 = vrot.slane %v6681_v54, %v6957_v29  ;;  %v5066_v28 = vsel %vm12831_vm1, %v8627_v61, 0.0  ;;  %v8768_v3 = vmul.f32 %v5785_v31, %v8730_v6 }
 0x18b   : > { %v8672_v51 = vpop.f32.mrf.mxu0  ;;  %12826 = vst [vmem:[#allocation50_spill] sm:$0xff] %v8722_v41  ;;  %v12829_v41 = vld [vmem:[#allocation3_spill] sm:$0xff]  ;;  %v5050_v61 = vsel %vm12836_vm12, %v8616_v36, 0.0  ;;  %vm12841_vm1 = vcmp.eq.s32.totalorder %v6920_v25, %v7568_v43  ;;  %vm12843_vm12 = vcmp.eq.s32.totalorder %v6920_v25, %v7571_v48 }
 0x18c   : > { %v8681_v10 = vpop.f32.mrf.mxu1  ;;  %12827 = vst [vmem:[#allocation51_spill] sm:$0xff] %v8728_v18  ;;  %v8750_v18 = vrot.slane %v8446_v8, %v6965_v30  ;;  %12833 = vst [vmem:[#allocation52_spill] sm:$0xff] %v8768_v3  ;;  %v8771_v8 = vmul.f32 %v5789_v32, %v8730_v6  ;;  %v5080_v32 = vsel %vm12838_vm7, %v8633_v59, 0.0  ;;  %v5082_v59 = vsel %vm12841_vm1, %v8636_v1, 0.0 }
 0x18d   : > { %v8683_v16 = vpop.f32.mrf.mxu0  ;;  %vm12845_vm7 = vcmp.eq.s32.totalorder %v6920_v25, %v7579_v63  ;;  %vm12848_vm1 = vcmp.eq.s32.totalorder %v6894_v23, %v7563_v42 }
 0x18e   : > { %v8685_v56 = vpop.f32.mrf.mxu1  ;;  %12834 = vst [vmem:[#allocation53_spill] sm:$0xff] %v8771_v8 }
 0x18f   : > { %v8690_v52 = vpop.f32.mrf.mxu0 }
 0x190   : > { %v8692_v44 = vpop.f32.mrf.mxu1  ;;  %2129 = vmatmul.mubr.bf16.gmra.mxu0 %v7496_v39 }
 0x191   : > { %v8694_v13 = vpop.f32.mrf.mxu0  ;;  %2402 = vmatmul.mubr.bf16.gmra.mxu1 %v7496_v39  ;;  %2138 = vmatprep.mubr.bf16.mxu0 %v12704_v38  ;;  %v8719_v39 = vrot.slane %v6681_v54, %v6965_v30  ;;  %v5064_v54 = vsel %vm12830_vm8, %v8625_v47, 0.0  ;;  %v12832_v47 = vld [vmem:[#allocation38_spill] sm:$0xff]  ;;  %v5065_v30 = vsel %vm12837_vm9, %v8629_v15, 0.0  ;;  %vm12840_vm8 = vcmp.eq.s32.totalorder %v6946_v27, %v7579_v63 }
 0x192   : > { %v8700_v55 = vpop.f32.mrf.mxu1  ;;  %2411 = vmatprep.mubr.bf16.mxu1 %v12704_v38  ;;  %v5067_v15 = vsel %vm12840_vm8, %v8631_v12, 0.0  ;;  %v5081_v12 = vsel %vm12843_vm12, %v8640_v9, 0.0  ;;  %vm12844_vm9 = vcmp.eq.s32.totalorder %v6923_v26, %v7563_v42  ;;  %vm12847_vm8 = vcmp.eq.s32.totalorder %v6923_v26, %v7571_v48 }
 0x193   : > { %v8704_v34 = vpop.f32.mrf.mxu0  ;;  %12824 = vst [vmem:[#allocation49_spill] sm:$0xff] %v8719_v39  ;;  %v5048_v39 = vsel %vm12835_vm13, %v8613_v46, 0.0  ;;  %v5049_v46 = vsel %vm12839_vm6, %v8620_v60, 0.0  ;;  %vm12842_vm13 = vcmp.eq.s32.totalorder %v6740_v2, %v7579_v63  ;;  %v5096_v1 = vsel %vm12844_vm9, %v8648_v0, 0.0 }
 0x194   : > { %v8707_v33 = vpop.f32.mrf.mxu1  ;;  %v5304_v36 = vadd.f32 %v5064_v54, %v5048_v39  ;;  %v5051_v60 = vsel %vm12842_vm13, %v8623_v53, 0.0  ;;  %v5346_v39 = vadd.f32 %v5066_v28, %v5050_v61  ;;  %v5083_v53 = vsel %vm12845_vm7, %v8643_v11, 0.0 }
 0x195   : > { %v8709_v35 = vpop.f32.mrf.mxu0  ;;  %vm12846_vm6 = vcmp.eq.s32.totalorder %v6923_v26, %v7568_v43  ;;  %v5367_v61 = vadd.f32 %v5067_v15, %v5051_v60  ;;  %v5097_v0 = vsel %vm12847_vm8, %v8658_v37, 0.0  ;;  %vm12849_vm13 = vcmp.eq.s32.totalorder %v6923_v26, %v7579_v63 }
 0x196   : > { %v8715_v50 = vpop.f32.mrf.mxu1  ;;  %v5305_v8 = vadd.f32 %v5304_v36, %v5080_v32  ;;  %v5098_v28 = vsel %vm12846_vm6, %v8653_v49, 0.0  ;;  %v5347_v3 = vadd.f32 %v5346_v39, %v5082_v59  ;;  %v5099_v49 = vsel %vm12849_vm13, %v8663_v62, 0.0 }
 0x197   : > { %v8732_v5 = vpop.f32.mrf.mxu0  ;;  %v5114_v36 = vsel %vm3674_vm15, %v8668_v58, 0.0  ;;  %v5368_v37 = vadd.f32 %v5367_v61, %v5083_v53  ;;  %vm12850_vm12 = vcmp.eq.s32.totalorder %v6894_v23, %v7571_v48  ;;  %vm12851_vm9 = vcmp.eq.s32.totalorder %v6897_v24, %v7563_v42 }
 0x198   : > { %v8746_v29 = vpop.f32.mrf.mxu1  ;;  %2139 = vmatmul.mubr.bf16.gmra.mxu0 %v12832_v47  ;;  %v5348_v59 = vadd.f32 %v5347_v3, %v5098_v28  ;;  %vm12852_vm15 = vcmp.eq.s32.totalorder %v6894_v23, %v7579_v63  ;;  %vm12853_vm7 = vcmp.eq.s32.totalorder %v6897_v24, %v7568_v43  ;;  %vm12855_vm6 = vcmp.eq.s32.totalorder %v6897_v24, %v7571_v48 }
 0x199   : > { %v8762_v17 = vpop.f32.mrf.mxu0  ;;  %2412 = vmatmul.mubr.bf16.gmra.mxu1 %v12832_v47  ;;  %2148 = vmatprep.mubr.bf16.mxu0 %v12704_v38  ;;  %v5325_v47 = vadd.f32 %v5065_v30, %v5049_v46  ;;  %v5112_v30 = vsel %vm12848_vm1, %v8665_v45, 0.0  ;;  %v5306_v46 = vadd.f32 %v5305_v8, %v5096_v1  ;;  %v5113_v45 = vsel %vm12850_vm12, %v8672_v51, 0.0  ;;  %v12854_v51 = vld [vmem:[#allocation39_spill] sm:$0xff] }
 0x19a   : > { %v8789_v31 = vpop.f32.mrf.mxu1  ;;  %2421 = vmatprep.mubr.bf16.mxu1 %v12704_v38  ;;  %v5115_v58 = vsel %vm12852_vm15, %v8681_v10, 0.0  ;;  %v5130_v3 = vsel %vm12853_vm7, %v8685_v56, 0.0  ;;  %v5349_v1 = vadd.f32 %v5348_v59, %v5114_v36  ;;  %vm12856_vm8 = vcmp.eq.s32.totalorder %v6868_v21, %v7563_v42 }
 0x19b   : > { %v8805_v40 = vpop.f32.mrf.mxu0  ;;  %v5326_v11 = vadd.f32 %v5325_v47, %v5081_v12  ;;  %v5128_v47 = vsel %vm12851_vm9, %v8683_v16, 0.0  ;;  %v5307_v60 = vadd.f32 %v5306_v46, %v5112_v30  ;;  %v5369_v12 = vadd.f32 %v5368_v37, %v5099_v49 }
 0x19c   : > { %v8820_v54 = vpop.f32.mrf.mxu1  ;;  %v5129_v16 = vsel %vm12855_vm6, %v8690_v52, 0.0  ;;  %v5144_v10 = vsel %vm12856_vm8, %v8694_v13, 0.0  ;;  %vm12857_vm1 = vcmp.eq.s32.totalorder %v6897_v24, %v7579_v63  ;;  %vm12858_vm13 = vcmp.eq.s32.totalorder %v6868_v21, %v7568_v43 }
 0x19d   : > { %v1598_v9 = vpop.f32.mrf.mxu0  ;;  %v5327_v62 = vadd.f32 %v5326_v11, %v5097_v0  ;;  %v5308_v28 = vadd.f32 %v5307_v60, %v5128_v47  ;;  %v5131_v61 = vsel %vm12857_vm1, %v8692_v44, 0.0  ;;  %v5146_v52 = vsel %vm12858_vm13, %v8700_v55, 0.0  ;;  %v12864_v47 = vld [vmem:[#allocation12_spill] sm:$0xff] }
 0x19e   : > { %v1871_v32 = vpop.f32.mrf.mxu1  ;;  %v5370_v13 = vadd.f32 %v5369_v12, %v5115_v58  ;;  %v5350_v30 = vadd.f32 %v5349_v1, %v5130_v3  ;;  %vm12859_vm12 = vcmp.eq.s32.totalorder %v6868_v21, %v7571_v48  ;;  %vm12860_vm9 = vcmp.eq.s32.totalorder %v6871_v22, %v7563_v42 }
 0x19f   : > { %v1600_v15 = vpop.f32.mrf.mxu0  ;;  %v5328_v56 = vadd.f32 %v5327_v62, %v5113_v45  ;;  %v5145_v11 = vsel %vm12859_vm12, %v8704_v34, 0.0  ;;  %v5160_v44 = vsel %vm12860_vm9, %v8709_v35, 0.0  ;;  %v5309_v36 = vadd.f32 %v5308_v28, %v5144_v10 }
 0x1a0   : > { %v1873_v8 = vpop.f32.mrf.mxu1  ;;  %2149 = vmatmul.mubr.bf16.gmra.mxu0 %v12854_v51  ;;  %vm12861_vm15 = vcmp.eq.s32.totalorder %v6868_v21, %v7579_v63  ;;  %vm12862_vm7 = vcmp.eq.s32.totalorder %v6871_v22, %v7568_v43  ;;  %v5371_v34 = vadd.f32 %v5370_v13, %v5131_v61  ;;  %v5351_v45 = vadd.f32 %v5350_v30, %v5146_v52  ;;  %v12873_v13 = vld [vmem:[#allocation40_spill] sm:$0xff] }
 0x1a1   : > { %v1604_v39 = vpop.f32.mrf.mxu0  ;;  %2422 = vmatmul.mubr.bf16.gmra.mxu1 %v12854_v51  ;;  %2158 = vmatprep.mubr.bf16.mxu0 %v12704_v38  ;;  %v5329_v49 = vadd.f32 %v5328_v56, %v5129_v16  ;;  %v5147_v55 = vsel %vm12861_vm15, %v8707_v33, 0.0  ;;  %v5162_v37 = vsel %vm12862_vm7, %v8715_v50, 0.0  ;;  %vm12863_vm6 = vcmp.eq.s32.totalorder %v6871_v22, %v7571_v48  ;;  %v12869_v16 = vld [vmem:[#allocation13_spill] sm:$0xff] }
 0x1a2   : > { %v1877_v53 = vpop.f32.mrf.mxu1  ;;  %2431 = vmatprep.mubr.bf16.mxu1 %v12704_v38  ;;  %v5161_v35 = vsel %vm12863_vm6, %v8732_v5, 0.0  ;;  %vm12865_vm8 = vcmp.eq.s32.totalorder %v12864_v47, %v7563_v42  ;;  %v5310_v58 = vadd.f32 %v5309_v36, %v5160_v44  ;;  %vm12866_vm1 = vcmp.eq.s32.totalorder %v6871_v22, %v7579_v63 }
 0x1a3   : > { %v1606_v0 = vpop.f32.mrf.mxu0  ;;  %v5176_v62 = vsel %vm12865_vm8, %v8762_v17, 0.0  ;;  %v5330_v33 = vadd.f32 %v5329_v49, %v5145_v11  ;;  %v5163_v50 = vsel %vm12866_vm1, %v8746_v29, 0.0  ;;  %vm12867_vm13 = vcmp.eq.s32.totalorder %v12864_v47, %v7568_v43  ;;  %v12875_v11 = vld [vmem:[#allocation10_spill] sm:$0xff] }
 0x1a4   : > { %v1879_v46 = vpop.f32.mrf.mxu1  ;;  %v5178_v3 = vsel %vm12867_vm13, %v8789_v31, 0.0  ;;  %v5372_v5 = vadd.f32 %v5371_v34, %v5147_v55  ;;  %v5352_v1 = vadd.f32 %v5351_v45, %v5162_v37  ;;  %vm12868_vm12 = vcmp.eq.s32.totalorder %v12864_v47, %v7571_v48  ;;  %v12880_v37 = vld [vmem:[#allocation5_spill] sm:$0xff] }
 0x1a5   : > { %v1608_v59 = vpop.f32.mrf.mxu0  ;;  %v5177_v17 = vsel %vm12868_vm12, %v8805_v40, 0.0  ;;  %vm12870_vm9 = vcmp.eq.s32.totalorder %v12869_v16, %v7563_v42  ;;  %v5331_v28 = vadd.f32 %v5330_v33, %v5161_v35  ;;  %v5311_v29 = vadd.f32 %v5310_v58, %v5176_v62 }
 0x1a6   : > { %v1881_v60 = vpop.f32.mrf.mxu1  ;;  %v5192_v10 = vsel %vm12870_vm9, %v1598_v9, 0.0  ;;  %vm12871_vm15 = vcmp.eq.s32.totalorder %v12864_v47, %v7579_v63  ;;  %vm12872_vm7 = vcmp.eq.s32.totalorder %v12869_v16, %v7568_v43  ;;  %v5373_v40 = vadd.f32 %v5372_v5, %v5163_v50  ;;  %v12885_v5 = vld [vmem:[#allocation42_spill] sm:$0xff] }
 0x1a7   : > { %v1610_v12 = vpop.f32.mrf.mxu0  ;;  %v5179_v31 = vsel %vm12871_vm15, %v8820_v54, 0.0  ;;  %v5194_v61 = vsel %vm12872_vm7, %v1871_v32, 0.0  ;;  %v5353_v30 = vadd.f32 %v5352_v1, %v5178_v3  ;;  %vm12874_vm6 = vcmp.eq.s32.totalorder %v12869_v16, %v7571_v48  ;;  %v12887_v1 = vld [vmem:[#allocation9_spill] sm:$0xff] }
 0x1a8   : > { %v1883_v56 = vpop.f32.mrf.mxu1  ;;  %2159 = vmatmul.mubr.bf16.gmra.mxu0 %v12873_v13  ;;  %v5193_v9 = vsel %vm12874_vm6, %v1600_v15, 0.0  ;;  %vm12876_vm8 = vcmp.eq.s32.totalorder %v12875_v11, %v7563_v42  ;;  %v5332_v54 = vadd.f32 %v5331_v28, %v5177_v17  ;;  %v5312_v32 = vadd.f32 %v5311_v29, %v5192_v10 }
 0x1a9   : > { %v1614_v52 = vpop.f32.mrf.mxu0  ;;  %v5208_v44 = vsel %vm12876_vm8, %v1604_v39, 0.0  ;;  %2432 = vmatmul.mubr.bf16.gmra.mxu1 %v12873_v13  ;;  %2168 = vmatprep.mubr.bf16.mxu0 %v12704_v38  ;;  %vm12877_vm1 = vcmp.eq.s32.totalorder %v12869_v16, %v7579_v63  ;;  %vm12878_vm13 = vcmp.eq.s32.totalorder %v12875_v11, %v7568_v43  ;;  %v12879_v39 = vld [vmem:[#allocation4_spill] sm:$0xff]  ;;  %vm644_vm9 = vcmp.eq.s32.totalorder %v12880_v37, %v8750_v18 }
 0x1aa   : > { %v1887_v49 = vpop.f32.mrf.mxu1  ;;  %v5195_v36 = vsel %vm12877_vm1, %v1873_v8, 0.0  ;;  %v5210_v55 = vsel %vm12878_vm13, %v1877_v53, 0.0  ;;  %2441 = vmatprep.mubr.bf16.mxu1 %v12704_v38  ;;  %vm628_vm12 = vcmp.eq.s32.totalorder %v12879_v39, %v8750_v18  ;;  %v5374_v34 = vadd.f32 %v5373_v40, %v5179_v31  ;;  %v12882_v8 = vld [vmem:[#allocation11_spill] sm:$0xff] }
 0x1ab   : > { %v1616_v15 = vpop.f32.mrf.mxu0  ;;  %v5354_v45 = vadd.f32 %v5353_v30, %v5194_v61  ;;  %vm12881_vm15 = vcmp.eq.s32.totalorder %v12875_v11, %v7571_v48  ;;  %vm12883_vm7 = vcmp.eq.s32.totalorder %v12882_v8, %v7563_v42  ;;  %vm630_vm6 = vcmp.eq.s32.totalorder %v12879_v39, %v8754_v19  ;;  %v12888_v31 = vld [vmem:[#allocation43_spill] sm:$0xff]  ;;  %vm9077_vm4 = vmpackc.low %vm644_vm9, %vm628_vm12 }
 0x1ac   : > { %v5209_v35 = vsel %vm12881_vm15, %v1606_v0, 0.0  ;;  %v5224_v62 = vsel %vm12883_vm7, %v1608_v59, 0.0  ;;  %v1889_v53 = vpop.f32.mrf.mxu1  ;;  %vm646_vm8 = vcmp.eq.s32.totalorder %v12880_v37, %v8754_v19  ;;  %v5333_v33 = vadd.f32 %v5332_v54, %v5193_v9  ;;  %v12886_v59 = vld [vmem:[#allocation8_spill] sm:$0xff] }
 0x1ad   : > { %v5313_v58 = vadd.f32 %v5312_v32, %v5208_v44  ;;  %vm12884_vm1 = vcmp.eq.s32.totalorder %v12875_v11, %v7579_v63  ;;  %v5226_v0 = vsel %vm3786_vm11, %v1881_v60, 0.0  ;;  %v1618_v3 = vpop.f32.mrf.mxu0  ;;  %vm597_vm13 = vcmp.eq.s32.totalorder %v12886_v59, %v12885_v5  ;;  %vm9096_vm12 = vmpackc.low %vm646_vm8, %vm630_vm6 }
 0x1ae   : > { %v5211_v50 = vsel %vm12884_vm1, %v1879_v46, 0.0  ;;  %vm613_vm15 = vcmp.eq.s32.totalorder %v12887_v1, %v12885_v5  ;;  %v5375_v17 = vadd.f32 %v5374_v34, %v5195_v36  ;;  %v5355_v10 = vadd.f32 %v5354_v45, %v5210_v55  ;;  %v1891_v29 = vpop.f32.mrf.mxu1  ;;  %v12891_v34 = vld [vmem:[#allocation41_spill] sm:$0xff] }
 0x1af   : > { %v5225_v28 = vsel %vm3785_vm2, %v1610_v12, 0.0  ;;  %v5240_v46 = vsel %vm3800_vm14, %v1614_v52, 0.0  ;;  %vm599_vm11 = vcmp.eq.s32.totalorder %v12886_v59, %v12888_v31  ;;  %vm615_vm7 = vcmp.eq.s32.totalorder %v12887_v1, %v12888_v31  ;;  %v1620_v30 = vpop.f32.mrf.mxu0  ;;  %v12892_v45 = vld [vmem:[#allocation49_spill] sm:$0xff]  ;;  %vm9117_vm8 = vmpackc.low %vm613_vm15, %vm597_vm13 }
 0x1b0   : > { %v5334_v60 = vadd.f32 %v5333_v33, %v5209_v35  ;;  %v5314_v61 = vadd.f32 %v5313_v58, %v5224_v62  ;;  %v5227_v40 = vsel %vm3787_vm5, %v1883_v56, 0.0  ;;  %v5242_v12 = vsel %vm3802_vm10, %v1887_v49, 0.0  ;;  %v1893_v54 = vpop.f32.mrf.mxu1  ;;  %2169 = vmatmul.mubr.bf16.gmra.mxu0 %v12891_v34  ;;  %vm9137_vm15 = vmpackc.low %vm615_vm7, %vm599_vm11 }
 0x1b1   : > { %vm596_vm14 = vcmp.eq.s32.totalorder %v12886_v59, %v8750_v18  ;;  %vm612_vm2 = vcmp.eq.s32.totalorder %v12887_v1, %v8750_v18  ;;  %v5376_v52 = vadd.f32 %v5375_v17, %v5211_v50  ;;  %v5356_v9 = vadd.f32 %v5355_v10, %v5226_v0  ;;  %2442 = vmatmul.mubr.bf16.gmra.mxu1 %v12891_v34  ;;  %v12895_v50 = vld [vmem:[#allocation50_spill] sm:$0xff] }
 0x1b2   : > { %v5241_v44 = vsel %vm3801_vm3, %v1616_v15, 0.0  ;;  %vm12889_vm5 = vcmp.eq.s32.totalorder %v12887_v1, %v7563_v42  ;;  %v5335_v49 = vadd.f32 %v5334_v60, %v5225_v28  ;;  %v5315_v32 = vadd.f32 %v5314_v61, %v5240_v46  ;;  %v1624_v15 = vpop.f32.mrf.mxu0  ;;  %v1897_v58 = vpop.f32.mrf.mxu1  ;;  %2484 = vmatprep.mubr.bf16.mxu0 %v12704_v38  ;;  %2757 = vmatprep.mubr.bf16.mxu1 %v12704_v38  ;;  %v12898_v46 = vld [vmem:[#allocation51_spill] sm:$0xff]  ;;  %vm9157_vm7 = vmpackc.low %vm612_vm2, %vm596_vm14 }
 0x1b3   : > { %v5256_v56 = vsel %vm12889_vm5, %v1618_v3, 0.0  ;;  %v5243_v36 = vsel %vm3803_vm0, %v1889_v53, 0.0  ;;  %vm12890_vm3 = vcmp.eq.s32.totalorder %v12887_v1, %v7568_v43  ;;  %v5377_v35 = vadd.f32 %v5376_v52, %v5227_v40 }
 0x1b4   : > { %v5258_v55 = vsel %vm12890_vm3, %v1891_v29, 0.0  ;;  %v5357_v62 = vadd.f32 %v5356_v9, %v5242_v12  ;;  %vm12893_vm0 = vcmp.eq.s32.totalorder %v12887_v1, %v7571_v48  ;;  %vm12894_vm3 = vcmp.eq.s32.totalorder %v12879_v39, %v7563_v42  ;;  %v1626_v28 = vpop.f32.mrf.mxu0  ;;  %v1899_v40 = vpop.f32.mrf.mxu1 }
 0x1b5   : > { %v5257_v53 = vsel %vm12893_vm0, %v1620_v30, 0.0  ;;  %v5272_v33 = vsel %vm12894_vm3, %v1624_v15, 0.0  ;;  %v5336_v0 = vadd.f32 %v5335_v49, %v5241_v44  ;;  %v5316_v3 = vadd.f32 %v5315_v32, %v5256_v56 }
 0x1b6   : > { %vm12896_vm3 = vcmp.eq.s32.totalorder %v12887_v1, %v7579_v63  ;;  %vm12897_vm10 = vcmp.eq.s32.totalorder %v12879_v39, %v7568_v43  ;;  %vm12459_vm1 = vcmp.eq.s32.totalorder %v6740_v2, %v12898_v46  ;;  %v5378_v29 = vadd.f32 %v5377_v35, %v5243_v36  ;;  %v1628_v56 = vpop.f32.mrf.mxu0  ;;  %v1901_v15 = vpop.f32.mrf.mxu1 }
 0x1b7   : > { %v5259_v17 = vsel %vm12896_vm3, %v1893_v54, 0.0  ;;  %v5274_v10 = vsel %vm12897_vm10, %v1897_v58, 0.0  ;;  %v5358_v60 = vadd.f32 %v5357_v62, %v5258_v55  ;;  %vm12899_vm0 = vcmp.eq.s32.totalorder %v12879_v39, %v7571_v48 }
 0x1b8   : > { %v5273_v61 = vsel %vm12899_vm0, %v1626_v28, 0.0  ;;  %v12900_v12 = vrot.slane %v8698_v57, %v12828_v20  ;;  %v5337_v52 = vadd.f32 %v5336_v0, %v5257_v53  ;;  %v5317_v9 = vadd.f32 %v5316_v3, %v5272_v33  ;;  %v1630_v33 = vpop.f32.mrf.mxu0 }
 0x1b9   : > { %vm12901_vm0 = vcmp.eq.s32.totalorder %v12879_v39, %v7579_v63  ;;  %v12902_v54 = vrot.slane %v8698_v57, %v12829_v41  ;;  %v5379_v32 = vadd.f32 %v5378_v29, %v5259_v17  ;;  %v5359_v36 = vadd.f32 %v5358_v60, %v5274_v10  ;;  %v1903_v17 = vpop.f32.mrf.mxu1 }
 0x1ba   : > { %v9051_v30 = vmul.f32 %v12900_v12, %v8730_v6  ;;  %v5275_v44 = vsel %vm12901_vm0, %v1899_v40, 0.0  ;;  %vm12903_vm0 = vcmp.eq.s32.totalorder %v12880_v37, %v7563_v42  ;;  %vm12460_vm10 = vcmp.eq.s32.totalorder %v6946_v27, %v12898_v46  ;;  %v1940_v60 = vpop.f32.mrf.mxu0 }
 0x1bb   : > { %v9066_v49 = vmul.f32 %v12902_v54, %v8730_v6  ;;  %v5288_v55 = vsel %vm12903_vm0, %v1628_v56, 0.0  ;;  %v5338_v42 = vadd.f32 %v5337_v52, %v5273_v61  ;;  %vm12906_vm5 = vcmp.eq.s32.totalorder %v12880_v37, %v7568_v43  ;;  %v12913_v61 = vld [vmem:[#allocation18_spill] sm:$0xff]  ;;  %v2213_v52 = vpop.f32.mrf.mxu1 }
 0x1bc   : > { %v5318_v62 = vadd.f32 %v5317_v9, %v5288_v55  ;;  %v5290_v53 = vsel %vm12906_vm5, %v1901_v15, 0.0  ;;  %vm12461_vm9 = vcmp.eq.s32.totalorder %v6920_v25, %v12892_v45  ;;  %vm535_vm0 = vcmp.eq.s32.totalorder %v12864_v47, %v12888_v31  ;;  %2485 = vmatmul.mubr.bf16.vlgmr.msra.gmra.mxu0 %v12913_v61  ;;  %2758 = vmatmul.mubr.bf16.vlgmr.msra.gmra.mxu1 %v12913_v61 }
 0x1bd   : > { %v5380_v43 = vadd.f32 %v5379_v32, %v5275_v44  ;;  %v5360_v0 = vadd.f32 %v5359_v36, %v5290_v53  ;;  %vm12909_vm3 = vcmp.eq.s32.totalorder %v12880_v37, %v7571_v48  ;;  %vm12912_vm6 = vcmp.eq.s32.totalorder %v12880_v37, %v7579_v63  ;;  %v1942_v32 = vpop.f32.mrf.mxu0  ;;  %2494 = vmatprep.mubr.bf16.mxu0 %v12704_v38 }
 0x1be   : > { %v5289_v3 = vsel %vm12909_vm3, %v1630_v33, 0.0  ;;  %v5319_v48 = vrot.slane %v5318_v62, 4  ;;  %v5291_v29 = vsel %vm12912_vm6, %v1903_v17, 0.0  ;;  %vm12462_vm13 = vcmp.eq.s32.totalorder %v6920_v25, %v8725_v14  ;;  %2767 = vmatprep.mubr.bf16.mxu1 %v12704_v38 }
 0x1bf   : > { %v5339_v28 = vadd.f32 %v5338_v42, %v5289_v3  ;;  %vm534_vm3 = vcmp.eq.s32.totalorder %v12864_v47, %v8754_v19  ;;  %v5361_v63 = vrot.slane %v5360_v0, 4  ;;  %v5381_v12 = vadd.f32 %v5380_v43, %v5291_v29  ;;  %v2215_v42 = vpop.f32.mrf.mxu1 }
 0x1c0   : > { %v12916_v9 = vmov 1.0|1.0   ;;  %v5320_v56 = vadd.f32 %v5319_v48, %v5318_v62  ;;  %vm12920_vm14 = vcmp.eq.s32.totalorder %v12887_v1, %v8754_v19  ;;  %vm12924_vm5 = vcmp.eq.s32.totalorder %v12875_v11, %v12885_v5 }
 0x1c1   : > { %6606 = vmatpush1.bf16.msk.msra.mxu0 %vm9077_vm4, %v12916_v9  ;;  %v5340_v54 = vrot.slane %v5339_v28, 4  ;;  %6638 = vmatpush1.bf16.msk.msra.mxu1 %vm9096_vm12, %v12916_v9  ;;  %vm12919_vm4 = vcmp.eq.s32.totalorder %v12886_v59, %v8754_v19  ;;  %v5362_v55 = vadd.f32 %v5361_v63, %v5360_v0  ;;  %v5382_v15 = vrot.slane %v5381_v12, 4  ;;  %v1944_v0 = vpop.f32.mrf.mxu0  ;;  %v2217_v29 = vpop.f32.mrf.mxu1 }
 0x1c2   : > { %vm9175_vm2 = vmpackc.low %vm12920_vm14, %vm12919_vm4  ;;  %vm12923_vm12 = vcmp.eq.s32.totalorder %v6740_v2, %v12892_v45  ;;  %6608 = vmatprep.subr.msk.bf16.mxu0 %vm9117_vm8, %v12916_v9  ;;  %vm12925_vm6 = vcmp.eq.s32.totalorder %v12882_v8, %v12885_v5  ;;  %vm500_vm4 = vcmp.eq.s32.totalorder %v6868_v21, %v8750_v18  ;;  %v5321_v53 = vrot.slane %v5320_v56, 2  ;;  %6640 = vmatprep.subr.msk.bf16.mxu1 %vm9137_vm15, %v12916_v9 }
 0x1c3   : > { %v3868_v35 = vsel %vm12923_vm12, %v1940_v60, 0.0  ;;  %vm9200_vm12 = vmpackc.low %vm12925_vm6, %vm12924_vm5  ;;  %v5341_v33 = vadd.f32 %v5340_v54, %v5339_v28  ;;  %vm12928_vm8 = vcmp.eq.s32.totalorder %v6740_v2, %v12895_v50  ;;  %vm12929_vm11 = vcmp.eq.s32.totalorder %v6740_v2, %v8725_v14 }
 0x1c4   : > { %v3870_v58 = vsel %vm12928_vm8, %v2213_v52, 0.0  ;;  %v3869_v43 = vsel %vm12929_vm11, %v1942_v32, 0.0  ;;  %vm12930_vm5 = vcmp.eq.s32.totalorder %v12875_v11, %v12888_v31  ;;  %vm12931_vm6 = vcmp.eq.s32.totalorder %v12882_v8, %v12888_v31  ;;  %v1946_v52 = vpop.f32.mrf.mxu0 }
 0x1c5   : > { %vm9223_vm14 = vmpackc.low %vm12931_vm6, %vm12930_vm5  ;;  %vm502_vm8 = vcmp.eq.s32.totalorder %v6868_v21, %v8754_v19  ;;  %v5363_v17 = vrot.slane %v5362_v55, 2  ;;  %v5383_v10 = vadd.f32 %v5382_v15, %v5381_v12  ;;  %v3871_v48 = vsel %vm12459_vm1, %v2215_v42, 0.0  ;;  %6610 = vmatpush1.bf16.msk.msra.mxu0 %vm9157_vm7, %v12916_v9  ;;  %6642 = vmatpush1.bf16.msk.msra.mxu1 %vm9175_vm2, %v12916_v9  ;;  %v2219_v15 = vpop.f32.mrf.mxu1 }
 0x1c6   : > { %vm12934_vm15 = vcmp.eq.s32.totalorder %v6946_v27, %v12892_v45  ;;  %vm12463_vm5 = vcmp.eq.s32.totalorder %v6923_v26, %v8725_v14  ;;  %v5322_v60 = vadd.f32 %v5321_v53, %v5320_v56  ;;  %v5342_v40 = vrot.slane %v5341_v33, 2  ;;  %6612 = vmatprep.subr.msk.bf16.mxu0 %vm9200_vm12, %v12916_v9  ;;  %6644 = vmatprep.subr.msk.bf16.mxu1 %vm9223_vm14, %v12916_v9 }
 0x1c7   : > { %v3884_v28 = vsel %vm12934_vm15, %v1944_v0, 0.0  ;;  %vm12935_vm15 = vcmp.eq.s32.totalorder %v6946_v27, %v12895_v50  ;;  %vm12936_vm7 = vcmp.eq.s32.totalorder %v12875_v11, %v8750_v18  ;;  %vm12937_vm11 = vcmp.eq.s32.totalorder %v12882_v8, %v8750_v18  ;;  %v12945_v0 = vld [vmem:[#allocation19_spill] sm:$0xff] }
 0x1c8   : > { %v4204_v63 = vadd.f32 %v3884_v28, %v3868_v35  ;;  %v3886_v12 = vsel %vm12935_vm15, %v2217_v29, 0.0  ;;  %vm9263_vm6 = vmpackc.low %vm12937_vm11, %vm12936_vm7  ;;  %v5364_v56 = vadd.f32 %v5363_v17, %v5362_v55  ;;  %v5384_v54 = vrot.slane %v5383_v10, 2  ;;  %2495 = vmatmul.mubr.bf16.gmra.mxu0 %v12945_v0  ;;  %v2223_v29 = vpop.f32.mrf.mxu1  ;;  %2768 = vmatmul.mubr.bf16.gmra.mxu1 %v12945_v0 }
 0x1c9   : > { %v4246_v32 = vadd.f32 %v3886_v12, %v3870_v58  ;;  %vm12940_vm12 = vcmp.eq.s32.totalorder %v6946_v27, %v8725_v14  ;;  %vm12941_vm7 = vcmp.eq.s32.totalorder %v12875_v11, %v8754_v19  ;;  %vm12942_vm2 = vcmp.eq.s32.totalorder %v12882_v8, %v8754_v19  ;;  %v1950_v58 = vpop.f32.mrf.mxu0  ;;  %2504 = vmatprep.mubr.bf16.mxu0 %v12704_v38 }
 0x1ca   : > { %v3885_v36 = vsel %vm12940_vm12, %v1946_v52, 0.0  ;;  %vm9285_vm15 = vmpackc.low %vm12942_vm2, %vm12941_vm7  ;;  %v5323_v35 = vrot.slane %v5322_v60, 1  ;;  %v5343_v42 = vadd.f32 %v5342_v40, %v5341_v33  ;;  %v3887_v53 = vsel %vm12460_vm10, %v2219_v15, 0.0  ;;  %2777 = vmatprep.mubr.bf16.mxu1 %v12704_v38  ;;  %6614 = vmatpush1.bf16.msk.msra.mxu0 %vm9263_vm6, %v12916_v9 }
 0x1cb   : > { %v4225_v62 = vadd.f32 %v3885_v36, %v3869_v43  ;;  %vm12467_vm14 = vcmp.eq.s32.totalorder %v6894_v23, %v12895_v50  ;;  %vm12464_vm12 = vcmp.eq.s32.totalorder %v6894_v23, %v8725_v14  ;;  %vm12946_vm2 = vcmp.eq.s32.totalorder %v12864_v47, %v12885_v5  ;;  %6646 = vmatpush1.bf16.msk.msra.mxu1 %vm9285_vm15, %v12916_v9 }
 0x1cc   : > { %vm12947_vm7 = vcmp.eq.s32.totalorder %v12869_v16, %v12885_v5  ;;  %v5365_v43 = vrot.slane %v5364_v56, 1  ;;  %v5385_v3 = vadd.f32 %v5384_v54, %v5383_v10  ;;  %v4267_v17 = vadd.f32 %v3887_v53, %v3871_v48  ;;  %v1952_v54 = vpop.f32.mrf.mxu0  ;;  %v2225_v53 = vpop.f32.mrf.mxu1 }
 0x1cd   : > { %vm9303_vm11 = vmpackc.low %vm12947_vm7, %vm12946_vm2  ;;  %v3900_v28 = vsel %vm12461_vm9, %v1950_v58, 0.0  ;;  %vm12950_vm7 = vcmp.eq.s32.totalorder %v12869_v16, %v12888_v31  ;;  %v5324_v48 = vadd.f32 %v5323_v35, %v5322_v60  ;;  %v5344_v40 = vrot.slane %v5343_v42, 1 }
 0x1ce   : > { %vm9324_vm1 = vmpackc.low %vm12950_vm7, %vm535_vm0  ;;  %v4205_v12 = vadd.f32 %v4204_v63, %v3900_v28  ;;  %vm12953_vm2 = vcmp.eq.s32.totalorder %v6920_v25, %v12895_v50  ;;  %vm12465_vm0 = vcmp.eq.s32.totalorder %v6897_v24, %v12892_v45  ;;  %vm12954_vm7 = vcmp.eq.s32.totalorder %v12864_v47, %v8750_v18  ;;  %6616 = vmatprep.subr.msk.bf16.mxu0 %vm9303_vm11, %v12916_v9 }
 0x1cf   : > { %v3902_v52 = vsel %vm12953_vm2, %v2223_v29, 0.0  ;;  %vm12955_vm10 = vcmp.eq.s32.totalorder %v12869_v16, %v8750_v18  ;;  %v5366_v63 = vadd.f32 %v5365_v43, %v5364_v56  ;;  %v5386_v36 = vrot.slane %v5385_v3, 1  ;;  %v12961_v56 = vld [vmem:[#allocation44_spill] sm:$0xff]  ;;  %v1954_v43 = vpop.f32.mrf.mxu0  ;;  %6648 = vmatprep.subr.msk.bf16.mxu1 %vm9324_vm1, %v12916_v9  ;;  %v12969_v29 = vld [vmem:[#allocation45_spill] sm:$0xff] }
 0x1d0   : > { %vm9347_vm9 = vmpackc.low %vm12955_vm10, %vm12954_vm7  ;;  %v4247_v15 = vadd.f32 %v4246_v32, %v3902_v52  ;;  %v3901_v35 = vsel %vm12462_vm13, %v1952_v54, 0.0  ;;  %vm12466_vm6 = vcmp.eq.s32.totalorder %v6897_v24, %v12895_v50  ;;  %vm12958_vm10 = vcmp.eq.s32.totalorder %v12869_v16, %v8754_v19  ;;  %v2227_v52 = vpop.f32.mrf.mxu1 }
 0x1d1   : > { %vm9368_vm2 = vmpackc.low %vm12958_vm10, %vm534_vm3  ;;  %vm12962_vm7 = vcmask 1041408   ;;  %v5345_v58 = vadd.f32 %v5344_v40, %v5343_v42  ;;  %v4226_v55 = vadd.f32 %v4225_v62, %v3901_v35  ;;  %vm12963_vm15 = vcmp.eq.s32.totalorder %v6920_v25, %v12898_v46  ;;  %6618 = vmatpush1.bf16.msk.msra.mxu0 %vm9347_vm9, %v12916_v9 }
 0x1d2   : > { %v5658_v32 = vsel %vm12962_vm7, %v12961_v56, %v5324_v48  ;;  %v3903_v33 = vsel %vm12963_vm15, %v2225_v53, 0.0  ;;  %vm12964_vm3 = vcmp.eq.s32.totalorder %v6868_v21, %v12885_v5  ;;  %vm12965_vm10 = vcmp.eq.s32.totalorder %v6871_v22, %v12885_v5  ;;  %v1956_v56 = vpop.f32.mrf.mxu0  ;;  %6650 = vmatpush1.bf16.msk.msra.mxu1 %vm9368_vm2, %v12916_v9 }
 0x1d3   : > { %vm9388_vm7 = vmpackc.low %vm12965_vm10, %vm12964_vm3  ;;  %v12968_v62 = vrot.slane %v8688_v4, %v6764_v7  ;;  %vm12970_vm15 = vcmask 1041408   ;;  %v5387_v10 = vadd.f32 %v5386_v36, %v5385_v3  ;;  %v4268_v40 = vadd.f32 %v4267_v17, %v3903_v33  ;;  %v12976_v3 = vld [vmem:[#allocation46_spill] sm:$0xff] }
 0x1d4   : > { %v5660_v48 = vsel %vm12970_vm15, %v12969_v29, %v5366_v63  ;;  %vm12971_vm3 = vcmp.eq.s32.totalorder %v6868_v21, %v12888_v31  ;;  %vm12972_vm10 = vcmp.eq.s32.totalorder %v6871_v22, %v12888_v31  ;;  %v12975_v35 = vrot.slane %v8688_v4, %v12828_v20  ;;  %v12982_v33 = vld [vmem:[#allocation2_spill] sm:$0xff]  ;;  %v12984_v29 = vld [vmem:[#allocation47_spill] sm:$0xff]  ;;  %6620 = vmatprep.subr.msk.bf16.mxu0 %vm9388_vm7, %v12916_v9 }
 0x1d5   : > { %v9395_v28 = vmul.f32 %v12968_v62, %v5658_v32  ;;  %vm9407_vm13 = vmpackc.low %vm12972_vm10, %vm12971_vm3  ;;  %v5659_v17 = vsel %vm12970_vm15, %v12976_v3, %v5345_v58  ;;  %vm12977_vm1 = vcmp.eq.s32.totalorder %v6923_v26, %v12892_v45  ;;  %vm12978_vm11 = vcmp.eq.s32.totalorder %v6923_v26, %v12895_v50 }
 0x1d6   : > { %v9414_v63 = vmul.f32 %v12975_v35, %v5660_v48  ;;  %v3916_v36 = vsel %vm12977_vm1, %v1954_v43, 0.0  ;;  %v3918_v53 = vsel %vm12978_vm11, %v2227_v52, 0.0  ;;  %vm3708_vm3 = vcmp.eq.s32.totalorder %v6868_v21, %v12892_v45  ;;  %v2229_v52 = vpop.f32.mrf.mxu1  ;;  %6652 = vmatprep.subr.msk.bf16.mxu1 %vm9407_vm13, %v12916_v9 }
 0x1d7   : > { %vm12979_vm10 = vcmp.eq.s32.totalorder %v6871_v22, %v8750_v18  ;;  %v5926_v58 = vmax.f32 %v9395_v28, 0.0  ;;  %v12983_v43 = vrot.slane %v8688_v4, %v12982_v33  ;;  %vm12985_vm11 = vcmask 1041408  }
 0x1d8   : > { %vm9435_vm15 = vmpackc.low %vm12979_vm10, %vm500_vm4  ;;  %v5661_v60 = vsel %vm12985_vm11, %v12984_v29, %v5387_v10  ;;  %v4206_v48 = vadd.f32 %v4205_v12, %v3916_v36  ;;  %vm3710_vm9 = vcmp.eq.s32.totalorder %v6868_v21, %v12895_v50  ;;  %vm12986_vm4 = vcmp.eq.s32.totalorder %v6871_v22, %v8754_v19  ;;  %v12990_v36 = vld [vmem:[#allocation20_spill] sm:$0xff] }
 0x1d9   : > { %v9443_v62 = vmul.f32 %v12983_v43, %v5659_v17  ;;  %vm9461_vm1 = vmpackc.low %vm12986_vm4, %vm502_vm8  ;;  %v5928_v10 = vmax.f32 %v9414_v63, 0.0  ;;  %v12989_v44 = vrot.slane %v8688_v4, %v12829_v41  ;;  %v4248_v3 = vadd.f32 %v4247_v15, %v3918_v53  ;;  %v1960_v17 = vpop.f32.mrf.mxu0  ;;  %2505 = vmatmul.mubr.bf16.gmra.mxu0 %v12990_v36  ;;  %v2233_v43 = vpop.f32.mrf.mxu1  ;;  %2778 = vmatmul.mubr.bf16.gmra.mxu1 %v12990_v36 }
 0x1da   : > { %v3917_v42 = vsel %vm12463_vm5, %v1956_v56, 0.0  ;;  %vm3709_vm8 = vcmp.eq.s32.totalorder %v6868_v21, %v8725_v14  ;;  %vm12991_vm2 = vcmp.eq.s32.totalorder %v6894_v23, %v12885_v5  ;;  %vm12992_vm7 = vcmp.eq.s32.totalorder %v6897_v24, %v12885_v5  ;;  %2514 = vmatprep.mubr.bf16.mxu0 %v12704_v38  ;;  %2787 = vmatprep.mubr.bf16.mxu1 %v12704_v38 }
 0x1db   : > { %v9469_v35 = vmul.f32 %v12989_v44, %v5661_v60  ;;  %vm9486_vm10 = vmpackc.low %vm12992_vm7, %vm12991_vm2  ;;  %v5942_v15 = vmin.f32 %v5926_v58, 1.0  ;;  %v5927_v53 = vmax.f32 %v9443_v62, 0.0  ;;  %v4227_v56 = vadd.f32 %v4226_v55, %v3917_v42  ;;  %v1962_v44 = vpop.f32.mrf.mxu0  ;;  %6622 = vmatpush1.bf16.msk.msra.mxu0 %vm9435_vm15, %v12916_v9  ;;  %6654 = vmatpush1.bf16.msk.msra.mxu1 %vm9461_vm1, %v12916_v9 }
 0x1dc   : > { %vm12995_vm11 = vcmp.eq.s32.totalorder %v6923_v26, %v12898_v46  ;;  %vm3711_vm13 = vcmp.eq.s32.totalorder %v6868_v21, %v12898_v46  ;;  %vm12996_vm4 = vcmp.eq.s32.totalorder %v6894_v23, %v12888_v31  ;;  %vm12997_vm2 = vcmp.eq.s32.totalorder %v6897_v24, %v12888_v31  ;;  %6624 = vmatprep.subr.msk.bf16.mxu0 %vm9486_vm10, %v12916_v9 }
 0x1dd   : > { %v3919_v54 = vsel %vm12995_vm11, %v2229_v52, 0.0  ;;  %vm9505_vm7 = vmpackc.low %vm12997_vm2, %vm12996_vm4  ;;  %v5944_v58 = vmin.f32 %v5928_v10, 1.0  ;;  %v5929_v29 = vmax.f32 %v9469_v35, 0.0  ;;  %vm13000_vm11 = vcmp.eq.s32.totalorder %v6894_v23, %v12892_v45 }
 0x1de   : > { %v4269_v60 = vadd.f32 %v4268_v40, %v3919_v54  ;;  %v3932_v52 = vsel %vm13000_vm11, %v1960_v17, 0.0  ;;  %vm12480_vm5 = vcmp.eq.s32.totalorder %v6871_v22, %v12892_v45  ;;  %v5943_v42 = vmin.f32 %v5927_v53, 1.0  ;;  %v2235_v54 = vpop.f32.mrf.mxu1  ;;  %6656 = vmatprep.subr.msk.bf16.mxu1 %vm9505_vm7, %v12916_v9 }
 0x1df   : > { %v4207_v10 = vadd.f32 %v4206_v48, %v3932_v52  ;;  %v3934_v40 = vsel %vm12467_vm14, %v2233_v43, 0.0  ;;  %v3933_v17 = vsel %vm12464_vm12, %v1962_v44, 0.0  ;;  %vm12478_vm4 = vcmp.eq.s32.totalorder %v6871_v22, %v12895_v50  ;;  %v1964_v43 = vpop.f32.mrf.mxu0 }
 0x1e0   : > { %vm13001_vm15 = vcmp.eq.s32.totalorder %v6894_v23, %v8750_v18  ;;  %vm13002_vm2 = vcmp.eq.s32.totalorder %v6897_v24, %v8750_v18  ;;  %v5945_v48 = vmin.f32 %v5929_v29, 1.0  ;;  %v4249_v12 = vadd.f32 %v4248_v3, %v3934_v40  ;;  %v2237_v44 = vpop.f32.mrf.mxu1 }
 0x1e1   : > { %vm9539_vm11 = vmpackc.low %vm13002_vm2, %vm13001_vm15  ;;  %v4228_v4 = vadd.f32 %v4227_v56, %v3933_v17  ;;  %vm13005_vm1 = vcmp.eq.s32.totalorder %v6894_v23, %v12898_v46  ;;  %vm12477_vm10 = vcmp.eq.s32.totalorder %v6871_v22, %v8725_v14  ;;  %vm13006_vm15 = vcmp.eq.s32.totalorder %v6894_v23, %v8754_v19 }
 0x1e2   : > { %v3935_v53 = vsel %vm13005_vm1, %v2235_v54, 0.0  ;;  %vm13007_vm2 = vcmp.eq.s32.totalorder %v6897_v24, %v8754_v19  ;;  %v6014_v56 = vcombine.low %v5942_v15, %v5943_v42  ;;  %v3948_v52 = vsel %vm12465_vm0, %v1964_v43, 0.0  ;;  %v1966_v15 = vpop.f32.mrf.mxu0  ;;  %6626 = vmatpush1.bf16.msk.msra.mxu0 %vm9539_vm11, %v12916_v9  ;;  %v2239_v42 = vpop.f32.mrf.mxu1 }
 0x1e3   : > { %vm9564_vm12 = vmpackc.low %vm13007_vm2, %vm13006_vm15  ;;  %v4270_v29 = vadd.f32 %v4269_v60, %v3935_v53  ;;  %vm12475_vm7 = vcmp.eq.s32.totalorder %v6871_v22, %v12898_v46  ;;  %vm437_vm1 = vcmp.eq.s32.totalorder %v6920_v25, %v12885_v5  ;;  %v6015_v55 = vcombine.low %v5944_v58, %v5945_v48  ;;  %v13012_v48 = vld [vmem:[#allocation21_spill] sm:$0xff] }
 0x1e4   : > { %v4208_v40 = vadd.f32 %v4207_v10, %v3948_v52  ;;  %v3950_v17 = vsel %vm12466_vm6, %v2237_v44, 0.0  ;;  %vm453_vm2 = vcmp.eq.s32.totalorder %v6923_v26, %v12885_v5  ;;  %6030 = vst [vmem:[%s9548_s28] sm:$0x77] %v6014_v56  ;;  %vm13010_vm0 = vcmp.eq.s32.totalorder %v6897_v24, %v8725_v14  ;;  %6658 = vmatpush1.bf16.msk.msra.mxu1 %vm9564_vm12, %v12916_v9  ;;  %v1970_v32 = vpop.f32.mrf.mxu0  ;;  %v2243_v53 = vpop.f32.mrf.mxu1  ;;  %v13014_v44 = vld [vmem:[#allocation53_spill] sm:$0xff] }
 0x1e5   : > { %v4250_v60 = vadd.f32 %v4249_v12, %v3950_v17  ;;  %v3949_v58 = vsel %vm13010_vm0, %v1966_v15, 0.0  ;;  %vm6627_vm14 = vmpackc.low %vm453_vm2, %vm437_vm1  ;;  %vm439_vm11 = vcmp.eq.s32.totalorder %v6920_v25, %v12888_v31  ;;  %vm455_vm15 = vcmp.eq.s32.totalorder %v6923_v26, %v12888_v31  ;;  %6031 = vst [vmem:[%s9548_s28 + $0x8] sm:$0x77] %v6015_v55  ;;  %2515 = vmatmul.mubr.bf16.gmra.mxu0 %v13012_v48 }
 0x1e6   : > { %v4229_v10 = vadd.f32 %v4228_v4, %v3949_v58  ;;  %vm13011_vm0 = vcmp.eq.s32.totalorder %v6897_v24, %v12898_v46  ;;  %6628 = vmatprep.subr.msk.bf16.mxu0 %vm6627_vm14, %v12916_v9  ;;  %vm6659_vm6 = vmpackc.low %vm455_vm15, %vm439_vm11  ;;  %vm436_vm12 = vcmp.eq.s32.totalorder %v6920_v25, %v8750_v18  ;;  %vm452_vm1 = vcmp.eq.s32.totalorder %v6923_v26, %v8750_v18  ;;  %v1972_v56 = vpop.f32.mrf.mxu0  ;;  %v2245_v15 = vpop.f32.mrf.mxu1 }
 0x1e7   : > { %v3951_v54 = vsel %vm13011_vm0, %v2239_v42, 0.0  ;;  %v3964_v4 = vsel %vm3708_vm3, %v1970_v32, 0.0  ;;  %2788 = vmatmul.mubr.bf16.gmra.mxu1 %v13012_v48  ;;  %2524 = vmatprep.mubr.bf16.mxu0 %v12704_v38  ;;  %vm6629_vm2 = vmpackc.low %vm452_vm1, %vm436_vm12  ;;  %vm438_vm14 = vcmp.eq.s32.totalorder %v6920_v25, %v8754_v19  ;;  %vm454_vm15 = vcmp.eq.s32.totalorder %v6923_v26, %v8754_v19 }
 0x1e8   : > { %v4271_v12 = vadd.f32 %v4270_v29, %v3951_v54  ;;  %v4209_v43 = vadd.f32 %v4208_v40, %v3964_v4  ;;  %v3966_v3 = vsel %vm3710_vm9, %v2243_v53, 0.0  ;;  %2797 = vmatprep.mubr.bf16.mxu1 %v12704_v38  ;;  %6660 = vmatprep.subr.msk.bf16.mxu1 %vm6659_vm6, %v12916_v9  ;;  %vm6661_vm11 = vmpackc.low %vm454_vm15, %vm438_vm14  ;;  %v13013_v29 = vld [vmem:[#allocation52_spill] sm:$0xff]  ;;  %v5879_v55 = vadd.f32 %v13014_v44, %v9443_v62 }
 0x1e9   : > { %v5878_v52 = vadd.f32 %v13013_v29, %v9395_v28  ;;  %v4251_v17 = vadd.f32 %v4250_v60, %v3966_v3  ;;  %v3965_v40 = vsel %vm3709_vm8, %v1972_v56, 0.0  ;;  %6630 = vmatpush1.bf16.msk.msra.mxu0 %vm6629_vm2, %v12916_v9  ;;  %6662 = vmatpush1.bf16.msk.msra.mxu1 %vm6661_vm11, %v12916_v9  ;;  %v5880_v58 = vadd.f32 %v9051_v30, %v9414_v63  ;;  %v1974_v60 = vpop.f32.mrf.mxu0  ;;  %v2247_v3 = vpop.f32.mrf.mxu1 }
 0x1ea   : > { %v5881_v42 = vadd.f32 %v9066_v49, %v9469_v35  ;;  %v4230_v28 = vadd.f32 %v4229_v10, %v3965_v40  ;;  %v3967_v62 = vsel %vm3711_vm13, %v2245_v15, 0.0  ;;  %v5895_v32 = vmax.f32 %v5879_v55, 0.0 }
 0x1eb   : > { %v5894_v54 = vmax.f32 %v5878_v52, 0.0  ;;  %v4272_v4 = vadd.f32 %v4271_v12, %v3967_v62  ;;  %v3980_v53 = vsel %vm12480_vm5, %v1974_v60, 0.0  ;;  %v5896_v56 = vmax.f32 %v5880_v58, 0.0  ;;  %v1976_v35 = vpop.f32.mrf.mxu0  ;;  %v2249_v52 = vpop.f32.mrf.mxu1 }
 0x1ec   : > { %v5897_v30 = vmax.f32 %v5881_v42, 0.0  ;;  %v4210_v63 = vadd.f32 %v4209_v43, %v3980_v53  ;;  %v3982_v49 = vsel %vm12478_vm4, %v2247_v3, 0.0  ;;  %v5911_v29 = vmin.f32 %v5895_v32, 1.0 }
 0x1ed   : > { %v5910_v10 = vmin.f32 %v5894_v54, 1.0  ;;  %v4252_v44 = vadd.f32 %v4251_v17, %v3982_v49  ;;  %v3981_v12 = vsel %vm12477_vm10, %v1976_v35, 0.0  ;;  %v5912_v43 = vmin.f32 %v5896_v56, 1.0  ;;  %v1980_v58 = vpop.f32.mrf.mxu0  ;;  %v13015_v17 = vld [vmem:[#allocation22_spill] sm:$0xff]  ;;  %v2253_v54 = vpop.f32.mrf.mxu1 }
 0x1ee   : > { %v5913_v55 = vmin.f32 %v5897_v30, 1.0  ;;  %v4231_v40 = vadd.f32 %v4230_v28, %v3981_v12  ;;  %v3983_v15 = vsel %vm12475_vm7, %v2249_v52, 0.0  ;;  %2525 = vmatmul.mubr.bf16.gmra.mxu0 %v13015_v17  ;;  %vm12474_vm6 = vcmp.eq.s32.totalorder %v12864_v47, %v8725_v14 }
 0x1ef   : > { %v5974_v42 = vcombine.low %v5910_v10, %v5911_v29  ;;  %v4273_v62 = vadd.f32 %v4272_v4, %v3983_v15  ;;  %vm13016_vm0 = vcmp.eq.s32.totalorder %v12864_v47, %v12892_v45  ;;  %2798 = vmatmul.mubr.bf16.gmra.mxu1 %v13015_v17  ;;  %vm12472_vm12 = vcmp.eq.s32.totalorder %v12864_v47, %v12898_v46  ;;  %v1982_v4 = vpop.f32.mrf.mxu0  ;;  %v2255_v30 = vpop.f32.mrf.mxu1 }
 0x1f0   : > { %v3996_v60 = vsel %vm13016_vm0, %v1980_v58, 0.0  ;;  %2534 = vmatprep.mubr.bf16.mxu0 %v12704_v38  ;;  %v5975_v28 = vcombine.low %v5912_v43, %v5913_v55  ;;  %vm13017_vm1 = vcmp.eq.s32.totalorder %v12864_v47, %v12895_v50  ;;  %vm12468_vm2 = vcmp.eq.s32.totalorder %v12869_v16, %v12892_v45  ;;  %2807 = vmatprep.mubr.bf16.mxu1 %v12704_v38 }
 0x1f1   : > { %v4211_v32 = vadd.f32 %v4210_v63, %v3996_v60  ;;  %v3998_v53 = vsel %vm13017_vm1, %v2253_v54, 0.0  ;;  %5990 = vst [vmem:[%s9652_s7] sm:$0x77] %v5974_v42  ;;  %v3997_v56 = vsel %vm12474_vm6, %v1982_v4, 0.0  ;;  %vm12469_vm14 = vcmp.eq.s32.totalorder %v12869_v16, %v12895_v50  ;;  %v1984_v35 = vpop.f32.mrf.mxu0  ;;  %v13018_v60 = vld [vmem:[#allocation23_spill] sm:$0xff] }
 0x1f2   : > { %v4253_v3 = vadd.f32 %v4252_v44, %v3998_v53  ;;  %5991 = vst [vmem:[%s9652_s7 + $0x8] sm:$0x77] %v5975_v28  ;;  %v4232_v63 = vadd.f32 %v4231_v40, %v3997_v56  ;;  %v3999_v49 = vsel %vm12472_vm12, %v2255_v30, 0.0  ;;  %vm12470_vm15 = vcmp.eq.s32.totalorder %v12869_v16, %v8725_v14  ;;  %v2257_v44 = vpop.f32.mrf.mxu1 }
 0x1f3   : > { %v4274_v10 = vadd.f32 %v4273_v62, %v3999_v49  ;;  %v4012_v29 = vsel %vm12468_vm2, %v1984_v35, 0.0  ;;  %vm12471_vm11 = vcmp.eq.s32.totalorder %v12869_v16, %v12898_v46  ;;  %v4014_v52 = vsel %vm12469_vm14, %v2257_v44, 0.0  ;;  %v1986_v43 = vpop.f32.mrf.mxu0 }
 0x1f4   : > { %v4212_v12 = vadd.f32 %v4211_v32, %v4012_v29  ;;  %vm12473_vm0 = vcmp.eq.s32.totalorder %v12875_v11, %v12892_v45  ;;  %v4254_v55 = vadd.f32 %v4253_v3, %v4014_v52  ;;  %v4013_v40 = vsel %vm12470_vm15, %v1986_v43, 0.0  ;;  %v2259_v15 = vpop.f32.mrf.mxu1 }
 0x1f5   : > { %vm12476_vm1 = vcmp.eq.s32.totalorder %v12875_v11, %v12895_v50  ;;  %vm12479_vm2 = vcmp.eq.s32.totalorder %v12875_v11, %v8725_v14  ;;  %v4233_v58 = vadd.f32 %v4232_v63, %v4013_v40  ;;  %v4015_v42 = vsel %vm12471_vm11, %v2259_v15, 0.0  ;;  %v1990_v62 = vpop.f32.mrf.mxu0 }
 0x1f6   : > { %2535 = vmatmul.mubr.bf16.gmra.mxu0 %v13018_v60  ;;  %vm12481_vm14 = vcmp.eq.s32.totalorder %v12875_v11, %v12898_v46  ;;  %vm12482_vm15 = vcmp.eq.s32.totalorder %v12882_v8, %v12892_v45  ;;  %v4275_v54 = vadd.f32 %v4274_v10, %v4015_v42  ;;  %v4028_v28 = vsel %vm12473_vm0, %v1990_v62, 0.0  ;;  %v2263_v32 = vpop.f32.mrf.mxu1  ;;  %v13019_v42 = vld [vmem:[#allocation24_spill] sm:$0xff] }
 0x1f7   : > { %2808 = vmatmul.mubr.bf16.gmra.mxu1 %v13018_v60  ;;  %vm3790_vm11 = vcmp.eq.s32.totalorder %v12882_v8, %v12895_v50  ;;  %vm3789_vm12 = vcmp.eq.s32.totalorder %v12882_v8, %v8725_v14  ;;  %2544 = vmatprep.mubr.bf16.mxu0 %v12704_v38  ;;  %v4213_v53 = vadd.f32 %v4212_v12, %v4028_v28  ;;  %v4030_v4 = vsel %vm12476_vm1, %v2263_v32, 0.0  ;;  %v1992_v3 = vpop.f32.mrf.mxu0 }
 0x1f8   : > { %vm3791_vm0 = vcmp.eq.s32.totalorder %v12882_v8, %v12898_v46  ;;  %2817 = vmatprep.mubr.bf16.mxu1 %v12704_v38  ;;  %vm3804_vm6 = vcmp.eq.s32.totalorder %v12886_v59, %v12892_v45  ;;  %v4255_v56 = vadd.f32 %v4254_v55, %v4030_v4  ;;  %v4029_v30 = vsel %vm12479_vm2, %v1992_v3, 0.0  ;;  %v2265_v63 = vpop.f32.mrf.mxu1 }
 0x1f9   : > { %vm405_vm7 = vcmp.eq.s32.totalorder %v6740_v2, %v12885_v5  ;;  %vm421_vm1 = vcmp.eq.s32.totalorder %v6946_v27, %v12885_v5  ;;  %v4234_v49 = vadd.f32 %v4233_v58, %v4029_v30  ;;  %v4031_v35 = vsel %vm12481_vm14, %v2265_v63, 0.0  ;;  %v1994_v10 = vpop.f32.mrf.mxu0 }
 0x1fa   : > { %vm6631_vm10 = vmpackc.low %vm421_vm1, %vm405_vm7  ;;  %vm407_vm4 = vcmp.eq.s32.totalorder %v6740_v2, %v12888_v31  ;;  %vm423_vm2 = vcmp.eq.s32.totalorder %v6946_v27, %v12888_v31  ;;  %v4276_v29 = vadd.f32 %v4275_v54, %v4031_v35  ;;  %v4044_v44 = vsel %vm12482_vm15, %v1994_v10, 0.0  ;;  %v2267_v12 = vpop.f32.mrf.mxu1 }
 0x1fb   : > { %6632 = vmatprep.subr.msk.bf16.mxu0 %vm6631_vm10, %v12916_v9  ;;  %vm6663_vm5 = vmpackc.low %vm423_vm2, %vm407_vm4  ;;  %vm404_vm14 = vcmp.eq.s32.totalorder %v6740_v2, %v8750_v18  ;;  %vm420_vm7 = vcmp.eq.s32.totalorder %v6946_v27, %v8750_v18  ;;  %v4214_v5 = vadd.f32 %v4213_v53, %v4044_v44  ;;  %v4046_v31 = vsel %vm3790_vm11, %v2267_v12, 0.0  ;;  %v1996_v52 = vpop.f32.mrf.mxu0 }
 0x1fc   : > { %6664 = vmatprep.subr.msk.bf16.mxu1 %vm6663_vm5, %v12916_v9  ;;  %vm6633_vm1 = vmpackc.low %vm420_vm7, %vm404_vm14  ;;  %vm406_vm15 = vcmp.eq.s32.totalorder %v6740_v2, %v8754_v19  ;;  %vm422_vm4 = vcmp.eq.s32.totalorder %v6946_v27, %v8754_v19  ;;  %v4256_v43 = vadd.f32 %v4255_v56, %v4046_v31  ;;  %v4045_v18 = vsel %vm3789_vm12, %v1996_v52, 0.0  ;;  %v2269_v55 = vpop.f32.mrf.mxu1 }
 0x1fd   : > { %vm3806_vm10 = vcmp.eq.s32.totalorder %v12886_v59, %v12895_v50  ;;  %6634 = vmatpush1.bf16.msk.msra.mxu0 %vm6633_vm1, %v12916_v9  ;;  %vm6665_vm2 = vmpackc.low %vm422_vm4, %vm406_vm15  ;;  %v4235_v40 = vadd.f32 %v4234_v49, %v4045_v18  ;;  %v4047_v15 = vsel %vm3791_vm0, %v2269_v55, 0.0  ;;  %v2000_v58 = vpop.f32.mrf.mxu0  ;;  %vm3805_vm5 = vcmp.eq.s32.totalorder %v12886_v59, %v8725_v14 }
 0x1fe   : > { %2545 = vmatmul.mubr.bf16.gmra.mxu0 %v13019_v42  ;;  %6666 = vmatpush1.bf16.msk.msra.mxu1 %vm6665_vm2, %v12916_v9  ;;  %v4277_v19 = vadd.f32 %v4276_v29, %v4047_v15  ;;  %v4060_v62 = vsel %vm3804_vm6, %v2000_v58, 0.0  ;;  %v2273_v54 = vpop.f32.mrf.mxu1  ;;  %vm3807_vm14 = vcmp.eq.s32.totalorder %v12886_v59, %v12898_v46  ;;  %vm12483_vm15 = vcmp.eq.s32.totalorder %v12887_v1, %v12892_v45  ;;  %v10189_v59 = vld [vmem:[%s8679_s22] sm:$0xff] }
 0x1ff   : > { %2818 = vmatmul.mubr.bf16.gmra.mxu1 %v13019_v42  ;;  %2554 = vmatprep.mubr.bf16.mxu0 %v12704_v38  ;;  %v4215_v28 = vadd.f32 %v4214_v5, %v4060_v62  ;;  %v4062_v32 = vsel %vm3806_vm10, %v2273_v54, 0.0  ;;  %v2002_v53 = vpop.f32.mrf.mxu0  ;;  %vm12484_vm7 = vcmp.eq.s32.totalorder %v12887_v1, %v12895_v50  ;;  %vm12485_vm1 = vcmp.eq.s32.totalorder %v12887_v1, %v8725_v14 }
 0x200   : > { %2827 = vmatprep.mubr.bf16.mxu1 %v12704_v38  ;;  %v4257_v9 = vadd.f32 %v4256_v43, %v4062_v32  ;;  %v4061_v4 = vsel %vm3805_vm5, %v2002_v53, 0.0  ;;  %v2275_v3 = vpop.f32.mrf.mxu1  ;;  %vm12486_vm4 = vcmp.eq.s32.totalorder %v12887_v1, %v12898_v46  ;;  %vm12487_vm2 = vcmp.eq.s32.totalorder %v12879_v39, %v12892_v45 }
 0x201   : > { %v4236_v56 = vadd.f32 %v4235_v40, %v4061_v4  ;;  %v4063_v30 = vsel %vm3807_vm14, %v2275_v3, 0.0  ;;  %v2004_v63 = vpop.f32.mrf.mxu0  ;;  %v13020_v40 = vld [vmem:[#allocation25_spill] sm:$0xff] }
 0x202   : > { %v4278_v49 = vadd.f32 %v4277_v19, %v4063_v30  ;;  %v4076_v35 = vsel %vm12483_vm15, %v2004_v63, 0.0  ;;  %v2277_v10 = vpop.f32.mrf.mxu1  ;;  %vm12488_vm15 = vcmp.eq.s32.totalorder %v12879_v39, %v12895_v50 }
 0x203   : > { %v4216_v29 = vadd.f32 %v4215_v28, %v4076_v35  ;;  %v4078_v44 = vsel %vm12484_vm7, %v2277_v10, 0.0  ;;  %v2006_v12 = vpop.f32.mrf.mxu0  ;;  %vm12489_vm7 = vcmp.eq.s32.totalorder %v12879_v39, %v8725_v14 }
 0x204   : > { %v4258_v5 = vadd.f32 %v4257_v9, %v4078_v44  ;;  %v4077_v31 = vsel %vm12485_vm1, %v2006_v12, 0.0  ;;  %v2279_v52 = vpop.f32.mrf.mxu1  ;;  %vm12494_vm1 = vcmp.eq.s32.totalorder %v12879_v39, %v12898_v46 }
 0x205   : > { %v4237_v43 = vadd.f32 %v4236_v56, %v4077_v31  ;;  %v4079_v18 = vsel %vm12486_vm4, %v2279_v52, 0.0  ;;  %v2010_v55 = vpop.f32.mrf.mxu0  ;;  %vm12493_vm4 = vcmp.eq.s32.totalorder %v12880_v37, %v12892_v45 }
 0x206   : > { %2555 = vmatmul.mubr.bf16.gmra.mxu0 %v13020_v40  ;;  %v4279_v15 = vadd.f32 %v4278_v49, %v4079_v18  ;;  %v4092_v58 = vsel %vm12487_vm2, %v2010_v55, 0.0  ;;  %v2283_v19 = vpop.f32.mrf.mxu1  ;;  %vm12492_vm2 = vcmp.eq.s32.totalorder %v12880_v37, %v12895_v50  ;;  %v13021_v18 = vld [vmem:[#allocation26_spill] sm:$0xff] }
 0x207   : > { %2828 = vmatmul.mubr.bf16.gmra.mxu1 %v13020_v40  ;;  %2564 = vmatprep.mubr.bf16.mxu0 %v12704_v38  ;;  %v4217_v62 = vadd.f32 %v4216_v29, %v4092_v58  ;;  %v4094_v54 = vsel %vm12488_vm15, %v2283_v19, 0.0  ;;  %v2012_v28 = vpop.f32.mrf.mxu0  ;;  %vm12490_vm15 = vcmp.eq.s32.totalorder %v12880_v37, %v8725_v14 }
 0x208   : > { %2837 = vmatprep.mubr.bf16.mxu1 %v12704_v38  ;;  %v4259_v32 = vadd.f32 %v4258_v5, %v4094_v54  ;;  %v4093_v53 = vsel %vm12489_vm7, %v2012_v28, 0.0  ;;  %v2285_v9 = vpop.f32.mrf.mxu1  ;;  %vm12491_vm7 = vcmp.eq.s32.totalorder %v12880_v37, %v12898_v46 }
 0x209   : > { %v4238_v4 = vadd.f32 %v4237_v43, %v4093_v53  ;;  %v4095_v3 = vsel %vm12494_vm1, %v2285_v9, 0.0  ;;  %v2014_v56 = vpop.f32.mrf.mxu0  ;;  %vm13026_vm1 = vcmp.eq.s32.totalorder %v6740_v2, %v8725_v14 }
 0x20a   : > { %v4280_v30 = vadd.f32 %v4279_v15, %v4095_v3  ;;  %v4108_v63 = vsel %vm12493_vm4, %v2014_v56, 0.0  ;;  %v2287_v49 = vpop.f32.mrf.mxu1  ;;  %vm13025_vm4 = vcmp.eq.s32.totalorder %v6946_v27, %v12895_v50 }
 0x20b   : > { %v9842_v35 = vadd.f32 %v4217_v62, %v4108_v63  ;;  %v4110_v10 = vsel %vm12492_vm2, %v2287_v49, 0.0  ;;  %v2016_v29 = vpop.f32.mrf.mxu0  ;;  %vm13024_vm2 = vcmp.eq.s32.totalorder %v6740_v2, %v12895_v50 }
 0x20c   : > { %v9847_v44 = vadd.f32 %v4259_v32, %v4110_v10  ;;  %v4109_v12 = vsel %vm12490_vm15, %v2016_v29, 0.0  ;;  %v2289_v5 = vpop.f32.mrf.mxu1  ;;  %vm13022_vm15 = vcmp.eq.s32.totalorder %v6740_v2, %v12892_v45 }
 0x20d   : > { %v9852_v31 = vadd.f32 %v4238_v4, %v4109_v12  ;;  %v4111_v52 = vsel %vm12491_vm7, %v2289_v5, 0.0  ;;  %v2020_v43 = vpop.f32.mrf.mxu0  ;;  %vm13023_vm7 = vcmp.eq.s32.totalorder %v6946_v27, %v12892_v45 }
 0x20e   : > { %2565 = vmatmul.mubr.bf16.gmra.mxu0 %v13021_v18  ;;  %v9858_v55 = vadd.f32 %v4280_v30, %v4111_v52  ;;  %v2293_v15 = vpop.f32.mrf.mxu1  ;;  %v4460_v54 = vsel %vm13022_vm15, %v2020_v43, 0.0  ;;  %vm13027_vm15 = vcmp.eq.s32.totalorder %v6946_v27, %v8725_v14  ;;  %v13030_v52 = vld [vmem:[#allocation27_spill] sm:$0xff] }
 0x20f   : > { %2838 = vmatmul.mubr.bf16.gmra.mxu1 %v13021_v18  ;;  %2574 = vmatprep.mubr.bf16.mxu0 %v12704_v38  ;;  %v2022_v58 = vpop.f32.mrf.mxu0  ;;  %v4462_v53 = vsel %vm13024_vm2, %v2293_v15, 0.0  ;;  %vm13029_vm2 = vcmp.eq.s32.totalorder %v6946_v27, %v12898_v46 }
 0x210   : > { %2847 = vmatprep.mubr.bf16.mxu1 %v12704_v38  ;;  %v2295_v19 = vpop.f32.mrf.mxu1  ;;  %v4461_v56 = vsel %vm13026_vm1, %v2022_v58, 0.0  ;;  %vm13031_vm1 = vcmp.eq.s32.totalorder %v6920_v25, %v12892_v45 }
 0x211   : > { %v2024_v62 = vpop.f32.mrf.mxu0 }
 0x212   : > { %v4476_v28 = vsel %vm13023_vm7, %v2024_v62, 0.0  ;;  %v2297_v32 = vpop.f32.mrf.mxu1  ;;  %vm13028_vm7 = vcmp.eq.s32.totalorder %v6740_v2, %v12898_v46 }
 0x213   : > { %v4796_v9 = vadd.f32 %v4476_v28, %v4460_v54  ;;  %v4478_v4 = vsel %vm13025_vm4, %v2297_v32, 0.0  ;;  %v2026_v3 = vpop.f32.mrf.mxu0  ;;  %v4463_v10 = vsel %vm13028_vm7, %v2295_v19, 0.0  ;;  %vm13032_vm4 = vcmp.eq.s32.totalorder %v6920_v25, %v12895_v50 }
 0x214   : > { %v4838_v30 = vadd.f32 %v4478_v4, %v4462_v53  ;;  %v4477_v63 = vsel %vm13027_vm15, %v2026_v3, 0.0  ;;  %v2299_v49 = vpop.f32.mrf.mxu1  ;;  %vm13033_vm15 = vcmp.eq.s32.totalorder %v6920_v25, %v8725_v14  ;;  %vm13034_vm7 = vcmp.eq.s32.totalorder %v6920_v25, %v12898_v46 }
 0x215   : > { %v4817_v29 = vadd.f32 %v4477_v63, %v4461_v56  ;;  %v4479_v12 = vsel %vm13029_vm2, %v2299_v49, 0.0  ;;  %v2030_v5 = vpop.f32.mrf.mxu0  ;;  %vm13035_vm2 = vcmp.eq.s32.totalorder %v6923_v26, %v12892_v45 }
 0x216   : > { %2575 = vmatmul.mubr.bf16.gmra.mxu0 %v13030_v52  ;;  %v4859_v43 = vadd.f32 %v4479_v12, %v4463_v10  ;;  %v4492_v15 = vsel %vm13031_vm1, %v2030_v5, 0.0  ;;  %v2303_v58 = vpop.f32.mrf.mxu1  ;;  %vm13036_vm1 = vcmp.eq.s32.totalorder %v6923_v26, %v12895_v50 }
 0x217   : > { %2848 = vmatmul.mubr.bf16.gmra.mxu1 %v13030_v52  ;;  %2584 = vmatprep.mubr.bf16.mxu0 %v12704_v38  ;;  %v4797_v62 = vadd.f32 %v4796_v9, %v4492_v15  ;;  %v4494_v19 = vsel %vm13032_vm4, %v2303_v58, 0.0  ;;  %v2032_v54 = vpop.f32.mrf.mxu0  ;;  %vm13037_vm4 = vcmp.eq.s32.totalorder %v6923_v26, %v8725_v14 }
 0x218   : > { %2857 = vmatprep.mubr.bf16.mxu1 %v12704_v38  ;;  %v4839_v28 = vadd.f32 %v4838_v30, %v4494_v19  ;;  %v4493_v32 = vsel %vm13033_vm15, %v2032_v54, 0.0  ;;  %v2305_v53 = vpop.f32.mrf.mxu1  ;;  %vm13038_vm15 = vcmp.eq.s32.totalorder %v6923_v26, %v12898_v46  ;;  %v13039_v54 = vld [vmem:[#allocation28_spill] sm:$0xff] }
 0x219   : > { %v4818_v4 = vadd.f32 %v4817_v29, %v4493_v32  ;;  %v4495_v3 = vsel %vm13034_vm7, %v2305_v53, 0.0  ;;  %v2034_v56 = vpop.f32.mrf.mxu0  ;;  %vm13040_vm7 = vcmp.eq.s32.totalorder %v6894_v23, %v12892_v45 }
 0x21a   : > { %v4860_v9 = vadd.f32 %v4859_v43, %v4495_v3  ;;  %v4508_v63 = vsel %vm13035_vm2, %v2034_v56, 0.0  ;;  %v2307_v49 = vpop.f32.mrf.mxu1  ;;  %vm13041_vm2 = vcmp.eq.s32.totalorder %v6894_v23, %v12895_v50 }
 0x21b   : > { %v4798_v10 = vadd.f32 %v4797_v62, %v4508_v63  ;;  %v4510_v30 = vsel %vm13036_vm1, %v2307_v49, 0.0  ;;  %v2036_v12 = vpop.f32.mrf.mxu0  ;;  %vm13042_vm1 = vcmp.eq.s32.totalorder %v6894_v23, %v8725_v14 }
 0x21c   : > { %v4840_v5 = vadd.f32 %v4839_v28, %v4510_v30  ;;  %v4509_v29 = vsel %vm13037_vm4, %v2036_v12, 0.0  ;;  %v2309_v15 = vpop.f32.mrf.mxu1  ;;  %vm13043_vm4 = vcmp.eq.s32.totalorder %v6894_v23, %v12898_v46 }
 0x21d   : > { %v4819_v58 = vadd.f32 %v4818_v4, %v4509_v29  ;;  %v4511_v43 = vsel %vm13038_vm15, %v2309_v15, 0.0  ;;  %v2040_v19 = vpop.f32.mrf.mxu0  ;;  %vm13044_vm15 = vcmp.eq.s32.totalorder %v6897_v24, %v12892_v45 }
 0x21e   : > { %2585 = vmatmul.mubr.bf16.gmra.mxu0 %v13039_v54  ;;  %v4861_v62 = vadd.f32 %v4860_v9, %v4511_v43  ;;  %v4524_v32 = vsel %vm13040_vm7, %v2040_v19, 0.0  ;;  %v2313_v53 = vpop.f32.mrf.mxu1  ;;  %vm13045_vm7 = vcmp.eq.s32.totalorder %v6897_v24, %v12895_v50 }
 0x21f   : > { %2858 = vmatmul.mubr.bf16.gmra.mxu1 %v13039_v54  ;;  %2594 = vmatprep.mubr.bf16.mxu0 %v12704_v38  ;;  %v4799_v28 = vadd.f32 %v4798_v10, %v4524_v32  ;;  %v4526_v4 = vsel %vm13041_vm2, %v2313_v53, 0.0  ;;  %v2042_v3 = vpop.f32.mrf.mxu0  ;;  %vm13046_vm2 = vcmp.eq.s32.totalorder %v6897_v24, %v8725_v14 }
 0x220   : > { %2867 = vmatprep.mubr.bf16.mxu1 %v12704_v38  ;;  %v4841_v56 = vadd.f32 %v4840_v5, %v4526_v4  ;;  %v4525_v9 = vsel %vm13042_vm1, %v2042_v3, 0.0  ;;  %v2315_v63 = vpop.f32.mrf.mxu1  ;;  %vm13047_vm1 = vcmp.eq.s32.totalorder %v6897_v24, %v12898_v46 }
 0x221   : > { %v4820_v49 = vadd.f32 %v4819_v58, %v4525_v9  ;;  %v4527_v30 = vsel %vm13043_vm4, %v2315_v63, 0.0  ;;  %v2044_v12 = vpop.f32.mrf.mxu0  ;;  %v13048_v9 = vld [vmem:[#allocation29_spill] sm:$0xff]  ;;  %vm13049_vm4 = vcmp.eq.s32.totalorder %v6871_v22, %v12892_v45 }
 0x222   : > { %v4862_v10 = vadd.f32 %v4861_v62, %v4527_v30  ;;  %v4540_v29 = vsel %vm13044_vm15, %v2044_v12, 0.0  ;;  %v2317_v15 = vpop.f32.mrf.mxu1  ;;  %vm13050_vm15 = vcmp.eq.s32.totalorder %v6871_v22, %v12895_v50 }
 0x223   : > { %v4800_v43 = vadd.f32 %v4799_v28, %v4540_v29  ;;  %v4542_v5 = vsel %vm13045_vm7, %v2317_v15, 0.0  ;;  %v2046_v19 = vpop.f32.mrf.mxu0  ;;  %vm13051_vm7 = vcmp.eq.s32.totalorder %v6871_v22, %v8725_v14 }
 0x224   : > { %v4842_v32 = vadd.f32 %v4841_v56, %v4542_v5  ;;  %v4541_v58 = vsel %vm13046_vm2, %v2046_v19, 0.0  ;;  %v2319_v53 = vpop.f32.mrf.mxu1  ;;  %vm13052_vm2 = vcmp.eq.s32.totalorder %v6871_v22, %v12898_v46 }
 0x225   : > { %v4821_v4 = vadd.f32 %v4820_v49, %v4541_v58  ;;  %v4543_v62 = vsel %vm13047_vm1, %v2319_v53, 0.0  ;;  %v2050_v3 = vpop.f32.mrf.mxu0  ;;  %vm13054_vm1 = vcmp.eq.s32.totalorder %v12864_v47, %v12892_v45 }
 0x226   : > { %2595 = vmatmul.mubr.bf16.gmra.mxu0 %v13048_v9  ;;  %v4863_v28 = vadd.f32 %v4862_v10, %v4543_v62  ;;  %v4556_v63 = vsel %vm3708_vm3, %v2050_v3, 0.0  ;;  %v2323_v30 = vpop.f32.mrf.mxu1 }
 0x227   : > { %2868 = vmatmul.mubr.bf16.gmra.mxu1 %v13048_v9  ;;  %2604 = vmatprep.mubr.bf16.mxu0 %v12704_v38  ;;  %v4801_v56 = vadd.f32 %v4800_v43, %v4556_v63  ;;  %v4558_v49 = vsel %vm3710_vm9, %v2323_v30, 0.0  ;;  %v2052_v12 = vpop.f32.mrf.mxu0 }
 0x228   : > { %2877 = vmatprep.mubr.bf16.mxu1 %v12704_v38  ;;  %v4843_v29 = vadd.f32 %v4842_v32, %v4558_v49  ;;  %v4557_v10 = vsel %vm3709_vm8, %v2052_v12, 0.0  ;;  %v2325_v15 = vpop.f32.mrf.mxu1 }
 0x229   : > { %v4822_v5 = vadd.f32 %v4821_v4, %v4557_v10  ;;  %v4559_v19 = vsel %vm3711_vm13, %v2325_v15, 0.0  ;;  %v2054_v58 = vpop.f32.mrf.mxu0  ;;  %v13053_v15 = vld [vmem:[#allocation30_spill] sm:$0xff] }
 0x22a   : > { %v4864_v43 = vadd.f32 %v4863_v28, %v4559_v19  ;;  %v4572_v53 = vsel %vm13049_vm4, %v2054_v58, 0.0  ;;  %v2327_v62 = vpop.f32.mrf.mxu1  ;;  %vm13055_vm4 = vcmp.eq.s32.totalorder %v12864_v47, %v12895_v50 }
 0x22b   : > { %v4802_v3 = vadd.f32 %v4801_v56, %v4572_v53  ;;  %v4574_v32 = vsel %vm13050_vm15, %v2327_v62, 0.0  ;;  %v2056_v63 = vpop.f32.mrf.mxu0  ;;  %vm13056_vm15 = vcmp.eq.s32.totalorder %v12864_v47, %v8725_v14 }
 0x22c   : > { %v4844_v30 = vadd.f32 %v4843_v29, %v4574_v32  ;;  %v4573_v4 = vsel %vm13051_vm7, %v2056_v63, 0.0  ;;  %v2329_v49 = vpop.f32.mrf.mxu1  ;;  %vm13057_vm7 = vcmp.eq.s32.totalorder %v12864_v47, %v12898_v46 }
 0x22d   : > { %v4823_v12 = vadd.f32 %v4822_v5, %v4573_v4  ;;  %v4575_v28 = vsel %vm13052_vm2, %v2329_v49, 0.0  ;;  %v2060_v10 = vpop.f32.mrf.mxu0  ;;  %vm13058_vm2 = vcmp.eq.s32.totalorder %v12869_v16, %v12892_v45 }
 0x22e   : > { %2605 = vmatmul.mubr.bf16.gmra.mxu0 %v13053_v15  ;;  %v4865_v56 = vadd.f32 %v4864_v43, %v4575_v28  ;;  %v4588_v19 = vsel %vm13054_vm1, %v2060_v10, 0.0  ;;  %v2333_v58 = vpop.f32.mrf.mxu1  ;;  %vm13059_vm1 = vcmp.eq.s32.totalorder %v12869_v16, %v12895_v50 }
 0x22f   : > { %2878 = vmatmul.mubr.bf16.gmra.mxu1 %v13053_v15  ;;  %2614 = vmatprep.mubr.bf16.mxu0 %v12704_v38  ;;  %v4803_v29 = vadd.f32 %v4802_v3, %v4588_v19  ;;  %v4590_v5 = vsel %vm13055_vm4, %v2333_v58, 0.0  ;;  %v2062_v53 = vpop.f32.mrf.mxu0  ;;  %vm13060_vm4 = vcmp.eq.s32.totalorder %v12869_v16, %v8725_v14 }
 0x230   : > { %2887 = vmatprep.mubr.bf16.mxu1 %v12704_v38  ;;  %v4845_v62 = vadd.f32 %v4844_v30, %v4590_v5  ;;  %v4589_v43 = vsel %vm13056_vm15, %v2062_v53, 0.0  ;;  %v2335_v32 = vpop.f32.mrf.mxu1  ;;  %vm13061_vm15 = vcmp.eq.s32.totalorder %v12869_v16, %v12898_v46 }
 0x231   : > { %v4824_v63 = vadd.f32 %v4823_v12, %v4589_v43  ;;  %v4591_v4 = vsel %vm13057_vm7, %v2335_v32, 0.0  ;;  %v2064_v49 = vpop.f32.mrf.mxu0  ;;  %vm13063_vm7 = vcmp.eq.s32.totalorder %v12875_v11, %v12892_v45 }
 0x232   : > { %v4866_v3 = vadd.f32 %v4865_v56, %v4591_v4  ;;  %v4604_v28 = vsel %vm13058_vm2, %v2064_v49, 0.0  ;;  %v2337_v10 = vpop.f32.mrf.mxu1  ;;  %v13062_v4 = vld [vmem:[#allocation31_spill] sm:$0xff]  ;;  %vm13064_vm2 = vcmp.eq.s32.totalorder %v12875_v11, %v12895_v50 }
 0x233   : > { %v4804_v19 = vadd.f32 %v4803_v29, %v4604_v28  ;;  %v4606_v30 = vsel %vm13059_vm1, %v2337_v10, 0.0  ;;  %v2066_v58 = vpop.f32.mrf.mxu0  ;;  %vm13065_vm1 = vcmp.eq.s32.totalorder %v12875_v11, %v8725_v14 }
 0x234   : > { %v4846_v5 = vadd.f32 %v4845_v62, %v4606_v30  ;;  %v4605_v12 = vsel %vm13060_vm4, %v2066_v58, 0.0  ;;  %v2339_v53 = vpop.f32.mrf.mxu1  ;;  %vm13066_vm4 = vcmp.eq.s32.totalorder %v12875_v11, %v12898_v46 }
 0x235   : > { %v4825_v43 = vadd.f32 %v4824_v63, %v4605_v12  ;;  %v4607_v56 = vsel %vm13061_vm15, %v2339_v53, 0.0  ;;  %v2070_v32 = vpop.f32.mrf.mxu0  ;;  %vm13067_vm15 = vcmp.eq.s32.totalorder %v12882_v8, %v12892_v45 }
 0x236   : > { %2615 = vmatmul.mubr.bf16.gmra.mxu0 %v13062_v4  ;;  %v4867_v29 = vadd.f32 %v4866_v3, %v4607_v56  ;;  %v4620_v49 = vsel %vm13063_vm7, %v2070_v32, 0.0  ;;  %v2343_v28 = vpop.f32.mrf.mxu1  ;;  %vm13069_vm7 = vcmp.eq.s32.totalorder %v12887_v1, %v12892_v45 }
 0x237   : > { %2888 = vmatmul.mubr.bf16.gmra.mxu1 %v13062_v4  ;;  %2624 = vmatprep.mubr.bf16.mxu0 %v12704_v38  ;;  %v4805_v62 = vadd.f32 %v4804_v19, %v4620_v49  ;;  %v4622_v63 = vsel %vm13064_vm2, %v2343_v28, 0.0  ;;  %v2072_v10 = vpop.f32.mrf.mxu0  ;;  %vm13070_vm2 = vcmp.eq.s32.totalorder %v12887_v1, %v12895_v50  ;;  %v13073_v4 = vld [vmem:[#allocation33_spill] sm:$0xff] }
 0x238   : > { %2897 = vmatprep.mubr.bf16.mxu1 %v12704_v38  ;;  %v4847_v30 = vadd.f32 %v4846_v5, %v4622_v63  ;;  %v4621_v3 = vsel %vm13065_vm1, %v2072_v10, 0.0  ;;  %v2345_v58 = vpop.f32.mrf.mxu1  ;;  %vm13071_vm1 = vcmp.eq.s32.totalorder %v12887_v1, %v8725_v14 }
 0x239   : > { %v4826_v12 = vadd.f32 %v4825_v43, %v4621_v3  ;;  %v4623_v53 = vsel %vm13066_vm4, %v2345_v58, 0.0  ;;  %v2074_v56 = vpop.f32.mrf.mxu0  ;;  %vm13072_vm4 = vcmp.eq.s32.totalorder %v12887_v1, %v12898_v46 }
 0x23a   : > { %v4868_v19 = vadd.f32 %v4867_v29, %v4623_v53  ;;  %v4636_v32 = vsel %vm13067_vm15, %v2074_v56, 0.0  ;;  %v2347_v49 = vpop.f32.mrf.mxu1  ;;  %v13068_v56 = vld [vmem:[#allocation32_spill] sm:$0xff]  ;;  %vm13074_vm15 = vcmp.eq.s32.totalorder %v12879_v39, %v12892_v45 }
 0x23b   : > { %v4806_v28 = vadd.f32 %v4805_v62, %v4636_v32  ;;  %v4638_v5 = vsel %vm3790_vm11, %v2347_v49, 0.0  ;;  %v2076_v63 = vpop.f32.mrf.mxu0 }
 0x23c   : > { %v4848_v10 = vadd.f32 %v4847_v30, %v4638_v5  ;;  %v4637_v43 = vsel %vm3789_vm12, %v2076_v63, 0.0  ;;  %v2349_v3 = vpop.f32.mrf.mxu1 }
 0x23d   : > { %v4827_v58 = vadd.f32 %v4826_v12, %v4637_v43  ;;  %v4639_v29 = vsel %vm3791_vm0, %v2349_v3, 0.0  ;;  %v2080_v53 = vpop.f32.mrf.mxu0 }
 0x23e   : > { %2625 = vmatmul.mubr.bf16.gmra.mxu0 %v13068_v56  ;;  %v4869_v62 = vadd.f32 %v4868_v19, %v4639_v29  ;;  %v4652_v32 = vsel %vm3804_vm6, %v2080_v53, 0.0  ;;  %v2353_v49 = vpop.f32.mrf.mxu1 }
 0x23f   : > { %2898 = vmatmul.mubr.bf16.gmra.mxu1 %v13068_v56  ;;  %2634 = vmatprep.mubr.bf16.mxu0 %v12704_v38  ;;  %v4807_v30 = vadd.f32 %v4806_v28, %v4652_v32  ;;  %v4654_v12 = vsel %vm3806_vm10, %v2353_v49, 0.0  ;;  %v2082_v5 = vpop.f32.mrf.mxu0  ;;  %v4219_v56 = vrot.slane %v9842_v35, 4 }
 0x240   : > { %2907 = vmatprep.mubr.bf16.mxu1 %v12704_v38  ;;  %v4849_v63 = vadd.f32 %v4848_v10, %v4654_v12  ;;  %v4653_v19 = vsel %vm3805_vm5, %v2082_v5, 0.0  ;;  %v2355_v43 = vpop.f32.mrf.mxu1 }
 0x241   : > { %v4828_v3 = vadd.f32 %v4827_v58, %v4653_v19  ;;  %v4655_v29 = vsel %vm3807_vm14, %v2355_v43, 0.0  ;;  %v2084_v53 = vpop.f32.mrf.mxu0  ;;  %v4261_v58 = vrot.slane %v9847_v44, 4 }
 0x242   : > { %v4870_v28 = vadd.f32 %v4869_v62, %v4655_v29  ;;  %v4668_v32 = vsel %vm13069_vm7, %v2084_v53, 0.0  ;;  %v2357_v49 = vpop.f32.mrf.mxu1  ;;  %v4240_v29 = vrot.slane %v9852_v31, 4  ;;  %vm13075_vm7 = vcmp.eq.s32.totalorder %v12879_v39, %v12895_v50 }
 0x243   : > { %v4808_v10 = vadd.f32 %v4807_v30, %v4668_v32  ;;  %v4670_v12 = vsel %vm13070_vm2, %v2357_v49, 0.0  ;;  %v2086_v5 = vpop.f32.mrf.mxu0  ;;  %v4282_v49 = vrot.slane %v9858_v55, 4  ;;  %vm13076_vm2 = vcmp.eq.s32.totalorder %v12879_v39, %v8725_v14 }
 0x244   : > { %v4850_v19 = vadd.f32 %v4849_v63, %v4670_v12  ;;  %v4669_v62 = vsel %vm13071_vm1, %v2086_v5, 0.0  ;;  %v2359_v43 = vpop.f32.mrf.mxu1  ;;  %v4241_v9 = vadd.f32 %v4240_v29, %v9852_v31  ;;  %vm13077_vm1 = vcmp.eq.s32.totalorder %v12879_v39, %v12898_v46 }
 0x245   : > { %v4829_v53 = vadd.f32 %v4828_v3, %v4669_v62  ;;  %v4671_v30 = vsel %vm13072_vm4, %v2359_v43, 0.0  ;;  %v2090_v32 = vpop.f32.mrf.mxu0  ;;  %v4220_v3 = vadd.f32 %v4219_v56, %v9842_v35  ;;  %vm13078_vm4 = vcmp.eq.s32.totalorder %v12880_v37, %v12892_v45 }
 0x246   : > { %2635 = vmatmul.mubr.bf16.gmra.mxu0 %v13073_v4  ;;  %v4871_v15 = vadd.f32 %v4870_v28, %v4671_v30  ;;  %v4684_v63 = vsel %vm13074_vm15, %v2090_v32, 0.0  ;;  %v2363_v12 = vpop.f32.mrf.mxu1  ;;  %v4262_v28 = vadd.f32 %v4261_v58, %v9847_v44  ;;  %vm13079_vm15 = vcmp.eq.s32.totalorder %v12880_v37, %v12895_v50 }
 0x247   : > { %2908 = vmatmul.mubr.bf16.gmra.mxu1 %v13073_v4  ;;  %2644 = vmatprep.mubr.bf16.mxu0 %v12704_v38  ;;  %v4809_v5 = vadd.f32 %v4808_v10, %v4684_v63  ;;  %v4686_v62 = vsel %vm13075_vm7, %v2363_v12, 0.0  ;;  %v2092_v43 = vpop.f32.mrf.mxu0  ;;  %v4283_v10 = vadd.f32 %v4282_v49, %v9858_v55  ;;  %vm13080_vm7 = vcmp.eq.s32.totalorder %v12880_v37, %v8725_v14 }
 0x248   : > { %2917 = vmatprep.mubr.bf16.mxu1 %v12704_v38  ;;  %v4851_v30 = vadd.f32 %v4850_v19, %v4686_v62  ;;  %v4685_v32 = vsel %vm13076_vm2, %v2092_v43, 0.0  ;;  %v2365_v4 = vpop.f32.mrf.mxu1  ;;  %v4221_v19 = vrot.slane %v4220_v3, 2  ;;  %vm13081_vm2 = vcmp.eq.s32.totalorder %v12880_v37, %v12898_v46 }
 0x249   : > { %v4830_v54 = vadd.f32 %v4829_v53, %v4685_v32  ;;  %v4687_v35 = vsel %vm13077_vm1, %v2365_v4, 0.0  ;;  %v2094_v56 = vpop.f32.mrf.mxu0  ;;  %v4263_v53 = vrot.slane %v4262_v28, 2  ;;  %vm13084_vm1 = vcmask 1040384  }
 0x24a   : > { %v4872_v63 = vadd.f32 %v4871_v15, %v4687_v35  ;;  %v4700_v44 = vsel %vm13078_vm4, %v2094_v56, 0.0  ;;  %v2367_v58 = vpop.f32.mrf.mxu1  ;;  %v4242_v15 = vrot.slane %v4241_v9, 2  ;;  %v13082_v35 = vld [vmem:[#allocation34_spill] sm:$0xff]  ;;  %v4284_v56 = vrot.slane %v4283_v10, 2  ;;  %vm13086_vm4 = vmmov %vm13084_vm1 }
 0x24b   : > { %v4810_v12 = vadd.f32 %v4809_v5, %v4700_v44  ;;  %v4702_v31 = vsel %vm13079_vm15, %v2367_v58, 0.0  ;;  %v2096_v29 = vpop.f32.mrf.mxu0  ;;  %vm13088_vm15 = vmmov %vm13084_vm1 }
 0x24c   : > { %v4852_v62 = vadd.f32 %v4851_v30, %v4702_v31  ;;  %v4701_v4 = vsel %vm13080_vm7, %v2096_v29, 0.0  ;;  %v2369_v55 = vpop.f32.mrf.mxu1  ;;  %v4222_v31 = vadd.f32 %v4221_v19, %v4220_v3  ;;  %v4243_v42 = vadd.f32 %v4242_v15, %v4241_v9  ;;  %vm13090_vm7 = vmmov %vm13084_vm1 }
 0x24d   : > { %v4811_v49 = vrot.slane %v4810_v12, 4  ;;  %v4831_v43 = vadd.f32 %v4830_v54, %v4701_v4  ;;  %v4703_v32 = vsel %vm13081_vm2, %v2369_v55, 0.0  ;;  %v10091_v5 = vpop.f32.mrf.mxu0  ;;  %v4264_v55 = vadd.f32 %v4263_v53, %v4262_v28 }
 0x24e   : > { %2645 = vmatmul.mubr.bf16.gmra.mxu0 %v13082_v35  ;;  %v4853_v44 = vrot.slane %v4852_v62, 4  ;;  %v4873_v58 = vadd.f32 %v4872_v63, %v4703_v32  ;;  %v10094_v30 = vpop.f32.mrf.mxu1  ;;  %v4223_v19 = vrot.slane %v4222_v31, 1  ;;  %v4244_v9 = vrot.slane %v4243_v42, 1 }
 0x24f   : > { %2918 = vmatmul.mubr.bf16.gmra.mxu1 %v13082_v35  ;;  %2654 = vmatprep.mubr.bf16.mxu0 %v12704_v38  ;;  %v4812_v29 = vadd.f32 %v4811_v49, %v4810_v12  ;;  %v4832_v54 = vrot.slane %v4831_v43, 4  ;;  %v10098_v4 = vpop.f32.mrf.mxu0  ;;  %v4285_v35 = vadd.f32 %v4284_v56, %v4283_v10  ;;  %v4265_v28 = vrot.slane %v4264_v55, 1  ;;  %v13083_v10 = vld [vmem:[#allocation35_spill] sm:$0xff] }
 0x250   : > { %2927 = vmatprep.mubr.bf16.mxu1 %v12704_v38  ;;  %v4854_v52 = vadd.f32 %v4853_v44, %v4852_v62  ;;  %v4874_v18 = vrot.slane %v4873_v58, 4  ;;  %v10101_v40 = vpop.f32.mrf.mxu1  ;;  %v4245_v39 = vadd.f32 %v4244_v9, %v4243_v42  ;;  %vm13098_vm2 = vcmp.eq.s32.totalorder %v6946_v27, %v12892_v45 }
 0x251   : > { %v4813_v63 = vrot.slane %v4812_v29, 2  ;;  %v4833_v32 = vadd.f32 %v4832_v54, %v4831_v43  ;;  %v10103_v60 = vpop.f32.mrf.mxu0 }
 0x252   : > { %v4855_v17 = vrot.slane %v4854_v52, 2  ;;  %v4875_v48 = vadd.f32 %v4874_v18, %v4873_v58  ;;  %v10105_v3 = vpop.f32.mrf.mxu1  ;;  %v4286_v18 = vrot.slane %v4285_v35, 1 }
 0x253   : > { %v4814_v12 = vadd.f32 %v4813_v63, %v4812_v29  ;;  %v4834_v49 = vrot.slane %v4833_v32, 2  ;;  %v10107_v36 = vpop.f32.mrf.mxu0 }
 0x254   : > { %v4856_v53 = vadd.f32 %v4855_v17, %v4854_v52  ;;  %v4876_v62 = vrot.slane %v4875_v48, 2  ;;  %v10109_v44 = vpop.f32.mrf.mxu1  ;;  %v4224_v17 = vadd.f32 %v4223_v19, %v4222_v31  ;;  %v4287_v34 = vadd.f32 %v4286_v18, %v4285_v35 }
 0x255   : > { %v4815_v15 = vrot.slane %v4814_v12, 1  ;;  %v4835_v43 = vadd.f32 %v4834_v49, %v4833_v32  ;;  %v10111_v54 = vpop.f32.mrf.mxu0  ;;  %v4266_v32 = vadd.f32 %v4265_v28, %v4264_v55 }
 0x256   : > { %2655 = vmatmul.mubr.bf16.gmra.mxu0 %v13083_v10  ;;  %v4857_v56 = vrot.slane %v4856_v53, 1  ;;  %v4877_v58 = vadd.f32 %v4876_v62, %v4875_v48  ;;  %v10114_v0 = vpop.f32.mrf.mxu1 }
 0x257   : > { %2928 = vmatmul.mubr.bf16.gmra.mxu1 %v13083_v10  ;;  %2664 = vmatprep.mubr.bf16.mxu0 %v12704_v38  ;;  %v4816_v52 = vadd.f32 %v4815_v15, %v4814_v12  ;;  %v4836_v29 = vrot.slane %v4835_v43, 1  ;;  %v10118_v63 = vpop.f32.mrf.mxu0  ;;  %v13092_v15 = vld [vmem:[#allocation36_spill] sm:$0xff] }
 0x258   : > { %2937 = vmatprep.mubr.bf16.mxu1 %v12704_v38  ;;  %v4858_v49 = vadd.f32 %v4857_v56, %v4856_v53  ;;  %v4878_v61 = vrot.slane %v4877_v58, 1  ;;  %v10121_v37 = vpop.f32.mrf.mxu1 }
 0x259   : > { %v10124_v48 = vsel %vm13084_vm1, %v4224_v17, %v4816_v52  ;;  %v4837_v62 = vadd.f32 %v4836_v29, %v4835_v43  ;;  %v10126_v10 = vpop.f32.mrf.mxu0  ;;  %v13093_v17 = vld [vmem:[#allocation37_spill] sm:$0xff]  ;;  %vm13100_vm1 = vcmp.eq.s32.totalorder %v6946_v27, %v12895_v50 }
 0x25a   : > { %13085 = vst [vmem:[#allocation39_spill] sm:$0xff] %v10124_v48  ;;  %v10129_v31 = vsel %vm13086_vm4, %v4266_v32, %v4858_v49  ;;  %v4879_v19 = vadd.f32 %v4878_v61, %v4877_v58  ;;  %v10131_v12 = vpop.f32.mrf.mxu1  ;;  %v13094_v32 = vld [vmem:[#allocation16_spill] sm:$0xff]  ;;  %v5070_v16 = vsel %vm13100_vm1, %v10105_v3, 0.0  ;;  %vm13103_vm4 = vcmp.eq.s32.totalorder %v6740_v2, %v12892_v45 }
 0x25b   : > { %13087 = vst [vmem:[#allocation42_spill] sm:$0xff] %v10129_v31  ;;  %v10134_v55 = vsel %vm13088_vm15, %v4245_v39, %v4837_v62  ;;  %v10136_v28 = vpop.f32.mrf.mxu0  ;;  %v5801_v49 = vrot.slane %v8698_v57, %v13094_v32  ;;  %vm13104_vm15 = vcmp.eq.s32.totalorder %v6740_v2, %v12895_v50  ;;  %vm13107_vm1 = vcmp.eq.s32.totalorder %v6740_v2, %v8725_v14 }
 0x25c   : > { %13089 = vst [vmem:[#allocation43_spill] sm:$0xff] %v10134_v55  ;;  %v10139_v42 = vsel %vm13090_vm7, %v4287_v34, %v4879_v19  ;;  %v10141_v53 = vpop.f32.mrf.mxu1  ;;  %v13095_v19 = vld [vmem:[#allocation17_spill] sm:$0xff]  ;;  %v13096_v55 = vld [vmem:[#allocation14_spill] sm:$0xff]  ;;  %v5054_v3 = vsel %vm13104_vm15, %v10094_v30, 0.0  ;;  %vm13105_vm7 = vcmp.eq.s32.totalorder %v6946_v27, %v8725_v14  ;;  %vm13109_vm15 = vcmp.eq.s32.totalorder %v6920_v25, %v12895_v50 }
 0x25d   : > { %13091 = vst [vmem:[#allocation49_spill] sm:$0xff] %v10139_v42  ;;  %v10143_v9 = vpop.f32.mrf.mxu0  ;;  %v5805_v31 = vrot.slane %v8698_v57, %v13096_v55  ;;  %v10194_v11 = vmul.f32 %v5801_v49, %v8730_v6  ;;  %v13101_v55 = vld [vmem:[#allocation38_spill] sm:$0xff] }
 0x25e   : > { %2665 = vmatmul.mubr.bf16.gmra.mxu0 %v13092_v15  ;;  %v10146_v35 = vpop.f32.mrf.mxu1 }
 0x25f   : > { %2938 = vmatmul.mubr.bf16.gmra.mxu1 %v13092_v15  ;;  %2674 = vmatprep.mubr.bf16.mxu0 %v12704_v38  ;;  %v10150_v61 = vpop.f32.mrf.mxu0  ;;  %v5809_v15 = vrot.slane %v8698_v57, %v13095_v19  ;;  %v5068_v57 = vsel %vm13098_vm2, %v10103_v60, 0.0  ;;  %v10223_v60 = vmul.f32 %v5805_v31, %v8730_v6  ;;  %v5069_v31 = vsel %vm13105_vm7, %v10107_v36, 0.0 }
 0x260   : > { %2947 = vmatprep.mubr.bf16.mxu1 %v12704_v38  ;;  %v10153_v39 = vpop.f32.mrf.mxu1  ;;  %vm13106_vm2 = vcmp.eq.s32.totalorder %v6920_v25, %v12892_v45  ;;  %vm13110_vm7 = vcmp.eq.s32.totalorder %v6740_v2, %v12898_v46 }
 0x261   : > { %v10155_v34 = vpop.f32.mrf.mxu0  ;;  %13102 = vst [vmem:[#allocation44_spill] sm:$0xff] %v10223_v60 }
 0x262   : > { %v10157_v43 = vpop.f32.mrf.mxu1 }
 0x263   : > { %v10159_v18 = vpop.f32.mrf.mxu0 }
 0x264   : > { %v10161_v56 = vpop.f32.mrf.mxu1 }
 0x265   : > { %v10163_v58 = vpop.f32.mrf.mxu0 }
 0x266   : > { %2675 = vmatmul.mubr.bf16.gmra.mxu0 %v13093_v17  ;;  %v10166_v52 = vpop.f32.mrf.mxu1 }
 0x267   : > { %2948 = vmatmul.mubr.bf16.gmra.mxu1 %v13093_v17  ;;  %2684 = vmatprep.mubr.bf16.mxu0 %v12704_v38  ;;  %v10170_v29 = vpop.f32.mrf.mxu0  ;;  %v306_v17 = vld [vmem:[%s7548_s19 + $0x8] sm:$0xff] }
 0x268   : > { %2957 = vmatprep.mubr.bf16.mxu1 %v12704_v38  ;;  %v10175_v62 = vpop.f32.mrf.mxu1  ;;  %v10210_v8 = vrot.slane %v306_v17, %v6764_v7  ;;  %v10213_v49 = vrot.slane %v306_v17, %v12828_v20  ;;  %v10229_v7 = vrot.slane %v306_v17, %v12829_v41  ;;  %v5052_v20 = vsel %vm13103_vm4, %v10091_v5, 0.0 }
 0x269   : > { %v10179_v42 = vpop.f32.mrf.mxu0  ;;  %v5053_v5 = vsel %vm13107_vm1, %v10098_v4, 0.0  ;;  %v5388_v30 = vadd.f32 %v5068_v57, %v5052_v20  ;;  %vm13108_vm4 = vcmp.eq.s32.totalorder %v6946_v27, %v12898_v46  ;;  %v5055_v4 = vsel %vm13110_vm7, %v10101_v40, 0.0 }
 0x26a   : > { %v10184_v48 = vpop.f32.mrf.mxu1  ;;  %v5071_v36 = vsel %vm13108_vm4, %v10109_v44, 0.0  ;;  %v5430_v20 = vadd.f32 %v5070_v16, %v5054_v3  ;;  %vm13112_vm1 = vcmp.eq.s32.totalorder %v6923_v26, %v12892_v45  ;;  %vm13113_vm4 = vcmp.eq.s32.totalorder %v6920_v25, %v12898_v46 }
 0x26b   : > { %v10186_v1 = vpop.f32.mrf.mxu0  ;;  %v5087_v40 = vsel %vm13113_vm4, %v10121_v37, 0.0  ;;  %v5451_v3 = vadd.f32 %v5071_v36, %v5055_v4  ;;  %vm13115_vm7 = vcmp.eq.s32.totalorder %v6923_v26, %v8725_v14  ;;  %vm13118_vm4 = vcmp.eq.s32.totalorder %v6894_v23, %v12895_v50 }
 0x26c   : > { %13097 = vst [vmem:[#allocation50_spill] sm:$0xff] %v10186_v1  ;;  %v10204_v47 = vpop.f32.mrf.mxu1  ;;  %v10207_v1 = vmul.f32 %v5809_v15, %v8730_v6  ;;  %v10226_v15 = vrot.slane %v306_v17, %v12982_v33  ;;  %v5084_v17 = vsel %vm13106_vm2, %v10111_v54, 0.0  ;;  %v5086_v54 = vsel %vm13109_vm15, %v10114_v0, 0.0 }
 0x26d   : > { %v10219_v13 = vpop.f32.mrf.mxu0  ;;  %vm13111_vm2 = vcmp.eq.s32.totalorder %v6920_v25, %v8725_v14  ;;  %v5100_v0 = vsel %vm13112_vm1, %v10126_v10, 0.0  ;;  %v5389_v60 = vadd.f32 %v5388_v30, %v5084_v17  ;;  %vm13114_vm15 = vcmp.eq.s32.totalorder %v6923_v26, %v12895_v50 }
 0x26e   : > { %13099 = vst [vmem:[#allocation51_spill] sm:$0xff] %v10207_v1  ;;  %2685 = vmatmul.mubr.bf16.gmra.mxu0 %v13101_v55  ;;  %v10247_v41 = vpop.f32.mrf.mxu1  ;;  %v5085_v57 = vsel %vm13111_vm2, %v10118_v63, 0.0  ;;  %v5102_v16 = vsel %vm13114_vm15, %v10131_v12, 0.0  ;;  %v5431_v1 = vadd.f32 %v5430_v20, %v5086_v54  ;;  %v5101_v10 = vsel %vm13115_vm7, %v10136_v28, 0.0 }
 0x26f   : > { %2958 = vmatmul.mubr.bf16.gmra.mxu1 %v13101_v55  ;;  %2694 = vmatprep.mubr.bf16.mxu0 %v12704_v38  ;;  %v10263_v33 = vpop.f32.mrf.mxu0  ;;  %v5409_v55 = vadd.f32 %v5069_v31, %v5053_v5  ;;  %vm13116_vm2 = vcmp.eq.s32.totalorder %v6894_v23, %v12892_v45  ;;  %v5390_v5 = vadd.f32 %v5389_v60, %v5100_v0  ;;  %v5118_v30 = vsel %vm13118_vm4, %v10146_v35, 0.0 }
 0x270   : > { %2967 = vmatprep.mubr.bf16.mxu1 %v12704_v38  ;;  %v10278_v44 = vpop.f32.mrf.mxu1  ;;  %v5116_v31 = vsel %vm13116_vm2, %v10143_v9, 0.0  ;;  %vm13117_vm1 = vcmp.eq.s32.totalorder %v6923_v26, %v12898_v46  ;;  %v5452_v28 = vadd.f32 %v5451_v3, %v5087_v40  ;;  %v5432_v54 = vadd.f32 %v5431_v1, %v5102_v16 }
 0x271   : > { %v2144_v63 = vpop.f32.mrf.mxu0  ;;  %v5410_v37 = vadd.f32 %v5409_v55, %v5085_v57  ;;  %v5103_v12 = vsel %vm13117_vm1, %v10141_v53, 0.0  ;;  %vm13119_vm15 = vcmp.eq.s32.totalorder %v6894_v23, %v8725_v14  ;;  %vm13120_vm7 = vcmp.eq.s32.totalorder %v6897_v24, %v12892_v45 }
 0x272   : > { %v2417_v17 = vpop.f32.mrf.mxu1  ;;  %v5117_v9 = vsel %vm13119_vm15, %v10150_v61, 0.0  ;;  %v5132_v55 = vsel %vm13120_vm7, %v10155_v34, 0.0  ;;  %v5391_v4 = vadd.f32 %v5390_v5, %v5116_v31  ;;  %vm13121_vm2 = vcmp.eq.s32.totalorder %v6894_v23, %v12898_v46 }
 0x273   : > { %v2146_v36 = vpop.f32.mrf.mxu0  ;;  %v5411_v53 = vadd.f32 %v5410_v37, %v5101_v10  ;;  %v5119_v35 = vsel %vm13121_vm2, %v10153_v39, 0.0  ;;  %vm13122_vm1 = vcmp.eq.s32.totalorder %v6897_v24, %v12895_v50  ;;  %v5453_v61 = vadd.f32 %v5452_v28, %v5103_v12 }
 0x274   : > { %v2419_v60 = vpop.f32.mrf.mxu1  ;;  %v5134_v1 = vsel %vm13122_vm1, %v10157_v43, 0.0  ;;  %v5433_v57 = vadd.f32 %v5432_v54, %v5118_v30  ;;  %vm13123_vm4 = vcmp.eq.s32.totalorder %v6897_v24, %v8725_v14  ;;  %v5148_v39 = vsel %vm3708_vm3, %v10163_v58, 0.0 }
 0x275   : > { %v2150_v20 = vpop.f32.mrf.mxu0  ;;  %v5133_v34 = vsel %vm13123_vm4, %v10159_v18, 0.0  ;;  %v5412_v43 = vadd.f32 %v5411_v53, %v5117_v9  ;;  %v5392_v40 = vadd.f32 %v5391_v4, %v5132_v55  ;;  %vm13124_vm15 = vcmp.eq.s32.totalorder %v6897_v24, %v12898_v46  ;;  %v13127_v9 = vld [vmem:[#allocation50_spill] sm:$0xff]  ;;  %v13129_v55 = vld [vmem:[#allocation12_spill] sm:$0xff] }
 0x276   : > { %2695 = vmatmul.mubr.bf16.gmra.mxu0 %v12854_v51  ;;  %v2423_v0 = vpop.f32.mrf.mxu1  ;;  %v5135_v16 = vsel %vm13124_vm15, %v10161_v56, 0.0  ;;  %v5150_v18 = vsel %vm3710_vm9, %v10166_v52, 0.0  ;;  %v5454_v58 = vadd.f32 %v5453_v61, %v5119_v35  ;;  %v5434_v10 = vadd.f32 %v5433_v57, %v5134_v1 }
 0x277   : > { %2968 = vmatmul.mubr.bf16.gmra.mxu1 %v12854_v51  ;;  %2704 = vmatprep.mubr.bf16.mxu0 %v12704_v38  ;;  %v2152_v3 = vpop.f32.mrf.mxu0  ;;  %v5149_v31 = vsel %vm3709_vm8, %v10170_v29, 0.0  ;;  %vm13125_vm3 = vcmp.eq.s32.totalorder %v6871_v22, %v12892_v45  ;;  %v5413_v5 = vadd.f32 %v5412_v43, %v5133_v34  ;;  %v5393_v12 = vadd.f32 %v5392_v40, %v5148_v39  ;;  %v13134_v39 = vld [vmem:[#allocation13_spill] sm:$0xff] }
 0x278   : > { %2977 = vmatprep.mubr.bf16.mxu1 %v12704_v38  ;;  %v5164_v56 = vsel %vm13125_vm3, %v10179_v42, 0.0  ;;  %v2425_v37 = vpop.f32.mrf.mxu1  ;;  %v5151_v52 = vsel %vm3711_vm13, %v10175_v62, 0.0  ;;  %vm13126_vm9 = vcmp.eq.s32.totalorder %v6871_v22, %v12895_v50  ;;  %v5455_v29 = vadd.f32 %v5454_v58, %v5135_v16 }
 0x279   : > { %v5166_v30 = vsel %vm13126_vm9, %v10184_v48, 0.0  ;;  %v2154_v28 = vpop.f32.mrf.mxu0  ;;  %v5435_v54 = vadd.f32 %v5434_v10, %v5150_v18  ;;  %vm13128_vm8 = vcmp.eq.s32.totalorder %v6871_v22, %v8725_v14  ;;  %vm13130_vm7 = vcmp.eq.s32.totalorder %v13129_v55, %v12892_v45  ;;  %v13138_v10 = vld [vmem:[#allocation40_spill] sm:$0xff] }
 0x27a   : > { %v5165_v42 = vsel %vm13128_vm8, %v13127_v9, 0.0  ;;  %v5180_v53 = vsel %vm13130_vm7, %v10219_v13, 0.0  ;;  %v2427_v4 = vpop.f32.mrf.mxu1  ;;  %v5414_v62 = vadd.f32 %v5413_v5, %v5149_v31  ;;  %v5394_v35 = vadd.f32 %v5393_v12, %v5164_v56  ;;  %v13140_v56 = vld [vmem:[#allocation10_spill] sm:$0xff]  ;;  %v13145_v9 = vld [vmem:[#allocation11_spill] sm:$0xff] }
 0x27b   : > { %vm13131_vm13 = vcmp.eq.s32.totalorder %v6871_v22, %v12898_v46  ;;  %vm13132_vm2 = vcmp.eq.s32.totalorder %v13129_v55, %v12895_v50  ;;  %v2156_v61 = vpop.f32.mrf.mxu0  ;;  %v5456_v57 = vadd.f32 %v5455_v29, %v5151_v52  ;;  %v5436_v34 = vadd.f32 %v5435_v54, %v5166_v30 }
 0x27c   : > { %v5167_v48 = vsel %vm13131_vm13, %v10204_v47, 0.0  ;;  %v5182_v1 = vsel %vm13132_vm2, %v10247_v41, 0.0  ;;  %vm13133_vm1 = vcmp.eq.s32.totalorder %v13129_v55, %v8725_v14  ;;  %vm13135_vm4 = vcmp.eq.s32.totalorder %v13134_v39, %v12892_v45  ;;  %v2429_v40 = vpop.f32.mrf.mxu1 }
 0x27d   : > { %v5181_v13 = vsel %vm13133_vm1, %v10263_v33, 0.0  ;;  %v5196_v43 = vsel %vm13135_vm4, %v2144_v63, 0.0  ;;  %v5415_v16 = vadd.f32 %v5414_v62, %v5165_v42  ;;  %v5395_v47 = vadd.f32 %v5394_v35, %v5180_v53  ;;  %v2160_v58 = vpop.f32.mrf.mxu0 }
 0x27e   : > { %vm13136_vm15 = vcmp.eq.s32.totalorder %v13129_v55, %v12898_v46  ;;  %vm13137_vm3 = vcmp.eq.s32.totalorder %v13134_v39, %v12895_v50  ;;  %2705 = vmatmul.mubr.bf16.gmra.mxu0 %v13138_v10  ;;  %v5457_v33 = vadd.f32 %v5456_v57, %v5167_v48  ;;  %v5437_v31 = vadd.f32 %v5436_v34, %v5182_v1  ;;  %v2433_v12 = vpop.f32.mrf.mxu1  ;;  %v13148_v34 = vld [vmem:[#allocation8_spill] sm:$0xff] }
 0x27f   : > { %v5183_v41 = vsel %vm13136_vm15, %v10278_v44, 0.0  ;;  %v5198_v18 = vsel %vm13137_vm3, %v2417_v17, 0.0  ;;  %vm13139_vm9 = vcmp.eq.s32.totalorder %v13134_v39, %v8725_v14  ;;  %vm13141_vm8 = vcmp.eq.s32.totalorder %v13140_v56, %v12892_v45  ;;  %2978 = vmatmul.mubr.bf16.gmra.mxu1 %v13138_v10  ;;  %2714 = vmatprep.mubr.bf16.mxu0 %v12704_v38 }
 0x280   : > { %v5197_v63 = vsel %vm13139_vm9, %v2146_v36, 0.0  ;;  %v5212_v5 = vsel %vm13141_vm8, %v2150_v20, 0.0  ;;  %v5416_v44 = vadd.f32 %v5415_v16, %v5181_v13  ;;  %v5396_v17 = vadd.f32 %v5395_v47, %v5196_v43  ;;  %v2162_v36 = vpop.f32.mrf.mxu0  ;;  %2987 = vmatprep.mubr.bf16.mxu1 %v12704_v38  ;;  %v2435_v53 = vpop.f32.mrf.mxu1 }
 0x281   : > { %vm13142_vm7 = vcmp.eq.s32.totalorder %v13134_v39, %v12898_v46  ;;  %vm13143_vm13 = vcmp.eq.s32.totalorder %v13140_v56, %v12895_v50  ;;  %v5458_v29 = vadd.f32 %v5457_v33, %v5183_v41  ;;  %v5438_v20 = vadd.f32 %v5437_v31, %v5198_v18  ;;  %v13149_v33 = vld [vmem:[#allocation9_spill] sm:$0xff] }
 0x282   : > { %v5199_v52 = vsel %vm13142_vm7, %v2419_v60, 0.0  ;;  %v5214_v30 = vsel %vm13143_vm13, %v2423_v0, 0.0  ;;  %vm13144_vm2 = vcmp.eq.s32.totalorder %v13140_v56, %v8725_v14  ;;  %vm13146_vm1 = vcmp.eq.s32.totalorder %v13145_v9, %v12892_v45  ;;  %v2164_v48 = vpop.f32.mrf.mxu0  ;;  %v2437_v13 = vpop.f32.mrf.mxu1 }
 0x283   : > { %v5213_v54 = vsel %vm13144_vm2, %v2152_v3, 0.0  ;;  %v5228_v42 = vsel %vm13146_vm1, %v2154_v28, 0.0  ;;  %v5417_v62 = vadd.f32 %v5416_v44, %v5197_v63  ;;  %v5397_v60 = vadd.f32 %v5396_v17, %v5212_v5  ;;  %v13152_v17 = vld [vmem:[#allocation41_spill] sm:$0xff] }
 0x284   : > { %vm13147_vm4 = vcmp.eq.s32.totalorder %v13140_v56, %v12898_v46  ;;  %v5230_v35 = vsel %vm3790_vm11, %v2427_v4, 0.0  ;;  %v5459_v1 = vadd.f32 %v5458_v29, %v5199_v52  ;;  %v5439_v57 = vadd.f32 %v5438_v20, %v5214_v30  ;;  %v2166_v47 = vpop.f32.mrf.mxu0  ;;  %v2439_v31 = vpop.f32.mrf.mxu1  ;;  %v13154_v29 = vld [vmem:[#allocation4_spill] sm:$0xff] }
 0x285   : > { %v5215_v0 = vsel %vm13147_vm4, %v2425_v37, 0.0  ;;  %v5229_v3 = vsel %vm3789_vm12, %v2156_v61, 0.0  ;;  %v5244_v28 = vsel %vm3804_vm6, %v2160_v58, 0.0  ;;  %v5418_v43 = vadd.f32 %v5417_v62, %v5213_v54 }
 0x286   : > { %v5398_v16 = vadd.f32 %v5397_v60, %v5228_v42  ;;  %v5231_v37 = vsel %vm3791_vm0, %v2429_v40, 0.0  ;;  %v5246_v4 = vsel %vm3806_vm10, %v2433_v12, 0.0  ;;  %v5460_v41 = vadd.f32 %v5459_v1, %v5215_v0  ;;  %v2170_v44 = vpop.f32.mrf.mxu0  ;;  %2715 = vmatmul.mubr.bf16.gmra.mxu0 %v13152_v17  ;;  %v2443_v54 = vpop.f32.mrf.mxu1 }
 0x287   : > { %v5440_v18 = vadd.f32 %v5439_v57, %v5230_v35  ;;  %v5245_v61 = vsel %vm3805_vm5, %v2162_v36, 0.0  ;;  %vm13150_vm6 = vcmp.eq.s32.totalorder %v13149_v33, %v12892_v45  ;;  %v5419_v63 = vadd.f32 %v5418_v43, %v5229_v3  ;;  %2988 = vmatmul.mubr.bf16.gmra.mxu1 %v13152_v17  ;;  %3030 = vmatprep.mubr.bf16.mxu0 %v12704_v38 }
 0x288   : > { %v5260_v58 = vsel %vm13150_vm6, %v2164_v48, 0.0  ;;  %v5399_v5 = vadd.f32 %v5398_v16, %v5244_v28  ;;  %v5247_v40 = vsel %vm3807_vm14, %v2435_v53, 0.0  ;;  %vm13151_vm12 = vcmp.eq.s32.totalorder %v13149_v33, %v12895_v50  ;;  %v2172_v0 = vpop.f32.mrf.mxu0  ;;  %3303 = vmatprep.mubr.bf16.mxu1 %v12704_v38  ;;  %v2445_v57 = vpop.f32.mrf.mxu1 }
 0x289   : > { %v5262_v12 = vsel %vm13151_vm12, %v2437_v13, 0.0  ;;  %vm12546_vm11 = vcmp.eq.s32.totalorder %v6740_v2, %v10210_v8  ;;  %v5461_v52 = vadd.f32 %v5460_v41, %v5231_v37  ;;  %v5441_v30 = vadd.f32 %v5440_v18, %v5246_v4  ;;  %v13160_v4 = vld [vmem:[#allocation5_spill] sm:$0xff] }
 0x28a   : > { %vm13153_vm0 = vcmp.eq.s32.totalorder %v13149_v33, %v8725_v14  ;;  %vm13155_vm10 = vcmp.eq.s32.totalorder %v13154_v29, %v12892_v45  ;;  %vm12544_vm5 = vcmp.eq.s32.totalorder %v6740_v2, %v10213_v49  ;;  %vm12540_vm14 = vcmp.eq.s32.totalorder %v6740_v2, %v10226_v15  ;;  %v2174_v43 = vpop.f32.mrf.mxu0  ;;  %v2447_v41 = vpop.f32.mrf.mxu1 }
 0x28b   : > { %v5261_v36 = vsel %vm13153_vm0, %v2166_v47, 0.0  ;;  %v5276_v20 = vsel %vm13155_vm10, %v2170_v44, 0.0  ;;  %v5420_v42 = vadd.f32 %v5419_v63, %v5245_v61  ;;  %v5400_v53 = vadd.f32 %v5399_v5, %v5260_v58  ;;  %v13163_v63 = vld [vmem:[#allocation15_spill] sm:$0xff]  ;;  %v13164_v5 = vld [vmem:[#allocation48_spill] sm:$0xff] }
 0x28c   : > { %vm13156_vm15 = vcmp.eq.s32.totalorder %v13149_v33, %v12898_v46  ;;  %vm13157_vm3 = vcmp.eq.s32.totalorder %v13154_v29, %v12895_v50  ;;  %vm12545_vm9 = vcmp.eq.s32.totalorder %v6946_v27, %v10210_v8  ;;  %v5462_v35 = vadd.f32 %v5461_v52, %v5247_v40  ;;  %v2449_v52 = vpop.f32.mrf.mxu1 }
 0x28d   : > { %v5263_v62 = vsel %vm13156_vm15, %v2439_v31, 0.0  ;;  %v5278_v60 = vsel %vm13157_vm3, %v2443_v54, 0.0  ;;  %v5442_v48 = vadd.f32 %v5441_v30, %v5262_v12  ;;  %vm13158_vm8 = vcmp.eq.s32.totalorder %v13154_v29, %v8725_v14  ;;  %v2176_v31 = vpop.f32.mrf.mxu0  ;;  %v13167_v54 = vld [vmem:[#allocation18_spill] sm:$0xff] }
 0x28e   : > { %v5277_v1 = vsel %vm13158_vm8, %v2172_v0, 0.0  ;;  %vm12538_vm7 = vcmp.eq.s32.totalorder %v6740_v2, %v10229_v7  ;;  %vm12543_vm13 = vcmp.eq.s32.totalorder %v6946_v27, %v10213_v49  ;;  %v5421_v3 = vadd.f32 %v5420_v42, %v5261_v36  ;;  %3031 = vmatmul.mubr.bf16.vlgmr.msra.gmra.mxu0 %v13167_v54 }
 0x28f   : > { %v5401_v28 = vadd.f32 %v5400_v53, %v5276_v20  ;;  %vm13159_vm2 = vcmp.eq.s32.totalorder %v13154_v29, %v12898_v46  ;;  %vm12539_vm1 = vcmp.eq.s32.totalorder %v6946_v27, %v10226_v15  ;;  %v5463_v16 = vadd.f32 %v5462_v35, %v5263_v62  ;;  %v2486_v20 = vpop.f32.mrf.mxu0  ;;  %v2759_v62 = vpop.f32.mrf.mxu1  ;;  %3304 = vmatmul.mubr.bf16.vlgmr.msra.gmra.mxu1 %v13167_v54 }
 0x290   : > { %v5279_v13 = vsel %vm13159_vm2, %v2445_v57, 0.0  ;;  %v5443_v37 = vadd.f32 %v5442_v48, %v5278_v60  ;;  %vm13161_vm4 = vcmp.eq.s32.totalorder %v13160_v4, %v12892_v45  ;;  %vm12534_vm6 = vcmp.eq.s32.totalorder %v6946_v27, %v10229_v7  ;;  %3040 = vmatprep.mubr.bf16.mxu0 %v12704_v38  ;;  %3313 = vmatprep.mubr.bf16.mxu1 %v12704_v38 }
 0x291   : > { %v5292_v47 = vsel %vm13161_vm4, %v2174_v43, 0.0  ;;  %v5422_v18 = vadd.f32 %v5421_v3, %v5277_v1  ;;  %vm13162_vm12 = vcmp.eq.s32.totalorder %v13160_v4, %v12895_v50  ;;  %v5813_v40 = vrot.slane %v13164_v5, %v13163_v63  ;;  %v2488_v35 = vpop.f32.mrf.mxu0  ;;  %v2761_v3 = vpop.f32.mrf.mxu1 }
 0x292   : > { %v5402_v61 = vadd.f32 %v5401_v28, %v5292_v47  ;;  %v5294_v58 = vsel %vm13162_vm12, %v2447_v41, 0.0  ;;  %v5464_v12 = vadd.f32 %v5463_v16, %v5279_v13  ;;  %vm13165_vm0 = vcmp.eq.s32.totalorder %v13160_v4, %v8725_v14 }
 0x293   : > { %v5444_v44 = vadd.f32 %v5443_v37, %v5294_v58  ;;  %v5293_v45 = vsel %vm13165_vm0, %v2176_v31, 0.0  ;;  %vm12533_vm10 = vcmp.eq.s32.totalorder %v6920_v25, %v10210_v8  ;;  %vm13166_vm15 = vcmp.eq.s32.totalorder %v13160_v4, %v12898_v46  ;;  %v2490_v37 = vpop.f32.mrf.mxu0  ;;  %v2763_v58 = vpop.f32.mrf.mxu1 }
 0x294   : > { %v5403_v30 = vrot.slane %v5402_v61, 4  ;;  %v5423_v36 = vadd.f32 %v5422_v18, %v5293_v45  ;;  %v5295_v50 = vsel %vm13166_vm15, %v2449_v52, 0.0  ;;  %vm12535_vm3 = vcmp.eq.s32.totalorder %v6920_v25, %v10213_v49 }
 0x295   : > { %v5445_v42 = vrot.slane %v5444_v44, 4  ;;  %v5465_v53 = vadd.f32 %v5464_v12, %v5295_v50  ;;  %v5707_v14 = vrot.slane %v10189_v59, %v13163_v63  ;;  %vm12536_vm8 = vcmp.eq.s32.totalorder %v6920_v25, %v10226_v15  ;;  %v2765_v50 = vpop.f32.mrf.mxu1 }
 0x296   : > { %v5404_v46 = vadd.f32 %v5403_v30, %v5402_v61  ;;  %v5424_v60 = vrot.slane %v5423_v36, 4  ;;  %v10502_v0 = vmul.f32 %v5813_v40, %v8730_v6  ;;  %vm12537_vm2 = vcmp.eq.s32.totalorder %v6920_v25, %v10229_v7 }
 0x297   : > { %v5446_v48 = vadd.f32 %v5445_v42, %v5444_v44  ;;  %v5466_v1 = vrot.slane %v5465_v53, 4  ;;  %v3872_v57 = vsel %vm12546_vm11, %v2486_v20, 0.0  ;;  %vm12542_vm4 = vcmp.eq.s32.totalorder %v6923_v26, %v10210_v8  ;;  %v2492_v44 = vpop.f32.mrf.mxu0 }
 0x298   : > { %vm12541_vm12 = vcmp.eq.s32.totalorder %v6923_v26, %v10213_v49  ;;  %v5405_v28 = vrot.slane %v5404_v46, 2  ;;  %v5425_v13 = vadd.f32 %v5424_v60, %v5423_v36  ;;  %v3874_v43 = vsel %vm12544_vm5, %v2759_v62, 0.0 }
 0x299   : > { %v3873_v16 = vsel %vm12540_vm14, %v2488_v35, 0.0  ;;  %v5447_v47 = vrot.slane %v5446_v48, 2  ;;  %v5467_v41 = vadd.f32 %v5466_v1, %v5465_v53  ;;  %v3875_v18 = vsel %vm12538_vm7, %v2761_v3, 0.0  ;;  %v2496_v62 = vpop.f32.mrf.mxu0 }
 0x29a   : > { %v3888_v61 = vsel %vm12545_vm9, %v2490_v37, 0.0  ;;  %v5406_v31 = vadd.f32 %v5405_v28, %v5404_v46  ;;  %v5426_v5 = vrot.slane %v5425_v13, 2  ;;  %v3890_v12 = vsel %vm12543_vm13, %v2763_v58, 0.0  ;;  %v13168_v46 = vld [vmem:[#allocation19_spill] sm:$0xff] }
 0x29b   : > { %v4288_v40 = vadd.f32 %v3888_v61, %v3872_v57  ;;  %v5448_v45 = vadd.f32 %v5447_v47, %v5446_v48  ;;  %v5468_v52 = vrot.slane %v5467_v41, 2  ;;  %v4330_v30 = vadd.f32 %v3890_v12, %v3874_v43  ;;  %3041 = vmatmul.mubr.bf16.gmra.mxu0 %v13168_v46  ;;  %v2769_v57 = vpop.f32.mrf.mxu1  ;;  %3314 = vmatmul.mubr.bf16.gmra.mxu1 %v13168_v46  ;;  %v13169_v58 = vld [vmem:[#allocation39_spill] sm:$0xff] }
 0x29c   : > { %v3889_v36 = vsel %vm12539_vm1, %v2492_v44, 0.0  ;;  %v5407_v20 = vrot.slane %v5406_v31, 1  ;;  %v5427_v54 = vadd.f32 %v5426_v5, %v5425_v13  ;;  %v3891_v53 = vsel %vm12534_vm6, %v2765_v50, 0.0  ;;  %3050 = vmatprep.mubr.bf16.mxu0 %v12704_v38  ;;  %3323 = vmatprep.mubr.bf16.mxu1 %v12704_v38 }
 0x29d   : > { %v4309_v42 = vadd.f32 %v3889_v36, %v3873_v16  ;;  %v5449_v60 = vrot.slane %v5448_v45, 1  ;;  %v5469_v35 = vadd.f32 %v5468_v52, %v5467_v41  ;;  %v4351_v48 = vadd.f32 %v3891_v53, %v3875_v18  ;;  %v2498_v16 = vpop.f32.mrf.mxu0  ;;  %v2771_v61 = vpop.f32.mrf.mxu1 }
 0x29e   : > { %v3904_v1 = vsel %vm12533_vm10, %v2496_v62, 0.0  ;;  %vm3665_vm0 = vcmp.eq.s32.totalorder %v6923_v26, %v10226_v15  ;;  %v5408_v3 = vadd.f32 %v5407_v20, %v5406_v31  ;;  %v5428_v28 = vrot.slane %v5427_v54, 1  ;;  %v13174_v62 = vld [vmem:[#allocation43_spill] sm:$0xff] }
 0x29f   : > { %v4289_v13 = vadd.f32 %v4288_v40, %v3904_v1  ;;  %v3906_v43 = vsel %vm12535_vm3, %v2769_v57, 0.0  ;;  %vm3667_vm15 = vcmp.eq.s32.totalorder %v6923_v26, %v10229_v7  ;;  %v5450_v37 = vadd.f32 %v5449_v60, %v5448_v45  ;;  %v2500_v44 = vpop.f32.mrf.mxu0 }
 0x2a0   : > { %v5470_v47 = vrot.slane %v5469_v35, 1  ;;  %v4331_v41 = vadd.f32 %v4330_v30, %v3906_v43  ;;  %v3905_v18 = vsel %vm12536_vm8, %v2498_v16, 0.0  ;;  %vm3680_vm10 = vcmp.eq.s32.totalorder %v6894_v23, %v10210_v8  ;;  %v13172_v30 = vld [vmem:[#allocation42_spill] sm:$0xff]  ;;  %v13178_v16 = vld [vmem:[#allocation49_spill] sm:$0xff] }
 0x2a1   : > { %vm13170_vm6 = vcmask 1041408   ;;  %v5429_v5 = vadd.f32 %v5428_v28, %v5427_v54  ;;  %v10556_v40 = vadd.f32 %v4309_v42, %v3905_v18  ;;  %v3907_v12 = vsel %vm12537_vm2, %v2771_v61, 0.0  ;;  %v2773_v54 = vpop.f32.mrf.mxu1  ;;  %v13179_v18 = vld [vmem:[#allocation51_spill] sm:$0xff] }
 0x2a2   : > { %v5662_v31 = vsel %vm13170_vm6, %v13169_v58, %v5408_v3  ;;  %vm3682_vm3 = vcmp.eq.s32.totalorder %v6894_v23, %v10213_v49  ;;  %vm3681_vm8 = vcmp.eq.s32.totalorder %v6894_v23, %v10226_v15  ;;  %v13171_v45 = vrot.slane %v10189_v59, %v13094_v32  ;;  %vm13175_vm7 = vmmov %vm13170_vm6  ;;  %v13176_v3 = vld [vmem:[#allocation14_spill] sm:$0xff] }
 0x2a3   : > { %v5664_v36 = vsel %vm13170_vm6, %v13172_v30, %v5450_v37  ;;  %v5471_v50 = vadd.f32 %v5470_v47, %v5469_v35  ;;  %v4352_v20 = vadd.f32 %v4351_v48, %v3907_v12  ;;  %vm3683_vm2 = vcmp.eq.s32.totalorder %v6894_v23, %v10229_v7  ;;  %v2502_v48 = vpop.f32.mrf.mxu0  ;;  %v2775_v47 = vpop.f32.mrf.mxu1  ;;  %v13180_v12 = vld [vmem:[#allocation20_spill] sm:$0xff] }
 0x2a4   : > { %v5760_v52 = vmul.f32 %v13171_v45, %v5662_v31  ;;  %v13173_v42 = vrot.slane %v10189_v59, %v13095_v19  ;;  %v5663_v46 = vsel %vm13175_vm7, %v13174_v62, %v5429_v5  ;;  %v3920_v60 = vsel %vm12542_vm4, %v2500_v44, 0.0  ;;  %3051 = vmatmul.mubr.bf16.gmra.mxu0 %v13180_v12  ;;  %3324 = vmatmul.mubr.bf16.gmra.mxu1 %v13180_v12 }
 0x2a5   : > { %v3922_v35 = vsel %vm12541_vm12, %v2773_v54, 0.0  ;;  %vm3696_vm6 = vcmp.eq.s32.totalorder %v6897_v24, %v10210_v8  ;;  %vm3698_vm1 = vcmp.eq.s32.totalorder %v6897_v24, %v10213_v49  ;;  %vm3697_vm14 = vcmp.eq.s32.totalorder %v6897_v24, %v10226_v15  ;;  %v2506_v5 = vpop.f32.mrf.mxu0  ;;  %3060 = vmatprep.mubr.bf16.mxu0 %v12704_v38  ;;  %3333 = vmatprep.mubr.bf16.mxu1 %v12704_v38 }
 0x2a6   : > { %v5762_v53 = vmul.f32 %v13173_v42, %v5664_v36  ;;  %v5882_v1 = vadd.f32 %v10194_v11, %v5760_v52  ;;  %v5930_v57 = vmax.f32 %v5760_v52, 0.0  ;;  %v13177_v28 = vrot.slane %v10189_v59, %v13176_v3  ;;  %v13181_v52 = vld [vmem:[#allocation44_spill] sm:$0xff]  ;;  %v2779_v59 = vpop.f32.mrf.mxu1 }
 0x2a7   : > { %v5665_v37 = vsel %vm13175_vm7, %v13178_v16, %v5471_v50  ;;  %vm3699_vm12 = vcmp.eq.s32.totalorder %v6897_v24, %v10229_v7  ;;  %v4290_v11 = vadd.f32 %v4289_v13, %v3920_v60  ;;  %vm12547_vm4 = vcmp.eq.s32.totalorder %v6868_v21, %v10210_v8  ;;  %v2508_v42 = vpop.f32.mrf.mxu0 }
 0x2a8   : > { %v5761_v43 = vmul.f32 %v13177_v28, %v5663_v46  ;;  %v5884_v61 = vadd.f32 %v13179_v18, %v5762_v53  ;;  %v5932_v58 = vmax.f32 %v5762_v53, 0.0  ;;  %v5763_v31 = vmul.f32 %v5707_v14, %v5665_v37 }
 0x2a9   : > { %vm12548_vm7 = vcmp.eq.s32.totalorder %v6868_v21, %v10213_v49  ;;  %vm12549_vm13 = vcmp.eq.s32.totalorder %v6868_v21, %v10226_v15  ;;  %v5898_v44 = vmax.f32 %v5882_v1, 0.0  ;;  %v5946_v45 = vmin.f32 %v5930_v57, 1.0  ;;  %v2781_v1 = vpop.f32.mrf.mxu1  ;;  %v2510_v16 = vpop.f32.mrf.mxu0 }
 0x2aa   : > { %v5883_v30 = vadd.f32 %v13181_v52, %v5761_v43  ;;  %v5931_v36 = vmax.f32 %v5761_v43, 0.0  ;;  %vm3715_vm5 = vcmp.eq.s32.totalorder %v6868_v21, %v10229_v7  ;;  %v5900_v14 = vmax.f32 %v5884_v61, 0.0 }
 0x2ab   : > { %v5948_v13 = vmin.f32 %v5932_v58, 1.0  ;;  %v5885_v50 = vadd.f32 %v10502_v0, %v5763_v31  ;;  %v5933_v54 = vmax.f32 %v5763_v31, 0.0  ;;  %v5914_v53 = vmin.f32 %v5898_v44, 1.0  ;;  %v2783_v61 = vpop.f32.mrf.mxu1  ;;  %v2512_v44 = vpop.f32.mrf.mxu0 }
 0x2ac   : > { %v5899_v62 = vmax.f32 %v5883_v30, 0.0  ;;  %v5947_v46 = vmin.f32 %v5931_v36, 1.0  ;;  %v4332_v60 = vadd.f32 %v4331_v41, %v3922_v35  ;;  %vm12550_vm11 = vcmp.eq.s32.totalorder %v6871_v22, %v10213_v49 }
 0x2ad   : > { %v5916_v57 = vmin.f32 %v5900_v14, 1.0  ;;  %v5901_v28 = vmax.f32 %v5885_v50, 0.0  ;;  %v5949_v43 = vmin.f32 %v5933_v54, 1.0  ;;  %v3921_v0 = vsel %vm3665_vm0, %v2502_v48, 0.0  ;;  %v2785_v30 = vpop.f32.mrf.mxu1 }
 0x2ae   : > { %vm12551_vm9 = vcmp.eq.s32.totalorder %v6871_v22, %v10226_v15  ;;  %v5915_v37 = vmin.f32 %v5899_v62, 1.0  ;;  %v6016_v18 = vcombine.low %v5946_v45, %v5947_v46  ;;  %v4311_v41 = vadd.f32 %v10556_v40, %v3921_v0 }
 0x2af   : > { %v3923_v35 = vsel %vm3667_vm15, %v2775_v47, 0.0  ;;  %v5917_v58 = vmin.f32 %v5901_v28, 1.0  ;;  %v6017_v31 = vcombine.low %v5948_v13, %v5949_v43  ;;  %v3936_v48 = vsel %vm3680_vm10, %v2506_v5, 0.0  ;;  %v2516_v13 = vpop.f32.mrf.mxu0 }
 0x2b0   : > { %v4353_v12 = vadd.f32 %v4352_v20, %v3923_v35  ;;  %v5976_v52 = vcombine.low %v5914_v53, %v5915_v37  ;;  %6032 = vst [vmem:[%s9548_s28 + $0x10] sm:$0x77] %v6016_v18  ;;  %v4291_v45 = vadd.f32 %v4290_v11, %v3936_v48  ;;  %v3938_v40 = vsel %vm3682_vm3, %v2779_v59, 0.0  ;;  %v13182_v11 = vld [vmem:[#allocation21_spill] sm:$0xff]  ;;  %v2789_v53 = vpop.f32.mrf.mxu1 }
 0x2b1   : > { %v3937_v47 = vsel %vm3681_vm8, %v2508_v42, 0.0  ;;  %v5977_v20 = vcombine.low %v5916_v57, %v5917_v58  ;;  %6033 = vst [vmem:[%s9548_s28 + $0x18] sm:$0x77] %v6017_v31  ;;  %v4333_v36 = vadd.f32 %v4332_v60, %v3938_v40  ;;  %v3939_v5 = vsel %vm3683_vm2, %v2781_v1, 0.0  ;;  %3061 = vmatmul.mubr.bf16.gmra.mxu0 %v13182_v11  ;;  %3334 = vmatmul.mubr.bf16.gmra.mxu1 %v13182_v11  ;;  %v2518_v57 = vpop.f32.mrf.mxu0 }
 0x2b2   : > { %v4312_v14 = vadd.f32 %v4311_v41, %v3937_v47  ;;  %5992 = vst [vmem:[%s9652_s7 + $0x10] sm:$0x77] %v5976_v52  ;;  %v4354_v50 = vadd.f32 %v4353_v12, %v3939_v5  ;;  %v3952_v59 = vsel %vm3696_vm6, %v2510_v16, 0.0  ;;  %v3954_v54 = vsel %vm3698_vm1, %v2783_v61, 0.0  ;;  %3070 = vmatprep.mubr.bf16.mxu0 %v12704_v38  ;;  %3343 = vmatprep.mubr.bf16.mxu1 %v12704_v38  ;;  %v2791_v37 = vpop.f32.mrf.mxu1  ;;  %v13184_v5 = vld [vmem:[#allocation22_spill] sm:$0xff] }
 0x2b3   : > { %v3953_v42 = vsel %vm3697_vm14, %v2512_v44, 0.0  ;;  %5993 = vst [vmem:[%s9652_s7 + $0x18] sm:$0x77] %v5977_v20  ;;  %v4292_v62 = vadd.f32 %v4291_v45, %v3952_v59  ;;  %v4334_v46 = vadd.f32 %v4333_v36, %v3954_v54  ;;  %v3955_v1 = vsel %vm3699_vm12, %v2785_v30, 0.0  ;;  %v2520_v58 = vpop.f32.mrf.mxu0 }
 0x2b4   : > { %v4313_v60 = vadd.f32 %v4312_v14, %v3953_v42  ;;  %v4355_v28 = vadd.f32 %v4354_v50, %v3955_v1  ;;  %v3968_v43 = vsel %vm12547_vm4, %v2516_v13, 0.0  ;;  %v3970_v0 = vsel %vm12548_vm7, %v2789_v53, 0.0  ;;  %v2793_v48 = vpop.f32.mrf.mxu1 }
 0x2b5   : > { %v3969_v16 = vsel %vm12549_vm13, %v2518_v57, 0.0  ;;  %v4293_v18 = vadd.f32 %v4292_v62, %v3968_v43  ;;  %v4335_v41 = vadd.f32 %v4334_v46, %v3970_v0  ;;  %v3971_v61 = vsel %vm3715_vm5, %v2791_v37, 0.0  ;;  %v2522_v45 = vpop.f32.mrf.mxu0 }
 0x2b6   : > { %v4314_v35 = vadd.f32 %v4313_v60, %v3969_v16  ;;  %v4356_v31 = vadd.f32 %v4355_v28, %v3971_v61  ;;  %vm13183_vm4 = vcmp.eq.s32.totalorder %v6871_v22, %v10210_v8  ;;  %vm12552_vm7 = vcmp.eq.s32.totalorder %v6871_v22, %v10229_v7  ;;  %v2795_v30 = vpop.f32.mrf.mxu1 }
 0x2b7   : > { %v3984_v12 = vsel %vm13183_vm4, %v2520_v58, 0.0  ;;  %v3986_v52 = vsel %vm12550_vm11, %v2793_v48, 0.0  ;;  %vm12553_vm13 = vcmp.eq.s32.totalorder %v13129_v55, %v10210_v8  ;;  %v3985_v47 = vsel %vm12551_vm9, %v2522_v45, 0.0  ;;  %v2526_v14 = vpop.f32.mrf.mxu0  ;;  %v13185_v48 = vld [vmem:[#allocation23_spill] sm:$0xff] }
 0x2b8   : > { %v4294_v44 = vadd.f32 %v4293_v18, %v3984_v12  ;;  %v4336_v40 = vadd.f32 %v4335_v41, %v3986_v52  ;;  %vm12554_vm4 = vcmp.eq.s32.totalorder %v13129_v55, %v10213_v49  ;;  %v4315_v20 = vadd.f32 %v4314_v35, %v3985_v47  ;;  %v2799_v50 = vpop.f32.mrf.mxu1 }
 0x2b9   : > { %v3987_v36 = vsel %vm12552_vm7, %v2795_v30, 0.0  ;;  %3071 = vmatmul.mubr.bf16.gmra.mxu0 %v13184_v5  ;;  %vm12555_vm11 = vcmp.eq.s32.totalorder %v13129_v55, %v10226_v15  ;;  %v4000_v11 = vsel %vm12553_vm13, %v2526_v14, 0.0  ;;  %3344 = vmatmul.mubr.bf16.gmra.mxu1 %v13184_v5  ;;  %vm12556_vm9 = vcmp.eq.s32.totalorder %v13129_v55, %v10229_v7  ;;  %v2528_v42 = vpop.f32.mrf.mxu0 }
 0x2ba   : > { %v4357_v13 = vadd.f32 %v4356_v31, %v3987_v36  ;;  %3080 = vmatprep.mubr.bf16.mxu0 %v12704_v38  ;;  %v4295_v59 = vadd.f32 %v4294_v44, %v4000_v11  ;;  %v4002_v54 = vsel %vm12554_vm4, %v2799_v50, 0.0  ;;  %vm12557_vm7 = vcmp.eq.s32.totalorder %v13134_v39, %v10210_v8  ;;  %3353 = vmatprep.mubr.bf16.mxu1 %v12704_v38  ;;  %v2801_v46 = vpop.f32.mrf.mxu1 }
 0x2bb   : > { %v4337_v53 = vadd.f32 %v4336_v40, %v4002_v54  ;;  %v4001_v62 = vsel %vm12555_vm11, %v2528_v42, 0.0  ;;  %vm12558_vm13 = vcmp.eq.s32.totalorder %v13134_v39, %v10213_v49  ;;  %v4003_v1 = vsel %vm12556_vm9, %v2801_v46, 0.0  ;;  %v2530_v57 = vpop.f32.mrf.mxu0 }
 0x2bc   : > { %v4316_v60 = vadd.f32 %v4315_v20, %v4001_v62  ;;  %vm12559_vm4 = vcmp.eq.s32.totalorder %v13134_v39, %v10226_v15  ;;  %v4358_v28 = vadd.f32 %v4357_v13, %v4003_v1  ;;  %v4016_v43 = vsel %vm12557_vm7, %v2530_v57, 0.0  ;;  %v2803_v0 = vpop.f32.mrf.mxu1 }
 0x2bd   : > { %vm12560_vm11 = vcmp.eq.s32.totalorder %v13134_v39, %v10229_v7  ;;  %v4296_v16 = vadd.f32 %v4295_v59, %v4016_v43  ;;  %v4018_v37 = vsel %vm12558_vm13, %v2803_v0, 0.0  ;;  %v2532_v18 = vpop.f32.mrf.mxu0  ;;  %vm12561_vm9 = vcmp.eq.s32.totalorder %v13140_v56, %v10210_v8  ;;  %v13186_v0 = vld [vmem:[#allocation24_spill] sm:$0xff] }
 0x2be   : > { %v4338_v41 = vadd.f32 %v4337_v53, %v4018_v37  ;;  %v4017_v35 = vsel %vm12559_vm4, %v2532_v18, 0.0  ;;  %v2805_v61 = vpop.f32.mrf.mxu1  ;;  %vm12562_vm7 = vcmp.eq.s32.totalorder %v13140_v56, %v10213_v49  ;;  %vm12563_vm13 = vcmp.eq.s32.totalorder %v13140_v56, %v10226_v15 }
 0x2bf   : > { %v4317_v58 = vadd.f32 %v4316_v60, %v4017_v35  ;;  %v4019_v31 = vsel %vm12560_vm11, %v2805_v61, 0.0  ;;  %v2536_v12 = vpop.f32.mrf.mxu0  ;;  %vm12564_vm4 = vcmp.eq.s32.totalorder %v13140_v56, %v10229_v7  ;;  %vm12565_vm11 = vcmp.eq.s32.totalorder %v13145_v9, %v10210_v8 }
 0x2c0   : > { %v4359_v44 = vadd.f32 %v4358_v28, %v4019_v31  ;;  %v4032_v52 = vsel %vm12561_vm9, %v2536_v12, 0.0  ;;  %v2809_v45 = vpop.f32.mrf.mxu1  ;;  %vm12566_vm9 = vcmp.eq.s32.totalorder %v13145_v9, %v10213_v49 }
 0x2c1   : > { %3081 = vmatmul.mubr.bf16.gmra.mxu0 %v13185_v48  ;;  %3354 = vmatmul.mubr.bf16.gmra.mxu1 %v13185_v48  ;;  %v4297_v40 = vadd.f32 %v4296_v16, %v4032_v52  ;;  %v4034_v47 = vsel %vm12562_vm7, %v2809_v45, 0.0  ;;  %v2538_v30 = vpop.f32.mrf.mxu0  ;;  %vm12567_vm7 = vcmp.eq.s32.totalorder %v13145_v9, %v10226_v15 }
 0x2c2   : > { %3090 = vmatprep.mubr.bf16.mxu0 %v12704_v38  ;;  %3363 = vmatprep.mubr.bf16.mxu1 %v12704_v38  ;;  %v4339_v20 = vadd.f32 %v4338_v41, %v4034_v47  ;;  %v4033_v36 = vsel %vm12563_vm13, %v2538_v30, 0.0  ;;  %v2811_v14 = vpop.f32.mrf.mxu1  ;;  %vm12568_vm13 = vcmp.eq.s32.totalorder %v13145_v9, %v10229_v7 }
 0x2c3   : > { %v4318_v5 = vadd.f32 %v4317_v58, %v4033_v36  ;;  %v4035_v13 = vsel %vm12564_vm4, %v2811_v14, 0.0  ;;  %v2540_v11 = vpop.f32.mrf.mxu0  ;;  %vm12569_vm4 = vcmp.eq.s32.totalorder %v13148_v34, %v10210_v8 }
 0x2c4   : > { %v4360_v50 = vadd.f32 %v4359_v44, %v4035_v13  ;;  %v4048_v59 = vsel %vm12565_vm11, %v2540_v11, 0.0  ;;  %v2813_v54 = vpop.f32.mrf.mxu1  ;;  %vm12570_vm11 = vcmp.eq.s32.totalorder %v13148_v34, %v10213_v49 }
 0x2c5   : > { %v4298_v42 = vadd.f32 %v4297_v40, %v4048_v59  ;;  %v4050_v53 = vsel %vm12566_vm9, %v2813_v54, 0.0  ;;  %v2542_v62 = vpop.f32.mrf.mxu0  ;;  %vm12571_vm9 = vcmp.eq.s32.totalorder %v13148_v34, %v10226_v15  ;;  %v13187_v54 = vld [vmem:[#allocation25_spill] sm:$0xff] }
 0x2c6   : > { %v4340_v46 = vadd.f32 %v4339_v20, %v4050_v53  ;;  %v4049_v60 = vsel %vm12567_vm7, %v2542_v62, 0.0  ;;  %v2815_v1 = vpop.f32.mrf.mxu1  ;;  %vm12572_vm7 = vcmp.eq.s32.totalorder %v13148_v34, %v10229_v7 }
 0x2c7   : > { %v4319_v57 = vadd.f32 %v4318_v5, %v4049_v60  ;;  %v4051_v28 = vsel %vm12568_vm13, %v2815_v1, 0.0  ;;  %v2546_v43 = vpop.f32.mrf.mxu0  ;;  %vm12573_vm13 = vcmp.eq.s32.totalorder %v13149_v33, %v10210_v8 }
 0x2c8   : > { %v4361_v16 = vadd.f32 %v4360_v50, %v4051_v28  ;;  %v4064_v37 = vsel %vm12569_vm4, %v2546_v43, 0.0  ;;  %v2819_v18 = vpop.f32.mrf.mxu1  ;;  %vm12574_vm4 = vcmp.eq.s32.totalorder %v13149_v33, %v10213_v49 }
 0x2c9   : > { %3091 = vmatmul.mubr.bf16.gmra.mxu0 %v13186_v0  ;;  %3364 = vmatmul.mubr.bf16.gmra.mxu1 %v13186_v0  ;;  %v4299_v41 = vadd.f32 %v4298_v42, %v4064_v37  ;;  %v4066_v35 = vsel %vm12570_vm11, %v2819_v18, 0.0  ;;  %v2548_v61 = vpop.f32.mrf.mxu0  ;;  %vm12575_vm11 = vcmp.eq.s32.totalorder %v13149_v33, %v10226_v15 }
 0x2ca   : > { %3100 = vmatprep.mubr.bf16.mxu0 %v12704_v38  ;;  %3373 = vmatprep.mubr.bf16.mxu1 %v12704_v38  ;;  %v4341_v58 = vadd.f32 %v4340_v46, %v4066_v35  ;;  %v4065_v31 = vsel %vm12571_vm9, %v2548_v61, 0.0  ;;  %v2821_v12 = vpop.f32.mrf.mxu1  ;;  %vm12576_vm9 = vcmp.eq.s32.totalorder %v13149_v33, %v10229_v7 }
 0x2cb   : > { %v4320_v48 = vadd.f32 %v4319_v57, %v4065_v31  ;;  %v4067_v44 = vsel %vm12572_vm7, %v2821_v12, 0.0  ;;  %v2550_v52 = vpop.f32.mrf.mxu0  ;;  %vm12577_vm7 = vcmp.eq.s32.totalorder %v13154_v29, %v10210_v8 }
 0x2cc   : > { %v4362_v45 = vadd.f32 %v4361_v16, %v4067_v44  ;;  %v4080_v40 = vsel %vm12573_vm13, %v2550_v52, 0.0  ;;  %v2823_v47 = vpop.f32.mrf.mxu1  ;;  %vm12578_vm13 = vcmp.eq.s32.totalorder %v13154_v29, %v10213_v49 }
 0x2cd   : > { %v4300_v30 = vadd.f32 %v4299_v41, %v4080_v40  ;;  %v4082_v20 = vsel %vm12574_vm4, %v2823_v47, 0.0  ;;  %v2552_v36 = vpop.f32.mrf.mxu0  ;;  %vm12579_vm4 = vcmp.eq.s32.totalorder %v13154_v29, %v10226_v15  ;;  %v13188_v47 = vld [vmem:[#allocation26_spill] sm:$0xff] }
 0x2ce   : > { %v4342_v14 = vadd.f32 %v4341_v58, %v4082_v20  ;;  %v4081_v5 = vsel %vm12575_vm11, %v2552_v36, 0.0  ;;  %v2825_v13 = vpop.f32.mrf.mxu1  ;;  %vm12584_vm11 = vcmp.eq.s32.totalorder %v13154_v29, %v10229_v7 }
 0x2cf   : > { %v4321_v11 = vadd.f32 %v4320_v48, %v4081_v5  ;;  %v4083_v50 = vsel %vm12576_vm9, %v2825_v13, 0.0  ;;  %v2556_v59 = vpop.f32.mrf.mxu0  ;;  %vm12583_vm9 = vcmp.eq.s32.totalorder %v13160_v4, %v10210_v8 }
 0x2d0   : > { %v4363_v42 = vadd.f32 %v4362_v45, %v4083_v50  ;;  %v4096_v53 = vsel %vm12577_vm7, %v2556_v59, 0.0  ;;  %v2829_v62 = vpop.f32.mrf.mxu1  ;;  %vm12582_vm7 = vcmp.eq.s32.totalorder %v13160_v4, %v10213_v49 }
 0x2d1   : > { %3101 = vmatmul.mubr.bf16.gmra.mxu0 %v13187_v54  ;;  %3374 = vmatmul.mubr.bf16.gmra.mxu1 %v13187_v54  ;;  %v4301_v46 = vadd.f32 %v4300_v30, %v4096_v53  ;;  %v4098_v60 = vsel %vm12578_vm13, %v2829_v62, 0.0  ;;  %v2558_v1 = vpop.f32.mrf.mxu0  ;;  %vm12580_vm13 = vcmp.eq.s32.totalorder %v13160_v4, %v10226_v15 }
 0x2d2   : > { %3110 = vmatprep.mubr.bf16.mxu0 %v12704_v38  ;;  %3383 = vmatprep.mubr.bf16.mxu1 %v12704_v38  ;;  %v4343_v57 = vadd.f32 %v4342_v14, %v4098_v60  ;;  %v4097_v28 = vsel %vm12579_vm4, %v2558_v1, 0.0  ;;  %v2831_v43 = vpop.f32.mrf.mxu1  ;;  %vm12581_vm4 = vcmp.eq.s32.totalorder %v13160_v4, %v10229_v7 }
 0x2d3   : > { %v4322_v0 = vadd.f32 %v4321_v11, %v4097_v28  ;;  %v4099_v16 = vsel %vm12584_vm11, %v2831_v43, 0.0  ;;  %v2560_v37 = vpop.f32.mrf.mxu0  ;;  %vm13193_vm11 = vcmp.eq.s32.totalorder %v6740_v2, %v10226_v15 }
 0x2d4   : > { %v4364_v18 = vadd.f32 %v4363_v42, %v4099_v16  ;;  %v4112_v41 = vsel %vm12583_vm9, %v2560_v37, 0.0  ;;  %v2833_v35 = vpop.f32.mrf.mxu1  ;;  %vm13192_vm9 = vcmp.eq.s32.totalorder %v6946_v27, %v10213_v49  ;;  %v13197_v16 = vld [vmem:[#allocation27_spill] sm:$0xff] }
 0x2d5   : > { %v10853_v61 = vadd.f32 %v4301_v46, %v4112_v41  ;;  %v4114_v58 = vsel %vm12582_vm7, %v2833_v35, 0.0  ;;  %v2562_v31 = vpop.f32.mrf.mxu0  ;;  %vm13191_vm7 = vcmp.eq.s32.totalorder %v6740_v2, %v10213_v49 }
 0x2d6   : > { %v10858_v12 = vadd.f32 %v4343_v57, %v4114_v58  ;;  %v4113_v48 = vsel %vm12580_vm13, %v2562_v31, 0.0  ;;  %v2835_v44 = vpop.f32.mrf.mxu1  ;;  %vm13189_vm13 = vcmp.eq.s32.totalorder %v6740_v2, %v10210_v8 }
 0x2d7   : > { %v10863_v52 = vadd.f32 %v4322_v0, %v4113_v48  ;;  %v4115_v45 = vsel %vm12581_vm4, %v2835_v44, 0.0  ;;  %v2566_v40 = vpop.f32.mrf.mxu0  ;;  %vm13190_vm4 = vcmp.eq.s32.totalorder %v6946_v27, %v10210_v8 }
 0x2d8   : > { %v10869_v30 = vadd.f32 %v4364_v18, %v4115_v45  ;;  %v2839_v20 = vpop.f32.mrf.mxu1  ;;  %v4464_v13 = vsel %vm13189_vm13, %v2566_v40, 0.0  ;;  %vm13194_vm13 = vcmp.eq.s32.totalorder %v6946_v27, %v10226_v15 }
 0x2d9   : > { %3111 = vmatmul.mubr.bf16.gmra.mxu0 %v13188_v47  ;;  %3384 = vmatmul.mubr.bf16.gmra.mxu1 %v13188_v47  ;;  %v2568_v36 = vpop.f32.mrf.mxu0  ;;  %v4466_v59 = vsel %vm13191_vm7, %v2839_v20, 0.0  ;;  %vm13196_vm7 = vcmp.eq.s32.totalorder %v6946_v27, %v10229_v7 }
 0x2da   : > { %3120 = vmatprep.mubr.bf16.mxu0 %v12704_v38  ;;  %3393 = vmatprep.mubr.bf16.mxu1 %v12704_v38  ;;  %v2841_v14 = vpop.f32.mrf.mxu1  ;;  %v4465_v62 = vsel %vm13193_vm11, %v2568_v36, 0.0  ;;  %vm13198_vm11 = vcmp.eq.s32.totalorder %v6920_v25, %v10210_v8 }
 0x2db   : > { %v2570_v5 = vpop.f32.mrf.mxu0 }
 0x2dc   : > { %v4480_v11 = vsel %vm13190_vm4, %v2570_v5, 0.0  ;;  %v2843_v50 = vpop.f32.mrf.mxu1  ;;  %vm13195_vm4 = vcmp.eq.s32.totalorder %v6740_v2, %v10229_v7 }
 0x2dd   : > { %v4880_v54 = vadd.f32 %v4480_v11, %v4464_v13  ;;  %v4482_v42 = vsel %vm13192_vm9, %v2843_v50, 0.0  ;;  %v2572_v53 = vpop.f32.mrf.mxu0  ;;  %v4467_v57 = vsel %vm13195_vm4, %v2841_v14, 0.0  ;;  %vm13199_vm9 = vcmp.eq.s32.totalorder %v6920_v25, %v10213_v49 }
 0x2de   : > { %v4922_v46 = vadd.f32 %v4482_v42, %v4466_v59  ;;  %v4481_v60 = vsel %vm13194_vm13, %v2572_v53, 0.0  ;;  %v2845_v1 = vpop.f32.mrf.mxu1  ;;  %vm13200_vm13 = vcmp.eq.s32.totalorder %v6920_v25, %v10226_v15  ;;  %vm13201_vm4 = vcmp.eq.s32.totalorder %v6920_v25, %v10229_v7 }
 0x2df   : > { %v4901_v28 = vadd.f32 %v4481_v60, %v4465_v62  ;;  %v4483_v43 = vsel %vm13196_vm7, %v2845_v1, 0.0  ;;  %v2576_v0 = vpop.f32.mrf.mxu0  ;;  %vm13202_vm7 = vcmp.eq.s32.totalorder %v6923_v26, %v10210_v8  ;;  %v13204_v60 = vld [vmem:[#allocation28_spill] sm:$0xff] }
 0x2e0   : > { %v4943_v37 = vadd.f32 %v4483_v43, %v4467_v57  ;;  %v4496_v18 = vsel %vm13198_vm11, %v2576_v0, 0.0  ;;  %v2849_v41 = vpop.f32.mrf.mxu1  ;;  %vm13203_vm11 = vcmp.eq.s32.totalorder %v6923_v26, %v10213_v49 }
 0x2e1   : > { %3121 = vmatmul.mubr.bf16.gmra.mxu0 %v13197_v16  ;;  %3394 = vmatmul.mubr.bf16.gmra.mxu1 %v13197_v16  ;;  %v4881_v35 = vadd.f32 %v4880_v54, %v4496_v18  ;;  %v4498_v58 = vsel %vm13199_vm9, %v2849_v41, 0.0  ;;  %v2578_v31 = vpop.f32.mrf.mxu0  ;;  %vm13206_vm9 = vcmp.eq.s32.totalorder %v6868_v21, %v10210_v8 }
 0x2e2   : > { %3130 = vmatprep.mubr.bf16.mxu0 %v12704_v38  ;;  %3403 = vmatprep.mubr.bf16.mxu1 %v12704_v38  ;;  %v4923_v48 = vadd.f32 %v4922_v46, %v4498_v58  ;;  %v4497_v44 = vsel %vm13200_vm13, %v2578_v31, 0.0  ;;  %v2851_v45 = vpop.f32.mrf.mxu1  ;;  %vm13207_vm13 = vcmp.eq.s32.totalorder %v6868_v21, %v10213_v49 }
 0x2e3   : > { %v4902_v40 = vadd.f32 %v4901_v28, %v4497_v44  ;;  %v4499_v47 = vsel %vm13201_vm4, %v2851_v45, 0.0  ;;  %v2580_v20 = vpop.f32.mrf.mxu0  ;;  %vm13208_vm4 = vcmp.eq.s32.totalorder %v6868_v21, %v10226_v15 }
 0x2e4   : > { %v4944_v36 = vadd.f32 %v4943_v37, %v4499_v47  ;;  %v4512_v14 = vsel %vm13202_vm7, %v2580_v20, 0.0  ;;  %v2853_v5 = vpop.f32.mrf.mxu1  ;;  %vm13209_vm7 = vcmp.eq.s32.totalorder %v6871_v22, %v10210_v8 }
 0x2e5   : > { %v4882_v13 = vadd.f32 %v4881_v35, %v4512_v14  ;;  %v4514_v11 = vsel %vm13203_vm11, %v2853_v5, 0.0  ;;  %v2582_v50 = vpop.f32.mrf.mxu0  ;;  %vm13210_vm11 = vcmp.eq.s32.totalorder %v6871_v22, %v10213_v49 }
 0x2e6   : > { %v4924_v59 = vadd.f32 %v4923_v48, %v4514_v11  ;;  %v4513_v54 = vsel %vm3665_vm0, %v2582_v50, 0.0  ;;  %v2855_v42 = vpop.f32.mrf.mxu1 }
 0x2e7   : > { %v4903_v53 = vadd.f32 %v4902_v40, %v4513_v54  ;;  %v4515_v62 = vsel %vm3667_vm15, %v2855_v42, 0.0  ;;  %v2586_v46 = vpop.f32.mrf.mxu0 }
 0x2e8   : > { %v4945_v1 = vadd.f32 %v4944_v36, %v4515_v62  ;;  %v4528_v57 = vsel %vm3680_vm10, %v2586_v46, 0.0  ;;  %v2859_v28 = vpop.f32.mrf.mxu1 }
 0x2e9   : > { %3131 = vmatmul.mubr.bf16.gmra.mxu0 %v13204_v60  ;;  %3404 = vmatmul.mubr.bf16.gmra.mxu1 %v13204_v60  ;;  %v4883_v43 = vadd.f32 %v4882_v13, %v4528_v57  ;;  %v4530_v0 = vsel %vm3682_vm3, %v2859_v28, 0.0  ;;  %v2588_v16 = vpop.f32.mrf.mxu0 }
 0x2ea   : > { %3140 = vmatprep.mubr.bf16.mxu0 %v12704_v38  ;;  %3413 = vmatprep.mubr.bf16.mxu1 %v12704_v38  ;;  %v4925_v37 = vadd.f32 %v4924_v59, %v4530_v0  ;;  %v4529_v18 = vsel %vm3681_vm8, %v2588_v16, 0.0  ;;  %v2861_v41 = vpop.f32.mrf.mxu1  ;;  %v13205_v59 = vld [vmem:[#allocation29_spill] sm:$0xff] }
 0x2eb   : > { %v4904_v35 = vadd.f32 %v4903_v53, %v4529_v18  ;;  %v4531_v58 = vsel %vm3683_vm2, %v2861_v41, 0.0  ;;  %v2590_v31 = vpop.f32.mrf.mxu0 }
 0x2ec   : > { %v4946_v48 = vadd.f32 %v4945_v1, %v4531_v58  ;;  %v4544_v44 = vsel %vm3696_vm6, %v2590_v31, 0.0  ;;  %v2863_v45 = vpop.f32.mrf.mxu1 }
 0x2ed   : > { %v4884_v40 = vadd.f32 %v4883_v43, %v4544_v44  ;;  %v4546_v47 = vsel %vm3698_vm1, %v2863_v45, 0.0  ;;  %v2592_v20 = vpop.f32.mrf.mxu0 }
 0x2ee   : > { %v4926_v36 = vadd.f32 %v4925_v37, %v4546_v47  ;;  %v4545_v14 = vsel %vm3697_vm14, %v2592_v20, 0.0  ;;  %v2865_v5 = vpop.f32.mrf.mxu1 }
 0x2ef   : > { %v4905_v13 = vadd.f32 %v4904_v35, %v4545_v14  ;;  %v4547_v11 = vsel %vm3699_vm12, %v2865_v5, 0.0  ;;  %v2596_v50 = vpop.f32.mrf.mxu0 }
 0x2f0   : > { %v4947_v54 = vadd.f32 %v4946_v48, %v4547_v11  ;;  %v4560_v42 = vsel %vm13206_vm9, %v2596_v50, 0.0  ;;  %v2869_v53 = vpop.f32.mrf.mxu1  ;;  %vm13211_vm9 = vcmp.eq.s32.totalorder %v6871_v22, %v10226_v15 }
 0x2f1   : > { %3141 = vmatmul.mubr.bf16.gmra.mxu0 %v13205_v59  ;;  %3414 = vmatmul.mubr.bf16.gmra.mxu1 %v13205_v59  ;;  %v4885_v62 = vadd.f32 %v4884_v40, %v4560_v42  ;;  %v4562_v46 = vsel %vm13207_vm13, %v2869_v53, 0.0  ;;  %v2598_v60 = vpop.f32.mrf.mxu0  ;;  %vm13212_vm13 = vcmp.eq.s32.totalorder %v6871_v22, %v10229_v7 }
 0x2f2   : > { %3150 = vmatprep.mubr.bf16.mxu0 %v12704_v38  ;;  %3423 = vmatprep.mubr.bf16.mxu1 %v12704_v38  ;;  %v4927_v1 = vadd.f32 %v4926_v36, %v4562_v46  ;;  %v4561_v57 = vsel %vm13208_vm4, %v2598_v60, 0.0  ;;  %v2871_v28 = vpop.f32.mrf.mxu1  ;;  %v13213_v36 = vld [vmem:[#allocation30_spill] sm:$0xff]  ;;  %vm13214_vm4 = vcmp.eq.s32.totalorder %v13129_v55, %v10210_v8 }
 0x2f3   : > { %v4906_v43 = vadd.f32 %v4905_v13, %v4561_v57  ;;  %v4563_v0 = vsel %vm3715_vm5, %v2871_v28, 0.0  ;;  %v2600_v16 = vpop.f32.mrf.mxu0 }
 0x2f4   : > { %v4948_v37 = vadd.f32 %v4947_v54, %v4563_v0  ;;  %v4576_v18 = vsel %vm13209_vm7, %v2600_v16, 0.0  ;;  %v2873_v41 = vpop.f32.mrf.mxu1  ;;  %vm13215_vm7 = vcmp.eq.s32.totalorder %v13129_v55, %v10213_v49 }
 0x2f5   : > { %v4886_v35 = vadd.f32 %v4885_v62, %v4576_v18  ;;  %v4578_v58 = vsel %vm13210_vm11, %v2873_v41, 0.0  ;;  %v2602_v31 = vpop.f32.mrf.mxu0  ;;  %vm13216_vm11 = vcmp.eq.s32.totalorder %v13129_v55, %v10226_v15 }
 0x2f6   : > { %v4928_v48 = vadd.f32 %v4927_v1, %v4578_v58  ;;  %v4577_v44 = vsel %vm13211_vm9, %v2602_v31, 0.0  ;;  %v2875_v45 = vpop.f32.mrf.mxu1  ;;  %vm13217_vm9 = vcmp.eq.s32.totalorder %v13129_v55, %v10229_v7 }
 0x2f7   : > { %v4907_v40 = vadd.f32 %v4906_v43, %v4577_v44  ;;  %v4579_v47 = vsel %vm13212_vm13, %v2875_v45, 0.0  ;;  %v2606_v20 = vpop.f32.mrf.mxu0  ;;  %vm13218_vm13 = vcmp.eq.s32.totalorder %v13134_v39, %v10210_v8 }
 0x2f8   : > { %v4949_v14 = vadd.f32 %v4948_v37, %v4579_v47  ;;  %v4592_v5 = vsel %vm13214_vm4, %v2606_v20, 0.0  ;;  %v2879_v13 = vpop.f32.mrf.mxu1  ;;  %vm13219_vm4 = vcmp.eq.s32.totalorder %v13134_v39, %v10213_v49 }
 0x2f9   : > { %3151 = vmatmul.mubr.bf16.gmra.mxu0 %v13213_v36  ;;  %3424 = vmatmul.mubr.bf16.gmra.mxu1 %v13213_v36  ;;  %v4887_v11 = vadd.f32 %v4886_v35, %v4592_v5  ;;  %v4594_v50 = vsel %vm13215_vm7, %v2879_v13, 0.0  ;;  %v2608_v59 = vpop.f32.mrf.mxu0  ;;  %vm13220_vm7 = vcmp.eq.s32.totalorder %v13134_v39, %v10226_v15 }
 0x2fa   : > { %3160 = vmatprep.mubr.bf16.mxu0 %v12704_v38  ;;  %3433 = vmatprep.mubr.bf16.mxu1 %v12704_v38  ;;  %v4929_v54 = vadd.f32 %v4928_v48, %v4594_v50  ;;  %v4593_v42 = vsel %vm13216_vm11, %v2608_v59, 0.0  ;;  %v2881_v53 = vpop.f32.mrf.mxu1  ;;  %vm13221_vm11 = vcmp.eq.s32.totalorder %v13134_v39, %v10229_v7  ;;  %v13222_v48 = vld [vmem:[#allocation31_spill] sm:$0xff] }
 0x2fb   : > { %v4908_v62 = vadd.f32 %v4907_v40, %v4593_v42  ;;  %v4595_v46 = vsel %vm13217_vm9, %v2881_v53, 0.0  ;;  %v2610_v60 = vpop.f32.mrf.mxu0  ;;  %vm13223_vm9 = vcmp.eq.s32.totalorder %v13140_v56, %v10210_v8 }
 0x2fc   : > { %v4950_v1 = vadd.f32 %v4949_v14, %v4595_v46  ;;  %v4608_v57 = vsel %vm13218_vm13, %v2610_v60, 0.0  ;;  %v2883_v28 = vpop.f32.mrf.mxu1  ;;  %vm13224_vm13 = vcmp.eq.s32.totalorder %v13140_v56, %v10213_v49 }
 0x2fd   : > { %v4888_v43 = vadd.f32 %v4887_v11, %v4608_v57  ;;  %v4610_v0 = vsel %vm13219_vm4, %v2883_v28, 0.0  ;;  %v2612_v16 = vpop.f32.mrf.mxu0  ;;  %vm13225_vm4 = vcmp.eq.s32.totalorder %v13140_v56, %v10226_v15 }
 0x2fe   : > { %v4930_v37 = vadd.f32 %v4929_v54, %v4610_v0  ;;  %v4609_v18 = vsel %vm13220_vm7, %v2612_v16, 0.0  ;;  %v2885_v41 = vpop.f32.mrf.mxu1  ;;  %vm13226_vm7 = vcmp.eq.s32.totalorder %v13140_v56, %v10229_v7 }
 0x2ff   : > { %v4909_v35 = vadd.f32 %v4908_v62, %v4609_v18  ;;  %v4611_v58 = vsel %vm13221_vm11, %v2885_v41, 0.0  ;;  %v2616_v31 = vpop.f32.mrf.mxu0  ;;  %vm13227_vm11 = vcmp.eq.s32.totalorder %v13145_v9, %v10210_v8 }
 0x300   : > { %v4951_v44 = vadd.f32 %v4950_v1, %v4611_v58  ;;  %v4624_v45 = vsel %vm13223_vm9, %v2616_v31, 0.0  ;;  %v2889_v40 = vpop.f32.mrf.mxu1  ;;  %vm13228_vm9 = vcmp.eq.s32.totalorder %v13145_v9, %v10213_v49 }
 0x301   : > { %3161 = vmatmul.mubr.bf16.gmra.mxu0 %v13222_v48  ;;  %3434 = vmatmul.mubr.bf16.gmra.mxu1 %v13222_v48  ;;  %v4889_v47 = vadd.f32 %v4888_v43, %v4624_v45  ;;  %v4626_v20 = vsel %vm13224_vm13, %v2889_v40, 0.0  ;;  %v2618_v36 = vpop.f32.mrf.mxu0  ;;  %vm13229_vm13 = vcmp.eq.s32.totalorder %v13145_v9, %v10226_v15 }
 0x302   : > { %3170 = vmatprep.mubr.bf16.mxu0 %v12704_v38  ;;  %3443 = vmatprep.mubr.bf16.mxu1 %v12704_v38  ;;  %v4931_v14 = vadd.f32 %v4930_v37, %v4626_v20  ;;  %v4625_v5 = vsel %vm13225_vm4, %v2618_v36, 0.0  ;;  %v2891_v13 = vpop.f32.mrf.mxu1  ;;  %vm13230_vm4 = vcmp.eq.s32.totalorder %v13145_v9, %v10229_v7  ;;  %v13231_v37 = vld [vmem:[#allocation32_spill] sm:$0xff]  ;;  %v6683_v9 = vld [vmem:[%s7548_s19 + $0x8] sm:$0xff] }
 0x303   : > { %v4910_v11 = vadd.f32 %v4909_v35, %v4625_v5  ;;  %v4627_v50 = vsel %vm13226_vm7, %v2891_v13, 0.0  ;;  %v2620_v59 = vpop.f32.mrf.mxu0  ;;  %vm13232_vm7 = vcmp.eq.s32.totalorder %v13148_v34, %v10210_v8  ;;  %v11208_v56 = vrot.slane %v6683_v9, %v13094_v32 }
 0x304   : > { %v4952_v54 = vadd.f32 %v4951_v44, %v4627_v50  ;;  %v4640_v42 = vsel %vm13227_vm11, %v2620_v59, 0.0  ;;  %v2893_v53 = vpop.f32.mrf.mxu1  ;;  %vm13233_vm11 = vcmp.eq.s32.totalorder %v13148_v34, %v10213_v49  ;;  %v11211_v10 = vrot.slane %v6683_v9, %v13095_v19 }
 0x305   : > { %v4890_v62 = vadd.f32 %v4889_v47, %v4640_v42  ;;  %v4642_v46 = vsel %vm13228_vm9, %v2893_v53, 0.0  ;;  %v2622_v60 = vpop.f32.mrf.mxu0  ;;  %vm13234_vm9 = vcmp.eq.s32.totalorder %v13148_v34, %v10226_v15  ;;  %v4345_v42 = vrot.slane %v10858_v12, 4 }
 0x306   : > { %v4932_v1 = vadd.f32 %v4931_v14, %v4642_v46  ;;  %v4641_v57 = vsel %vm13229_vm13, %v2622_v60, 0.0  ;;  %v2895_v28 = vpop.f32.mrf.mxu1  ;;  %vm13235_vm13 = vcmp.eq.s32.totalorder %v13148_v34, %v10229_v7  ;;  %v4324_v60 = vrot.slane %v10863_v52, 4 }
 0x307   : > { %v4911_v43 = vadd.f32 %v4910_v11, %v4641_v57  ;;  %v4643_v0 = vsel %vm13230_vm4, %v2895_v28, 0.0  ;;  %v2626_v16 = vpop.f32.mrf.mxu0  ;;  %vm13236_vm4 = vcmp.eq.s32.totalorder %v13149_v33, %v10210_v8  ;;  %v4303_v11 = vrot.slane %v10853_v61, 4 }
 0x308   : > { %v4953_v18 = vadd.f32 %v4952_v54, %v4643_v0  ;;  %v4656_v41 = vsel %vm13232_vm7, %v2626_v16, 0.0  ;;  %v2899_v35 = vpop.f32.mrf.mxu1  ;;  %vm13237_vm7 = vcmp.eq.s32.totalorder %v13149_v33, %v10213_v49  ;;  %v4366_v0 = vrot.slane %v10869_v30, 4 }
 0x309   : > { %3171 = vmatmul.mubr.bf16.gmra.mxu0 %v13231_v37  ;;  %3444 = vmatmul.mubr.bf16.gmra.mxu1 %v13231_v37  ;;  %v4891_v58 = vadd.f32 %v4890_v62, %v4656_v41  ;;  %v4658_v31 = vsel %vm13233_vm11, %v2899_v35, 0.0  ;;  %v2628_v48 = vpop.f32.mrf.mxu0  ;;  %vm13238_vm11 = vcmp.eq.s32.totalorder %v13149_v33, %v10226_v15  ;;  %v4304_v41 = vadd.f32 %v4303_v11, %v10853_v61 }
 0x30a   : > { %3180 = vmatprep.mubr.bf16.mxu0 %v12704_v38  ;;  %3453 = vmatprep.mubr.bf16.mxu1 %v12704_v38  ;;  %v4933_v44 = vadd.f32 %v4932_v1, %v4658_v31  ;;  %v4657_v45 = vsel %vm13234_vm9, %v2628_v48, 0.0  ;;  %v2901_v40 = vpop.f32.mrf.mxu1  ;;  %vm13239_vm9 = vcmp.eq.s32.totalorder %v13149_v33, %v10229_v7  ;;  %v4346_v48 = vadd.f32 %v4345_v42, %v10858_v12 }
 0x30b   : > { %v4912_v47 = vadd.f32 %v4911_v43, %v4657_v45  ;;  %v4659_v20 = vsel %vm13235_vm13, %v2901_v40, 0.0  ;;  %v2630_v36 = vpop.f32.mrf.mxu0  ;;  %v13240_v43 = vld [vmem:[#allocation33_spill] sm:$0xff]  ;;  %vm13241_vm13 = vcmp.eq.s32.totalorder %v13154_v29, %v10210_v8  ;;  %v4305_v11 = vrot.slane %v4304_v41, 2 }
 0x30c   : > { %v4954_v14 = vadd.f32 %v4953_v18, %v4659_v20  ;;  %v4672_v5 = vsel %vm13236_vm4, %v2630_v36, 0.0  ;;  %v2903_v13 = vpop.f32.mrf.mxu1  ;;  %vm13242_vm4 = vcmp.eq.s32.totalorder %v13154_v29, %v10213_v49  ;;  %v11214_v39 = vrot.slane %v6683_v9, %v13176_v3 }
 0x30d   : > { %v4892_v50 = vadd.f32 %v4891_v58, %v4672_v5  ;;  %v4674_v59 = vsel %vm13237_vm7, %v2903_v13, 0.0  ;;  %v2632_v54 = vpop.f32.mrf.mxu0  ;;  %vm13243_vm7 = vcmp.eq.s32.totalorder %v13154_v29, %v10226_v15  ;;  %v11228_v32 = vrot.slane %v6683_v9, %v13163_v63 }
 0x30e   : > { %v4934_v53 = vadd.f32 %v4933_v44, %v4674_v59  ;;  %v4673_v62 = vsel %vm13238_vm11, %v2632_v54, 0.0  ;;  %v2905_v46 = vpop.f32.mrf.mxu1  ;;  %vm13244_vm11 = vcmp.eq.s32.totalorder %v13154_v29, %v10229_v7  ;;  %v4347_v54 = vrot.slane %v4346_v48, 2 }
 0x30f   : > { %v4913_v1 = vadd.f32 %v4912_v47, %v4673_v62  ;;  %v4675_v57 = vsel %vm13239_vm9, %v2905_v46, 0.0  ;;  %v2636_v28 = vpop.f32.mrf.mxu0  ;;  %v4325_v47 = vadd.f32 %v4324_v60, %v10863_v52  ;;  %vm13245_vm9 = vcmp.eq.s32.totalorder %v13160_v4, %v10210_v8 }
 0x310   : > { %v4955_v16 = vadd.f32 %v4954_v14, %v4675_v57  ;;  %v4688_v37 = vsel %vm13241_vm13, %v2636_v28, 0.0  ;;  %v2909_v18 = vpop.f32.mrf.mxu1  ;;  %v4367_v14 = vadd.f32 %v4366_v0, %v10869_v30  ;;  %vm13246_vm13 = vcmp.eq.s32.totalorder %v13160_v4, %v10213_v49  ;;  %v13249_v28 = vld [vmem:[#allocation34_spill] sm:$0xff] }
 0x311   : > { %3181 = vmatmul.mubr.bf16.gmra.mxu0 %v13240_v43  ;;  %3454 = vmatmul.mubr.bf16.gmra.mxu1 %v13240_v43  ;;  %v4893_v35 = vadd.f32 %v4892_v50, %v4688_v37  ;;  %v4690_v58 = vsel %vm13242_vm4, %v2909_v18, 0.0  ;;  %v2638_v31 = vpop.f32.mrf.mxu0  ;;  %vm13247_vm4 = vcmp.eq.s32.totalorder %v13160_v4, %v10226_v15  ;;  %v4326_v62 = vrot.slane %v4325_v47, 2 }
 0x312   : > { %3190 = vmatprep.mubr.bf16.mxu0 %v12704_v38  ;;  %3463 = vmatprep.mubr.bf16.mxu1 %v12704_v38  ;;  %v4935_v44 = vadd.f32 %v4934_v53, %v4690_v58  ;;  %v4689_v45 = vsel %vm13243_vm7, %v2638_v31, 0.0  ;;  %v2911_v40 = vpop.f32.mrf.mxu1  ;;  %vm13248_vm7 = vcmp.eq.s32.totalorder %v13160_v4, %v10229_v7  ;;  %v4368_v43 = vrot.slane %v4367_v14, 2 }
 0x313   : > { %v4914_v20 = vadd.f32 %v4913_v1, %v4689_v45  ;;  %v4691_v61 = vsel %vm13244_vm11, %v2911_v40, 0.0  ;;  %v2640_v36 = vpop.f32.mrf.mxu0  ;;  %v4306_v18 = vadd.f32 %v4305_v11, %v4304_v41  ;;  %vm13251_vm11 = vcmask 1040384  }
 0x314   : > { %v4956_v5 = vadd.f32 %v4955_v16, %v4691_v61  ;;  %v4704_v12 = vsel %vm13245_vm9, %v2640_v36, 0.0  ;;  %v2913_v13 = vpop.f32.mrf.mxu1  ;;  %v4327_v61 = vadd.f32 %v4326_v62, %v4325_v47  ;;  %vm13253_vm9 = vmmov %vm13251_vm11 }
 0x315   : > { %v4894_v50 = vadd.f32 %v4893_v35, %v4704_v12  ;;  %v4706_v52 = vsel %vm13246_vm13, %v2913_v13, 0.0  ;;  %v2642_v59 = vpop.f32.mrf.mxu0  ;;  %v4369_v13 = vadd.f32 %v4368_v43, %v4367_v14  ;;  %v4307_v11 = vrot.slane %v4306_v18, 1  ;;  %v13250_v14 = vld [vmem:[#allocation35_spill] sm:$0xff]  ;;  %vm13255_vm13 = vmmov %vm13253_vm9 }
 0x316   : > { %v4936_v42 = vadd.f32 %v4935_v44, %v4706_v52  ;;  %v4705_v53 = vsel %vm13247_vm4, %v2642_v59, 0.0  ;;  %v2915_v30 = vpop.f32.mrf.mxu1  ;;  %v4348_v44 = vadd.f32 %v4347_v54, %v4346_v48  ;;  %v4328_v47 = vrot.slane %v4327_v61, 1  ;;  %vm13257_vm4 = vmmov %vm13253_vm9 }
 0x317   : > { %v4895_v46 = vrot.slane %v4894_v50, 4  ;;  %v4915_v60 = vadd.f32 %v4914_v20, %v4705_v53  ;;  %v4707_v1 = vsel %vm13248_vm7, %v2915_v30, 0.0  ;;  %v11102_v57 = vpop.f32.mrf.mxu0  ;;  %vm13266_vm7 = vcmp.eq.s32.totalorder %v6946_v27, %v10210_v8 }
 0x318   : > { %v4937_v0 = vrot.slane %v4936_v42, 4  ;;  %v4957_v16 = vadd.f32 %v4956_v5, %v4707_v1  ;;  %v11105_v37 = vpop.f32.mrf.mxu1  ;;  %v4349_v48 = vrot.slane %v4348_v44, 1  ;;  %v4329_v4 = vadd.f32 %v4328_v47, %v4327_v61 }
 0x319   : > { %3191 = vmatmul.mubr.bf16.gmra.mxu0 %v13249_v28  ;;  %3464 = vmatmul.mubr.bf16.gmra.mxu1 %v13249_v28  ;;  %v4896_v35 = vadd.f32 %v4895_v46, %v4894_v50  ;;  %v4916_v58 = vrot.slane %v4915_v60, 4  ;;  %v11109_v31 = vpop.f32.mrf.mxu0  ;;  %v4370_v28 = vrot.slane %v4369_v13, 1 }
 0x31a   : > { %3200 = vmatprep.mubr.bf16.mxu0 %v12704_v38  ;;  %3473 = vmatprep.mubr.bf16.mxu1 %v12704_v38  ;;  %v4938_v45 = vadd.f32 %v4937_v0, %v4936_v42  ;;  %v4958_v40 = vrot.slane %v4957_v16, 4  ;;  %v11112_v20 = vpop.f32.mrf.mxu1 }
 0x31b   : > { %v4897_v36 = vrot.slane %v4896_v35, 2  ;;  %v4917_v5 = vadd.f32 %v4916_v58, %v4915_v60  ;;  %v11114_v12 = vpop.f32.mrf.mxu0  ;;  %v4371_v29 = vadd.f32 %v4370_v28, %v4369_v13  ;;  %v13259_v13 = vld [vmem:[#allocation36_spill] sm:$0xff]  ;;  %v11169_v28 = vld [vmem:[%s8679_s22 + $0x8] sm:$0xff] }
 0x31c   : > { %v4939_v52 = vrot.slane %v4938_v45, 2  ;;  %v4959_v59 = vadd.f32 %v4958_v40, %v4957_v16  ;;  %v11116_v41 = vpop.f32.mrf.mxu1 }
 0x31d   : > { %v4898_v50 = vadd.f32 %v4897_v36, %v4896_v35  ;;  %v4918_v53 = vrot.slane %v4917_v5, 2  ;;  %v11118_v30 = vpop.f32.mrf.mxu0  ;;  %v4308_v35 = vadd.f32 %v4307_v11, %v4306_v18  ;;  %v4350_v36 = vadd.f32 %v4349_v48, %v4348_v44 }
 0x31e   : > { %v4940_v54 = vadd.f32 %v4939_v52, %v4938_v45  ;;  %v4960_v42 = vrot.slane %v4959_v59, 2  ;;  %v11120_v46 = vpop.f32.mrf.mxu1 }
 0x31f   : > { %v4899_v62 = vrot.slane %v4898_v50, 1  ;;  %v4919_v60 = vadd.f32 %v4918_v53, %v4917_v5  ;;  %v11122_v1 = vpop.f32.mrf.mxu0 }
 0x320   : > { %v4941_v43 = vrot.slane %v4940_v54, 1  ;;  %v4961_v0 = vadd.f32 %v4960_v42, %v4959_v59  ;;  %v11125_v16 = vpop.f32.mrf.mxu1 }
 0x321   : > { %3201 = vmatmul.mubr.bf16.gmra.mxu0 %v13250_v14  ;;  %3474 = vmatmul.mubr.bf16.gmra.mxu1 %v13250_v14  ;;  %v4900_v58 = vadd.f32 %v4899_v62, %v4898_v50  ;;  %v4920_v45 = vrot.slane %v4919_v60, 1  ;;  %v11129_v40 = vpop.f32.mrf.mxu0 }
 0x322   : > { %3210 = vmatprep.mubr.bf16.mxu0 %v12704_v38  ;;  %3483 = vmatprep.mubr.bf16.mxu1 %v12704_v38  ;;  %v4942_v5 = vadd.f32 %v4941_v43, %v4940_v54  ;;  %v4962_v52 = vrot.slane %v4961_v0, 1  ;;  %v11132_v53 = vpop.f32.mrf.mxu1 }
 0x323   : > { %v11135_v59 = vsel %vm13251_vm11, %v4308_v35, %v4900_v58  ;;  %v4921_v42 = vadd.f32 %v4920_v45, %v4919_v60  ;;  %v11137_v14 = vpop.f32.mrf.mxu0  ;;  %v11178_v58 = vsub.f32 1.0, %v11169_v28  ;;  %vm13267_vm11 = vcmp.eq.s32.totalorder %v6946_v27, %v10213_v49 }
 0x324   : > { %13252 = vst [vmem:[#allocation45_spill] sm:$0xff] %v11135_v59  ;;  %v11140_v18 = vsel %vm13253_vm9, %v4350_v36, %v4942_v5  ;;  %v4963_v11 = vadd.f32 %v4962_v52, %v4961_v0  ;;  %v11142_v50 = vpop.f32.mrf.mxu1  ;;  %v13261_v36 = vld [vmem:[#allocation37_spill] sm:$0xff]  ;;  %v13264_v59 = vld [vmem:[#allocation2_spill] sm:$0xff]  ;;  %v5074_v3 = vsel %vm13267_vm11, %v11116_v41, 0.0  ;;  %vm13271_vm9 = vcmp.eq.s32.totalorder %v6740_v2, %v10210_v8 }
 0x325   : > { %13254 = vst [vmem:[#allocation46_spill] sm:$0xff] %v11140_v18  ;;  %v11145_v44 = vsel %vm13255_vm13, %v4329_v4, %v4921_v42  ;;  %v11147_v48 = vpop.f32.mrf.mxu0  ;;  %13260 = vst [vmem:[#allocation53_spill] sm:$0xff] %v11178_v58  ;;  %v5821_v17 = vrot.slane %v11178_v58, %v13264_v59  ;;  %v5056_v9 = vsel %vm13271_vm9, %v11102_v57, 0.0  ;;  %vm13272_vm13 = vcmp.eq.s32.totalorder %v6740_v2, %v10213_v49 }
 0x326   : > { %13256 = vst [vmem:[#allocation47_spill] sm:$0xff] %v11145_v44  ;;  %v11150_v61 = vsel %vm13257_vm4, %v4371_v29, %v4963_v11  ;;  %v11152_v54 = vpop.f32.mrf.mxu1  ;;  %v13262_v11 = vld [vmem:[#allocation6_spill] sm:$0xff]  ;;  %v13263_v44 = vld [vmem:[#allocation7_spill] sm:$0xff]  ;;  %v5058_v41 = vsel %vm13272_vm13, %v11105_v37, 0.0  ;;  %vm13273_vm4 = vcmp.eq.s32.totalorder %v6946_v27, %v10226_v15  ;;  %vm13275_vm11 = vcmp.eq.s32.totalorder %v6740_v2, %v10226_v15 }
 0x327   : > { %13258 = vst [vmem:[#allocation52_spill] sm:$0xff] %v11150_v61  ;;  %v11154_v47 = vpop.f32.mrf.mxu0  ;;  %v5825_v18 = vrot.slane %v11178_v58, %v13263_v44  ;;  %v11243_v34 = vmul.f32 %v5821_v17, %v8730_v6  ;;  %v5057_v57 = vsel %vm13275_vm11, %v11109_v31, 0.0  ;;  %vm13276_vm9 = vcmp.eq.s32.totalorder %v6946_v27, %v10229_v7 }
 0x328   : > { %v11157_v62 = vpop.f32.mrf.mxu1  ;;  %vm13277_vm13 = vcmp.eq.s32.totalorder %v6920_v25, %v10213_v49  ;;  %vm13280_vm11 = vcmp.eq.s32.totalorder %v6923_v26, %v10210_v8 }
 0x329   : > { %3211 = vmatmul.mubr.bf16.gmra.mxu0 %v13259_v13  ;;  %3484 = vmatmul.mubr.bf16.gmra.mxu1 %v13259_v13  ;;  %v11161_v60 = vpop.f32.mrf.mxu0  ;;  %v5817_v13 = vrot.slane %v11178_v58, %v13262_v11  ;;  %v5072_v58 = vsel %vm13266_vm7, %v11114_v12, 0.0  ;;  %v13268_v11 = vld [vmem:[#allocation38_spill] sm:$0xff]  ;;  %v11238_v12 = vmul.f32 %v5825_v18, %v8730_v6  ;;  %13270 = vst [vmem:[#allocation18_spill] sm:$0xff] %v11243_v34  ;;  %v5073_v18 = vsel %vm13273_vm4, %v11118_v30, 0.0 }
 0x32a   : > { %3220 = vmatprep.mubr.bf16.mxu0 %v12704_v38  ;;  %3493 = vmatprep.mubr.bf16.mxu1 %v12704_v38  ;;  %v11164_v4 = vpop.f32.mrf.mxu1  ;;  %vm13274_vm7 = vcmp.eq.s32.totalorder %v6920_v25, %v10210_v8  ;;  %v5472_v37 = vadd.f32 %v5072_v58, %v5056_v9  ;;  %v5075_v30 = vsel %vm13276_vm9, %v11120_v46, 0.0  ;;  %vm13278_vm4 = vcmp.eq.s32.totalorder %v6740_v2, %v10229_v7 }
 0x32b   : > { %v11166_v29 = vpop.f32.mrf.mxu0  ;;  %13269 = vst [vmem:[#allocation48_spill] sm:$0xff] %v11238_v12  ;;  %v5088_v17 = vsel %vm13274_vm7, %v11122_v1, 0.0  ;;  %v5090_v1 = vsel %vm13277_vm13, %v11125_v16, 0.0  ;;  %v5059_v31 = vsel %vm13278_vm4, %v11112_v20, 0.0  ;;  %v5514_v58 = vadd.f32 %v5074_v3, %v5058_v41 }
 0x32c   : > { %v11171_v43 = vpop.f32.mrf.mxu1  ;;  %vm13279_vm7 = vcmp.eq.s32.totalorder %v6920_v25, %v10226_v15  ;;  %v5104_v16 = vsel %vm13280_vm11, %v11137_v14, 0.0  ;;  %v5493_v9 = vadd.f32 %v5073_v18, %v5057_v57  ;;  %v5473_v34 = vadd.f32 %v5472_v37, %v5088_v17 }
 0x32d   : > { %v11173_v0 = vpop.f32.mrf.mxu0  ;;  %v5089_v46 = vsel %vm13279_vm7, %v11129_v40, 0.0  ;;  %vm13281_vm9 = vcmp.eq.s32.totalorder %v6920_v25, %v10229_v7  ;;  %vm13282_vm13 = vcmp.eq.s32.totalorder %v6923_v26, %v10213_v49  ;;  %v5535_v41 = vadd.f32 %v5075_v30, %v5059_v31 }
 0x32e   : > { %v11175_v35 = vpop.f32.mrf.mxu1  ;;  %v5091_v20 = vsel %vm13281_vm9, %v11132_v53, 0.0  ;;  %v5106_v3 = vsel %vm13282_vm13, %v11142_v50, 0.0  ;;  %v5515_v12 = vadd.f32 %v5514_v58, %v5090_v1  ;;  %v5105_v14 = vsel %vm3665_vm0, %v11147_v48, 0.0 }
 0x32f   : > { %v11180_v45 = vpop.f32.mrf.mxu0  ;;  %v5120_v18 = vsel %vm3680_vm10, %v11154_v47, 0.0  ;;  %v5494_v53 = vadd.f32 %v5493_v9, %v5089_v46  ;;  %v5474_v57 = vadd.f32 %v5473_v34, %v5104_v16  ;;  %v5107_v50 = vsel %vm3667_vm15, %v11152_v54, 0.0 }
 0x330   : > { %v11183_v5 = vpop.f32.mrf.mxu1  ;;  %v5122_v37 = vsel %vm3682_vm3, %v11157_v62, 0.0  ;;  %v5536_v48 = vadd.f32 %v5535_v41, %v5091_v20  ;;  %v5516_v1 = vadd.f32 %v5515_v12, %v5106_v3  ;;  %v5121_v47 = vsel %vm3681_vm8, %v11161_v60, 0.0 }
 0x331   : > { %3221 = vmatmul.mubr.bf16.gmra.mxu0 %v13261_v36  ;;  %3494 = vmatmul.mubr.bf16.gmra.mxu1 %v13261_v36  ;;  %v11187_v52 = vpop.f32.mrf.mxu0  ;;  %v5136_v34 = vsel %vm3696_vm6, %v11166_v29, 0.0  ;;  %v5495_v54 = vadd.f32 %v5494_v53, %v5105_v14  ;;  %v5475_v58 = vadd.f32 %v5474_v57, %v5120_v18  ;;  %v5123_v62 = vsel %vm3683_vm2, %v11164_v4, 0.0 }
 0x332   : > { %3230 = vmatprep.mubr.bf16.mxu0 %v12704_v38  ;;  %3503 = vmatprep.mubr.bf16.mxu1 %v12704_v38  ;;  %v11190_v42 = vpop.f32.mrf.mxu1  ;;  %v5138_v12 = vsel %vm3698_vm1, %v11171_v43, 0.0  ;;  %v5537_v60 = vadd.f32 %v5536_v48, %v5107_v50  ;;  %v5517_v16 = vadd.f32 %v5516_v1, %v5122_v37  ;;  %v5137_v29 = vsel %vm3697_vm14, %v11173_v0, 0.0 }
 0x333   : > { %v11194_v61 = vpop.f32.mrf.mxu0  ;;  %vm13283_vm10 = vcmp.eq.s32.totalorder %v6868_v21, %v10210_v8  ;;  %v5496_v43 = vadd.f32 %v5495_v54, %v5121_v47  ;;  %v5476_v20 = vadd.f32 %v5475_v58, %v5136_v34  ;;  %v5139_v3 = vsel %vm3699_vm12, %v11175_v35, 0.0  ;;  %v13290_v47 = vld [vmem:[#allocation12_spill] sm:$0xff] }
 0x334   : > { %v11200_v36 = vpop.f32.mrf.mxu1  ;;  %v5152_v4 = vsel %vm13283_vm10, %v11180_v45, 0.0  ;;  %vm13284_vm14 = vcmp.eq.s32.totalorder %v6868_v21, %v10213_v49  ;;  %v5538_v45 = vadd.f32 %v5537_v60, %v5123_v62  ;;  %v5518_v14 = vadd.f32 %v5517_v16, %v5138_v12 }
 0x335   : > { %v11202_v33 = vpop.f32.mrf.mxu0  ;;  %v5154_v0 = vsel %vm13284_vm14, %v11183_v5, 0.0  ;;  %vm13285_vm1 = vcmp.eq.s32.totalorder %v6868_v21, %v10226_v15  ;;  %vm13286_vm3 = vcmp.eq.s32.totalorder %v6871_v22, %v10210_v8  ;;  %v5497_v53 = vadd.f32 %v5496_v43, %v5137_v29  ;;  %v13295_v29 = vld [vmem:[#allocation13_spill] sm:$0xff] }
 0x336   : > { %13265 = vst [vmem:[#allocation50_spill] sm:$0xff] %v11202_v33  ;;  %v11220_v55 = vpop.f32.mrf.mxu1  ;;  %v11223_v33 = vmul.f32 %v5817_v13, %v8730_v6  ;;  %v5168_v35 = vsel %vm13286_vm3, %v11194_v61, 0.0  ;;  %v5477_v57 = vadd.f32 %v5476_v20, %v5152_v4  ;;  %v5155_v5 = vsel %vm3715_vm5, %v11190_v42, 0.0 }
 0x337   : > { %v11234_v19 = vpop.f32.mrf.mxu0  ;;  %vm13287_vm8 = vcmp.eq.s32.totalorder %v6871_v22, %v10213_v49  ;;  %v5519_v48 = vadd.f32 %v5518_v14, %v5154_v0  ;;  %vm13289_vm2 = vcmp.eq.s32.totalorder %v6871_v22, %v10226_v15  ;;  %vm13291_vm12 = vcmp.eq.s32.totalorder %v13290_v47, %v10210_v8 }
 0x338   : > { %v11261_v13 = vpop.f32.mrf.mxu1  ;;  %v5170_v50 = vsel %vm13287_vm8, %v11200_v36, 0.0  ;;  %v5184_v34 = vsel %vm13291_vm12, %v11234_v19, 0.0  ;;  %v5478_v58 = vadd.f32 %v5477_v57, %v5168_v35  ;;  %vm13292_vm5 = vcmp.eq.s32.totalorder %v6871_v22, %v10229_v7 }
 0x339   : > { %3231 = vmatmul.mubr.bf16.gmra.mxu0 %v13268_v11  ;;  %3504 = vmatmul.mubr.bf16.gmra.mxu1 %v13268_v11  ;;  %v11277_v63 = vpop.f32.mrf.mxu0  ;;  %v5171_v36 = vsel %vm13292_vm5, %v11220_v55, 0.0  ;;  %vm13293_vm0 = vcmp.eq.s32.totalorder %v13290_v47, %v10213_v49  ;;  %v5520_v16 = vadd.f32 %v5519_v48, %v5170_v50  ;;  %vm13294_vm15 = vcmp.eq.s32.totalorder %v13290_v47, %v10226_v15  ;;  %v13306_v48 = vld [vmem:[#allocation11_spill] sm:$0xff] }
 0x33a   : > { %3240 = vmatprep.mubr.bf16.mxu0 %v12704_v38  ;;  %3513 = vmatprep.mubr.bf16.mxu1 %v12704_v38  ;;  %v11292_v11 = vpop.f32.mrf.mxu1  ;;  %v5186_v62 = vsel %vm13293_vm0, %v11261_v13, 0.0  ;;  %v5185_v19 = vsel %vm13294_vm15, %v11277_v63, 0.0  ;;  %vm13296_vm6 = vcmp.eq.s32.totalorder %v13295_v29, %v10210_v8  ;;  %v5479_v55 = vadd.f32 %v5478_v58, %v5184_v34 }
 0x33b   : > { %v2690_v40 = vpop.f32.mrf.mxu0  ;;  %vm13297_vm4 = vcmp.eq.s32.totalorder %v13290_v47, %v10229_v7  ;;  %vm13298_vm7 = vcmp.eq.s32.totalorder %v13295_v29, %v10213_v49  ;;  %v5521_v14 = vadd.f32 %v5520_v16, %v5186_v62  ;;  %vm13300_vm11 = vcmp.eq.s32.totalorder %v13295_v29, %v10226_v15  ;;  %v13311_v62 = vld [vmem:[#allocation8_spill] sm:$0xff] }
 0x33c   : > { %v2963_v17 = vpop.f32.mrf.mxu1  ;;  %v5200_v4 = vsel %vm13296_vm6, %v2690_v40, 0.0  ;;  %v5187_v13 = vsel %vm13297_vm4, %v11292_v11, 0.0  ;;  %vm13303_vm13 = vcmp.eq.s32.totalorder %v13295_v29, %v10229_v7  ;;  %vm13309_vm8 = vcmp.eq.s32.totalorder %v13306_v48, %v10213_v49 }
 0x33d   : > { %v2692_v30 = vpop.f32.mrf.mxu0  ;;  %v13288_v1 = vld [vmem:[#allocation50_spill] sm:$0xff]  ;;  %vm13312_vm12 = vcmp.eq.s32.totalorder %v13311_v62, %v10210_v8  ;;  %vm13313_vm5 = vcmp.eq.s32.totalorder %v13306_v48, %v10229_v7  ;;  %vm13314_vm0 = vcmp.eq.s32.totalorder %v13311_v62, %v10213_v49  ;;  %vm13315_vm15 = vcmp.eq.s32.totalorder %v13311_v62, %v10226_v15 }
 0x33e   : > { %v2965_v31 = vpop.f32.mrf.mxu1  ;;  %v5169_v61 = vsel %vm13289_vm2, %v13288_v1, 0.0  ;;  %v5201_v40 = vsel %vm13300_vm11, %v2692_v30, 0.0  ;;  %vm13310_vm2 = vcmp.eq.s32.totalorder %v13306_v48, %v10226_v15  ;;  %vm13318_vm4 = vcmp.eq.s32.totalorder %v13311_v62, %v10229_v7 }
 0x33f   : > { %v2696_v46 = vpop.f32.mrf.mxu0  ;;  %v5203_v57 = vsel %vm13303_vm13, %v2965_v31, 0.0  ;;  %vm12615_vm11 = vcmp.eq.s32.totalorder %v6740_v2, %v11208_v56 }
 0x340   : > { %v2969_v9 = vpop.f32.mrf.mxu1 }
 0x341   : > { %3241 = vmatmul.mubr.bf16.gmra.mxu0 %v12854_v51  ;;  %3514 = vmatmul.mubr.bf16.gmra.mxu1 %v12854_v51  ;;  %v2698_v41 = vpop.f32.mrf.mxu0  ;;  %v5153_v51 = vsel %vm13285_vm1, %v11187_v52, 0.0  ;;  %v5539_v52 = vadd.f32 %v5538_v45, %v5139_v3  ;;  %v5202_v3 = vsel %vm13298_vm7, %v2963_v17, 0.0  ;;  %v13299_v45 = vld [vmem:[#allocation40_spill] sm:$0xff]  ;;  %v5480_v17 = vadd.f32 %v5479_v55, %v5200_v4 }
 0x342   : > { %3250 = vmatprep.mubr.bf16.mxu0 %v12704_v38  ;;  %3523 = vmatprep.mubr.bf16.mxu1 %v12704_v38  ;;  %v2971_v18 = vpop.f32.mrf.mxu1  ;;  %v5498_v42 = vadd.f32 %v5497_v53, %v5153_v51  ;;  %v13301_v51 = vld [vmem:[#allocation10_spill] sm:$0xff]  ;;  %vm13307_vm1 = vcmp.eq.s32.totalorder %v13306_v48, %v10210_v8 }
 0x343   : > { %v2700_v37 = vpop.f32.mrf.mxu0  ;;  %v5540_v60 = vadd.f32 %v5539_v52, %v5155_v5  ;;  %vm13302_vm9 = vcmp.eq.s32.totalorder %v13301_v51, %v10210_v8  ;;  %vm13304_vm10 = vcmp.eq.s32.totalorder %v13301_v51, %v10213_v49  ;;  %vm13305_vm14 = vcmp.eq.s32.totalorder %v13301_v51, %v10226_v15 }
 0x344   : > { %v2973_v54 = vpop.f32.mrf.mxu1  ;;  %v5499_v20 = vadd.f32 %v5498_v42, %v5169_v61  ;;  %v5216_v35 = vsel %vm13302_vm9, %v2696_v46, 0.0  ;;  %v5218_v5 = vsel %vm13304_vm10, %v2969_v9, 0.0  ;;  %v5522_v46 = vadd.f32 %v5521_v14, %v5202_v3 }
 0x345   : > { %v2702_v12 = vpop.f32.mrf.mxu0  ;;  %v5541_v63 = vadd.f32 %v5540_v60, %v5171_v36  ;;  %v5217_v52 = vsel %vm13305_vm14, %v2698_v41, 0.0  ;;  %v5232_v1 = vsel %vm13307_vm1, %v2700_v37, 0.0  ;;  %v5481_v31 = vadd.f32 %v5480_v17, %v5216_v35  ;;  %v13320_v35 = vld [vmem:[#allocation41_spill] sm:$0xff] }
 0x346   : > { %v2975_v43 = vpop.f32.mrf.mxu1  ;;  %v5500_v11 = vadd.f32 %v5499_v20, %v5185_v19  ;;  %vm13308_vm3 = vcmp.eq.s32.totalorder %v13301_v51, %v10229_v7  ;;  %v5523_v36 = vadd.f32 %v5522_v46, %v5218_v5  ;;  %v5233_v41 = vsel %vm13310_vm2, %v2702_v12, 0.0 }
 0x347   : > { %v2706_v0 = vpop.f32.mrf.mxu0  ;;  %v5542_v50 = vadd.f32 %v5541_v63, %v5187_v13  ;;  %v5219_v9 = vsel %vm13308_vm3, %v2971_v18, 0.0  ;;  %v5482_v19 = vadd.f32 %v5481_v31, %v5232_v1  ;;  %v5235_v18 = vsel %vm13313_vm5, %v2975_v43, 0.0  ;;  %v13316_v13 = vld [vmem:[#allocation9_spill] sm:$0xff] }
 0x348   : > { %v2979_v53 = vpop.f32.mrf.mxu1  ;;  %v5501_v34 = vadd.f32 %v5500_v11, %v5201_v40  ;;  %v5248_v37 = vsel %vm13312_vm12, %v2706_v0, 0.0  ;;  %vm13317_vm6 = vcmp.eq.s32.totalorder %v13316_v13, %v10210_v8  ;;  %vm13319_vm7 = vcmp.eq.s32.totalorder %v13316_v13, %v10213_v49 }
 0x349   : > { %3251 = vmatmul.mubr.bf16.gmra.mxu0 %v13299_v45  ;;  %3524 = vmatmul.mubr.bf16.gmra.mxu1 %v13299_v45  ;;  %v2708_v30 = vpop.f32.mrf.mxu0  ;;  %v5543_v58 = vadd.f32 %v5542_v50, %v5203_v57  ;;  %v5483_v63 = vadd.f32 %v5482_v19, %v5248_v37  ;;  %vm13321_vm9 = vcmp.eq.s32.totalorder %v13316_v13, %v10226_v15  ;;  %v13322_v57 = vld [vmem:[#allocation4_spill] sm:$0xff] }
 0x34a   : > { %3260 = vmatprep.mubr.bf16.mxu0 %v12704_v38  ;;  %3533 = vmatprep.mubr.bf16.mxu1 %v12704_v38  ;;  %v2981_v61 = vpop.f32.mrf.mxu1  ;;  %v5234_v38 = vsel %vm13309_vm8, %v2973_v54, 0.0  ;;  %v5502_v16 = vadd.f32 %v5501_v34, %v5217_v52  ;;  %v5250_v54 = vsel %vm13314_vm0, %v2979_v53, 0.0  ;;  %v5249_v12 = vsel %vm13315_vm15, %v2708_v30, 0.0 }
 0x34b   : > { %v2710_v42 = vpop.f32.mrf.mxu0  ;;  %v5544_v20 = vadd.f32 %v5543_v58, %v5219_v9  ;;  %v5524_v55 = vadd.f32 %v5523_v36, %v5234_v38  ;;  %v5251_v43 = vsel %vm13318_vm4, %v2981_v61, 0.0  ;;  %vm13323_vm13 = vcmp.eq.s32.totalorder %v13322_v57, %v10210_v8 }
 0x34c   : > { %v2983_v60 = vpop.f32.mrf.mxu1  ;;  %v5264_v3 = vsel %vm13317_vm6, %v2710_v42, 0.0  ;;  %v5503_v45 = vadd.f32 %v5502_v16, %v5233_v41  ;;  %vm12613_vm10 = vcmp.eq.s32.totalorder %v6740_v2, %v11211_v10  ;;  %vm12609_vm14 = vcmp.eq.s32.totalorder %v6740_v2, %v11214_v39  ;;  %v13328_v16 = vld [vmem:[#allocation5_spill] sm:$0xff] }
 0x34d   : > { %v2712_v4 = vpop.f32.mrf.mxu0  ;;  %v5266_v14 = vsel %vm13319_vm7, %v2983_v60, 0.0  ;;  %v5545_v53 = vadd.f32 %v5544_v20, %v5235_v18  ;;  %v5525_v11 = vadd.f32 %v5524_v55, %v5250_v54  ;;  %v5484_v46 = vadd.f32 %v5483_v63, %v5264_v3  ;;  %v13332_v3 = vld [vmem:[#allocation53_spill] sm:$0xff] }
 0x34e   : > { %v2985_v0 = vpop.f32.mrf.mxu1  ;;  %v5265_v17 = vsel %vm13321_vm9, %v2712_v4, 0.0  ;;  %v5504_v50 = vadd.f32 %v5503_v45, %v5249_v12  ;;  %vm13324_vm1 = vcmp.eq.s32.totalorder %v13316_v13, %v10229_v7  ;;  %vm13325_vm3 = vcmp.eq.s32.totalorder %v13322_v57, %v10213_v49  ;;  %v13331_v12 = vld [vmem:[#allocation3_spill] sm:$0xff] }
 0x34f   : > { %v2716_v40 = vpop.f32.mrf.mxu0  ;;  %v5267_v52 = vsel %vm13324_vm1, %v2985_v0, 0.0  ;;  %vm12606_vm8 = vcmp.eq.s32.totalorder %v6740_v2, %v11228_v32  ;;  %vm12614_vm2 = vcmp.eq.s32.totalorder %v6946_v27, %v11208_v56  ;;  %v5546_v34 = vadd.f32 %v5545_v53, %v5251_v43 }
 0x350   : > { %v5280_v5 = vsel %vm13323_vm13, %v2716_v40, 0.0  ;;  %v2989_v30 = vpop.f32.mrf.mxu1  ;;  %v5526_v31 = vadd.f32 %v5525_v11, %v5266_v14  ;;  %vm13326_vm12 = vcmp.eq.s32.totalorder %v13322_v57, %v10226_v15  ;;  %vm12612_vm5 = vcmp.eq.s32.totalorder %v6946_v27, %v11211_v10 }
 0x351   : > { %3261 = vmatmul.mubr.bf16.gmra.mxu0 %v13320_v35  ;;  %3534 = vmatmul.mubr.bf16.gmra.mxu1 %v13320_v35  ;;  %v5282_v1 = vsel %vm13325_vm3, %v2989_v30, 0.0  ;;  %v2718_v61 = vpop.f32.mrf.mxu0  ;;  %v5505_v42 = vadd.f32 %v5504_v50, %v5265_v17  ;;  %v5485_v58 = vadd.f32 %v5484_v46, %v5280_v5  ;;  %vm13327_vm0 = vcmp.eq.s32.totalorder %v13322_v57, %v10229_v7 }
 0x352   : > { %v5281_v9 = vsel %vm13326_vm12, %v2718_v61, 0.0  ;;  %v2991_v38 = vpop.f32.mrf.mxu1  ;;  %vm12608_vm15 = vcmp.eq.s32.totalorder %v6946_v27, %v11214_v39  ;;  %v5547_v37 = vadd.f32 %v5546_v34, %v5267_v52  ;;  %v5527_v60 = vadd.f32 %v5526_v31, %v5282_v1 }
 0x353   : > { %v5283_v36 = vsel %vm13327_vm0, %v2991_v38, 0.0  ;;  %v2720_v41 = vpop.f32.mrf.mxu0  ;;  %vm13329_vm6 = vcmp.eq.s32.totalorder %v13328_v16, %v10210_v8  ;;  %vm12603_vm4 = vcmp.eq.s32.totalorder %v6946_v27, %v11228_v32  ;;  %v5506_v54 = vadd.f32 %v5505_v42, %v5281_v9 }
 0x354   : > { %v5296_v19 = vsel %vm13329_vm6, %v2720_v41, 0.0  ;;  %v2993_v18 = vpop.f32.mrf.mxu1  ;;  %vm13330_vm7 = vcmp.eq.s32.totalorder %v13328_v16, %v10213_v49  ;;  %v5829_v0 = vrot.slane %v13332_v3, %v13331_v12  ;;  %v5548_v45 = vadd.f32 %v5547_v37, %v5283_v36 }
 0x355   : > { %v5486_v4 = vadd.f32 %v5485_v58, %v5296_v19  ;;  %v5298_v20 = vsel %vm13330_vm7, %v2993_v18, 0.0  ;;  %v2722_v55 = vpop.f32.mrf.mxu0  ;;  %vm13333_vm9 = vcmp.eq.s32.totalorder %v13328_v16, %v10226_v15  ;;  %vm12602_vm13 = vcmp.eq.s32.totalorder %v6920_v25, %v11208_v56 }
 0x356   : > { %v5528_v63 = vadd.f32 %v5527_v60, %v5298_v20  ;;  %v5297_v8 = vsel %vm13333_vm9, %v2722_v55, 0.0  ;;  %v2995_v43 = vpop.f32.mrf.mxu1  ;;  %vm13334_vm1 = vcmp.eq.s32.totalorder %v13328_v16, %v10229_v7  ;;  %vm12604_vm3 = vcmp.eq.s32.totalorder %v6920_v25, %v11211_v10 }
 0x357   : > { %v5487_v14 = vrot.slane %v5486_v4, 4  ;;  %v5507_v40 = vadd.f32 %v5506_v54, %v5297_v8  ;;  %v5299_v49 = vsel %vm13334_vm1, %v2995_v43, 0.0  ;;  %v3032_v35 = vpop.f32.mrf.mxu0  ;;  %v5723_v15 = vrot.slane %v11169_v28, %v13331_v12 }
 0x358   : > { %v5529_v53 = vrot.slane %v5528_v63, 4  ;;  %v5549_v11 = vadd.f32 %v5548_v45, %v5299_v49  ;;  %v3305_v17 = vpop.f32.mrf.mxu1  ;;  %vm12605_vm12 = vcmp.eq.s32.totalorder %v6920_v25, %v11214_v39  ;;  %v11511_v50 = vmul.f32 %v5829_v0, %v8730_v6 }
 0x359   : > { %v5488_v5 = vadd.f32 %v5487_v14, %v5486_v4  ;;  %v5508_v30 = vrot.slane %v5507_v40, 4  ;;  %v3034_v7 = vpop.f32.mrf.mxu0  ;;  %vm12607_vm0 = vcmp.eq.s32.totalorder %v6920_v25, %v11228_v32  ;;  %v3876_v1 = vsel %vm12615_vm11, %v3032_v35, 0.0 }
 0x35a   : > { %v5530_v46 = vadd.f32 %v5529_v53, %v5528_v63  ;;  %v5550_v52 = vrot.slane %v5549_v11, 4  ;;  %v3307_v61 = vpop.f32.mrf.mxu1  ;;  %vm12611_vm6 = vcmp.eq.s32.totalorder %v6923_v26, %v11208_v56  ;;  %vm12610_vm7 = vcmp.eq.s32.totalorder %v6923_v26, %v11211_v10 }
 0x35b   : > { %v5489_v34 = vrot.slane %v5488_v5, 2  ;;  %v5509_v31 = vadd.f32 %v5508_v30, %v5507_v40  ;;  %v3878_v9 = vsel %vm12613_vm10, %v3305_v17, 0.0  ;;  %v3877_v38 = vsel %vm12609_vm14, %v3034_v7, 0.0  ;;  %v3036_v42 = vpop.f32.mrf.mxu0 }
 0x35c   : > { %v5531_v58 = vrot.slane %v5530_v46, 2  ;;  %v5551_v36 = vadd.f32 %v5550_v52, %v5549_v11  ;;  %v3879_v41 = vsel %vm12606_vm8, %v3307_v61, 0.0  ;;  %v3892_v37 = vsel %vm12614_vm2, %v3036_v42, 0.0  ;;  %v3309_v60 = vpop.f32.mrf.mxu1 }
 0x35d   : > { %v5490_v19 = vadd.f32 %v5489_v34, %v5488_v5  ;;  %v5510_v18 = vrot.slane %v5509_v31, 2  ;;  %v4372_v54 = vadd.f32 %v3892_v37, %v3876_v1  ;;  %v3894_v4 = vsel %vm12612_vm5, %v3309_v60, 0.0  ;;  %v3038_v20 = vpop.f32.mrf.mxu0 }
 0x35e   : > { %v5532_v55 = vadd.f32 %v5531_v58, %v5530_v46  ;;  %v5552_v0 = vrot.slane %v5551_v36, 2  ;;  %v4414_v45 = vadd.f32 %v3894_v4, %v3878_v9  ;;  %v3893_v63 = vsel %vm12608_vm15, %v3038_v20, 0.0  ;;  %v3311_v8 = vpop.f32.mrf.mxu1  ;;  %v13335_v58 = vld [vmem:[#allocation45_spill] sm:$0xff]  ;;  %v13339_v20 = vld [vmem:[#allocation46_spill] sm:$0xff] }
 0x35f   : > { %v5491_v43 = vrot.slane %v5490_v19, 1  ;;  %v5511_v14 = vadd.f32 %v5510_v18, %v5509_v31  ;;  %v4393_v40 = vadd.f32 %v3893_v63, %v3877_v38  ;;  %v3895_v49 = vsel %vm12603_vm4, %v3311_v8, 0.0  ;;  %v3042_v35 = vpop.f32.mrf.mxu0  ;;  %v13337_v18 = vld [vmem:[#allocation6_spill] sm:$0xff] }
 0x360   : > { %v5533_v53 = vrot.slane %v5532_v55, 1  ;;  %v5553_v11 = vadd.f32 %v5552_v0, %v5551_v36  ;;  %v4435_v17 = vadd.f32 %v3895_v49, %v3879_v41  ;;  %v3908_v5 = vsel %vm12602_vm13, %v3042_v35, 0.0  ;;  %v3315_v30 = vpop.f32.mrf.mxu1 }
 0x361   : > { %vm3669_vm9 = vcmp.eq.s32.totalorder %v6923_v26, %v11214_v39  ;;  %v5492_v7 = vadd.f32 %v5491_v43, %v5490_v19  ;;  %v5512_v46 = vrot.slane %v5511_v14, 1  ;;  %v4373_v52 = vadd.f32 %v4372_v54, %v3908_v5  ;;  %v3044_v61 = vpop.f32.mrf.mxu0 }
 0x362   : > { %v3910_v1 = vsel %vm12604_vm3, %v3315_v30, 0.0  ;;  %vm3671_vm1 = vcmp.eq.s32.totalorder %v6923_v26, %v11228_v32  ;;  %v5534_v34 = vadd.f32 %v5533_v53, %v5532_v55  ;;  %v5554_v31 = vrot.slane %v5553_v11, 1  ;;  %v3317_v42 = vpop.f32.mrf.mxu1  ;;  %v13345_v30 = vld [vmem:[#allocation52_spill] sm:$0xff] }
 0x363   : > { %v4415_v9 = vadd.f32 %v4414_v45, %v3910_v1  ;;  %v3909_v38 = vsel %vm12605_vm12, %v3044_v61, 0.0  ;;  %vm3684_vm13 = vcmp.eq.s32.totalorder %v6894_v23, %v11208_v56  ;;  %vm13336_vm4 = vcmask 1041408   ;;  %v3046_v19 = vpop.f32.mrf.mxu0  ;;  %v13346_v1 = vld [vmem:[#allocation48_spill] sm:$0xff] }
 0x364   : > { %v5666_v36 = vsel %vm13336_vm4, %v13335_v58, %v5492_v7  ;;  %v5513_v41 = vadd.f32 %v5512_v46, %v5511_v14  ;;  %v4394_v37 = vadd.f32 %v4393_v40, %v3909_v38  ;;  %v3911_v60 = vsel %vm12607_vm0, %v3317_v42, 0.0  ;;  %vm13340_vm8 = vmmov %vm13336_vm4  ;;  %v3319_v63 = vpop.f32.mrf.mxu1  ;;  %v13342_v14 = vld [vmem:[#allocation47_spill] sm:$0xff]  ;;  %v13347_v58 = vld [vmem:[#allocation18_spill] sm:$0xff] }
 0x365   : > { %vm3686_vm3 = vcmp.eq.s32.totalorder %v6894_v23, %v11211_v10  ;;  %vm3685_vm12 = vcmp.eq.s32.totalorder %v6894_v23, %v11214_v39  ;;  %v13338_v54 = vrot.slane %v11169_v28, %v13337_v18  ;;  %v5668_v55 = vsel %vm13340_vm8, %v13339_v20, %v5534_v34  ;;  %vm13343_vm0 = vmmov %vm13340_vm8  ;;  %v3048_v53 = vpop.f32.mrf.mxu0 }
 0x366   : > { %v5555_v0 = vadd.f32 %v5554_v31, %v5553_v11  ;;  %v4436_v45 = vadd.f32 %v4435_v17, %v3911_v60  ;;  %vm3687_vm4 = vcmp.eq.s32.totalorder %v6894_v23, %v11228_v32  ;;  %v13341_v8 = vrot.slane %v11169_v28, %v13263_v44  ;;  %v3321_v46 = vpop.f32.mrf.mxu1 }
 0x367   : > { %v5764_v4 = vmul.f32 %v13338_v54, %v5666_v36  ;;  %v5667_v40 = vsel %vm13343_vm0, %v13342_v14, %v5513_v41  ;;  %v3924_v49 = vsel %vm12611_vm6, %v3046_v19, 0.0  ;;  %v3926_v35 = vsel %vm12610_vm7, %v3319_v63, 0.0  ;;  %v3052_v38 = vpop.f32.mrf.mxu0 }
 0x368   : > { %v5766_v43 = vmul.f32 %v13341_v8, %v5668_v55  ;;  %vm3700_vm8 = vcmp.eq.s32.totalorder %v6897_v24, %v11208_v56  ;;  %vm3702_vm15 = vcmp.eq.s32.totalorder %v6897_v24, %v11211_v10  ;;  %vm3701_vm14 = vcmp.eq.s32.totalorder %v6897_v24, %v11214_v39  ;;  %v3325_v60 = vpop.f32.mrf.mxu1 }
 0x369   : > { %v5886_v44 = vadd.f32 %v11223_v33, %v5764_v4  ;;  %v5934_v11 = vmax.f32 %v5764_v4, 0.0  ;;  %v13344_v17 = vrot.slane %v11169_v28, %v13264_v59  ;;  %v5669_v7 = vsel %vm13343_vm0, %v13345_v30, %v5555_v0  ;;  %v3054_v19 = vpop.f32.mrf.mxu0 }
 0x36a   : > { %vm3703_vm7 = vcmp.eq.s32.totalorder %v6897_v24, %v11228_v32  ;;  %v5888_v61 = vadd.f32 %v13346_v1, %v5766_v43  ;;  %v5936_v34 = vmax.f32 %v5766_v43, 0.0  ;;  %v5767_v31 = vmul.f32 %v5723_v15, %v5669_v7  ;;  %v3327_v55 = vpop.f32.mrf.mxu1 }
 0x36b   : > { %v5765_v5 = vmul.f32 %v13344_v17, %v5667_v40  ;;  %v4374_v33 = vadd.f32 %v4373_v52, %v3924_v49  ;;  %vm12616_vm6 = vcmp.eq.s32.totalorder %v6868_v21, %v11208_v56  ;;  %vm12617_vm5 = vcmp.eq.s32.totalorder %v6868_v21, %v11211_v10  ;;  %v3056_v43 = vpop.f32.mrf.mxu0 }
 0x36c   : > { %vm12618_vm0 = vcmp.eq.s32.totalorder %v6868_v21, %v11214_v39  ;;  %v5902_v59 = vmax.f32 %v5886_v44, 0.0  ;;  %v5950_v42 = vmin.f32 %v5934_v11, 1.0  ;;  %vm3719_vm10 = vcmp.eq.s32.totalorder %v6868_v21, %v11228_v32 }
 0x36d   : > { %v5887_v36 = vadd.f32 %v13347_v58, %v5765_v5  ;;  %v5935_v41 = vmax.f32 %v5765_v5, 0.0  ;;  %v5904_v28 = vmax.f32 %v5888_v61, 0.0  ;;  %v5952_v12 = vmin.f32 %v5936_v34, 1.0  ;;  %v3058_v5 = vpop.f32.mrf.mxu0 }
 0x36e   : > { %v5889_v15 = vadd.f32 %v11511_v50, %v5767_v31  ;;  %v5937_v52 = vmax.f32 %v5767_v31, 0.0  ;;  %v5918_v18 = vmin.f32 %v5902_v59, 1.0  ;;  %v4416_v20 = vadd.f32 %v4415_v9, %v3926_v35  ;;  %v3329_v35 = vpop.f32.mrf.mxu1 }
 0x36f   : > { %v5903_v54 = vmax.f32 %v5887_v36, 0.0  ;;  %v5951_v4 = vmin.f32 %v5935_v41, 1.0  ;;  %vm12619_vm11 = vcmp.eq.s32.totalorder %v6871_v22, %v11211_v10  ;;  %v5920_v0 = vmin.f32 %v5904_v28, 1.0 }
 0x370   : > { %v5905_v63 = vmax.f32 %v5889_v15, 0.0  ;;  %v5953_v8 = vmin.f32 %v5937_v52, 1.0  ;;  %v3925_v50 = vsel %vm3669_vm9, %v3048_v53, 0.0  ;;  %vm12620_vm2 = vcmp.eq.s32.totalorder %v6871_v22, %v11214_v39  ;;  %v3331_v1 = vpop.f32.mrf.mxu1 }
 0x371   : > { %v5919_v14 = vmin.f32 %v5903_v54, 1.0  ;;  %v6018_v40 = vcombine.low %v5950_v42, %v5951_v4  ;;  %v4395_v9 = vadd.f32 %v4394_v37, %v3925_v50  ;;  %v3927_v49 = vsel %vm3671_vm1, %v3321_v46, 0.0 }
 0x372   : > { %v5921_v44 = vmin.f32 %v5905_v63, 1.0  ;;  %v6019_v11 = vcombine.low %v5952_v12, %v5953_v8  ;;  %v4437_v17 = vadd.f32 %v4436_v45, %v3927_v49  ;;  %v3940_v53 = vsel %vm3684_vm13, %v3052_v38, 0.0  ;;  %v3062_v38 = vpop.f32.mrf.mxu0  ;;  %v3335_v36 = vpop.f32.mrf.mxu1 }
 0x373   : > { %v5978_v30 = vcombine.low %v5918_v18, %v5919_v14  ;;  %6034 = vst [vmem:[%s9548_s28 + $0x20] sm:$0x77] %v6018_v40  ;;  %v4375_v7 = vadd.f32 %v4374_v33, %v3940_v53  ;;  %v3942_v37 = vsel %vm3686_vm3, %v3325_v60, 0.0  ;;  %v3941_v46 = vsel %vm3685_vm12, %v3054_v19, 0.0 }
 0x374   : > { %v5979_v61 = vcombine.low %v5920_v0, %v5921_v44  ;;  %6035 = vst [vmem:[%s9548_s28 + $0x28] sm:$0x77] %v6019_v11  ;;  %v4417_v45 = vadd.f32 %v4416_v20, %v3942_v37  ;;  %v4396_v34 = vadd.f32 %v4395_v9, %v3941_v46  ;;  %v3943_v31 = vsel %vm3687_vm4, %v3327_v55, 0.0  ;;  %v3064_v15 = vpop.f32.mrf.mxu0  ;;  %v3337_v4 = vpop.f32.mrf.mxu1 }
 0x375   : > { %5994 = vst [vmem:[%s9652_s7 + $0x20] sm:$0x77] %v5978_v30  ;;  %v4438_v33 = vadd.f32 %v4437_v17, %v3943_v31  ;;  %v3956_v59 = vsel %vm3700_vm8, %v3056_v43, 0.0  ;;  %v3958_v42 = vsel %vm3702_vm15, %v3329_v35, 0.0  ;;  %v3957_v58 = vsel %vm3701_vm14, %v3058_v5, 0.0 }
 0x376   : > { %5995 = vst [vmem:[%s9652_s7 + $0x28] sm:$0x77] %v5979_v61  ;;  %v4376_v41 = vadd.f32 %v4375_v7, %v3956_v59  ;;  %v4418_v60 = vadd.f32 %v4417_v45, %v3958_v42  ;;  %v4397_v28 = vadd.f32 %v4396_v34, %v3957_v58  ;;  %v3959_v12 = vsel %vm3703_vm7, %v3331_v1, 0.0  ;;  %v3066_v8 = vpop.f32.mrf.mxu0  ;;  %v3339_v14 = vpop.f32.mrf.mxu1 }
 0x377   : > { %v4439_v52 = vadd.f32 %v4438_v33, %v3959_v12  ;;  %v3972_v19 = vsel %vm12616_vm6, %v3062_v38, 0.0  ;;  %v3974_v18 = vsel %vm12617_vm5, %v3335_v36, 0.0  ;;  %v3973_v54 = vsel %vm12618_vm0, %v3064_v15, 0.0 }
 0x378   : > { %v4377_v20 = vadd.f32 %v4376_v41, %v3972_v19  ;;  %v4419_v55 = vadd.f32 %v4418_v60, %v3974_v18  ;;  %v4398_v0 = vadd.f32 %v4397_v28, %v3973_v54  ;;  %v3975_v63 = vsel %vm3719_vm10, %v3337_v4, 0.0  ;;  %v3068_v49 = vpop.f32.mrf.mxu0  ;;  %v3341_v11 = vpop.f32.mrf.mxu1 }
 0x379   : > { %v4440_v50 = vadd.f32 %v4439_v52, %v3975_v63  ;;  %vm13348_vm6 = vcmp.eq.s32.totalorder %v6871_v22, %v11208_v56  ;;  %vm12621_vm5 = vcmp.eq.s32.totalorder %v6871_v22, %v11228_v32  ;;  %v3990_v9 = vsel %vm12619_vm11, %v3339_v14, 0.0 }
 0x37a   : > { %v3988_v43 = vsel %vm13348_vm6, %v3066_v8, 0.0  ;;  %vm12622_vm0 = vcmp.eq.s32.totalorder %v13290_v47, %v11208_v56  ;;  %v4420_v35 = vadd.f32 %v4419_v55, %v3990_v9  ;;  %v3989_v44 = vsel %vm12620_vm2, %v3068_v49, 0.0  ;;  %v3072_v5 = vpop.f32.mrf.mxu0  ;;  %v3345_v37 = vpop.f32.mrf.mxu1 }
 0x37b   : > { %v4378_v40 = vadd.f32 %v4377_v20, %v3988_v43  ;;  %vm12623_vm6 = vcmp.eq.s32.totalorder %v13290_v47, %v11211_v10  ;;  %v4399_v17 = vadd.f32 %v4398_v0, %v3989_v44  ;;  %v3991_v53 = vsel %vm12621_vm5, %v3341_v11, 0.0 }
 0x37c   : > { %vm12624_vm11 = vcmp.eq.s32.totalorder %v13290_v47, %v11214_v39  ;;  %v4441_v30 = vadd.f32 %v4440_v50, %v3991_v53  ;;  %v4004_v7 = vsel %vm12622_vm0, %v3072_v5, 0.0  ;;  %vm12625_vm2 = vcmp.eq.s32.totalorder %v13290_v47, %v11228_v32  ;;  %v3074_v61 = vpop.f32.mrf.mxu0  ;;  %v3347_v31 = vpop.f32.mrf.mxu1 }
 0x37d   : > { %v4379_v46 = vadd.f32 %v4378_v40, %v4004_v7  ;;  %v4006_v1 = vsel %vm12623_vm6, %v3345_v37, 0.0  ;;  %vm12626_vm5 = vcmp.eq.s32.totalorder %v13295_v29, %v11208_v56  ;;  %v4005_v34 = vsel %vm12624_vm11, %v3074_v61, 0.0 }
 0x37e   : > { %v4421_v45 = vadd.f32 %v4420_v35, %v4006_v1  ;;  %vm12627_vm0 = vcmp.eq.s32.totalorder %v13295_v29, %v11211_v10  ;;  %v4400_v38 = vadd.f32 %v4399_v17, %v4005_v34  ;;  %v4007_v33 = vsel %vm12625_vm2, %v3347_v31, 0.0  ;;  %v3076_v59 = vpop.f32.mrf.mxu0  ;;  %v3349_v36 = vpop.f32.mrf.mxu1 }
 0x37f   : > { %vm12628_vm6 = vcmp.eq.s32.totalorder %v13295_v29, %v11214_v39  ;;  %v4442_v42 = vadd.f32 %v4441_v30, %v4007_v33  ;;  %v4020_v58 = vsel %vm12626_vm5, %v3076_v59, 0.0  ;;  %vm12629_vm11 = vcmp.eq.s32.totalorder %v13295_v29, %v11228_v32 }
 0x380   : > { %v4380_v41 = vadd.f32 %v4379_v46, %v4020_v58  ;;  %v4022_v60 = vsel %vm12627_vm0, %v3349_v36, 0.0  ;;  %v3078_v28 = vpop.f32.mrf.mxu0  ;;  %vm12630_vm2 = vcmp.eq.s32.totalorder %v13301_v51, %v11208_v56  ;;  %v3351_v52 = vpop.f32.mrf.mxu1  ;;  %vm12631_vm5 = vcmp.eq.s32.totalorder %v13301_v51, %v11211_v10 }
 0x381   : > { %v4422_v12 = vadd.f32 %v4421_v45, %v4022_v60  ;;  %v4021_v15 = vsel %vm12628_vm6, %v3078_v28, 0.0  ;;  %v4023_v18 = vsel %vm12629_vm11, %v3351_v52, 0.0  ;;  %vm12632_vm0 = vcmp.eq.s32.totalorder %v13301_v51, %v11214_v39 }
 0x382   : > { %v4401_v19 = vadd.f32 %v4400_v38, %v4021_v15  ;;  %v3082_v54 = vpop.f32.mrf.mxu0  ;;  %v4443_v4 = vadd.f32 %v4442_v42, %v4023_v18  ;;  %v3355_v55 = vpop.f32.mrf.mxu1  ;;  %vm12633_vm6 = vcmp.eq.s32.totalorder %v13301_v51, %v11228_v32  ;;  %vm12634_vm11 = vcmp.eq.s32.totalorder %v13306_v48, %v11208_v56 }
 0x383   : > { %v4036_v20 = vsel %vm12630_vm2, %v3082_v54, 0.0  ;;  %v4038_v63 = vsel %vm12631_vm5, %v3355_v55, 0.0  ;;  %vm12635_vm2 = vcmp.eq.s32.totalorder %v13306_v48, %v11211_v10  ;;  %vm12636_vm5 = vcmp.eq.s32.totalorder %v13306_v48, %v11214_v39 }
 0x384   : > { %v4381_v0 = vadd.f32 %v4380_v41, %v4036_v20  ;;  %v3084_v8 = vpop.f32.mrf.mxu0  ;;  %v4423_v50 = vadd.f32 %v4422_v12, %v4038_v63  ;;  %v3357_v14 = vpop.f32.mrf.mxu1 }
 0x385   : > { %v4037_v43 = vsel %vm12632_vm0, %v3084_v8, 0.0  ;;  %v4039_v9 = vsel %vm12633_vm6, %v3357_v14, 0.0  ;;  %vm12637_vm0 = vcmp.eq.s32.totalorder %v13306_v48, %v11228_v32  ;;  %vm12638_vm6 = vcmp.eq.s32.totalorder %v13311_v62, %v11208_v56 }
 0x386   : > { %v4402_v40 = vadd.f32 %v4401_v19, %v4037_v43  ;;  %v3086_v49 = vpop.f32.mrf.mxu0  ;;  %v4444_v35 = vadd.f32 %v4443_v4, %v4039_v9  ;;  %v3359_v11 = vpop.f32.mrf.mxu1 }
 0x387   : > { %v4052_v44 = vsel %vm12634_vm11, %v3086_v49, 0.0  ;;  %v4054_v53 = vsel %vm12635_vm2, %v3359_v11, 0.0  ;;  %vm12639_vm11 = vcmp.eq.s32.totalorder %v13311_v62, %v11211_v10  ;;  %vm12640_vm2 = vcmp.eq.s32.totalorder %v13311_v62, %v11214_v39 }
 0x388   : > { %v4382_v17 = vadd.f32 %v4381_v0, %v4052_v44  ;;  %v3088_v5 = vpop.f32.mrf.mxu0  ;;  %v4424_v30 = vadd.f32 %v4423_v50, %v4054_v53  ;;  %v3361_v37 = vpop.f32.mrf.mxu1 }
 0x389   : > { %v4053_v7 = vsel %vm12636_vm5, %v3088_v5, 0.0  ;;  %v4055_v1 = vsel %vm12637_vm0, %v3361_v37, 0.0  ;;  %vm12641_vm5 = vcmp.eq.s32.totalorder %v13311_v62, %v11228_v32  ;;  %vm12642_vm0 = vcmp.eq.s32.totalorder %v13316_v13, %v11208_v56 }
 0x38a   : > { %v4403_v46 = vadd.f32 %v4402_v40, %v4053_v7  ;;  %v3092_v61 = vpop.f32.mrf.mxu0  ;;  %v4445_v45 = vadd.f32 %v4444_v35, %v4055_v1  ;;  %v3365_v31 = vpop.f32.mrf.mxu1 }
 0x38b   : > { %v4068_v34 = vsel %vm12638_vm6, %v3092_v61, 0.0  ;;  %v4070_v33 = vsel %vm12639_vm11, %v3365_v31, 0.0  ;;  %vm12643_vm6 = vcmp.eq.s32.totalorder %v13316_v13, %v11211_v10  ;;  %vm12644_vm11 = vcmp.eq.s32.totalorder %v13316_v13, %v11214_v39 }
 0x38c   : > { %v4383_v38 = vadd.f32 %v4382_v17, %v4068_v34  ;;  %v3094_v59 = vpop.f32.mrf.mxu0  ;;  %v4425_v42 = vadd.f32 %v4424_v30, %v4070_v33  ;;  %v3367_v36 = vpop.f32.mrf.mxu1 }
 0x38d   : > { %v4069_v58 = vsel %vm12640_vm2, %v3094_v59, 0.0  ;;  %v4071_v60 = vsel %vm12641_vm5, %v3367_v36, 0.0  ;;  %vm12645_vm2 = vcmp.eq.s32.totalorder %v13316_v13, %v11228_v32  ;;  %vm12646_vm5 = vcmp.eq.s32.totalorder %v13322_v57, %v11208_v56 }
 0x38e   : > { %v4404_v41 = vadd.f32 %v4403_v46, %v4069_v58  ;;  %v3096_v28 = vpop.f32.mrf.mxu0  ;;  %v4446_v12 = vadd.f32 %v4445_v45, %v4071_v60  ;;  %v3369_v52 = vpop.f32.mrf.mxu1 }
 0x38f   : > { %v4084_v15 = vsel %vm12642_vm0, %v3096_v28, 0.0  ;;  %v4086_v18 = vsel %vm12643_vm6, %v3369_v52, 0.0  ;;  %vm12647_vm0 = vcmp.eq.s32.totalorder %v13322_v57, %v11211_v10  ;;  %vm12648_vm6 = vcmp.eq.s32.totalorder %v13322_v57, %v11214_v39 }
 0x390   : > { %v4384_v19 = vadd.f32 %v4383_v38, %v4084_v15  ;;  %v3098_v54 = vpop.f32.mrf.mxu0  ;;  %v4426_v4 = vadd.f32 %v4425_v42, %v4086_v18  ;;  %v3371_v55 = vpop.f32.mrf.mxu1 }
 0x391   : > { %v4085_v20 = vsel %vm12644_vm11, %v3098_v54, 0.0  ;;  %v4087_v63 = vsel %vm12645_vm2, %v3371_v55, 0.0  ;;  %vm12653_vm11 = vcmp.eq.s32.totalorder %v13322_v57, %v11228_v32  ;;  %vm12651_vm2 = vcmp.eq.s32.totalorder %v13328_v16, %v11208_v56 }
 0x392   : > { %v4405_v0 = vadd.f32 %v4404_v41, %v4085_v20  ;;  %v3102_v8 = vpop.f32.mrf.mxu0  ;;  %v4447_v50 = vadd.f32 %v4446_v12, %v4087_v63  ;;  %v3375_v14 = vpop.f32.mrf.mxu1 }
 0x393   : > { %v4100_v43 = vsel %vm12646_vm5, %v3102_v8, 0.0  ;;  %v4102_v9 = vsel %vm12647_vm0, %v3375_v14, 0.0  ;;  %vm12649_vm5 = vcmp.eq.s32.totalorder %v13328_v16, %v11211_v10  ;;  %vm12650_vm0 = vcmp.eq.s32.totalorder %v13328_v16, %v11214_v39 }
 0x394   : > { %v4385_v40 = vadd.f32 %v4384_v19, %v4100_v43  ;;  %v3104_v49 = vpop.f32.mrf.mxu0  ;;  %v4427_v35 = vadd.f32 %v4426_v4, %v4102_v9  ;;  %v3377_v11 = vpop.f32.mrf.mxu1 }
 0x395   : > { %v4101_v44 = vsel %vm12648_vm6, %v3104_v49, 0.0  ;;  %v4103_v53 = vsel %vm12653_vm11, %v3377_v11, 0.0  ;;  %vm12652_vm6 = vcmp.eq.s32.totalorder %v13328_v16, %v11228_v32  ;;  %vm13353_vm11 = vcmp.eq.s32.totalorder %v6740_v2, %v11214_v39 }
 0x396   : > { %v4406_v17 = vadd.f32 %v4405_v0, %v4101_v44  ;;  %v3106_v5 = vpop.f32.mrf.mxu0  ;;  %v4448_v30 = vadd.f32 %v4447_v50, %v4103_v53  ;;  %v3379_v37 = vpop.f32.mrf.mxu1 }
 0x397   : > { %v4116_v7 = vsel %vm12651_vm2, %v3106_v5, 0.0  ;;  %v4118_v1 = vsel %vm12649_vm5, %v3379_v37, 0.0  ;;  %vm13349_vm5 = vcmp.eq.s32.totalorder %v6740_v2, %v11208_v56  ;;  %vm13351_vm2 = vcmp.eq.s32.totalorder %v6740_v2, %v11211_v10 }
 0x398   : > { %v11830_v46 = vadd.f32 %v4385_v40, %v4116_v7  ;;  %v3108_v61 = vpop.f32.mrf.mxu0  ;;  %v11835_v45 = vadd.f32 %v4427_v35, %v4118_v1  ;;  %v3381_v31 = vpop.f32.mrf.mxu1 }
 0x399   : > { %v4117_v34 = vsel %vm12650_vm0, %v3108_v61, 0.0  ;;  %v4119_v33 = vsel %vm12652_vm6, %v3381_v31, 0.0  ;;  %vm13350_vm0 = vcmp.eq.s32.totalorder %v6946_v27, %v11208_v56  ;;  %vm13352_vm6 = vcmp.eq.s32.totalorder %v6946_v27, %v11211_v10 }
 0x39a   : > { %v11840_v38 = vadd.f32 %v4406_v17, %v4117_v34  ;;  %v3112_v59 = vpop.f32.mrf.mxu0  ;;  %v11845_v42 = vadd.f32 %v4448_v30, %v4119_v33  ;;  %v3385_v58 = vpop.f32.mrf.mxu1 }
 0x39b   : > { %v4468_v28 = vsel %vm13349_vm5, %v3112_v59, 0.0  ;;  %v4470_v52 = vsel %vm13351_vm2, %v3385_v58, 0.0  ;;  %vm13354_vm5 = vcmp.eq.s32.totalorder %v6946_v27, %v11214_v39  ;;  %vm13356_vm2 = vcmp.eq.s32.totalorder %v6946_v27, %v11228_v32 }
 0x39c   : > { %v3114_v36 = vpop.f32.mrf.mxu0  ;;  %v3387_v41 = vpop.f32.mrf.mxu1 }
 0x39d   : > { %v4469_v4 = vsel %vm13353_vm11, %v3114_v36, 0.0  ;;  %vm13357_vm11 = vcmp.eq.s32.totalorder %v6920_v25, %v11208_v56 }
 0x39e   : > { %v3116_v60 = vpop.f32.mrf.mxu0  ;;  %v3389_v15 = vpop.f32.mrf.mxu1 }
 0x39f   : > { %v4484_v12 = vsel %vm13350_vm0, %v3116_v60, 0.0  ;;  %v4486_v18 = vsel %vm13352_vm6, %v3389_v15, 0.0  ;;  %vm13355_vm0 = vcmp.eq.s32.totalorder %v6740_v2, %v11228_v32  ;;  %vm13358_vm6 = vcmp.eq.s32.totalorder %v6920_v25, %v11211_v10 }
 0x3a0   : > { %v4964_v19 = vadd.f32 %v4484_v12, %v4468_v28  ;;  %v3118_v54 = vpop.f32.mrf.mxu0  ;;  %v5006_v20 = vadd.f32 %v4486_v18, %v4470_v52  ;;  %v3391_v0 = vpop.f32.mrf.mxu1  ;;  %v4471_v63 = vsel %vm13355_vm0, %v3387_v41, 0.0  ;;  %vm13360_vm0 = vcmp.eq.s32.totalorder %v6920_v25, %v11228_v32 }
 0x3a1   : > { %v4485_v55 = vsel %vm13354_vm5, %v3118_v54, 0.0  ;;  %v4487_v50 = vsel %vm13356_vm2, %v3391_v0, 0.0  ;;  %vm13359_vm5 = vcmp.eq.s32.totalorder %v6920_v25, %v11214_v39  ;;  %vm13361_vm2 = vcmp.eq.s32.totalorder %v6923_v26, %v11208_v56 }
 0x3a2   : > { %v4985_v8 = vadd.f32 %v4485_v55, %v4469_v4  ;;  %v3122_v43 = vpop.f32.mrf.mxu0  ;;  %v5027_v14 = vadd.f32 %v4487_v50, %v4471_v63  ;;  %v3395_v9 = vpop.f32.mrf.mxu1 }
 0x3a3   : > { %v4500_v40 = vsel %vm13357_vm11, %v3122_v43, 0.0  ;;  %v4502_v35 = vsel %vm13358_vm6, %v3395_v9, 0.0  ;;  %vm13362_vm11 = vcmp.eq.s32.totalorder %v6923_v26, %v11211_v10  ;;  %vm13363_vm6 = vcmp.eq.s32.totalorder %v6868_v21, %v11208_v56 }
 0x3a4   : > { %v4965_v49 = vadd.f32 %v4964_v19, %v4500_v40  ;;  %v3124_v44 = vpop.f32.mrf.mxu0  ;;  %v5007_v11 = vadd.f32 %v5006_v20, %v4502_v35  ;;  %v3397_v53 = vpop.f32.mrf.mxu1 }
 0x3a5   : > { %v4501_v17 = vsel %vm13359_vm5, %v3124_v44, 0.0  ;;  %v4503_v30 = vsel %vm13360_vm0, %v3397_v53, 0.0  ;;  %vm13364_vm5 = vcmp.eq.s32.totalorder %v6868_v21, %v11211_v10  ;;  %vm13365_vm0 = vcmp.eq.s32.totalorder %v6868_v21, %v11214_v39 }
 0x3a6   : > { %v4986_v5 = vadd.f32 %v4985_v8, %v4501_v17  ;;  %v3126_v7 = vpop.f32.mrf.mxu0  ;;  %v5028_v37 = vadd.f32 %v5027_v14, %v4503_v30  ;;  %v3399_v61 = vpop.f32.mrf.mxu1 }
 0x3a7   : > { %v4516_v1 = vsel %vm13361_vm2, %v3126_v7, 0.0  ;;  %v4518_v31 = vsel %vm13362_vm11, %v3399_v61, 0.0  ;;  %vm13366_vm2 = vcmp.eq.s32.totalorder %v6871_v22, %v11208_v56  ;;  %vm13367_vm11 = vcmp.eq.s32.totalorder %v6871_v22, %v11211_v10 }
 0x3a8   : > { %v4966_v34 = vadd.f32 %v4965_v49, %v4516_v1  ;;  %v3128_v33 = vpop.f32.mrf.mxu0  ;;  %v5008_v59 = vadd.f32 %v5007_v11, %v4518_v31  ;;  %v3401_v36 = vpop.f32.mrf.mxu1 }
 0x3a9   : > { %v4517_v58 = vsel %vm3669_vm9, %v3128_v33, 0.0  ;;  %v4519_v60 = vsel %vm3671_vm1, %v3401_v36, 0.0 }
 0x3aa   : > { %v4987_v41 = vadd.f32 %v4986_v5, %v4517_v58  ;;  %v3132_v28 = vpop.f32.mrf.mxu0  ;;  %v5029_v12 = vadd.f32 %v5028_v37, %v4519_v60  ;;  %v3405_v52 = vpop.f32.mrf.mxu1 }
 0x3ab   : > { %v4532_v15 = vsel %vm3684_vm13, %v3132_v28, 0.0  ;;  %v4534_v18 = vsel %vm3686_vm3, %v3405_v52, 0.0 }
 0x3ac   : > { %v4967_v19 = vadd.f32 %v4966_v34, %v4532_v15  ;;  %v3134_v54 = vpop.f32.mrf.mxu0  ;;  %v5009_v4 = vadd.f32 %v5008_v59, %v4534_v18  ;;  %v3407_v55 = vpop.f32.mrf.mxu1 }
 0x3ad   : > { %v4533_v20 = vsel %vm3685_vm12, %v3134_v54, 0.0  ;;  %v4535_v63 = vsel %vm3687_vm4, %v3407_v55, 0.0 }
 0x3ae   : > { %v4988_v0 = vadd.f32 %v4987_v41, %v4533_v20  ;;  %v3136_v8 = vpop.f32.mrf.mxu0  ;;  %v5030_v50 = vadd.f32 %v5029_v12, %v4535_v63  ;;  %v3409_v14 = vpop.f32.mrf.mxu1 }
 0x3af   : > { %v4548_v43 = vsel %vm3700_vm8, %v3136_v8, 0.0  ;;  %v4550_v9 = vsel %vm3702_vm15, %v3409_v14, 0.0 }
 0x3b0   : > { %v4968_v40 = vadd.f32 %v4967_v19, %v4548_v43  ;;  %v3138_v49 = vpop.f32.mrf.mxu0  ;;  %v5010_v35 = vadd.f32 %v5009_v4, %v4550_v9  ;;  %v3411_v11 = vpop.f32.mrf.mxu1 }
 0x3b1   : > { %v4549_v44 = vsel %vm3701_vm14, %v3138_v49, 0.0  ;;  %v4551_v53 = vsel %vm3703_vm7, %v3411_v11, 0.0 }
 0x3b2   : > { %v4989_v17 = vadd.f32 %v4988_v0, %v4549_v44  ;;  %v3142_v5 = vpop.f32.mrf.mxu0  ;;  %v5031_v30 = vadd.f32 %v5030_v50, %v4551_v53  ;;  %v3415_v37 = vpop.f32.mrf.mxu1 }
 0x3b3   : > { %v4564_v7 = vsel %vm13363_vm6, %v3142_v5, 0.0  ;;  %v4566_v61 = vsel %vm13364_vm5, %v3415_v37, 0.0  ;;  %vm13368_vm6 = vcmp.eq.s32.totalorder %v6871_v22, %v11214_v39  ;;  %vm13369_vm5 = vcmp.eq.s32.totalorder %v6871_v22, %v11228_v32 }
 0x3b4   : > { %v4969_v1 = vadd.f32 %v4968_v40, %v4564_v7  ;;  %v3144_v34 = vpop.f32.mrf.mxu0  ;;  %v5011_v31 = vadd.f32 %v5010_v35, %v4566_v61  ;;  %v3417_v59 = vpop.f32.mrf.mxu1 }
 0x3b5   : > { %v4565_v33 = vsel %vm13365_vm0, %v3144_v34, 0.0  ;;  %v4567_v36 = vsel %vm3719_vm10, %v3417_v59, 0.0  ;;  %vm13370_vm0 = vcmp.eq.s32.totalorder %v13290_v47, %v11208_v56 }
 0x3b6   : > { %v4990_v58 = vadd.f32 %v4989_v17, %v4565_v33  ;;  %v3146_v41 = vpop.f32.mrf.mxu0  ;;  %v5032_v60 = vadd.f32 %v5031_v30, %v4567_v36  ;;  %v3419_v12 = vpop.f32.mrf.mxu1 }
 0x3b7   : > { %v4580_v28 = vsel %vm13366_vm2, %v3146_v41, 0.0  ;;  %v4582_v52 = vsel %vm13367_vm11, %v3419_v12, 0.0  ;;  %vm13371_vm2 = vcmp.eq.s32.totalorder %v13290_v47, %v11211_v10  ;;  %vm13372_vm11 = vcmp.eq.s32.totalorder %v13290_v47, %v11214_v39 }
 0x3b8   : > { %v4970_v15 = vadd.f32 %v4969_v1, %v4580_v28  ;;  %v3148_v19 = vpop.f32.mrf.mxu0  ;;  %v5012_v18 = vadd.f32 %v5011_v31, %v4582_v52  ;;  %v3421_v4 = vpop.f32.mrf.mxu1 }
 0x3b9   : > { %v4581_v54 = vsel %vm13368_vm6, %v3148_v19, 0.0  ;;  %v4583_v55 = vsel %vm13369_vm5, %v3421_v4, 0.0  ;;  %vm13373_vm6 = vcmp.eq.s32.totalorder %v13290_v47, %v11228_v32  ;;  %vm13374_vm5 = vcmp.eq.s32.totalorder %v13295_v29, %v11208_v56 }
 0x3ba   : > { %v4991_v20 = vadd.f32 %v4990_v58, %v4581_v54  ;;  %v3152_v0 = vpop.f32.mrf.mxu0  ;;  %v5033_v63 = vadd.f32 %v5032_v60, %v4583_v55  ;;  %v3425_v50 = vpop.f32.mrf.mxu1 }
 0x3bb   : > { %v4596_v8 = vsel %vm13370_vm0, %v3152_v0, 0.0  ;;  %v4598_v14 = vsel %vm13371_vm2, %v3425_v50, 0.0  ;;  %vm13375_vm0 = vcmp.eq.s32.totalorder %v13295_v29, %v11211_v10  ;;  %vm13376_vm2 = vcmp.eq.s32.totalorder %v13295_v29, %v11214_v39 }
 0x3bc   : > { %v4971_v43 = vadd.f32 %v4970_v15, %v4596_v8  ;;  %v3154_v40 = vpop.f32.mrf.mxu0  ;;  %v5013_v9 = vadd.f32 %v5012_v18, %v4598_v14  ;;  %v3427_v35 = vpop.f32.mrf.mxu1 }
 0x3bd   : > { %v4597_v49 = vsel %vm13372_vm11, %v3154_v40, 0.0  ;;  %v4599_v11 = vsel %vm13373_vm6, %v3427_v35, 0.0  ;;  %vm13377_vm11 = vcmp.eq.s32.totalorder %v13295_v29, %v11228_v32  ;;  %vm13378_vm6 = vcmp.eq.s32.totalorder %v13301_v51, %v11208_v56 }
 0x3be   : > { %v4992_v44 = vadd.f32 %v4991_v20, %v4597_v49  ;;  %v3156_v17 = vpop.f32.mrf.mxu0  ;;  %v5034_v53 = vadd.f32 %v5033_v63, %v4599_v11  ;;  %v3429_v30 = vpop.f32.mrf.mxu1 }
 0x3bf   : > { %v4612_v5 = vsel %vm13374_vm5, %v3156_v17, 0.0  ;;  %v4614_v37 = vsel %vm13375_vm0, %v3429_v30, 0.0  ;;  %vm13379_vm5 = vcmp.eq.s32.totalorder %v13301_v51, %v11211_v10  ;;  %vm13380_vm0 = vcmp.eq.s32.totalorder %v13301_v51, %v11214_v39 }
 0x3c0   : > { %v4972_v7 = vadd.f32 %v4971_v43, %v4612_v5  ;;  %v3158_v1 = vpop.f32.mrf.mxu0  ;;  %v5014_v61 = vadd.f32 %v5013_v9, %v4614_v37  ;;  %v3431_v31 = vpop.f32.mrf.mxu1 }
 0x3c1   : > { %v4613_v34 = vsel %vm13376_vm2, %v3158_v1, 0.0  ;;  %v4615_v59 = vsel %vm13377_vm11, %v3431_v31, 0.0  ;;  %vm13381_vm2 = vcmp.eq.s32.totalorder %v13301_v51, %v11228_v32  ;;  %vm13382_vm11 = vcmp.eq.s32.totalorder %v13306_v48, %v11208_v56 }
 0x3c2   : > { %v4993_v33 = vadd.f32 %v4992_v44, %v4613_v34  ;;  %v3162_v58 = vpop.f32.mrf.mxu0  ;;  %v5035_v36 = vadd.f32 %v5034_v53, %v4615_v59  ;;  %v3435_v60 = vpop.f32.mrf.mxu1 }
 0x3c3   : > { %v4628_v41 = vsel %vm13378_vm6, %v3162_v58, 0.0  ;;  %v4630_v12 = vsel %vm13379_vm5, %v3435_v60, 0.0  ;;  %vm13383_vm6 = vcmp.eq.s32.totalorder %v13306_v48, %v11211_v10  ;;  %vm13384_vm5 = vcmp.eq.s32.totalorder %v13306_v48, %v11214_v39 }
 0x3c4   : > { %v4973_v28 = vadd.f32 %v4972_v7, %v4628_v41  ;;  %v3164_v15 = vpop.f32.mrf.mxu0  ;;  %v5015_v52 = vadd.f32 %v5014_v61, %v4630_v12  ;;  %v3437_v18 = vpop.f32.mrf.mxu1  ;;  %v4387_v41 = vrot.slane %v11830_v46, 4 }
 0x3c5   : > { %v4629_v19 = vsel %vm13380_vm0, %v3164_v15, 0.0  ;;  %v4631_v4 = vsel %vm13381_vm2, %v3437_v18, 0.0  ;;  %vm13385_vm0 = vcmp.eq.s32.totalorder %v13306_v48, %v11228_v32  ;;  %vm13386_vm2 = vcmp.eq.s32.totalorder %v13311_v62, %v11208_v56 }
 0x3c6   : > { %v4994_v54 = vadd.f32 %v4993_v33, %v4629_v19  ;;  %v3166_v20 = vpop.f32.mrf.mxu0  ;;  %v5036_v55 = vadd.f32 %v5035_v36, %v4631_v4  ;;  %v3439_v63 = vpop.f32.mrf.mxu1  ;;  %v4429_v15 = vrot.slane %v11835_v45, 4 }
 0x3c7   : > { %v4644_v0 = vsel %vm13382_vm11, %v3166_v20, 0.0  ;;  %v4646_v50 = vsel %vm13383_vm6, %v3439_v63, 0.0  ;;  %vm13387_vm11 = vcmp.eq.s32.totalorder %v13311_v62, %v11211_v10  ;;  %vm13388_vm6 = vcmp.eq.s32.totalorder %v13311_v62, %v11214_v39 }
 0x3c8   : > { %v4974_v8 = vadd.f32 %v4973_v28, %v4644_v0  ;;  %v3168_v43 = vpop.f32.mrf.mxu0  ;;  %v5016_v14 = vadd.f32 %v5015_v52, %v4646_v50  ;;  %v3441_v9 = vpop.f32.mrf.mxu1  ;;  %v4450_v0 = vrot.slane %v11845_v42, 4 }
 0x3c9   : > { %v4645_v40 = vsel %vm13384_vm5, %v3168_v43, 0.0  ;;  %v4647_v35 = vsel %vm13385_vm0, %v3441_v9, 0.0  ;;  %vm13389_vm5 = vcmp.eq.s32.totalorder %v13311_v62, %v11228_v32  ;;  %vm13390_vm0 = vcmp.eq.s32.totalorder %v13316_v13, %v11208_v56 }
 0x3ca   : > { %v4995_v49 = vadd.f32 %v4994_v54, %v4645_v40  ;;  %v3172_v44 = vpop.f32.mrf.mxu0  ;;  %v5037_v11 = vadd.f32 %v5036_v55, %v4647_v35  ;;  %v3445_v53 = vpop.f32.mrf.mxu1  ;;  %v4408_v54 = vrot.slane %v11840_v38, 4  ;;  %v4388_v43 = vadd.f32 %v4387_v41, %v11830_v46 }
 0x3cb   : > { %v4660_v17 = vsel %vm13386_vm2, %v3172_v44, 0.0  ;;  %v4662_v30 = vsel %vm13387_vm11, %v3445_v53, 0.0  ;;  %vm13391_vm2 = vcmp.eq.s32.totalorder %v13316_v13, %v11211_v10  ;;  %vm13392_vm11 = vcmp.eq.s32.totalorder %v13316_v13, %v11214_v39 }
 0x3cc   : > { %v4975_v5 = vadd.f32 %v4974_v8, %v4660_v17  ;;  %v3174_v7 = vpop.f32.mrf.mxu0  ;;  %v5017_v37 = vadd.f32 %v5016_v14, %v4662_v30  ;;  %v3447_v61 = vpop.f32.mrf.mxu1  ;;  %v4409_v17 = vadd.f32 %v4408_v54, %v11840_v38  ;;  %v4451_v30 = vadd.f32 %v4450_v0, %v11845_v42 }
 0x3cd   : > { %v4661_v1 = vsel %vm13388_vm6, %v3174_v7, 0.0  ;;  %v4663_v31 = vsel %vm13389_vm5, %v3447_v61, 0.0  ;;  %vm13393_vm6 = vcmp.eq.s32.totalorder %v13316_v13, %v11228_v32  ;;  %vm13394_vm5 = vcmp.eq.s32.totalorder %v13322_v57, %v11208_v56 }
 0x3ce   : > { %v4996_v34 = vadd.f32 %v4995_v49, %v4661_v1  ;;  %v3176_v33 = vpop.f32.mrf.mxu0  ;;  %v5038_v59 = vadd.f32 %v5037_v11, %v4663_v31  ;;  %v3449_v36 = vpop.f32.mrf.mxu1  ;;  %v4430_v49 = vadd.f32 %v4429_v15, %v11835_v45  ;;  %v4389_v1 = vrot.slane %v4388_v43, 2 }
 0x3cf   : > { %v4676_v58 = vsel %vm13390_vm0, %v3176_v33, 0.0  ;;  %v4678_v28 = vsel %vm13391_vm2, %v3449_v36, 0.0  ;;  %vm13395_vm0 = vcmp.eq.s32.totalorder %v13322_v57, %v11211_v10  ;;  %vm13396_vm2 = vcmp.eq.s32.totalorder %v13322_v57, %v11214_v39 }
 0x3d0   : > { %v4976_v60 = vadd.f32 %v4975_v5, %v4676_v58  ;;  %v3178_v12 = vpop.f32.mrf.mxu0  ;;  %v5018_v52 = vadd.f32 %v5017_v37, %v4678_v28  ;;  %v3451_v18 = vpop.f32.mrf.mxu1  ;;  %v4431_v31 = vrot.slane %v4430_v49, 2  ;;  %v4410_v58 = vrot.slane %v4409_v17, 2 }
 0x3d1   : > { %v4677_v19 = vsel %vm13392_vm11, %v3178_v12, 0.0  ;;  %v4679_v20 = vsel %vm13393_vm6, %v3451_v18, 0.0  ;;  %vm13397_vm11 = vcmp.eq.s32.totalorder %v13322_v57, %v11228_v32  ;;  %vm13398_vm6 = vcmp.eq.s32.totalorder %v13328_v16, %v11208_v56 }
 0x3d2   : > { %v4997_v4 = vadd.f32 %v4996_v34, %v4677_v19  ;;  %v3182_v55 = vpop.f32.mrf.mxu0  ;;  %v5039_v63 = vadd.f32 %v5038_v59, %v4679_v20  ;;  %v3455_v50 = vpop.f32.mrf.mxu1  ;;  %v4452_v12 = vrot.slane %v4451_v30, 2  ;;  %v4390_v18 = vadd.f32 %v4389_v1, %v4388_v43 }
 0x3d3   : > { %v4692_v8 = vsel %vm13394_vm5, %v3182_v55, 0.0  ;;  %v4694_v40 = vsel %vm13395_vm0, %v3455_v50, 0.0  ;;  %vm13399_vm5 = vcmp.eq.s32.totalorder %v13328_v16, %v11211_v10  ;;  %vm13400_vm0 = vcmp.eq.s32.totalorder %v13328_v16, %v11214_v39 }
 0x3d4   : > { %v4977_v14 = vadd.f32 %v4976_v60, %v4692_v8  ;;  %v3184_v9 = vpop.f32.mrf.mxu0  ;;  %v5019_v35 = vadd.f32 %v5018_v52, %v4694_v40  ;;  %v3457_v11 = vpop.f32.mrf.mxu1  ;;  %v4432_v55 = vadd.f32 %v4431_v31, %v4430_v49  ;;  %v4411_v50 = vadd.f32 %v4410_v58, %v4409_v17 }
 0x3d5   : > { %v4693_v44 = vsel %vm13396_vm2, %v3184_v9, 0.0  ;;  %v4695_v46 = vsel %vm13397_vm11, %v3457_v11, 0.0  ;;  %vm13401_vm2 = vcmp.eq.s32.totalorder %v13328_v16, %v11228_v32  ;;  %vm13402_vm11 = vcmask 1040384  }
 0x3d6   : > { %v4998_v53 = vadd.f32 %v4997_v4, %v4693_v44  ;;  %v3186_v5 = vpop.f32.mrf.mxu0  ;;  %v5040_v7 = vadd.f32 %v5039_v63, %v4695_v46  ;;  %v3459_v37 = vpop.f32.mrf.mxu1  ;;  %v4391_v46 = vrot.slane %v4390_v18, 1 }
 0x3d7   : > { %v4708_v45 = vsel %vm13398_vm6, %v3186_v5, 0.0  ;;  %v4710_v38 = vsel %vm13399_vm5, %v3459_v37, 0.0  ;;  %vm13403_vm6 = vmmov %vm13402_vm11 }
 0x3d8   : > { %v4978_v61 = vadd.f32 %v4977_v14, %v4708_v45  ;;  %v3188_v34 = vpop.f32.mrf.mxu0  ;;  %v5020_v33 = vadd.f32 %v5019_v35, %v4710_v38  ;;  %v3461_v42 = vpop.f32.mrf.mxu1  ;;  %v4453_v35 = vadd.f32 %v4452_v12, %v4451_v30  ;;  %v4433_v45 = vrot.slane %v4432_v55, 1  ;;  %vm13405_vm5 = vmmov %vm13403_vm6 }
 0x3d9   : > { %v4709_v59 = vsel %vm13400_vm0, %v3188_v34, 0.0  ;;  %v4711_v60 = vsel %vm13401_vm2, %v3461_v42, 0.0  ;;  %v4392_v30 = vadd.f32 %v4391_v46, %v4390_v18  ;;  %vm13407_vm0 = vmmov %vm13405_vm5  ;;  %vm13409_vm2 = vcmp.eq.s32.totalorder %v6946_v27, %v11208_v56 }
 0x3da   : > { %v4979_v36 = vrot.slane %v4978_v61, 4  ;;  %v4999_v41 = vadd.f32 %v4998_v53, %v4709_v59  ;;  %v12047_v28 = vpop.f32.mrf.mxu0  ;;  %v5021_v15 = vrot.slane %v5020_v33, 4  ;;  %v5041_v52 = vadd.f32 %v5040_v7, %v4711_v60  ;;  %v12049_v19 = vpop.f32.mrf.mxu1 }
 0x3db   : > { %v4454_v17 = vrot.slane %v4453_v35, 1  ;;  %v4434_v60 = vadd.f32 %v4433_v45, %v4432_v55 }
 0x3dc   : > { %v4980_v54 = vadd.f32 %v4979_v36, %v4978_v61  ;;  %v5000_v4 = vrot.slane %v4999_v41, 4  ;;  %v12051_v20 = vpop.f32.mrf.mxu0  ;;  %v5022_v0 = vadd.f32 %v5021_v15, %v5020_v33  ;;  %v5042_v63 = vrot.slane %v5041_v52, 4  ;;  %v12053_v8 = vpop.f32.mrf.mxu1 }
 0x3dd   : > { %v4412_v61 = vrot.slane %v4411_v50, 1 }
 0x3de   : > { %v4981_v14 = vrot.slane %v4980_v54, 2  ;;  %v5001_v40 = vadd.f32 %v5000_v4, %v4999_v41  ;;  %v3196_v9 = vpop.f32.mrf.mxu0  ;;  %v5023_v44 = vrot.slane %v5022_v0, 2  ;;  %v5043_v11 = vadd.f32 %v5042_v63, %v5041_v52  ;;  %v3469_v53 = vpop.f32.mrf.mxu1 }
 0x3e0   : > { %v4982_v5 = vadd.f32 %v4981_v14, %v4980_v54  ;;  %v5002_v43 = vrot.slane %v5001_v40, 2  ;;  %v3198_v7 = vpop.f32.mrf.mxu0  ;;  %v5024_v37 = vadd.f32 %v5023_v44, %v5022_v0  ;;  %v5044_v1 = vrot.slane %v5043_v11, 2  ;;  %v3471_v49 = vpop.f32.mrf.mxu1 }
 0x3e1   : > { %v4413_v54 = vadd.f32 %v4412_v61, %v4411_v50  ;;  %v4455_v14 = vadd.f32 %v4454_v17, %v4453_v35 }
 0x3e2   : > { %v4983_v38 = vrot.slane %v4982_v5, 1  ;;  %v5003_v34 = vadd.f32 %v5002_v43, %v5001_v40  ;;  %v3202_v31 = vpop.f32.mrf.mxu0  ;;  %v5025_v33 = vrot.slane %v5024_v37, 1  ;;  %v5045_v59 = vadd.f32 %v5044_v1, %v5043_v11  ;;  %v3475_v42 = vpop.f32.mrf.mxu1 }
 0x3e4   : > { %v4984_v58 = vadd.f32 %v4983_v38, %v4982_v5  ;;  %v5004_v36 = vrot.slane %v5003_v34, 1  ;;  %v3204_v41 = vpop.f32.mrf.mxu0  ;;  %v5026_v12 = vadd.f32 %v5025_v33, %v5024_v37  ;;  %v5046_v15 = vrot.slane %v5045_v59, 1  ;;  %v3477_v52 = vpop.f32.mrf.mxu1 }
 0x3e6   : > { %v12056_v4 = vsel %vm13402_vm11, %v4392_v30, %v4984_v58  ;;  %v5005_v0 = vadd.f32 %v5004_v36, %v5003_v34  ;;  %v3206_v63 = vpop.f32.mrf.mxu0  ;;  %v12059_v40 = vsel %vm13403_vm6, %v4434_v60, %v5026_v12  ;;  %v5047_v44 = vadd.f32 %v5046_v15, %v5045_v59  ;;  %v3479_v11 = vpop.f32.mrf.mxu1 }
 0x3e7   : > { %13404 = vst [vmem:[#allocation19_spill] sm:$0xff] %v12059_v40  ;;  %v5076_v60 = vsel %vm13409_vm2, %v3196_v9, 0.0  ;;  %vm13410_vm11 = vcmp.eq.s32.totalorder %v6946_v27, %v11211_v10  ;;  %vm13411_vm6 = vcmp.eq.s32.totalorder %v6740_v2, %v11208_v56  ;;  %vm13414_vm2 = vcmp.eq.s32.totalorder %v6920_v25, %v11208_v56 }
 0x3e8   : > { %v12062_v18 = vsel %vm13405_vm5, %v4413_v54, %v5005_v0  ;;  %v3208_v46 = vpop.f32.mrf.mxu0  ;;  %v12065_v55 = vsel %vm13407_vm0, %v4455_v14, %v5047_v44  ;;  %v3481_v5 = vpop.f32.mrf.mxu1  ;;  %v5078_v15 = vsel %vm13410_vm11, %v3469_v53, 0.0  ;;  %v5060_v0 = vsel %vm13411_vm6, %v12047_v28, 0.0 }
 0x3e9   : > { %13406 = vst [vmem:[#allocation39_spill] sm:$0xff] %v12062_v18  ;;  %13408 = vst [vmem:[#allocation42_spill] sm:$0xff] %v12065_v55  ;;  %vm13412_vm5 = vcmp.eq.s32.totalorder %v6740_v2, %v11211_v10  ;;  %vm13413_vm0 = vcmp.eq.s32.totalorder %v6946_v27, %v11214_v39  ;;  %v5092_v53 = vsel %vm13414_vm2, %v3202_v31, 0.0  ;;  %vm13415_vm11 = vcmp.eq.s32.totalorder %v6740_v2, %v11214_v39 }
 0x3ea   : > { %v3212_v50 = vpop.f32.mrf.mxu0  ;;  %v3485_v43 = vpop.f32.mrf.mxu1  ;;  %v5062_v14 = vsel %vm13412_vm5, %v12049_v19, 0.0  ;;  %v5077_v9 = vsel %vm13413_vm0, %v3198_v7, 0.0  ;;  %v5061_v28 = vsel %vm13415_vm11, %v12051_v20, 0.0  ;;  %v5556_v55 = vadd.f32 %v5076_v60, %v5060_v0 }
 0x3eb   : > { %vm13416_vm6 = vcmp.eq.s32.totalorder %v6946_v27, %v11228_v32  ;;  %vm13417_vm5 = vcmp.eq.s32.totalorder %v6920_v25, %v11211_v10  ;;  %vm13418_vm0 = vcmp.eq.s32.totalorder %v6740_v2, %v11228_v32  ;;  %v5598_v40 = vadd.f32 %v5078_v15, %v5062_v14 }
 0x3ec   : > { %v3214_v45 = vpop.f32.mrf.mxu0  ;;  %v3487_v37 = vpop.f32.mrf.mxu1  ;;  %v5079_v19 = vsel %vm13416_vm6, %v3471_v49, 0.0  ;;  %v5094_v7 = vsel %vm13417_vm5, %v3475_v42, 0.0  ;;  %v5063_v31 = vsel %vm13418_vm0, %v12053_v8, 0.0  ;;  %vm13419_vm2 = vcmp.eq.s32.totalorder %v6920_v25, %v11214_v39 }
 0x3ed   : > { %v5093_v20 = vsel %vm13419_vm2, %v3204_v41, 0.0  ;;  %vm13420_vm11 = vcmp.eq.s32.totalorder %v6923_v26, %v11208_v56  ;;  %v5577_v60 = vadd.f32 %v5077_v9, %v5061_v28  ;;  %v5557_v42 = vadd.f32 %v5556_v55, %v5092_v53 }
 0x3ee   : > { %v3216_v1 = vpop.f32.mrf.mxu0  ;;  %v3489_v61 = vpop.f32.mrf.mxu1  ;;  %v5108_v27 = vsel %vm13420_vm11, %v3206_v63, 0.0  ;;  %vm13421_vm6 = vcmp.eq.s32.totalorder %v6920_v25, %v11228_v32  ;;  %vm13422_vm5 = vcmp.eq.s32.totalorder %v6923_v26, %v11211_v10  ;;  %v5619_v15 = vadd.f32 %v5079_v19, %v5063_v31 }
 0x3ef   : > { %v5095_v0 = vsel %vm13421_vm6, %v3477_v52, 0.0  ;;  %v5110_v2 = vsel %vm13422_vm5, %v3479_v11, 0.0  ;;  %v5599_v14 = vadd.f32 %v5598_v40, %v5094_v7  ;;  %v5109_v41 = vsel %vm3669_vm9, %v3208_v46, 0.0 }
 0x3f0   : > { %v3218_v35 = vpop.f32.mrf.mxu0  ;;  %v3491_v38 = vpop.f32.mrf.mxu1  ;;  %v5124_v63 = vsel %vm3684_vm13, %v3212_v50, 0.0  ;;  %v5578_v9 = vadd.f32 %v5577_v60, %v5093_v20  ;;  %v5558_v53 = vadd.f32 %v5557_v42, %v5108_v27  ;;  %v5111_v25 = vsel %vm3671_vm1, %v3481_v5, 0.0 }
 0x3f1   : > { %v5126_v52 = vsel %vm3686_vm3, %v3485_v43, 0.0  ;;  %v5620_v11 = vadd.f32 %v5619_v15, %v5095_v0  ;;  %v5600_v28 = vadd.f32 %v5599_v14, %v5110_v2  ;;  %v5125_v46 = vsel %vm3685_vm12, %v3214_v45, 0.0 }
 0x3f2   : > { %v3222_v34 = vpop.f32.mrf.mxu0  ;;  %v3495_v17 = vpop.f32.mrf.mxu1  ;;  %v5140_v50 = vsel %vm3700_vm8, %v3216_v1, 0.0  ;;  %v5579_v7 = vadd.f32 %v5578_v9, %v5109_v41  ;;  %v5559_v31 = vadd.f32 %v5558_v53, %v5124_v63  ;;  %v5127_v26 = vsel %vm3687_vm4, %v3487_v37, 0.0 }
 0x3f3   : > { %v5142_v5 = vsel %vm3702_vm15, %v3489_v61, 0.0  ;;  %v5621_v20 = vadd.f32 %v5620_v11, %v5111_v25  ;;  %v5601_v27 = vadd.f32 %v5600_v28, %v5126_v52  ;;  %v5141_v45 = vsel %vm3701_vm14, %v3218_v35, 0.0 }
 0x3f4   : > { %v3224_v33 = vpop.f32.mrf.mxu0  ;;  %v12067_v59 = vpop.f32.mrf.mxu1  ;;  %vm13423_vm13 = vcmp.eq.s32.totalorder %v6868_v21, %v11208_v56  ;;  %v5580_v42 = vadd.f32 %v5579_v7, %v5125_v46  ;;  %v5560_v0 = vadd.f32 %v5559_v31, %v5140_v50  ;;  %v5143_v23 = vsel %vm3703_vm7, %v3491_v38, 0.0 }
 0x3f5   : > { %v5156_v1 = vsel %vm13423_vm13, %v3222_v34, 0.0  ;;  %vm13424_vm15 = vcmp.eq.s32.totalorder %v6868_v21, %v11211_v10  ;;  %v5622_v2 = vadd.f32 %v5621_v20, %v5127_v26  ;;  %v5602_v15 = vadd.f32 %v5601_v27, %v5142_v5 }
 0x3f6   : > { %v3226_v30 = vpop.f32.mrf.mxu0  ;;  %v12069_v58 = vpop.f32.mrf.mxu1  ;;  %v5158_v37 = vsel %vm13424_vm15, %v3495_v17, 0.0  ;;  %vm13425_vm14 = vcmp.eq.s32.totalorder %v6868_v21, %v11214_v39  ;;  %vm13426_vm3 = vcmp.eq.s32.totalorder %v6871_v22, %v11208_v56  ;;  %v5581_v41 = vadd.f32 %v5580_v42, %v5141_v45 }
 0x3f7   : > { %v5157_v35 = vsel %vm13425_vm14, %v3224_v33, 0.0  ;;  %v5172_v34 = vsel %vm13426_vm3, %v3226_v30, 0.0  ;;  %v5561_v63 = vadd.f32 %v5560_v0, %v5156_v1  ;;  %v5159_v24 = vsel %vm3719_vm10, %v12067_v59, 0.0 }
 0x3f8   : > { %v12071_v36 = vpop.f32.mrf.mxu0  ;;  %v12076_v12 = vpop.f32.mrf.mxu1  ;;  %vm13427_vm12 = vcmp.eq.s32.totalorder %v6871_v22, %v11211_v10  ;;  %v5623_v9 = vadd.f32 %v5622_v2, %v5143_v23  ;;  %v5603_v33 = vadd.f32 %v5602_v15, %v5158_v37  ;;  %vm13428_vm7 = vcmp.eq.s32.totalorder %v6871_v22, %v11214_v39 }
 0x3f9   : > { %v5174_v38 = vsel %vm13427_vm12, %v12069_v58, 0.0  ;;  %v5173_v30 = vsel %vm13428_vm7, %v12071_v36, 0.0  ;;  %vm13429_vm9 = vcmp.eq.s32.totalorder %v13290_v47, %v11208_v56  ;;  %v5582_v59 = vadd.f32 %v5581_v41, %v5157_v35 }
 0x3fa   : > { %v12081_v54 = vpop.f32.mrf.mxu0  ;;  %v12097_v44 = vpop.f32.mrf.mxu1  ;;  %v5562_v25 = vadd.f32 %v5561_v63, %v5172_v34  ;;  %vm13430_vm10 = vcmp.eq.s32.totalorder %v6871_v22, %v11228_v32  ;;  %vm13431_vm1 = vcmp.eq.s32.totalorder %v13290_v47, %v11211_v10  ;;  %v5624_v36 = vadd.f32 %v5623_v9, %v5159_v24 }
 0x3fb   : > { %v5188_v53 = vsel %vm13429_vm9, %v12081_v54, 0.0  ;;  %v5175_v58 = vsel %vm13430_vm10, %v12076_v12, 0.0  ;;  %v5190_v52 = vsel %vm13431_vm1, %v12097_v44, 0.0  ;;  %v5604_v28 = vadd.f32 %v5603_v33, %v5174_v38 }
 0x3fc   : > { %v12109_v18 = vpop.f32.mrf.mxu0  ;;  %v12121_v49 = vpop.f32.mrf.mxu1  ;;  %vm13432_vm4 = vcmp.eq.s32.totalorder %v13290_v47, %v11214_v39  ;;  %vm13433_vm8 = vcmp.eq.s32.totalorder %v13295_v29, %v11208_v56  ;;  %v5583_v22 = vadd.f32 %v5582_v59, %v5173_v30  ;;  %v5563_v12 = vadd.f32 %v5562_v25, %v5188_v53 }
 0x3fd   : > { %v5189_v54 = vsel %vm13432_vm4, %v12109_v18, 0.0  ;;  %vm13434_vm0 = vcmp.eq.s32.totalorder %v13290_v47, %v11228_v32  ;;  %vm13435_vm2 = vcmp.eq.s32.totalorder %v13295_v29, %v11211_v10  ;;  %v5625_v26 = vadd.f32 %v5624_v36, %v5175_v58 }
 0x3fe   : > { %v3236_v8 = vpop.f32.mrf.mxu0  ;;  %v3509_v55 = vpop.f32.mrf.mxu1  ;;  %v5191_v44 = vsel %vm13434_vm0, %v12121_v49, 0.0  ;;  %v5605_v5 = vadd.f32 %v5604_v28, %v5190_v52  ;;  %vm13436_vm11 = vcmp.eq.s32.totalorder %v13295_v29, %v11214_v39  ;;  %vm13437_vm6 = vcmp.eq.s32.totalorder %v13301_v51, %v11208_v56 }
 0x3ff   : > { %v5204_v46 = vsel %vm13433_vm8, %v3236_v8, 0.0  ;;  %v5206_v7 = vsel %vm13435_vm2, %v3509_v55, 0.0  ;;  %v5584_v27 = vadd.f32 %v5583_v22, %v5189_v54  ;;  %vm13438_vm5 = vcmp.eq.s32.totalorder %v13295_v29, %v11228_v32 }
 0x400   : > { %v3238_v40 = vpop.f32.mrf.mxu0  ;;  %v3511_v19 = vpop.f32.mrf.mxu1  ;;  %v5564_v45 = vadd.f32 %v5563_v12, %v5204_v46  ;;  %vm13439_vm13 = vcmp.eq.s32.totalorder %v13301_v51, %v11211_v10  ;;  %v5626_v1 = vadd.f32 %v5625_v26, %v5191_v44  ;;  %v5606_v42 = vadd.f32 %v5605_v5, %v5206_v7 }
 0x401   : > { %v5205_v18 = vsel %vm13436_vm11, %v3238_v40, 0.0  ;;  %v5207_v47 = vsel %vm13438_vm5, %v3511_v19, 0.0  ;;  %vm13440_vm15 = vcmp.eq.s32.totalorder %v13301_v51, %v11214_v39  ;;  %vm13441_vm14 = vcmp.eq.s32.totalorder %v13306_v48, %v11208_v56 }
 0x402   : > { %v3242_v43 = vpop.f32.mrf.mxu0  ;;  %v3515_v60 = vpop.f32.mrf.mxu1  ;;  %v5585_v23 = vadd.f32 %v5584_v27, %v5205_v18  ;;  %vm13442_vm3 = vcmp.eq.s32.totalorder %v13301_v51, %v11228_v32  ;;  %vm13443_vm12 = vcmp.eq.s32.totalorder %v13306_v48, %v11211_v10  ;;  %v5627_v2 = vadd.f32 %v5626_v1, %v5207_v47 }
 0x403   : > { %v5220_v8 = vsel %vm13437_vm6, %v3242_v43, 0.0  ;;  %v5222_v49 = vsel %vm13439_vm13, %v3515_v60, 0.0  ;;  %vm13444_vm7 = vcmp.eq.s32.totalorder %v13306_v48, %v11214_v39  ;;  %vm13445_vm9 = vcmp.eq.s32.totalorder %v13311_v62, %v11208_v56 }
 0x404   : > { %v3244_v61 = vpop.f32.mrf.mxu0  ;;  %v3517_v14 = vpop.f32.mrf.mxu1  ;;  %v5565_v37 = vadd.f32 %v5564_v45, %v5220_v8  ;;  %v5607_v15 = vadd.f32 %v5606_v42, %v5222_v49  ;;  %vm13446_vm10 = vcmp.eq.s32.totalorder %v13306_v48, %v11228_v32  ;;  %vm13447_vm1 = vcmp.eq.s32.totalorder %v13311_v62, %v11211_v10 }
 0x405   : > { %v5221_v40 = vsel %vm13440_vm15, %v3244_v61, 0.0  ;;  %v5223_v29 = vsel %vm13442_vm3, %v3517_v14, 0.0  ;;  %vm13448_vm4 = vcmp.eq.s32.totalorder %v13311_v62, %v11214_v39  ;;  %vm13449_vm8 = vcmp.eq.s32.totalorder %v13316_v13, %v11208_v56 }
 0x406   : > { %v3246_v17 = vpop.f32.mrf.mxu0  ;;  %v3519_v21 = vpop.f32.mrf.mxu1  ;;  %v5586_v41 = vadd.f32 %v5585_v23, %v5221_v40  ;;  %v5628_v38 = vadd.f32 %v5627_v2, %v5223_v29  ;;  %vm13450_vm0 = vcmp.eq.s32.totalorder %v13311_v62, %v11228_v32  ;;  %vm13451_vm2 = vcmp.eq.s32.totalorder %v13316_v13, %v11211_v10 }
 0x407   : > { %v5236_v43 = vsel %vm13441_vm14, %v3246_v17, 0.0  ;;  %v5238_v19 = vsel %vm13443_vm12, %v3519_v21, 0.0  ;;  %vm13452_vm11 = vcmp.eq.s32.totalorder %v13316_v13, %v11214_v39  ;;  %vm13453_vm6 = vcmp.eq.s32.totalorder %v13322_v57, %v11208_v56 }
 0x408   : > { %v3248_v11 = vpop.f32.mrf.mxu0  ;;  %v3521_v50 = vpop.f32.mrf.mxu1  ;;  %v5566_v63 = vadd.f32 %v5565_v37, %v5236_v43  ;;  %v5608_v17 = vadd.f32 %v5607_v15, %v5238_v19  ;;  %vm13454_vm5 = vcmp.eq.s32.totalorder %v13316_v13, %v11228_v32  ;;  %vm13455_vm13 = vcmp.eq.s32.totalorder %v13322_v57, %v11211_v10 }
 0x409   : > { %v5237_v61 = vsel %vm13444_vm7, %v3248_v11, 0.0  ;;  %v5239_v51 = vsel %vm13446_vm10, %v3521_v50, 0.0  ;;  %vm13456_vm15 = vcmp.eq.s32.totalorder %v13322_v57, %v11214_v39  ;;  %vm13457_vm14 = vcmp.eq.s32.totalorder %v13322_v57, %v11228_v32 }
 0x40a   : > { %v3252_v31 = vpop.f32.mrf.mxu0  ;;  %v3525_v20 = vpop.f32.mrf.mxu1  ;;  %v5587_v53 = vadd.f32 %v5586_v41, %v5237_v61  ;;  %v5629_v58 = vadd.f32 %v5628_v38, %v5239_v51  ;;  %vm13458_vm3 = vcmp.eq.s32.totalorder %v13328_v16, %v11208_v56  ;;  %vm13459_vm12 = vcmp.eq.s32.totalorder %v13328_v16, %v11211_v10 }
 0x40b   : > { %v5252_v35 = vsel %vm13445_vm9, %v3252_v31, 0.0  ;;  %v5254_v14 = vsel %vm13447_vm1, %v3525_v20, 0.0  ;;  %vm13460_vm7 = vcmp.eq.s32.totalorder %v13328_v16, %v11214_v39  ;;  %vm13461_vm9 = vcmp.eq.s32.totalorder %v13328_v16, %v11228_v32  ;;  %v13463_v16 = vld [vmem:[#allocation17_spill] sm:$0xff] }
 0x40c   : > { %v3254_v55 = vpop.f32.mrf.mxu0  ;;  %v3527_v0 = vpop.f32.mrf.mxu1  ;;  %v5567_v21 = vadd.f32 %v5566_v63, %v5252_v35  ;;  %v5609_v52 = vadd.f32 %v5608_v17, %v5254_v14  ;;  %v13462_v63 = vld [vmem:[#allocation16_spill] sm:$0xff]  ;;  %v5841_v38 = vrot.slane %v13332_v3, %v13463_v16  ;;  %vm13466_vm10 = vcmask 1041408  }
 0x40d   : > { %v5253_v9 = vsel %vm13448_vm4, %v3254_v55, 0.0  ;;  %v5255_v48 = vsel %vm13450_vm0, %v3527_v0, 0.0  ;;  %v5833_v51 = vrot.slane %v13332_v3, %v13462_v63  ;;  %vm13468_vm1 = vmmov %vm13466_vm10 }
 0x40e   : > { %v3256_v60 = vpop.f32.mrf.mxu0  ;;  %v3529_v34 = vpop.f32.mrf.mxu1  ;;  %v5588_v54 = vadd.f32 %v5587_v53, %v5253_v9  ;;  %v5630_v12 = vadd.f32 %v5629_v58, %v5255_v48  ;;  %v6684_v9 = vld [vmem:[%s8679_s22 + $0x8] sm:$0xff]  ;;  %v13464_v53 = vld [vmem:[#allocation14_spill] sm:$0xff]  ;;  %vm13470_vm4 = vmmov %vm13468_vm1 }
 0x40f   : > { %v5268_v33 = vsel %vm13449_vm8, %v3256_v60, 0.0  ;;  %v5270_v59 = vsel %vm13451_vm2, %v3529_v34, 0.0  ;;  %vm13472_vm8 = vmmov %vm13468_vm1 }
 0x410   : > { %v3258_v24 = vpop.f32.mrf.mxu0  ;;  %v3531_v30 = vpop.f32.mrf.mxu1  ;;  %v5568_v46 = vadd.f32 %v5567_v21, %v5268_v33  ;;  %v5610_v44 = vadd.f32 %v5609_v52, %v5270_v59  ;;  %v5727_v33 = vrot.slane %v6684_v9, %v13462_v63  ;;  %v5837_v21 = vrot.slane %v13332_v3, %v13464_v53  ;;  %v13465_v52 = vld [vmem:[#allocation15_spill] sm:$0xff] }
 0x411   : > { %v5269_v11 = vsel %vm13452_vm11, %v3258_v24, 0.0  ;;  %v5271_v62 = vsel %vm13454_vm5, %v3531_v30, 0.0 }
 0x412   : > { %v3262_v25 = vpop.f32.mrf.mxu0  ;;  %v3535_v28 = vpop.f32.mrf.mxu1  ;;  %v5589_v26 = vadd.f32 %v5588_v54, %v5269_v11  ;;  %v5631_v8 = vadd.f32 %v5630_v12, %v5271_v62  ;;  %v5845_v11 = vrot.slane %v13332_v3, %v13465_v52  ;;  %v5731_v54 = vrot.slane %v6684_v9, %v13464_v53 }
 0x413   : > { %v5284_v36 = vsel %vm13453_vm6, %v3262_v25, 0.0  ;;  %v5286_v50 = vsel %vm13455_vm13, %v3535_v28, 0.0  ;;  %v5735_v25 = vrot.slane %v6684_v9, %v13463_v16  ;;  %v5739_v12 = vrot.slane %v6684_v9, %v13465_v52 }
 0x414   : > { %v3264_v22 = vpop.f32.mrf.mxu0  ;;  %v3537_v31 = vpop.f32.mrf.mxu1  ;;  %v5569_v5 = vadd.f32 %v5568_v46, %v5284_v36  ;;  %v5611_v20 = vadd.f32 %v5610_v44, %v5286_v50  ;;  %v5874_v36 = vmul.f32 %v5833_v51, %v8730_v6  ;;  %v5876_v50 = vmul.f32 %v5841_v38, %v8730_v6 }
 0x415   : > { %v5285_v7 = vsel %vm13456_vm15, %v3264_v22, 0.0  ;;  %v5287_v18 = vsel %vm13457_vm14, %v3537_v31, 0.0  ;;  %v5875_v3 = vmul.f32 %v5837_v21, %v8730_v6 }
 0x416   : > { %v3266_v13 = vpop.f32.mrf.mxu0  ;;  %v3539_v45 = vpop.f32.mrf.mxu1  ;;  %v5590_v47 = vadd.f32 %v5589_v26, %v5285_v7  ;;  %v5632_v42 = vadd.f32 %v5631_v8, %v5287_v18  ;;  %v13467_v7 = vld [vmem:[#allocation19_spill] sm:$0xff]  ;;  %v5877_v8 = vmul.f32 %v5845_v11, %v8730_v6 }
 0x417   : > { %v5300_v27 = vsel %vm13458_vm3, %v3266_v13, 0.0  ;;  %v5302_v55 = vsel %vm13459_vm12, %v3539_v45, 0.0  ;;  %v13469_v18 = vld [vmem:[#allocation39_spill] sm:$0xff]  ;;  %v13471_v45 = vld [vmem:[#allocation42_spill] sm:$0xff] }
 0x418   : > { %v5570_v49 = vadd.f32 %v5569_v5, %v5300_v27  ;;  %v3268_v1 = vpop.f32.mrf.mxu0  ;;  %v5612_v40 = vadd.f32 %v5611_v20, %v5302_v55  ;;  %v3541_v43 = vpop.f32.mrf.mxu1 }
 0x419   : > { %v5301_v57 = vsel %vm13460_vm7, %v3268_v1, 0.0  ;;  %v5303_v56 = vsel %vm13461_vm9, %v3541_v43, 0.0 }
 0x41a   : > { %v5571_v0 = vrot.slane %v5570_v49, 4  ;;  %v5591_v23 = vadd.f32 %v5590_v47, %v5301_v57  ;;  %v5613_v37 = vrot.slane %v5612_v40, 4  ;;  %v5633_v29 = vadd.f32 %v5632_v42, %v5303_v56 }
 0x41c   : > { %v5572_v19 = vadd.f32 %v5571_v0, %v5570_v49  ;;  %v5592_v10 = vrot.slane %v5591_v23, 4  ;;  %v5614_v60 = vadd.f32 %v5613_v37, %v5612_v40  ;;  %v5634_v2 = vrot.slane %v5633_v29, 4 }
 0x41e   : > { %v5573_v15 = vrot.slane %v5572_v19, 2  ;;  %v5593_v61 = vadd.f32 %v5592_v10, %v5591_v23  ;;  %v5615_v35 = vrot.slane %v5614_v60, 2  ;;  %v5635_v34 = vadd.f32 %v5634_v2, %v5633_v29 }
 0x420   : > { %v5574_v39 = vadd.f32 %v5573_v15, %v5572_v19  ;;  %v5594_v41 = vrot.slane %v5593_v61, 2  ;;  %v5616_v14 = vadd.f32 %v5615_v35, %v5614_v60  ;;  %v5636_v24 = vrot.slane %v5635_v34, 2 }
 0x422   : > { %v5575_v32 = vrot.slane %v5574_v39, 1  ;;  %v5595_v17 = vadd.f32 %v5594_v41, %v5593_v61  ;;  %v5617_v30 = vrot.slane %v5616_v14, 1  ;;  %v5637_v48 = vadd.f32 %v5636_v24, %v5635_v34 }
 0x424   : > { %v5576_v59 = vadd.f32 %v5575_v32, %v5574_v39  ;;  %v5596_v58 = vrot.slane %v5595_v17, 1  ;;  %v5618_v28 = vadd.f32 %v5617_v30, %v5616_v14  ;;  %v5638_v46 = vrot.slane %v5637_v48, 1 }
 0x426   : > { %v5670_v62 = vsel %vm13466_vm10, %v12056_v4, %v5576_v59  ;;  %v5597_v22 = vadd.f32 %v5596_v58, %v5595_v17  ;;  %v5672_v31 = vsel %vm13468_vm1, %v13467_v7, %v5618_v28  ;;  %v5639_v26 = vadd.f32 %v5638_v46, %v5637_v48 }
 0x427   : > { %v5768_v44 = vmul.f32 %v5727_v33, %v5670_v62  ;;  %v5770_v5 = vmul.f32 %v5735_v25, %v5672_v31 }
 0x428   : > { %v5671_v13 = vsel %vm13470_vm4, %v13469_v18, %v5597_v22  ;;  %v5673_v47 = vsel %vm13472_vm8, %v13471_v45, %v5639_v26 }
 0x429   : > { %v5890_v20 = vadd.f32 %v5874_v36, %v5768_v44  ;;  %v5938_v4 = vmax.f32 %v5768_v44, 0.0  ;;  %v5769_v27 = vmul.f32 %v5731_v54, %v5671_v13  ;;  %v5892_v49 = vadd.f32 %v5876_v50, %v5770_v5 }
 0x42a   : > { %v5940_v55 = vmax.f32 %v5770_v5, 0.0  ;;  %v5771_v1 = vmul.f32 %v5739_v12, %v5673_v47 }
 0x42b   : > { %v5906_v42 = vmax.f32 %v5890_v20, 0.0  ;;  %v5891_v40 = vadd.f32 %v5875_v3, %v5769_v27  ;;  %v5939_v57 = vmax.f32 %v5769_v27, 0.0  ;;  %v5908_v43 = vmax.f32 %v5892_v49, 0.0 }
 0x42c   : > { %v5893_v0 = vadd.f32 %v5877_v8, %v5771_v1  ;;  %v5941_v23 = vmax.f32 %v5771_v1, 0.0  ;;  %v5954_v56 = vmin.f32 %v5938_v4, 1.0  ;;  %v5956_v29 = vmin.f32 %v5940_v55, 1.0 }
 0x42d   : > { %v5907_v6 = vmax.f32 %v5891_v40, 0.0  ;;  %v5955_v37 = vmin.f32 %v5939_v57, 1.0  ;;  %v5922_v60 = vmin.f32 %v5906_v42, 1.0  ;;  %v5924_v61 = vmin.f32 %v5908_v43, 1.0 }
 0x42e   : > { %v5909_v19 = vmax.f32 %v5893_v0, 0.0  ;;  %v5957_v10 = vmin.f32 %v5941_v23, 1.0 }
 0x42f   : > { %v5923_v2 = vmin.f32 %v5907_v6, 1.0  ;;  %v6020_v15 = vcombine.low %v5954_v56, %v5955_v37 }
 0x430   : > { %v5925_v35 = vmin.f32 %v5909_v19, 1.0  ;;  %v6021_v34 = vcombine.low %v5956_v29, %v5957_v10 }
 0x431   : > { %v5980_v39 = vcombine.low %v5922_v60, %v5923_v2  ;;  %6036 = vst [vmem:[%s9548_s28 + $0x30] sm:$0x77] %v6020_v15 }
 0x432   : > { %v5981_v41 = vcombine.low %v5924_v61, %v5925_v35  ;;  %6037 = vst [vmem:[%s9548_s28 + $0x38] sm:$0x77] %v6021_v34 }
 0x433   : > { %5996 = vst [vmem:[%s9652_s7 + $0x30] sm:$0x77] %v5980_v39 }
 0x434   : > { %5997 = vst [vmem:[%s9652_s7 + $0x38] sm:$0x77] %v5981_v41 }
 0x435 PF: > { %s17_s21 = sadd.s32 1, %s6691_s21  }
 0x436   : > { %p14_p4 = scmp.ge.s32.totalorder %s17_s21, 4  }
 0x438   :  { %16 = sbr.rel (!%p14_p4) target bundleno = 1 (0x1), region = 88 }

</bundles_post_ra>
